<compile_context>
chip_gen: v7x
topology: tpu7x:2x2x1
jax: 0.10.0
libtpu: 0.0.40
codegen_flags: <defaults>
</compile_context>

<pallas_src>
import jax
import jax.numpy as jnp
from jax.experimental import pallas as pl
from jax.experimental.pallas import tpu as pltpu

# ----------------------------- configuration ------------------------------
BS = 2
NUM_POINTS = 64
IMG_SIZE = 16
PATCH = 4
NUM_IMG = 3                       # rend_three_views
IMG_FEAT_DIM = 3
PROPRIO_DIM = 4
LANG_LEN = 8
LANG_DIM = 32
IM_CH = 32
ATTN_DIM = 64
ATTN_HEADS = 2
ATTN_DIM_HEAD = 32
DEPTH = 2
FEAT_DIM = 32
FF_MULT = 4
LRELU_SLOPE = 0.02

NPP = IMG_SIZE // PATCH                       # patches per side = 4
NPIX = PATCH * PATCH                          # pixels per patch = 16
T_IMG = NUM_IMG * NPP * NPP                   # 48 image tokens / sample
T_ALL = LANG_LEN + T_IMG                      # 56 tokens / sample
BT = BS * T_ALL                               # 112 tokens total
D_SEQ = 2 * IM_CH                             # input_dim_before_seq = 64
INNER = ATTN_HEADS * ATTN_DIM_HEAD            # 64
FF_DIM = FF_MULT * ATTN_DIM                   # 256
# renderer channels: corr(3) + img_feat(3) + depth(1) + pixel_loc(3)
C_IN = 3 + IMG_FEAT_DIM + 1 + 3               # 10
NTOK = BS * T_IMG                             # 96 image tokens total
D_PRE = NPIX * IM_CH                          # 512

# padded contraction dims (bias folded via a ones column, 16-row aligned)
K_PRE = 176                                   # 160 data + 1 ones + 15 zero
K_PROP = 16                                   # 4 + 1 + 11
K_LANG = 48                                   # 32 + 1 + 15

# --------------------------- packed-slab layout ----------------------------
# bf16 weight slabs grouped by output (lane) width; all row offsets are
# multiples of 16 so bf16 sublane-packed ref slices stay tile aligned.
W32_PATCH = 0                                           # (512, 32) patchify conv
W32_PROP = W32_PATCH + D_PRE                            # (16, 32)  proprio emb (+bias row)
W32_QKV = W32_PROP + K_PROP                             # per (layer, head): Wq|Wk|Wv, 64 rows each
W32_ROWS = W32_QKV + DEPTH * ATTN_HEADS * 3 * ATTN_DIM  # 1296

W64_LANG = 0                                            # (48, 64) lang emb (+bias row)
W64_BEF = W64_LANG + K_LANG                             # (64, 64) fc_bef_attn
W64_AFT = W64_BEF + D_SEQ                               # (64, 64) fc_aft_attn
W64_WO = W64_AFT + ATTN_DIM                             # per (layer, head): 32 rows
W64_WF2 = W64_WO + DEPTH * ATTN_HEADS * ATTN_DIM_HEAD   # per layer: 256 rows
W64_ROWS = W64_WF2 + DEPTH * FF_DIM                     # 816

W128_TRANS = 0                                          # (64, 128) W_aft @ W_up (lane padded)
W128_FEAT = W128_TRANS + ATTN_DIM                       # (192, 128) per-view feat head
W128_ROWS = W128_FEAT + NUM_IMG * D_SEQ                 # 256

# f32 bias / LayerNorm slabs: one parameter per row
P64_BEF = 0
P64_AFT = 1
P64_LAYER = 2                                           # per layer: ln1_g, ln1_b, bo, ln2_g, ln2_b, bf2
P64_ROWS = P64_LAYER + DEPTH * 6                        # 14


# ------------------------- small in-kernel helpers -------------------------
def _lrelu(v):
    return jnp.where(v >= 0, v, LRELU_SLOPE * v)


def _ln(x, g, b):
    mu = jnp.mean(x, axis=-1, keepdims=True)
    xc = x - mu
    var = jnp.mean(xc * xc, axis=-1, keepdims=True)
    return xc * jax.lax.rsqrt(var + 1e-5) * g + b


def _bdot(a, b):
    # bf16 MXU operands, f32 accumulation (.astype on bf16 is a no-op).
    return jnp.dot(a.astype(jnp.bfloat16), b.astype(jnp.bfloat16),
                   preferred_element_type=jnp.float32)


# ------------------------------ fused kernel -------------------------------
def _mvt_kernel(ximg_ref, prop_ref, lang_ref, posb_ref, mask_ref,
                w512_ref, w32_ref, w64_ref, w128_ref, w256_ref,
                p32_ref, p64_ref, p128_ref, p256_ref,
                u_ref, feat_ref, x_scr):
    # --------------------------- tokenizer ---------------------------------
    # 1x1 conv over all 16 pixel positions at once (block-diag weight, bias
    # folded via the ones column of the input), then patchify as ONE matmul.
    d0 = _lrelu(_bdot(ximg_ref[...], w512_ref[...])).astype(jnp.bfloat16)      # (96, 512)
    ins = _lrelu(jnp.dot(d0, w32_ref[W32_PATCH:W32_PATCH + D_PRE, :],
                         preferred_element_type=jnp.float32)
                 + p32_ref[0:1, :])                                            # (96, 32)
    pp = _lrelu(_bdot(prop_ref[...], w32_ref[W32_PROP:W32_PROP + K_PROP, :]))  # (2, 32)
    lng = _lrelu(_bdot(lang_ref[...], w64_ref[W64_LANG:W64_LANG + K_LANG, :])) # (16, 64)

    wbef = w64_ref[W64_BEF:W64_BEF + D_SEQ, :]                                 # (64, 64) bf16
    b_bef = p64_ref[P64_BEF:P64_BEF + 1, :]
    lang_tok = _bdot(lng, wbef) + b_bef                                        # (16, 64)
    pos_bef = posb_ref[...]                                                    # (48, 64) = pos_emb @ W_bef

    for b in range(BS):
        r0 = b * T_ALL
        x_scr[r0:r0 + LANG_LEN, :] = lang_tok[b * LANG_LEN:(b + 1) * LANG_LEN, :]
        # (cat(ins, proprio) + pos) @ W_bef with the channel concat folded into
        # split row-blocks of W_bef (avoids lane concat).
        img_tok = (_bdot(ins[b * T_IMG:(b + 1) * T_IMG, :], wbef[:IM_CH, :])
                   + _bdot(pp[b:b + 1, :], wbef[IM_CH:, :])
                   + pos_bef + b_bef)                                          # (48, 64)
        x_scr[r0 + LANG_LEN:r0 + T_ALL, :] = img_tok

    x = x_scr[...]                                                             # (112, 64) f32

    # ------------------- transformer (DEPTH unrolled) ----------------------
    for l in range(DEPTH):
        pb = P64_LAYER + l * 6
        ln1g = p64_ref[pb:pb + 1, :]
        ln1b = p64_ref[pb + 1:pb + 2, :]
        bo = p64_ref[pb + 2:pb + 3, :]
        ln2g = p64_ref[pb + 3:pb + 4, :]
        ln2b = p64_ref[pb + 4:pb + 5, :]
        bf2 = p64_ref[pb + 5:pb + 6, :]
        bf1 = p256_ref[l:l + 1, :]

        h = _ln(x, ln1g, ln1b).astype(jnp.bfloat16)                            # (112, 64)
        attn = jnp.zeros((BT, ATTN_DIM), jnp.float32)
        for hd in range(ATTN_HEADS):
            qb = W32_QKV + (l * ATTN_HEADS + hd) * 3 * ATTN_DIM
            q = jnp.dot(h, w32_ref[qb:qb + ATTN_DIM, :],
                        preferred_element_type=jnp.float32)                    # scale pre-folded
            k = jnp.dot(h, w32_ref[qb + ATTN_DIM:qb + 2 * ATTN_DIM, :],
                        preferred_element_type=jnp.float32)
            v = jnp.dot(h, w32_ref[qb + 2 * ATTN_DIM:qb + 3 * ATTN_DIM, :],
                        preferred_element_type=jnp.float32)
            # batched over the batch dim: (112,112) scores + block-diagonal mask
            s = jax.lax.dot_general(q.astype(jnp.bfloat16), k.astype(jnp.bfloat16),
                                    (((1,), (1,)), ((), ())),
                                    preferred_element_type=jnp.float32)
            s = s + mask_ref[...]
            s = s - jnp.max(s, axis=-1, keepdims=True)
            p = jnp.exp(s)
            p = p / jnp.sum(p, axis=-1, keepdims=True)
            o_h = _bdot(p, v)                                                  # (112, 32)
            ob = W64_WO + (l * ATTN_HEADS + hd) * ATTN_DIM_HEAD
            attn = attn + _bdot(o_h, w64_ref[ob:ob + ATTN_DIM_HEAD, :])        # merge heads via Wo blocks
        x1 = x + attn + bo

        h2 = _ln(x1, ln2g, ln2b).astype(jnp.bfloat16)
        # TODO(synk): PyTorch nn.GELU defaults to exact erf; tanh approximation used here.
        f = jax.nn.gelu(jnp.dot(h2, w256_ref[l * ATTN_DIM:(l + 1) * ATTN_DIM, :],
                                preferred_element_type=jnp.float32) + bf1
                        ).astype(jnp.bfloat16)                                 # (112, 256) bf16
        x = x1 + jnp.dot(f, w64_ref[W64_WF2 + l * FF_DIM:W64_WF2 + (l + 1) * FF_DIM, :],
                         preferred_element_type=jnp.float32) + bf2

    # ------------------------------- head ----------------------------------
    w_trans = w128_ref[W128_TRANS:W128_TRANS + ATTN_DIM, :]                    # (64, 128)
    w_aft = w64_ref[W64_AFT:W64_AFT + ATTN_DIM, :]                             # (64, 64)
    b_trans = p128_ref[0:1, :]
    b_feat = p128_ref[1:2, :]
    b_aft = p64_ref[P64_AFT:P64_AFT + 1, :]
    tpv = NPP * NPP                                                            # tokens / view
    for b in range(BS):
        xi = x[b * T_ALL + LANG_LEN:(b + 1) * T_ALL, :].astype(jnp.bfloat16)   # drop lang tokens
        # lane-dense (padded to 128) decoder projection, fc_aft_attn folded in
        u_ref[b * T_IMG:(b + 1) * T_IMG, :] = (
            jnp.dot(xi, w_trans, preferred_element_type=jnp.float32) + b_trans)
        xa = jnp.dot(xi, w_aft, preferred_element_type=jnp.float32) + b_aft    # (48, 64)
        acc = b_feat
        for vw in range(NUM_IMG):
            pooled = jnp.max(xa[vw * tpv:(vw + 1) * tpv, :], axis=0, keepdims=True)
            fb = W128_FEAT + vw * D_SEQ
            acc = acc + _bdot(pooled, w128_ref[fb:fb + D_SEQ, :])
        feat_ref[b:b + 1, :] = acc


# ------------------------------ call helper --------------------------------
def _full_spec(shape):
    n = len(shape)
    return pl.BlockSpec(shape, lambda i, _n=n: (0,) * _n)


def _mvt_pallas(x_aug, prop_aug, lang_aug, params):
    ins = (x_aug, prop_aug, lang_aug, params["pos_bef"], params["mask"],
           params["w512"], params["w32"], params["w64"], params["w128"], params["w256"],
           params["p32"], params["p64"], params["p128"], params["p256"])
    out_shape = (jax.ShapeDtypeStruct((NTOK, 128), jnp.float32),
                 jax.ShapeDtypeStruct((BS, 128), jnp.float32))
    return pl.pallas_call(
        _mvt_kernel,
        out_shape=out_shape,
        grid_spec=pltpu.PrefetchScalarGridSpec(
            num_scalar_prefetch=0,
            grid=(1,),
            in_specs=[_full_spec(a.shape) for a in ins],
            out_specs=[_full_spec(o.shape) for o in out_shape],
            scratch_shapes=[pltpu.VMEM((BT, ATTN_DIM), jnp.float32)],
        ),
        compiler_params=pltpu.CompilerParams(dimension_semantics=("arbitrary",)),
    )(*ins)


# ------------------------------- parameters --------------------------------
def make_params(key):
    ks = iter(jax.random.split(key, 40))

    def init(shape, scale=0.02):
        return (scale * jax.random.normal(next(ks), shape)).astype(jnp.float32)

    # ---- raw (unfused) parameters matching the module's layers ----
    W_pre = init((C_IN, IM_CH));            b_pre = init((IM_CH,))
    W_patch = init((NPIX * IM_CH, IM_CH));  b_patch = init((IM_CH,))
    W_prop = init((PROPRIO_DIM, IM_CH));    b_prop = init((IM_CH,))
    W_lang = init((LANG_DIM, D_SEQ));       b_lang = init((D_SEQ,))
    pos_emb = init((T_IMG, D_SEQ), 1.0)     # pe_fix: image tokens only
    W_bef = init((D_SEQ, ATTN_DIM));        b_bef = init((ATTN_DIM,))
    layer_raw = []
    for _ in range(DEPTH):
        layer_raw.append(dict(
            Wqkv=init((ATTN_DIM, 3 * INNER)),                      # fused Q|K|V (no bias)
            Wo=init((INNER, ATTN_DIM)), bo=init((ATTN_DIM,)),
            Wf1=init((ATTN_DIM, FF_DIM)), bf1=init((FF_DIM,)),
            Wf2=init((FF_DIM, ATTN_DIM)), bf2=init((ATTN_DIM,)),
            ln1_g=jnp.ones((ATTN_DIM,), jnp.float32),
            ln1_b=jnp.zeros((ATTN_DIM,), jnp.float32),
            ln2_g=jnp.ones((ATTN_DIM,), jnp.float32),
            ln2_b=jnp.zeros((ATTN_DIM,), jnp.float32)))
    W_aft = init((ATTN_DIM, D_SEQ));        b_aft = init((D_SEQ,))
    W_up = init((D_SEQ, NPIX));             b_up = init((NPIX,))
    W_feat = init((NUM_IMG * D_SEQ, FEAT_DIM)); b_feat = init((FEAT_DIM,))

    # ---- pack into bf16 weight slabs + f32 bias slabs (all host-side) ----
    # tokenizer 1x1 conv: block-diagonal over the 16 pixel positions; bias
    # folded via the input's ones column (row NPIX*C_IN).
    eye = jnp.eye(NPIX, dtype=jnp.float32)
    w_pre_bd = (eye[:, None, :, None] * W_pre[None, :, None, :]).reshape(NPIX * C_IN, D_PRE)
    w512 = jnp.zeros((K_PRE, D_PRE), jnp.float32)
    w512 = w512.at[:NPIX * C_IN].set(w_pre_bd)
    w512 = w512.at[NPIX * C_IN].set(jnp.tile(b_pre, NPIX))

    w32 = jnp.zeros((W32_ROWS, IM_CH), jnp.float32)
    w32 = w32.at[W32_PATCH:W32_PATCH + D_PRE].set(W_patch)
    w32 = w32.at[W32_PROP:W32_PROP + PROPRIO_DIM].set(W_prop)
    w32 = w32.at[W32_PROP + PROPRIO_DIM].set(b_prop)

    w64 = jnp.zeros((W64_ROWS, ATTN_DIM), jnp.float32)
    w64 = w64.at[W64_LANG:W64_LANG + LANG_DIM].set(W_lang)
    w64 = w64.at[W64_LANG + LANG_DIM].set(b_lang)
    w64 = w64.at[W64_BEF:W64_BEF + D_SEQ].set(W_bef)
    w64 = w64.at[W64_AFT:W64_AFT + ATTN_DIM].set(W_aft)

    w128 = jnp.zeros((W128_ROWS, 128), jnp.float32)
    # translation decoder: fc_aft_attn folded into the up-projection (no
    # nonlinearity between them); lane-padded to 128 for unmasked stores.
    w128 = w128.at[W128_TRANS:W128_TRANS + ATTN_DIM, :NPIX].set(W_aft @ W_up)
    w128 = w128.at[W128_FEAT:W128_FEAT + NUM_IMG * D_SEQ, :FEAT_DIM].set(W_feat)

    w256 = jnp.zeros((DEPTH * ATTN_DIM, FF_DIM), jnp.float32)

    p64 = jnp.zeros((P64_ROWS, ATTN_DIM), jnp.float32)
    p64 = p64.at[P64_BEF].set(b_bef)
    p64 = p64.at[P64_AFT].set(b_aft)
    p256 = jnp.zeros((DEPTH, FF_DIM), jnp.float32)

    scale = ATTN_DIM_HEAD ** -0.5
    for l, lp in enumerate(layer_raw):
        for hd in range(ATTN_HEADS):
            c = hd * ATTN_DIM_HEAD
            qb = W32_QKV + (l * ATTN_HEADS + hd) * 3 * ATTN_DIM
            w32 = w32.at[qb:qb + ATTN_DIM].set(lp["Wqkv"][:, c:c + ATTN_DIM_HEAD] * scale)
            w32 = w32.at[qb + ATTN_DIM:qb + 2 * ATTN_DIM].set(
                lp["Wqkv"][:, INNER + c:INNER + c + ATTN_DIM_HEAD])
            w32 = w32.at[qb + 2 * ATTN_DIM:qb + 3 * ATTN_DIM].set(
                lp["Wqkv"][:, 2 * INNER + c:2 * INNER + c + ATTN_DIM_HEAD])
            ob = W64_WO + (l * ATTN_HEADS + hd) * ATTN_DIM_HEAD
            w64 = w64.at[ob:ob + ATTN_DIM_HEAD].set(lp["Wo"][c:c + ATTN_DIM_HEAD, :])
        w64 = w64.at[W64_WF2 + l * FF_DIM:W64_WF2 + (l + 1) * FF_DIM].set(lp["Wf2"])
        w256 = w256.at[l * ATTN_DIM:(l + 1) * ATTN_DIM].set(lp["Wf1"])
        pb = P64_LAYER + l * 6
        p64 = p64.at[pb].set(lp["ln1_g"])
        p64 = p64.at[pb + 1].set(lp["ln1_b"])
        p64 = p64.at[pb + 2].set(lp["bo"])
        p64 = p64.at[pb + 3].set(lp["ln2_g"])
        p64 = p64.at[pb + 4].set(lp["ln2_b"])
        p64 = p64.at[pb + 5].set(lp["bf2"])
        p256 = p256.at[l].set(lp["bf1"])

    p32 = b_patch.reshape(1, IM_CH)
    p128 = jnp.zeros((2, 128), jnp.float32)
    p128 = p128.at[0, :NPIX].set(b_aft @ W_up + b_up)
    p128 = p128.at[1, :FEAT_DIM].set(b_feat)

    # position embedding pre-multiplied by fc_bef_attn weight (host fold).
    pos_bef = pos_emb @ W_bef

    # block-diagonal (per-sample) additive attention mask for batched attention.
    tok_b = jnp.arange(BT, dtype=jnp.int32) // T_ALL
    mask = jnp.where(tok_b[:, None] == tok_b[None, :], 0.0, -1e9).astype(jnp.float32)

    bf16 = jnp.bfloat16
    return dict(w512=w512.astype(bf16), w32=w32.astype(bf16), w64=w64.astype(bf16),
                w128=w128.astype(bf16), w256=w256.astype(bf16),
                p32=p32, p64=p64, p128=p128, p256=p256,
                pos_bef=pos_bef, mask=mask)


# ------------------------------ renderer glue -------------------------------
def make_pixel_loc():
    # matches RVT pixel_loc, but built channels-last: (num_img, H, W, 3)
    pix = jnp.zeros((NUM_IMG, IMG_SIZE, IMG_SIZE, 3), jnp.float32)
    pix = pix.at[..., 0].set(jnp.linspace(-1.0, 1.0, NUM_IMG)[:, None, None])
    pix = pix.at[..., 1].set(jnp.linspace(-1.0, 1.0, IMG_SIZE)[None, :, None])
    pix = pix.at[..., 2].set(jnp.linspace(-1.0, 1.0, IMG_SIZE)[None, None, :])
    return pix


def render(pc, img_feat):
    """Orthographic splat of point clouds onto three views (channels-last).

    pc: (bs, P, 3) in [-1, 1];  img_feat: (bs, P, img_feat_dim)
    returns (bs, num_img, H, W, 3+img_feat_dim+1)   (corr, rgb, depth).
    """
    # TODO(synk): the real BoxRenderer does anti-aliased z-buffered splatting;
    # scatter rasterization has no clean Pallas equivalent, kept in JAX glue.
    S = IMG_SIZE
    max_pc = jnp.maximum(jnp.max(jnp.abs(pc), axis=(1, 2), keepdims=True), 1e-6)
    corr = pc / max_pc                                       # norm_corr
    view_axes = [((0, 1), 2), ((0, 2), 1), ((1, 2), 0)]      # (u,v axes), depth axis

    def one_view(pc_b, corr_b, feat_b, uv, dax):
        u = jnp.clip(jnp.round((pc_b[:, uv[0]] + 1.0) * 0.5 * (S - 1)), 0, S - 1).astype(jnp.int32)
        v = jnp.clip(jnp.round((pc_b[:, uv[1]] + 1.0) * 0.5 * (S - 1)), 0, S - 1).astype(jnp.int32)
        idx = v * S + u
        depth = pc_b[:, dax:dax + 1]
        feats = jnp.concatenate([corr_b, feat_b, depth], axis=-1)         # (P, 7)
        acc = jnp.zeros((S * S, feats.shape[-1]), jnp.float32).at[idx].add(feats)
        cnt = jnp.zeros((S * S, 1), jnp.float32).at[idx].add(1.0)
        img = acc / jnp.maximum(cnt, 1.0)
        return img.reshape(S, S, -1)

    views = []
    for uv, dax in view_axes:
        vimg = jax.vmap(
            lambda pb, cb, fb, _uv=uv, _dax=dax: one_view(pb, cb, fb, _uv, _dax)
        )(pc, corr, img_feat)
        views.append(vimg)                                                # (bs, H, W, 7)
    return jnp.stack(views, axis=1)                                       # (bs, V, H, W, 7)


# ------------------------------ MVT forward ---------------------------------
def mvt_forward(params, pc, img_feat, proprio, lang_emb):
    bs = pc.shape[0]
    # ---- render (mvt1_or_mvt2=True, img_aug=0, dyn_cam_info=None), channels-last ----
    img = render(pc, img_feat)                                            # (bs,V,H,W,7)
    pix = make_pixel_loc()
    img = jnp.concatenate(
        [img, jnp.broadcast_to(pix[None], (bs, NUM_IMG, IMG_SIZE, IMG_SIZE, 3))],
        axis=-1)                                                          # (bs,V,H,W,10)

    # token-major patch layout: row = token, cols = (pixel-in-patch, channel);
    # ones column folds the 1x1-conv bias into the weight slab.
    x = img.reshape(bs, NUM_IMG, NPP, PATCH, NPP, PATCH, C_IN)
    x = jnp.transpose(x, (0, 1, 2, 4, 3, 5, 6)).reshape(NTOK, NPIX * C_IN)
    x_aug = jnp.concatenate(
        [x, jnp.ones((NTOK, 1), jnp.float32),
         jnp.zeros((NTOK, K_PRE - NPIX * C_IN - 1), jnp.float32)], axis=-1)

    prop_aug = jnp.concatenate(
        [proprio, jnp.ones((bs, 1), jnp.float32),
         jnp.zeros((bs, K_PROP - PROPRIO_DIM - 1), jnp.float32)], axis=-1)
    lang = lang_emb.reshape(bs * LANG_LEN, LANG_DIM)
    lang_aug = jnp.concatenate(
        [lang, jnp.ones((bs * LANG_LEN, 1), jnp.float32),
         jnp.zeros((bs * LANG_LEN, K_LANG - LANG_DIM - 1), jnp.float32)], axis=-1)

    # ---- ONE fused pallas_call: tokenizer + transformer + head ----
    # TODO(synk): RVT's ConvexUpSample / multi-stage conv decoder simplified to a
    # single learned depth-to-space upsample; heatmap-weighted feature readout and
    # rot_ver heads omitted.
    u_pad, feat_pad = _mvt_pallas(x_aug, prop_aug, lang_aug, params)

    # depth-to-space for the per-view translation heatmap (tiny, XLA glue)
    u = u_pad[:, :NPIX]                                                   # (96, 16)
    trans = u.reshape(bs, NUM_IMG, NPP, NPP, PATCH, PATCH)
    trans = jnp.transpose(trans, (0, 1, 2, 4, 3, 5)).reshape(bs, NUM_IMG, IMG_SIZE, IMG_SIZE)
    feat = feat_pad[:, :FEAT_DIM]                                         # (2, 32)

    return {"trans": trans, "feat": feat}


# ---------------------------------- main ------------------------------------
if __name__ == "__main__":
    key = jax.random.PRNGKey(0)
    k_par, k_pc, k_if, k_pr, k_lg = jax.random.split(key, 5)
    params = make_params(k_par)

    pc = jax.random.uniform(k_pc, (BS, NUM_POINTS, 3), minval=-1.0, maxval=1.0,
                            dtype=jnp.float32)
    img_feat = jax.random.uniform(k_if, (BS, NUM_POINTS, IMG_FEAT_DIM),
                                  minval=-1.0, maxval=1.0, dtype=jnp.float32)
    proprio = jax.random.uniform(k_pr, (BS, PROPRIO_DIM), dtype=jnp.float32)
    lang_emb = jax.random.normal(k_lg, (BS, LANG_LEN, LANG_DIM), dtype=jnp.float32)

    fwd = jax.jit(mvt_forward)
    out = fwd(params, pc, img_feat, proprio, lang_emb)
    jax.block_until_ready(out["trans"])
    jax.block_until_ready(out["feat"])
    assert out["trans"].shape == (BS, NUM_IMG, IMG_SIZE, IMG_SIZE)
    assert out["feat"].shape == (BS, FEAT_DIM)
    print("KERNEL_OK")
</pallas_src>

<mosaic_0001>
module attributes {stable_mosaic.version = 11 : i64} {
  func.func private @main(%arg0: i32) attributes {dimension_semantics = [#tpu.dimension_semantics<core_parallel>], iteration_bounds = array<i64: 2>, tpu.core_type = #tpu.core_type<sc_scalar_subcore>, window_params = []} {
    return
  }
}

module attributes {stable_mosaic.version = 11 : i64} {
  func.func private @main(%arg0: i32) attributes {dimension_semantics = [#tpu.dimension_semantics<core_parallel>], iteration_bounds = array<i64: 2>, tpu.core_type = #tpu.core_type<sc_scalar_subcore>, window_params = []} {
    return
  }
}

module attributes {stable_mosaic.version = 11 : i64} {
  func.func @_mvt_kernel(%arg0: i32, %arg1: memref<96x176xf32, #tpu.memory_space<vmem>>, %arg2: memref<2x16xf32, #tpu.memory_space<vmem>>, %arg3: memref<16x48xf32, #tpu.memory_space<vmem>>, %arg4: memref<48x64xf32, #tpu.memory_space<vmem>>, %arg5: memref<112x112xf32, #tpu.memory_space<vmem>>, %arg6: memref<176x512xbf16, #tpu.memory_space<vmem>>, %arg7: memref<1296x32xbf16, #tpu.memory_space<vmem>>, %arg8: memref<816x64xbf16, #tpu.memory_space<vmem>>, %arg9: memref<256x128xbf16, #tpu.memory_space<vmem>>, %arg10: memref<128x256xbf16, #tpu.memory_space<vmem>>, %arg11: memref<1x32xf32, #tpu.memory_space<vmem>>, %arg12: memref<14x64xf32, #tpu.memory_space<vmem>>, %arg13: memref<2x128xf32, #tpu.memory_space<vmem>>, %arg14: memref<2x256xf32, #tpu.memory_space<vmem>>, %arg15: memref<96x128xf32, #tpu.memory_space<vmem>>, %arg16: memref<2x128xf32, #tpu.memory_space<vmem>>, %arg17: memref<112x64xf32, #tpu.memory_space<vmem>>) attributes {dimension_semantics = [#tpu.dimension_semantics<arbitrary>], iteration_bounds = array<i64: 1>, scalar_prefetch = 0 : i64, scratch_operands = 1 : i64, tpu.core_type = #tpu.core_type<tc>, window_params = [{pipeline_mode = #tpu.pipeline_mode<synchronous>, transform_indices = @transform_0, window_bounds = array<i64: 96, 176>}, {pipeline_mode = #tpu.pipeline_mode<synchronous>, transform_indices = @transform_1, window_bounds = array<i64: 2, 16>}, {pipeline_mode = #tpu.pipeline_mode<synchronous>, transform_indices = @transform_2, window_bounds = array<i64: 16, 48>}, {pipeline_mode = #tpu.pipeline_mode<synchronous>, transform_indices = @transform_3, window_bounds = array<i64: 48, 64>}, {pipeline_mode = #tpu.pipeline_mode<synchronous>, transform_indices = @transform_4, window_bounds = array<i64: 112, 112>}, {pipeline_mode = #tpu.pipeline_mode<synchronous>, transform_indices = @transform_5, window_bounds = array<i64: 176, 512>}, {pipeline_mode = #tpu.pipeline_mode<synchronous>, transform_indices = @transform_6, window_bounds = array<i64: 1296, 32>}, {pipeline_mode = #tpu.pipeline_mode<synchronous>, transform_indices = @transform_7, window_bounds = array<i64: 816, 64>}, {pipeline_mode = #tpu.pipeline_mode<synchronous>, transform_indices = @transform_8, window_bounds = array<i64: 256, 128>}, {pipeline_mode = #tpu.pipeline_mode<synchronous>, transform_indices = @transform_9, window_bounds = array<i64: 128, 256>}, {pipeline_mode = #tpu.pipeline_mode<synchronous>, transform_indices = @transform_10, window_bounds = array<i64: 1, 32>}, {pipeline_mode = #tpu.pipeline_mode<synchronous>, transform_indices = @transform_11, window_bounds = array<i64: 14, 64>}, {pipeline_mode = #tpu.pipeline_mode<synchronous>, transform_indices = @transform_12, window_bounds = array<i64: 2, 128>}, {pipeline_mode = #tpu.pipeline_mode<synchronous>, transform_indices = @transform_13, window_bounds = array<i64: 2, 256>}, {pipeline_mode = #tpu.pipeline_mode<synchronous>, transform_indices = @transform_14, window_bounds = array<i64: 96, 128>}, {pipeline_mode = #tpu.pipeline_mode<synchronous>, transform_indices = @transform_15, window_bounds = array<i64: 2, 128>}]} {
    %c0 = arith.constant 0 : index
    %c0_0 = arith.constant 0 : index
    %0 = vector.load %arg1[%c0, %c0_0] : memref<96x176xf32, #tpu.memory_space<vmem>>, vector<96x176xf32>
    %c0_1 = arith.constant 0 : index
    %c0_2 = arith.constant 0 : index
    %1 = vector.load %arg6[%c0_1, %c0_2] : memref<176x512xbf16, #tpu.memory_space<vmem>>, vector<176x512xbf16>
    %2 = arith.truncf %0 : vector<96x176xf32> to vector<96x176xbf16>
    %cst = arith.constant dense<0.000000e+00> : vector<96x512xf32>
    %3 = tpu.matmul %2, %1, %cst {dimension_numbers = #tpu.dot_dimension_numbers<[1], [0], [0], [1], [0, 0, 1, 1], [], []>} : vector<96x176xbf16>, vector<176x512xbf16>, vector<96x512xf32> -> vector<96x512xf32>
    %cst_3 = arith.constant 0.000000e+00 : f32
    %4 = vector.broadcast %cst_3 : f32 to vector<96x512xf32>
    %5 = arith.cmpf oge, %3, %4 : vector<96x512xf32>
    %cst_4 = arith.constant 2.000000e-02 : f32
    %6 = vector.broadcast %cst_4 : f32 to vector<96x512xf32>
    %7 = arith.mulf %6, %3 : vector<96x512xf32>
    %8 = arith.select %5, %3, %7 : vector<96x512xi1>, vector<96x512xf32>
    %9 = arith.truncf %8 : vector<96x512xf32> to vector<96x512xbf16>
    %c0_5 = arith.constant 0 : index
    %c0_6 = arith.constant 0 : index
    %10 = vector.load %arg7[%c0_5, %c0_6] : memref<1296x32xbf16, #tpu.memory_space<vmem>>, vector<512x32xbf16>
    %cst_7 = arith.constant dense<0.000000e+00> : vector<96x32xf32>
    %11 = tpu.matmul %9, %10, %cst_7 {dimension_numbers = #tpu.dot_dimension_numbers<[1], [0], [0], [1], [0, 0, 1, 1], [], []>} : vector<96x512xbf16>, vector<512x32xbf16>, vector<96x32xf32> -> vector<96x32xf32>
    %c0_8 = arith.constant 0 : index
    %c0_9 = arith.constant 0 : index
    %12 = vector.load %arg11[%c0_8, %c0_9] : memref<1x32xf32, #tpu.memory_space<vmem>>, vector<1x32xf32>
    %13 = vector.broadcast %12 : vector<1x32xf32> to vector<96x32xf32>
    %14 = arith.addf %11, %13 : vector<96x32xf32>
    %cst_10 = arith.constant 0.000000e+00 : f32
    %15 = vector.broadcast %cst_10 : f32 to vector<96x32xf32>
    %16 = arith.cmpf oge, %14, %15 : vector<96x32xf32>
    %cst_11 = arith.constant 2.000000e-02 : f32
    %17 = vector.broadcast %cst_11 : f32 to vector<96x32xf32>
    %18 = arith.mulf %17, %14 : vector<96x32xf32>
    %19 = arith.select %16, %14, %18 : vector<96x32xi1>, vector<96x32xf32>
    %c0_12 = arith.constant 0 : index
    %c0_13 = arith.constant 0 : index
    %20 = vector.load %arg2[%c0_12, %c0_13] : memref<2x16xf32, #tpu.memory_space<vmem>>, vector<2x16xf32>
    %c512 = arith.constant 512 : index
    %c0_14 = arith.constant 0 : index
    %21 = vector.load %arg7[%c512, %c0_14] : memref<1296x32xbf16, #tpu.memory_space<vmem>>, vector<16x32xbf16>
    %22 = arith.truncf %20 : vector<2x16xf32> to vector<2x16xbf16>
    %cst_15 = arith.constant dense<0.000000e+00> : vector<2x32xf32>
    %23 = tpu.matmul %22, %21, %cst_15 {dimension_numbers = #tpu.dot_dimension_numbers<[1], [0], [0], [1], [0, 0, 1, 1], [], []>} : vector<2x16xbf16>, vector<16x32xbf16>, vector<2x32xf32> -> vector<2x32xf32>
    %cst_16 = arith.constant 0.000000e+00 : f32
    %24 = vector.broadcast %cst_16 : f32 to vector<2x32xf32>
    %25 = arith.cmpf oge, %23, %24 : vector<2x32xf32>
    %cst_17 = arith.constant 2.000000e-02 : f32
    %26 = vector.broadcast %cst_17 : f32 to vector<2x32xf32>
    %27 = arith.mulf %26, %23 : vector<2x32xf32>
    %28 = arith.select %25, %23, %27 : vector<2x32xi1>, vector<2x32xf32>
    %c0_18 = arith.constant 0 : index
    %c0_19 = arith.constant 0 : index
    %29 = vector.load %arg3[%c0_18, %c0_19] : memref<16x48xf32, #tpu.memory_space<vmem>>, vector<16x48xf32>
    %c0_20 = arith.constant 0 : index
    %c0_21 = arith.constant 0 : index
    %30 = vector.load %arg8[%c0_20, %c0_21] : memref<816x64xbf16, #tpu.memory_space<vmem>>, vector<48x64xbf16>
    %31 = arith.truncf %29 : vector<16x48xf32> to vector<16x48xbf16>
    %cst_22 = arith.constant dense<0.000000e+00> : vector<16x64xf32>
    %32 = tpu.matmul %31, %30, %cst_22 {dimension_numbers = #tpu.dot_dimension_numbers<[1], [0], [0], [1], [0, 0, 1, 1], [], []>} : vector<16x48xbf16>, vector<48x64xbf16>, vector<16x64xf32> -> vector<16x64xf32>
    %cst_23 = arith.constant 0.000000e+00 : f32
    %33 = vector.broadcast %cst_23 : f32 to vector<16x64xf32>
    %34 = arith.cmpf oge, %32, %33 : vector<16x64xf32>
    %cst_24 = arith.constant 2.000000e-02 : f32
    %35 = vector.broadcast %cst_24 : f32 to vector<16x64xf32>
    %36 = arith.mulf %35, %32 : vector<16x64xf32>
    %37 = arith.select %34, %32, %36 : vector<16x64xi1>, vector<16x64xf32>
    %c48 = arith.constant 48 : index
    %c0_25 = arith.constant 0 : index
    %38 = vector.load %arg8[%c48, %c0_25] : memref<816x64xbf16, #tpu.memory_space<vmem>>, vector<64x64xbf16>
    %c0_26 = arith.constant 0 : index
    %c0_27 = arith.constant 0 : index
    %39 = vector.load %arg12[%c0_26, %c0_27] : memref<14x64xf32, #tpu.memory_space<vmem>>, vector<1x64xf32>
    %40 = arith.truncf %37 : vector<16x64xf32> to vector<16x64xbf16>
    %cst_28 = arith.constant dense<0.000000e+00> : vector<16x64xf32>
    %41 = tpu.matmul %40, %38, %cst_28 {dimension_numbers = #tpu.dot_dimension_numbers<[1], [0], [0], [1], [0, 0, 1, 1], [], []>} : vector<16x64xbf16>, vector<64x64xbf16>, vector<16x64xf32> -> vector<16x64xf32>
    %42 = vector.broadcast %39 : vector<1x64xf32> to vector<16x64xf32>
    %43 = arith.addf %41, %42 : vector<16x64xf32>
    %c0_29 = arith.constant 0 : index
    %c0_30 = arith.constant 0 : index
    %44 = vector.load %arg4[%c0_29, %c0_30] : memref<48x64xf32, #tpu.memory_space<vmem>>, vector<48x64xf32>
    %45 = vector.extract_strided_slice %43 {offsets = [0, 0], sizes = [8, 64], strides = [1, 1]} : vector<16x64xf32> to vector<8x64xf32>
    %c0_31 = arith.constant 0 : index
    %c0_32 = arith.constant 0 : index
    %46 = vector.load %arg17[%c0_31, %c0_32] : memref<112x64xf32, #tpu.memory_space<vmem>>, vector<8x64xf32>
    tpu.vector_store %arg17[%c0_31, %c0_32], %45 {strides = array<i32>} : memref<112x64xf32, #tpu.memory_space<vmem>>, vector<8x64xf32>,
    %47 = vector.extract_strided_slice %19 {offsets = [0, 0], sizes = [48, 32], strides = [1, 1]} : vector<96x32xf32> to vector<48x32xf32>
    %48 = vector.extract_strided_slice %38 {offsets = [0, 0], sizes = [32, 64], strides = [1, 1]} : vector<64x64xbf16> to vector<32x64xbf16>
    %49 = arith.truncf %47 : vector<48x32xf32> to vector<48x32xbf16>
    %cst_33 = arith.constant dense<0.000000e+00> : vector<48x64xf32>
    %50 = tpu.matmul %49, %48, %cst_33 {dimension_numbers = #tpu.dot_dimension_numbers<[1], [0], [0], [1], [0, 0, 1, 1], [], []>} : vector<48x32xbf16>, vector<32x64xbf16>, vector<48x64xf32> -> vector<48x64xf32>
    %51 = vector.extract_strided_slice %28 {offsets = [0, 0], sizes = [1, 32], strides = [1, 1]} : vector<2x32xf32> to vector<1x32xf32>
    %52 = vector.extract_strided_slice %38 {offsets = [32, 0], sizes = [32, 64], strides = [1, 1]} : vector<64x64xbf16> to vector<32x64xbf16>
    %53 = arith.truncf %51 : vector<1x32xf32> to vector<1x32xbf16>
    %cst_34 = arith.constant dense<0.000000e+00> : vector<1x64xf32>
    %54 = tpu.matmul %53, %52, %cst_34 {dimension_numbers = #tpu.dot_dimension_numbers<[1], [0], [0], [1], [0, 0, 1, 1], [], []>} : vector<1x32xbf16>, vector<32x64xbf16>, vector<1x64xf32> -> vector<1x64xf32>
    %55 = vector.broadcast %54 : vector<1x64xf32> to vector<48x64xf32>
    %56 = arith.addf %50, %55 : vector<48x64xf32>
    %57 = arith.addf %56, %44 : vector<48x64xf32>
    %58 = vector.broadcast %39 : vector<1x64xf32> to vector<48x64xf32>
    %59 = arith.addf %57, %58 : vector<48x64xf32>
    %c8 = arith.constant 8 : index
    %c0_35 = arith.constant 0 : index
    %60 = vector.load %arg17[%c8, %c0_35] : memref<112x64xf32, #tpu.memory_space<vmem>>, vector<48x64xf32>
    tpu.vector_store %arg17[%c8, %c0_35], %59 {strides = array<i32>} : memref<112x64xf32, #tpu.memory_space<vmem>>, vector<48x64xf32>,
    %61 = vector.extract_strided_slice %43 {offsets = [8, 0], sizes = [8, 64], strides = [1, 1]} : vector<16x64xf32> to vector<8x64xf32>
    %c56 = arith.constant 56 : index
    %c0_36 = arith.constant 0 : index
    %62 = vector.load %arg17[%c56, %c0_36] : memref<112x64xf32, #tpu.memory_space<vmem>>, vector<8x64xf32>
    tpu.vector_store %arg17[%c56, %c0_36], %61 {strides = array<i32>} : memref<112x64xf32, #tpu.memory_space<vmem>>, vector<8x64xf32>,
    %63 = vector.extract_strided_slice %19 {offsets = [48, 0], sizes = [48, 32], strides = [1, 1]} : vector<96x32xf32> to vector<48x32xf32>
    %64 = vector.extract_strided_slice %38 {offsets = [0, 0], sizes = [32, 64], strides = [1, 1]} : vector<64x64xbf16> to vector<32x64xbf16>
    %65 = arith.truncf %63 : vector<48x32xf32> to vector<48x32xbf16>
    %cst_37 = arith.constant dense<0.000000e+00> : vector<48x64xf32>
    %66 = tpu.matmul %65, %64, %cst_37 {dimension_numbers = #tpu.dot_dimension_numbers<[1], [0], [0], [1], [0, 0, 1, 1], [], []>} : vector<48x32xbf16>, vector<32x64xbf16>, vector<48x64xf32> -> vector<48x64xf32>
    %67 = vector.extract_strided_slice %28 {offsets = [1, 0], sizes = [1, 32], strides = [1, 1]} : vector<2x32xf32> to vector<1x32xf32>
    %68 = vector.extract_strided_slice %38 {offsets = [32, 0], sizes = [32, 64], strides = [1, 1]} : vector<64x64xbf16> to vector<32x64xbf16>
    %69 = arith.truncf %67 : vector<1x32xf32> to vector<1x32xbf16>
    %cst_38 = arith.constant dense<0.000000e+00> : vector<1x64xf32>
    %70 = tpu.matmul %69, %68, %cst_38 {dimension_numbers = #tpu.dot_dimension_numbers<[1], [0], [0], [1], [0, 0, 1, 1], [], []>} : vector<1x32xbf16>, vector<32x64xbf16>, vector<1x64xf32> -> vector<1x64xf32>
    %71 = vector.broadcast %70 : vector<1x64xf32> to vector<48x64xf32>
    %72 = arith.addf %66, %71 : vector<48x64xf32>
    %73 = arith.addf %72, %44 : vector<48x64xf32>
    %74 = vector.broadcast %39 : vector<1x64xf32> to vector<48x64xf32>
    %75 = arith.addf %73, %74 : vector<48x64xf32>
    %c64 = arith.constant 64 : index
    %c0_39 = arith.constant 0 : index
    %76 = vector.load %arg17[%c64, %c0_39] : memref<112x64xf32, #tpu.memory_space<vmem>>, vector<48x64xf32>
    tpu.vector_store %arg17[%c64, %c0_39], %75 {strides = array<i32>} : memref<112x64xf32, #tpu.memory_space<vmem>>, vector<48x64xf32>,
    %c0_40 = arith.constant 0 : index
    %c0_41 = arith.constant 0 : index
    %77 = vector.load %arg17[%c0_40, %c0_41] : memref<112x64xf32, #tpu.memory_space<vmem>>, vector<112x64xf32>
    %c2 = arith.constant 2 : index
    %c0_42 = arith.constant 0 : index
    %78 = vector.load %arg12[%c2, %c0_42] : memref<14x64xf32, #tpu.memory_space<vmem>>, vector<1x64xf32>
    %c3 = arith.constant 3 : index
    %c0_43 = arith.constant 0 : index
    %79 = vector.load %arg12[%c3, %c0_43] : memref<14x64xf32, #tpu.memory_space<vmem>>, vector<1x64xf32>
    %c4 = arith.constant 4 : index
    %c0_44 = arith.constant 0 : index
    %80 = vector.load %arg12[%c4, %c0_44] : memref<14x64xf32, #tpu.memory_space<vmem>>, vector<1x64xf32>
    %c5 = arith.constant 5 : index
    %c0_45 = arith.constant 0 : index
    %81 = vector.load %arg12[%c5, %c0_45] : memref<14x64xf32, #tpu.memory_space<vmem>>, vector<1x64xf32>
    %c6 = arith.constant 6 : index
    %c0_46 = arith.constant 0 : index
    %82 = vector.load %arg12[%c6, %c0_46] : memref<14x64xf32, #tpu.memory_space<vmem>>, vector<1x64xf32>
    %c7 = arith.constant 7 : index
    %c0_47 = arith.constant 0 : index
    %83 = vector.load %arg12[%c7, %c0_47] : memref<14x64xf32, #tpu.memory_space<vmem>>, vector<1x64xf32>
    %c0_48 = arith.constant 0 : index
    %c0_49 = arith.constant 0 : index
    %84 = vector.load %arg14[%c0_48, %c0_49] : memref<2x256xf32, #tpu.memory_space<vmem>>, vector<1x256xf32>
    %cst_50 = arith.constant dense<0.000000e+00> : vector<112xf32>
    %85 = vector.multi_reduction <add>, %77, %cst_50 [1] : vector<112x64xf32> to vector<112xf32>
    %86 = vector.shape_cast %85 : vector<112xf32> to vector<112x1xf32>
    %cst_51 = arith.constant 6.400000e+01 : f32
    %87 = vector.broadcast %cst_51 : f32 to vector<112x1xf32>
    %88 = arith.divf %86, %87 : vector<112x1xf32>
    %89 = vector.broadcast %88 : vector<112x1xf32> to vector<112x64xf32>
    %90 = arith.subf %77, %89 : vector<112x64xf32>
    %91 = arith.mulf %90, %90 : vector<112x64xf32>
    %cst_52 = arith.constant dense<0.000000e+00> : vector<112xf32>
    %92 = vector.multi_reduction <add>, %91, %cst_52 [1] : vector<112x64xf32> to vector<112xf32>
    %93 = vector.shape_cast %92 : vector<112xf32> to vector<112x1xf32>
    %cst_53 = arith.constant 6.400000e+01 : f32
    %94 = vector.broadcast %cst_53 : f32 to vector<112x1xf32>
    %95 = arith.divf %93, %94 : vector<112x1xf32>
    %cst_54 = arith.constant 9.99999974E-6 : f32
    %96 = vector.broadcast %cst_54 : f32 to vector<112x1xf32>
    %97 = arith.addf %95, %96 : vector<112x1xf32>
    %98 = math.rsqrt %97 : vector<112x1xf32>
    %99 = vector.broadcast %98 : vector<112x1xf32> to vector<112x64xf32>
    %100 = arith.mulf %90, %99 : vector<112x64xf32>
    %101 = vector.broadcast %78 : vector<1x64xf32> to vector<112x64xf32>
    %102 = arith.mulf %100, %101 : vector<112x64xf32>
    %103 = vector.broadcast %79 : vector<1x64xf32> to vector<112x64xf32>
    %104 = arith.addf %102, %103 : vector<112x64xf32>
    %105 = arith.truncf %104 : vector<112x64xf32> to vector<112x64xbf16>
    %cst_55 = arith.constant 0.000000e+00 : f32
    %106 = vector.broadcast %cst_55 : f32 to vector<112x64xf32>
    %c528 = arith.constant 528 : index
    %c0_56 = arith.constant 0 : index
    %107 = vector.load %arg7[%c528, %c0_56] : memref<1296x32xbf16, #tpu.memory_space<vmem>>, vector<64x32xbf16>
    %cst_57 = arith.constant dense<0.000000e+00> : vector<112x32xf32>
    %108 = tpu.matmul %105, %107, %cst_57 {dimension_numbers = #tpu.dot_dimension_numbers<[1], [0], [0], [1], [0, 0, 1, 1], [], []>} : vector<112x64xbf16>, vector<64x32xbf16>, vector<112x32xf32> -> vector<112x32xf32>
    %c592 = arith.constant 592 : index
    %c0_58 = arith.constant 0 : index
    %109 = vector.load %arg7[%c592, %c0_58] : memref<1296x32xbf16, #tpu.memory_space<vmem>>, vector<64x32xbf16>
    %cst_59 = arith.constant dense<0.000000e+00> : vector<112x32xf32>
    %110 = tpu.matmul %105, %109, %cst_59 {dimension_numbers = #tpu.dot_dimension_numbers<[1], [0], [0], [1], [0, 0, 1, 1], [], []>} : vector<112x64xbf16>, vector<64x32xbf16>, vector<112x32xf32> -> vector<112x32xf32>
    %c656 = arith.constant 656 : index
    %c0_60 = arith.constant 0 : index
    %111 = vector.load %arg7[%c656, %c0_60] : memref<1296x32xbf16, #tpu.memory_space<vmem>>, vector<64x32xbf16>
    %cst_61 = arith.constant dense<0.000000e+00> : vector<112x32xf32>
    %112 = tpu.matmul %105, %111, %cst_61 {dimension_numbers = #tpu.dot_dimension_numbers<[1], [0], [0], [1], [0, 0, 1, 1], [], []>} : vector<112x64xbf16>, vector<64x32xbf16>, vector<112x32xf32> -> vector<112x32xf32>
    %113 = arith.truncf %108 : vector<112x32xf32> to vector<112x32xbf16>
    %114 = arith.truncf %110 : vector<112x32xf32> to vector<112x32xbf16>
    %cst_62 = arith.constant dense<0.000000e+00> : vector<112x112xf32>
    %115 = tpu.matmul %113, %114, %cst_62 {dimension_numbers = #tpu.dot_dimension_numbers<[1], [1], [0], [0], [0, 0, 1, 0], [], []>} : vector<112x32xbf16>, vector<112x32xbf16>, vector<112x112xf32> -> vector<112x112xf32>
    %c0_63 = arith.constant 0 : index
    %c0_64 = arith.constant 0 : index
    %116 = vector.load %arg5[%c0_63, %c0_64] : memref<112x112xf32, #tpu.memory_space<vmem>>, vector<112x112xf32>
    %117 = arith.addf %115, %116 : vector<112x112xf32>
    %cst_65 = arith.constant dense<0xFF800000> : vector<112xf32>
    %118 = vector.multi_reduction <maximumf>, %117, %cst_65 [1] : vector<112x112xf32> to vector<112xf32>
    %119 = vector.shape_cast %118 : vector<112xf32> to vector<112x1xf32>
    %120 = vector.broadcast %119 : vector<112x1xf32> to vector<112x112xf32>
    %121 = arith.subf %117, %120 : vector<112x112xf32>
    %122 = math.exp %121 : vector<112x112xf32>
    %cst_66 = arith.constant dense<0.000000e+00> : vector<112xf32>
    %123 = vector.multi_reduction <add>, %122, %cst_66 [1] : vector<112x112xf32> to vector<112xf32>
    %124 = vector.shape_cast %123 : vector<112xf32> to vector<112x1xf32>
    %125 = vector.broadcast %124 : vector<112x1xf32> to vector<112x112xf32>
    %126 = arith.divf %122, %125 : vector<112x112xf32>
    %127 = arith.truncf %126 : vector<112x112xf32> to vector<112x112xbf16>
    %128 = arith.truncf %112 : vector<112x32xf32> to vector<112x32xbf16>
    %cst_67 = arith.constant dense<0.000000e+00> : vector<112x32xf32>
    %129 = tpu.matmul %127, %128, %cst_67 {dimension_numbers = #tpu.dot_dimension_numbers<[1], [0], [0], [1], [0, 0, 1, 1], [], []>} : vector<112x112xbf16>, vector<112x32xbf16>, vector<112x32xf32> -> vector<112x32xf32>
    %c176 = arith.constant 176 : index
    %c0_68 = arith.constant 0 : index
    %130 = vector.load %arg8[%c176, %c0_68] : memref<816x64xbf16, #tpu.memory_space<vmem>>, vector<32x64xbf16>
    %131 = arith.truncf %129 : vector<112x32xf32> to vector<112x32xbf16>
    %cst_69 = arith.constant dense<0.000000e+00> : vector<112x64xf32>
    %132 = tpu.matmul %131, %130, %cst_69 {dimension_numbers = #tpu.dot_dimension_numbers<[1], [0], [0], [1], [0, 0, 1, 1], [], []>} : vector<112x32xbf16>, vector<32x64xbf16>, vector<112x64xf32> -> vector<112x64xf32>
    %133 = arith.addf %106, %132 : vector<112x64xf32>
    %c720 = arith.constant 720 : index
    %c0_70 = arith.constant 0 : index
    %134 = vector.load %arg7[%c720, %c0_70] : memref<1296x32xbf16, #tpu.memory_space<vmem>>, vector<64x32xbf16>
    %cst_71 = arith.constant dense<0.000000e+00> : vector<112x32xf32>
    %135 = tpu.matmul %105, %134, %cst_71 {dimension_numbers = #tpu.dot_dimension_numbers<[1], [0], [0], [1], [0, 0, 1, 1], [], []>} : vector<112x64xbf16>, vector<64x32xbf16>, vector<112x32xf32> -> vector<112x32xf32>
    %c784 = arith.constant 784 : index
    %c0_72 = arith.constant 0 : index
    %136 = vector.load %arg7[%c784, %c0_72] : memref<1296x32xbf16, #tpu.memory_space<vmem>>, vector<64x32xbf16>
    %cst_73 = arith.constant dense<0.000000e+00> : vector<112x32xf32>
    %137 = tpu.matmul %105, %136, %cst_73 {dimension_numbers = #tpu.dot_dimension_numbers<[1], [0], [0], [1], [0, 0, 1, 1], [], []>} : vector<112x64xbf16>, vector<64x32xbf16>, vector<112x32xf32> -> vector<112x32xf32>
    %c848 = arith.constant 848 : index
    %c0_74 = arith.constant 0 : index
    %138 = vector.load %arg7[%c848, %c0_74] : memref<1296x32xbf16, #tpu.memory_space<vmem>>, vector<64x32xbf16>
    %cst_75 = arith.constant dense<0.000000e+00> : vector<112x32xf32>
    %139 = tpu.matmul %105, %138, %cst_75 {dimension_numbers = #tpu.dot_dimension_numbers<[1], [0], [0], [1], [0, 0, 1, 1], [], []>} : vector<112x64xbf16>, vector<64x32xbf16>, vector<112x32xf32> -> vector<112x32xf32>
    %140 = arith.truncf %135 : vector<112x32xf32> to vector<112x32xbf16>
    %141 = arith.truncf %137 : vector<112x32xf32> to vector<112x32xbf16>
    %cst_76 = arith.constant dense<0.000000e+00> : vector<112x112xf32>
    %142 = tpu.matmul %140, %141, %cst_76 {dimension_numbers = #tpu.dot_dimension_numbers<[1], [1], [0], [0], [0, 0, 1, 0], [], []>} : vector<112x32xbf16>, vector<112x32xbf16>, vector<112x112xf32> -> vector<112x112xf32>
    %c0_77 = arith.constant 0 : index
    %c0_78 = arith.constant 0 : index
    %143 = vector.load %arg5[%c0_77, %c0_78] : memref<112x112xf32, #tpu.memory_space<vmem>>, vector<112x112xf32>
    %144 = arith.addf %142, %143 : vector<112x112xf32>
    %cst_79 = arith.constant dense<0xFF800000> : vector<112xf32>
    %145 = vector.multi_reduction <maximumf>, %144, %cst_79 [1] : vector<112x112xf32> to vector<112xf32>
    %146 = vector.shape_cast %145 : vector<112xf32> to vector<112x1xf32>
    %147 = vector.broadcast %146 : vector<112x1xf32> to vector<112x112xf32>
    %148 = arith.subf %144, %147 : vector<112x112xf32>
    %149 = math.exp %148 : vector<112x112xf32>
    %cst_80 = arith.constant dense<0.000000e+00> : vector<112xf32>
    %150 = vector.multi_reduction <add>, %149, %cst_80 [1] : vector<112x112xf32> to vector<112xf32>
    %151 = vector.shape_cast %150 : vector<112xf32> to vector<112x1xf32>
    %152 = vector.broadcast %151 : vector<112x1xf32> to vector<112x112xf32>
    %153 = arith.divf %149, %152 : vector<112x112xf32>
    %154 = arith.truncf %153 : vector<112x112xf32> to vector<112x112xbf16>
    %155 = arith.truncf %139 : vector<112x32xf32> to vector<112x32xbf16>
    %cst_81 = arith.constant dense<0.000000e+00> : vector<112x32xf32>
    %156 = tpu.matmul %154, %155, %cst_81 {dimension_numbers = #tpu.dot_dimension_numbers<[1], [0], [0], [1], [0, 0, 1, 1], [], []>} : vector<112x112xbf16>, vector<112x32xbf16>, vector<112x32xf32> -> vector<112x32xf32>
    %c208 = arith.constant 208 : index
    %c0_82 = arith.constant 0 : index
    %157 = vector.load %arg8[%c208, %c0_82] : memref<816x64xbf16, #tpu.memory_space<vmem>>, vector<32x64xbf16>
    %158 = arith.truncf %156 : vector<112x32xf32> to vector<112x32xbf16>
    %cst_83 = arith.constant dense<0.000000e+00> : vector<112x64xf32>
    %159 = tpu.matmul %158, %157, %cst_83 {dimension_numbers = #tpu.dot_dimension_numbers<[1], [0], [0], [1], [0, 0, 1, 1], [], []>} : vector<112x32xbf16>, vector<32x64xbf16>, vector<112x64xf32> -> vector<112x64xf32>
    %160 = arith.addf %133, %159 : vector<112x64xf32>
    %161 = arith.addf %77, %160 : vector<112x64xf32>
    %162 = vector.broadcast %80 : vector<1x64xf32> to vector<112x64xf32>
    %163 = arith.addf %161, %162 : vector<112x64xf32>
    %cst_84 = arith.constant dense<0.000000e+00> : vector<112xf32>
    %164 = vector.multi_reduction <add>, %163, %cst_84 [1] : vector<112x64xf32> to vector<112xf32>
    %165 = vector.shape_cast %164 : vector<112xf32> to vector<112x1xf32>
    %cst_85 = arith.constant 6.400000e+01 : f32
    %166 = vector.broadcast %cst_85 : f32 to vector<112x1xf32>
    %167 = arith.divf %165, %166 : vector<112x1xf32>
    %168 = vector.broadcast %167 : vector<112x1xf32> to vector<112x64xf32>
    %169 = arith.subf %163, %168 : vector<112x64xf32>
    %170 = arith.mulf %169, %169 : vector<112x64xf32>
    %cst_86 = arith.constant dense<0.000000e+00> : vector<112xf32>
    %171 = vector.multi_reduction <add>, %170, %cst_86 [1] : vector<112x64xf32> to vector<112xf32>
    %172 = vector.shape_cast %171 : vector<112xf32> to vector<112x1xf32>
    %cst_87 = arith.constant 6.400000e+01 : f32
    %173 = vector.broadcast %cst_87 : f32 to vector<112x1xf32>
    %174 = arith.divf %172, %173 : vector<112x1xf32>
    %cst_88 = arith.constant 9.99999974E-6 : f32
    %175 = vector.broadcast %cst_88 : f32 to vector<112x1xf32>
    %176 = arith.addf %174, %175 : vector<112x1xf32>
    %177 = math.rsqrt %176 : vector<112x1xf32>
    %178 = vector.broadcast %177 : vector<112x1xf32> to vector<112x64xf32>
    %179 = arith.mulf %169, %178 : vector<112x64xf32>
    %180 = vector.broadcast %81 : vector<1x64xf32> to vector<112x64xf32>
    %181 = arith.mulf %179, %180 : vector<112x64xf32>
    %182 = vector.broadcast %82 : vector<1x64xf32> to vector<112x64xf32>
    %183 = arith.addf %181, %182 : vector<112x64xf32>
    %184 = arith.truncf %183 : vector<112x64xf32> to vector<112x64xbf16>
    %c0_89 = arith.constant 0 : index
    %c0_90 = arith.constant 0 : index
    %185 = vector.load %arg10[%c0_89, %c0_90] : memref<128x256xbf16, #tpu.memory_space<vmem>>, vector<64x256xbf16>
    %cst_91 = arith.constant dense<0.000000e+00> : vector<112x256xf32>
    %186 = tpu.matmul %184, %185, %cst_91 {dimension_numbers = #tpu.dot_dimension_numbers<[1], [0], [0], [1], [0, 0, 1, 1], [], []>} : vector<112x64xbf16>, vector<64x256xbf16>, vector<112x256xf32> -> vector<112x256xf32>
    %187 = vector.broadcast %84 : vector<1x256xf32> to vector<112x256xf32>
    %188 = arith.addf %186, %187 : vector<112x256xf32>
    %189 = arith.mulf %188, %188 : vector<112x256xf32>
    %190 = arith.mulf %188, %189 : vector<112x256xf32>
    %cst_92 = arith.constant 4.471500e-02 : f32
    %191 = vector.broadcast %cst_92 : f32 to vector<112x256xf32>
    %192 = arith.mulf %191, %190 : vector<112x256xf32>
    %193 = arith.addf %188, %192 : vector<112x256xf32>
    %cst_93 = arith.constant 0.797884583 : f32
    %194 = vector.broadcast %cst_93 : f32 to vector<112x256xf32>
    %195 = arith.mulf %194, %193 : vector<112x256xf32>
    %196 = math.tanh %195 : vector<112x256xf32>
    %cst_94 = arith.constant 1.000000e+00 : f32
    %197 = vector.broadcast %cst_94 : f32 to vector<112x256xf32>
    %198 = arith.addf %197, %196 : vector<112x256xf32>
    %cst_95 = arith.constant 5.000000e-01 : f32
    %199 = vector.broadcast %cst_95 : f32 to vector<112x256xf32>
    %200 = arith.mulf %199, %198 : vector<112x256xf32>
    %201 = arith.mulf %188, %200 : vector<112x256xf32>
    %202 = arith.truncf %201 : vector<112x256xf32> to vector<112x256xbf16>
    %c304 = arith.constant 304 : index
    %c0_96 = arith.constant 0 : index
    %203 = vector.load %arg8[%c304, %c0_96] : memref<816x64xbf16, #tpu.memory_space<vmem>>, vector<256x64xbf16>
    %cst_97 = arith.constant dense<0.000000e+00> : vector<112x64xf32>
    %204 = tpu.matmul %202, %203, %cst_97 {dimension_numbers = #tpu.dot_dimension_numbers<[1], [0], [0], [1], [0, 0, 1, 1], [], []>} : vector<112x256xbf16>, vector<256x64xbf16>, vector<112x64xf32> -> vector<112x64xf32>
    %205 = arith.addf %163, %204 : vector<112x64xf32>
    %206 = vector.broadcast %83 : vector<1x64xf32> to vector<112x64xf32>
    %207 = arith.addf %205, %206 : vector<112x64xf32>
    %c8_98 = arith.constant 8 : index
    %c0_99 = arith.constant 0 : index
    %208 = vector.load %arg12[%c8_98, %c0_99] : memref<14x64xf32, #tpu.memory_space<vmem>>, vector<1x64xf32>
    %c9 = arith.constant 9 : index
    %c0_100 = arith.constant 0 : index
    %209 = vector.load %arg12[%c9, %c0_100] : memref<14x64xf32, #tpu.memory_space<vmem>>, vector<1x64xf32>
    %c10 = arith.constant 10 : index
    %c0_101 = arith.constant 0 : index
    %210 = vector.load %arg12[%c10, %c0_101] : memref<14x64xf32, #tpu.memory_space<vmem>>, vector<1x64xf32>
    %c11 = arith.constant 11 : index
    %c0_102 = arith.constant 0 : index
    %211 = vector.load %arg12[%c11, %c0_102] : memref<14x64xf32, #tpu.memory_space<vmem>>, vector<1x64xf32>
    %c12 = arith.constant 12 : index
    %c0_103 = arith.constant 0 : index
    %212 = vector.load %arg12[%c12, %c0_103] : memref<14x64xf32, #tpu.memory_space<vmem>>, vector<1x64xf32>
    %c13 = arith.constant 13 : index
    %c0_104 = arith.constant 0 : index
    %213 = vector.load %arg12[%c13, %c0_104] : memref<14x64xf32, #tpu.memory_space<vmem>>, vector<1x64xf32>
    %c1 = arith.constant 1 : index
    %c0_105 = arith.constant 0 : index
    %214 = vector.load %arg14[%c1, %c0_105] : memref<2x256xf32, #tpu.memory_space<vmem>>, vector<1x256xf32>
    %cst_106 = arith.constant dense<0.000000e+00> : vector<112xf32>
    %215 = vector.multi_reduction <add>, %207, %cst_106 [1] : vector<112x64xf32> to vector<112xf32>
    %216 = vector.shape_cast %215 : vector<112xf32> to vector<112x1xf32>
    %cst_107 = arith.constant 6.400000e+01 : f32
    %217 = vector.broadcast %cst_107 : f32 to vector<112x1xf32>
    %218 = arith.divf %216, %217 : vector<112x1xf32>
    %219 = vector.broadcast %218 : vector<112x1xf32> to vector<112x64xf32>
    %220 = arith.subf %207, %219 : vector<112x64xf32>
    %221 = arith.mulf %220, %220 : vector<112x64xf32>
    %cst_108 = arith.constant dense<0.000000e+00> : vector<112xf32>
    %222 = vector.multi_reduction <add>, %221, %cst_108 [1] : vector<112x64xf32> to vector<112xf32>
    %223 = vector.shape_cast %222 : vector<112xf32> to vector<112x1xf32>
    %cst_109 = arith.constant 6.400000e+01 : f32
    %224 = vector.broadcast %cst_109 : f32 to vector<112x1xf32>
    %225 = arith.divf %223, %224 : vector<112x1xf32>
    %cst_110 = arith.constant 9.99999974E-6 : f32
    %226 = vector.broadcast %cst_110 : f32 to vector<112x1xf32>
    %227 = arith.addf %225, %226 : vector<112x1xf32>
    %228 = math.rsqrt %227 : vector<112x1xf32>
    %229 = vector.broadcast %228 : vector<112x1xf32> to vector<112x64xf32>
    %230 = arith.mulf %220, %229 : vector<112x64xf32>
    %231 = vector.broadcast %208 : vector<1x64xf32> to vector<112x64xf32>
    %232 = arith.mulf %230, %231 : vector<112x64xf32>
    %233 = vector.broadcast %209 : vector<1x64xf32> to vector<112x64xf32>
    %234 = arith.addf %232, %233 : vector<112x64xf32>
    %235 = arith.truncf %234 : vector<112x64xf32> to vector<112x64xbf16>
    %cst_111 = arith.constant 0.000000e+00 : f32
    %236 = vector.broadcast %cst_111 : f32 to vector<112x64xf32>
    %c912 = arith.constant 912 : index
    %c0_112 = arith.constant 0 : index
    %237 = vector.load %arg7[%c912, %c0_112] : memref<1296x32xbf16, #tpu.memory_space<vmem>>, vector<64x32xbf16>
    %cst_113 = arith.constant dense<0.000000e+00> : vector<112x32xf32>
    %238 = tpu.matmul %235, %237, %cst_113 {dimension_numbers = #tpu.dot_dimension_numbers<[1], [0], [0], [1], [0, 0, 1, 1], [], []>} : vector<112x64xbf16>, vector<64x32xbf16>, vector<112x32xf32> -> vector<112x32xf32>
    %c976 = arith.constant 976 : index
    %c0_114 = arith.constant 0 : index
    %239 = vector.load %arg7[%c976, %c0_114] : memref<1296x32xbf16, #tpu.memory_space<vmem>>, vector<64x32xbf16>
    %cst_115 = arith.constant dense<0.000000e+00> : vector<112x32xf32>
    %240 = tpu.matmul %235, %239, %cst_115 {dimension_numbers = #tpu.dot_dimension_numbers<[1], [0], [0], [1], [0, 0, 1, 1], [], []>} : vector<112x64xbf16>, vector<64x32xbf16>, vector<112x32xf32> -> vector<112x32xf32>
    %c1040 = arith.constant 1040 : index
    %c0_116 = arith.constant 0 : index
    %241 = vector.load %arg7[%c1040, %c0_116] : memref<1296x32xbf16, #tpu.memory_space<vmem>>, vector<64x32xbf16>
    %cst_117 = arith.constant dense<0.000000e+00> : vector<112x32xf32>
    %242 = tpu.matmul %235, %241, %cst_117 {dimension_numbers = #tpu.dot_dimension_numbers<[1], [0], [0], [1], [0, 0, 1, 1], [], []>} : vector<112x64xbf16>, vector<64x32xbf16>, vector<112x32xf32> -> vector<112x32xf32>
    %243 = arith.truncf %238 : vector<112x32xf32> to vector<112x32xbf16>
    %244 = arith.truncf %240 : vector<112x32xf32> to vector<112x32xbf16>
    %cst_118 = arith.constant dense<0.000000e+00> : vector<112x112xf32>
    %245 = tpu.matmul %243, %244, %cst_118 {dimension_numbers = #tpu.dot_dimension_numbers<[1], [1], [0], [0], [0, 0, 1, 0], [], []>} : vector<112x32xbf16>, vector<112x32xbf16>, vector<112x112xf32> -> vector<112x112xf32>
    %c0_119 = arith.constant 0 : index
    %c0_120 = arith.constant 0 : index
    %246 = vector.load %arg5[%c0_119, %c0_120] : memref<112x112xf32, #tpu.memory_space<vmem>>, vector<112x112xf32>
    %247 = arith.addf %245, %246 : vector<112x112xf32>
    %cst_121 = arith.constant dense<0xFF800000> : vector<112xf32>
    %248 = vector.multi_reduction <maximumf>, %247, %cst_121 [1] : vector<112x112xf32> to vector<112xf32>
    %249 = vector.shape_cast %248 : vector<112xf32> to vector<112x1xf32>
    %250 = vector.broadcast %249 : vector<112x1xf32> to vector<112x112xf32>
    %251 = arith.subf %247, %250 : vector<112x112xf32>
    %252 = math.exp %251 : vector<112x112xf32>
    %cst_122 = arith.constant dense<0.000000e+00> : vector<112xf32>
    %253 = vector.multi_reduction <add>, %252, %cst_122 [1] : vector<112x112xf32> to vector<112xf32>
    %254 = vector.shape_cast %253 : vector<112xf32> to vector<112x1xf32>
    %255 = vector.broadcast %254 : vector<112x1xf32> to vector<112x112xf32>
    %256 = arith.divf %252, %255 : vector<112x112xf32>
    %257 = arith.truncf %256 : vector<112x112xf32> to vector<112x112xbf16>
    %258 = arith.truncf %242 : vector<112x32xf32> to vector<112x32xbf16>
    %cst_123 = arith.constant dense<0.000000e+00> : vector<112x32xf32>
    %259 = tpu.matmul %257, %258, %cst_123 {dimension_numbers = #tpu.dot_dimension_numbers<[1], [0], [0], [1], [0, 0, 1, 1], [], []>} : vector<112x112xbf16>, vector<112x32xbf16>, vector<112x32xf32> -> vector<112x32xf32>
    %c240 = arith.constant 240 : index
    %c0_124 = arith.constant 0 : index
    %260 = vector.load %arg8[%c240, %c0_124] : memref<816x64xbf16, #tpu.memory_space<vmem>>, vector<32x64xbf16>
    %261 = arith.truncf %259 : vector<112x32xf32> to vector<112x32xbf16>
    %cst_125 = arith.constant dense<0.000000e+00> : vector<112x64xf32>
    %262 = tpu.matmul %261, %260, %cst_125 {dimension_numbers = #tpu.dot_dimension_numbers<[1], [0], [0], [1], [0, 0, 1, 1], [], []>} : vector<112x32xbf16>, vector<32x64xbf16>, vector<112x64xf32> -> vector<112x64xf32>
    %263 = arith.addf %236, %262 : vector<112x64xf32>
    %c1104 = arith.constant 1104 : index
    %c0_126 = arith.constant 0 : index
    %264 = vector.load %arg7[%c1104, %c0_126] : memref<1296x32xbf16, #tpu.memory_space<vmem>>, vector<64x32xbf16>
    %cst_127 = arith.constant dense<0.000000e+00> : vector<112x32xf32>
    %265 = tpu.matmul %235, %264, %cst_127 {dimension_numbers = #tpu.dot_dimension_numbers<[1], [0], [0], [1], [0, 0, 1, 1], [], []>} : vector<112x64xbf16>, vector<64x32xbf16>, vector<112x32xf32> -> vector<112x32xf32>
    %c1168 = arith.constant 1168 : index
    %c0_128 = arith.constant 0 : index
    %266 = vector.load %arg7[%c1168, %c0_128] : memref<1296x32xbf16, #tpu.memory_space<vmem>>, vector<64x32xbf16>
    %cst_129 = arith.constant dense<0.000000e+00> : vector<112x32xf32>
    %267 = tpu.matmul %235, %266, %cst_129 {dimension_numbers = #tpu.dot_dimension_numbers<[1], [0], [0], [1], [0, 0, 1, 1], [], []>} : vector<112x64xbf16>, vector<64x32xbf16>, vector<112x32xf32> -> vector<112x32xf32>
    %c1232 = arith.constant 1232 : index
    %c0_130 = arith.constant 0 : index
    %268 = vector.load %arg7[%c1232, %c0_130] : memref<1296x32xbf16, #tpu.memory_space<vmem>>, vector<64x32xbf16>
    %cst_131 = arith.constant dense<0.000000e+00> : vector<112x32xf32>
    %269 = tpu.matmul %235, %268, %cst_131 {dimension_numbers = #tpu.dot_dimension_numbers<[1], [0], [0], [1], [0, 0, 1, 1], [], []>} : vector<112x64xbf16>, vector<64x32xbf16>, vector<112x32xf32> -> vector<112x32xf32>
    %270 = arith.truncf %265 : vector<112x32xf32> to vector<112x32xbf16>
    %271 = arith.truncf %267 : vector<112x32xf32> to vector<112x32xbf16>
    %cst_132 = arith.constant dense<0.000000e+00> : vector<112x112xf32>
    %272 = tpu.matmul %270, %271, %cst_132 {dimension_numbers = #tpu.dot_dimension_numbers<[1], [1], [0], [0], [0, 0, 1, 0], [], []>} : vector<112x32xbf16>, vector<112x32xbf16>, vector<112x112xf32> -> vector<112x112xf32>
    %c0_133 = arith.constant 0 : index
    %c0_134 = arith.constant 0 : index
    %273 = vector.load %arg5[%c0_133, %c0_134] : memref<112x112xf32, #tpu.memory_space<vmem>>, vector<112x112xf32>
    %274 = arith.addf %272, %273 : vector<112x112xf32>
    %cst_135 = arith.constant dense<0xFF800000> : vector<112xf32>
    %275 = vector.multi_reduction <maximumf>, %274, %cst_135 [1] : vector<112x112xf32> to vector<112xf32>
    %276 = vector.shape_cast %275 : vector<112xf32> to vector<112x1xf32>
    %277 = vector.broadcast %276 : vector<112x1xf32> to vector<112x112xf32>
    %278 = arith.subf %274, %277 : vector<112x112xf32>
    %279 = math.exp %278 : vector<112x112xf32>
    %cst_136 = arith.constant dense<0.000000e+00> : vector<112xf32>
    %280 = vector.multi_reduction <add>, %279, %cst_136 [1] : vector<112x112xf32> to vector<112xf32>
    %281 = vector.shape_cast %280 : vector<112xf32> to vector<112x1xf32>
    %282 = vector.broadcast %281 : vector<112x1xf32> to vector<112x112xf32>
    %283 = arith.divf %279, %282 : vector<112x112xf32>
    %284 = arith.truncf %283 : vector<112x112xf32> to vector<112x112xbf16>
    %285 = arith.truncf %269 : vector<112x32xf32> to vector<112x32xbf16>
    %cst_137 = arith.constant dense<0.000000e+00> : vector<112x32xf32>
    %286 = tpu.matmul %284, %285, %cst_137 {dimension_numbers = #tpu.dot_dimension_numbers<[1], [0], [0], [1], [0, 0, 1, 1], [], []>} : vector<112x112xbf16>, vector<112x32xbf16>, vector<112x32xf32> -> vector<112x32xf32>
    %c272 = arith.constant 272 : index
    %c0_138 = arith.constant 0 : index
    %287 = vector.load %arg8[%c272, %c0_138] : memref<816x64xbf16, #tpu.memory_space<vmem>>, vector<32x64xbf16>
    %288 = arith.truncf %286 : vector<112x32xf32> to vector<112x32xbf16>
    %cst_139 = arith.constant dense<0.000000e+00> : vector<112x64xf32>
    %289 = tpu.matmul %288, %287, %cst_139 {dimension_numbers = #tpu.dot_dimension_numbers<[1], [0], [0], [1], [0, 0, 1, 1], [], []>} : vector<112x32xbf16>, vector<32x64xbf16>, vector<112x64xf32> -> vector<112x64xf32>
    %290 = arith.addf %263, %289 : vector<112x64xf32>
    %291 = arith.addf %207, %290 : vector<112x64xf32>
    %292 = vector.broadcast %210 : vector<1x64xf32> to vector<112x64xf32>
    %293 = arith.addf %291, %292 : vector<112x64xf32>
    %cst_140 = arith.constant dense<0.000000e+00> : vector<112xf32>
    %294 = vector.multi_reduction <add>, %293, %cst_140 [1] : vector<112x64xf32> to vector<112xf32>
    %295 = vector.shape_cast %294 : vector<112xf32> to vector<112x1xf32>
    %cst_141 = arith.constant 6.400000e+01 : f32
    %296 = vector.broadcast %cst_141 : f32 to vector<112x1xf32>
    %297 = arith.divf %295, %296 : vector<112x1xf32>
    %298 = vector.broadcast %297 : vector<112x1xf32> to vector<112x64xf32>
    %299 = arith.subf %293, %298 : vector<112x64xf32>
    %300 = arith.mulf %299, %299 : vector<112x64xf32>
    %cst_142 = arith.constant dense<0.000000e+00> : vector<112xf32>
    %301 = vector.multi_reduction <add>, %300, %cst_142 [1] : vector<112x64xf32> to vector<112xf32>
    %302 = vector.shape_cast %301 : vector<112xf32> to vector<112x1xf32>
    %cst_143 = arith.constant 6.400000e+01 : f32
    %303 = vector.broadcast %cst_143 : f32 to vector<112x1xf32>
    %304 = arith.divf %302, %303 : vector<112x1xf32>
    %cst_144 = arith.constant 9.99999974E-6 : f32
    %305 = vector.broadcast %cst_144 : f32 to vector<112x1xf32>
    %306 = arith.addf %304, %305 : vector<112x1xf32>
    %307 = math.rsqrt %306 : vector<112x1xf32>
    %308 = vector.broadcast %307 : vector<112x1xf32> to vector<112x64xf32>
    %309 = arith.mulf %299, %308 : vector<112x64xf32>
    %310 = vector.broadcast %211 : vector<1x64xf32> to vector<112x64xf32>
    %311 = arith.mulf %309, %310 : vector<112x64xf32>
    %312 = vector.broadcast %212 : vector<1x64xf32> to vector<112x64xf32>
    %313 = arith.addf %311, %312 : vector<112x64xf32>
    %314 = arith.truncf %313 : vector<112x64xf32> to vector<112x64xbf16>
    %c64_145 = arith.constant 64 : index
    %c0_146 = arith.constant 0 : index
    %315 = vector.load %arg10[%c64_145, %c0_146] : memref<128x256xbf16, #tpu.memory_space<vmem>>, vector<64x256xbf16>
    %cst_147 = arith.constant dense<0.000000e+00> : vector<112x256xf32>
    %316 = tpu.matmul %314, %315, %cst_147 {dimension_numbers = #tpu.dot_dimension_numbers<[1], [0], [0], [1], [0, 0, 1, 1], [], []>} : vector<112x64xbf16>, vector<64x256xbf16>, vector<112x256xf32> -> vector<112x256xf32>
    %317 = vector.broadcast %214 : vector<1x256xf32> to vector<112x256xf32>
    %318 = arith.addf %316, %317 : vector<112x256xf32>
    %319 = arith.mulf %318, %318 : vector<112x256xf32>
    %320 = arith.mulf %318, %319 : vector<112x256xf32>
    %cst_148 = arith.constant 4.471500e-02 : f32
    %321 = vector.broadcast %cst_148 : f32 to vector<112x256xf32>
    %322 = arith.mulf %321, %320 : vector<112x256xf32>
    %323 = arith.addf %318, %322 : vector<112x256xf32>
    %cst_149 = arith.constant 0.797884583 : f32
    %324 = vector.broadcast %cst_149 : f32 to vector<112x256xf32>
    %325 = arith.mulf %324, %323 : vector<112x256xf32>
    %326 = math.tanh %325 : vector<112x256xf32>
    %cst_150 = arith.constant 1.000000e+00 : f32
    %327 = vector.broadcast %cst_150 : f32 to vector<112x256xf32>
    %328 = arith.addf %327, %326 : vector<112x256xf32>
    %cst_151 = arith.constant 5.000000e-01 : f32
    %329 = vector.broadcast %cst_151 : f32 to vector<112x256xf32>
    %330 = arith.mulf %329, %328 : vector<112x256xf32>
    %331 = arith.mulf %318, %330 : vector<112x256xf32>
    %332 = arith.truncf %331 : vector<112x256xf32> to vector<112x256xbf16>
    %c560 = arith.constant 560 : index
    %c0_152 = arith.constant 0 : index
    %333 = vector.load %arg8[%c560, %c0_152] : memref<816x64xbf16, #tpu.memory_space<vmem>>, vector<256x64xbf16>
    %cst_153 = arith.constant dense<0.000000e+00> : vector<112x64xf32>
    %334 = tpu.matmul %332, %333, %cst_153 {dimension_numbers = #tpu.dot_dimension_numbers<[1], [0], [0], [1], [0, 0, 1, 1], [], []>} : vector<112x256xbf16>, vector<256x64xbf16>, vector<112x64xf32> -> vector<112x64xf32>
    %335 = arith.addf %293, %334 : vector<112x64xf32>
    %336 = vector.broadcast %213 : vector<1x64xf32> to vector<112x64xf32>
    %337 = arith.addf %335, %336 : vector<112x64xf32>
    %c0_154 = arith.constant 0 : index
    %c0_155 = arith.constant 0 : index
    %338 = vector.load %arg9[%c0_154, %c0_155] : memref<256x128xbf16, #tpu.memory_space<vmem>>, vector<64x128xbf16>
    %c112 = arith.constant 112 : index
    %c0_156 = arith.constant 0 : index
    %339 = vector.load %arg8[%c112, %c0_156] : memref<816x64xbf16, #tpu.memory_space<vmem>>, vector<64x64xbf16>
    %c0_157 = arith.constant 0 : index
    %c0_158 = arith.constant 0 : index
    %340 = vector.load %arg13[%c0_157, %c0_158] : memref<2x128xf32, #tpu.memory_space<vmem>>, vector<1x128xf32>
    %c1_159 = arith.constant 1 : index
    %c0_160 = arith.constant 0 : index
    %341 = vector.load %arg13[%c1_159, %c0_160] : memref<2x128xf32, #tpu.memory_space<vmem>>, vector<1x128xf32>
    %c1_161 = arith.constant 1 : index
    %c0_162 = arith.constant 0 : index
    %342 = vector.load %arg12[%c1_161, %c0_162] : memref<14x64xf32, #tpu.memory_space<vmem>>, vector<1x64xf32>
    %343 = vector.extract_strided_slice %337 {offsets = [8, 0], sizes = [48, 64], strides = [1, 1]} : vector<112x64xf32> to vector<48x64xf32>
    %344 = arith.truncf %343 : vector<48x64xf32> to vector<48x64xbf16>
    %cst_163 = arith.constant dense<0.000000e+00> : vector<48x128xf32>
    %345 = tpu.matmul %344, %338, %cst_163 {dimension_numbers = #tpu.dot_dimension_numbers<[1], [0], [0], [1], [0, 0, 1, 1], [], []>} : vector<48x64xbf16>, vector<64x128xbf16>, vector<48x128xf32> -> vector<48x128xf32>
    %346 = vector.broadcast %340 : vector<1x128xf32> to vector<48x128xf32>
    %347 = arith.addf %345, %346 : vector<48x128xf32>
    %c0_164 = arith.constant 0 : index
    %c0_165 = arith.constant 0 : index
    %348 = vector.load %arg15[%c0_164, %c0_165] : memref<96x128xf32, #tpu.memory_space<vmem>>, vector<48x128xf32>
    tpu.vector_store %arg15[%c0_164, %c0_165], %347 {strides = array<i32>} : memref<96x128xf32, #tpu.memory_space<vmem>>, vector<48x128xf32>,
    %cst_166 = arith.constant dense<0.000000e+00> : vector<48x64xf32>
    %349 = tpu.matmul %344, %339, %cst_166 {dimension_numbers = #tpu.dot_dimension_numbers<[1], [0], [0], [1], [0, 0, 1, 1], [], []>} : vector<48x64xbf16>, vector<64x64xbf16>, vector<48x64xf32> -> vector<48x64xf32>
    %350 = vector.broadcast %342 : vector<1x64xf32> to vector<48x64xf32>
    %351 = arith.addf %349, %350 : vector<48x64xf32>
    %352 = vector.extract_strided_slice %351 {offsets = [0, 0], sizes = [16, 64], strides = [1, 1]} : vector<48x64xf32> to vector<16x64xf32>
    %cst_167 = arith.constant dense<0xFF800000> : vector<64xf32>
    %353 = vector.multi_reduction <maximumf>, %352, %cst_167 [0] : vector<16x64xf32> to vector<64xf32>
    %354 = vector.shape_cast %353 : vector<64xf32> to vector<1x64xf32>
    %c64_168 = arith.constant 64 : index
    %c0_169 = arith.constant 0 : index
    %355 = vector.load %arg9[%c64_168, %c0_169] : memref<256x128xbf16, #tpu.memory_space<vmem>>, vector<64x128xbf16>
    %356 = arith.truncf %354 : vector<1x64xf32> to vector<1x64xbf16>
    %cst_170 = arith.constant dense<0.000000e+00> : vector<1x128xf32>
    %357 = tpu.matmul %356, %355, %cst_170 {dimension_numbers = #tpu.dot_dimension_numbers<[1], [0], [0], [1], [0, 0, 1, 1], [], []>} : vector<1x64xbf16>, vector<64x128xbf16>, vector<1x128xf32> -> vector<1x128xf32>
    %358 = arith.addf %341, %357 : vector<1x128xf32>
    %359 = vector.extract_strided_slice %351 {offsets = [16, 0], sizes = [16, 64], strides = [1, 1]} : vector<48x64xf32> to vector<16x64xf32>
    %cst_171 = arith.constant dense<0xFF800000> : vector<64xf32>
    %360 = vector.multi_reduction <maximumf>, %359, %cst_171 [0] : vector<16x64xf32> to vector<64xf32>
    %361 = vector.shape_cast %360 : vector<64xf32> to vector<1x64xf32>
    %c128 = arith.constant 128 : index
    %c0_172 = arith.constant 0 : index
    %362 = vector.load %arg9[%c128, %c0_172] : memref<256x128xbf16, #tpu.memory_space<vmem>>, vector<64x128xbf16>
    %363 = arith.truncf %361 : vector<1x64xf32> to vector<1x64xbf16>
    %cst_173 = arith.constant dense<0.000000e+00> : vector<1x128xf32>
    %364 = tpu.matmul %363, %362, %cst_173 {dimension_numbers = #tpu.dot_dimension_numbers<[1], [0], [0], [1], [0, 0, 1, 1], [], []>} : vector<1x64xbf16>, vector<64x128xbf16>, vector<1x128xf32> -> vector<1x128xf32>
    %365 = arith.addf %358, %364 : vector<1x128xf32>
    %366 = vector.extract_strided_slice %351 {offsets = [32, 0], sizes = [16, 64], strides = [1, 1]} : vector<48x64xf32> to vector<16x64xf32>
    %cst_174 = arith.constant dense<0xFF800000> : vector<64xf32>
    %367 = vector.multi_reduction <maximumf>, %366, %cst_174 [0] : vector<16x64xf32> to vector<64xf32>
    %368 = vector.shape_cast %367 : vector<64xf32> to vector<1x64xf32>
    %c192 = arith.constant 192 : index
    %c0_175 = arith.constant 0 : index
    %369 = vector.load %arg9[%c192, %c0_175] : memref<256x128xbf16, #tpu.memory_space<vmem>>, vector<64x128xbf16>
    %370 = arith.truncf %368 : vector<1x64xf32> to vector<1x64xbf16>
    %cst_176 = arith.constant dense<0.000000e+00> : vector<1x128xf32>
    %371 = tpu.matmul %370, %369, %cst_176 {dimension_numbers = #tpu.dot_dimension_numbers<[1], [0], [0], [1], [0, 0, 1, 1], [], []>} : vector<1x64xbf16>, vector<64x128xbf16>, vector<1x128xf32> -> vector<1x128xf32>
    %372 = arith.addf %365, %371 : vector<1x128xf32>
    %c0_177 = arith.constant 0 : index
    %c0_178 = arith.constant 0 : index
    %373 = vector.load %arg16[%c0_177, %c0_178] : memref<2x128xf32, #tpu.memory_space<vmem>>, vector<1x128xf32>
    tpu.vector_store %arg16[%c0_177, %c0_178], %372 {strides = array<i32>} : memref<2x128xf32, #tpu.memory_space<vmem>>, vector<1x128xf32>,
    %374 = vector.extract_strided_slice %337 {offsets = [64, 0], sizes = [48, 64], strides = [1, 1]} : vector<112x64xf32> to vector<48x64xf32>
    %375 = arith.truncf %374 : vector<48x64xf32> to vector<48x64xbf16>
    %cst_179 = arith.constant dense<0.000000e+00> : vector<48x128xf32>
    %376 = tpu.matmul %375, %338, %cst_179 {dimension_numbers = #tpu.dot_dimension_numbers<[1], [0], [0], [1], [0, 0, 1, 1], [], []>} : vector<48x64xbf16>, vector<64x128xbf16>, vector<48x128xf32> -> vector<48x128xf32>
    %377 = vector.broadcast %340 : vector<1x128xf32> to vector<48x128xf32>
    %378 = arith.addf %376, %377 : vector<48x128xf32>
    %c48_180 = arith.constant 48 : index
    %c0_181 = arith.constant 0 : index
    %379 = vector.load %arg15[%c48_180, %c0_181] : memref<96x128xf32, #tpu.memory_space<vmem>>, vector<48x128xf32>
    tpu.vector_store %arg15[%c48_180, %c0_181], %378 {strides = array<i32>} : memref<96x128xf32, #tpu.memory_space<vmem>>, vector<48x128xf32>,
    %cst_182 = arith.constant dense<0.000000e+00> : vector<48x64xf32>
    %380 = tpu.matmul %375, %339, %cst_182 {dimension_numbers = #tpu.dot_dimension_numbers<[1], [0], [0], [1], [0, 0, 1, 1], [], []>} : vector<48x64xbf16>, vector<64x64xbf16>, vector<48x64xf32> -> vector<48x64xf32>
    %381 = vector.broadcast %342 : vector<1x64xf32> to vector<48x64xf32>
    %382 = arith.addf %380, %381 : vector<48x64xf32>
    %383 = vector.extract_strided_slice %382 {offsets = [0, 0], sizes = [16, 64], strides = [1, 1]} : vector<48x64xf32> to vector<16x64xf32>
    %cst_183 = arith.constant dense<0xFF800000> : vector<64xf32>
    %384 = vector.multi_reduction <maximumf>, %383, %cst_183 [0] : vector<16x64xf32> to vector<64xf32>
    %385 = vector.shape_cast %384 : vector<64xf32> to vector<1x64xf32>
    %c64_184 = arith.constant 64 : index
    %c0_185 = arith.constant 0 : index
    %386 = vector.load %arg9[%c64_184, %c0_185] : memref<256x128xbf16, #tpu.memory_space<vmem>>, vector<64x128xbf16>
    %387 = arith.truncf %385 : vector<1x64xf32> to vector<1x64xbf16>
    %cst_186 = arith.constant dense<0.000000e+00> : vector<1x128xf32>
    %388 = tpu.matmul %387, %386, %cst_186 {dimension_numbers = #tpu.dot_dimension_numbers<[1], [0], [0], [1], [0, 0, 1, 1], [], []>} : vector<1x64xbf16>, vector<64x128xbf16>, vector<1x128xf32> -> vector<1x128xf32>
    %389 = arith.addf %341, %388 : vector<1x128xf32>
    %390 = vector.extract_strided_slice %382 {offsets = [16, 0], sizes = [16, 64], strides = [1, 1]} : vector<48x64xf32> to vector<16x64xf32>
    %cst_187 = arith.constant dense<0xFF800000> : vector<64xf32>
    %391 = vector.multi_reduction <maximumf>, %390, %cst_187 [0] : vector<16x64xf32> to vector<64xf32>
    %392 = vector.shape_cast %391 : vector<64xf32> to vector<1x64xf32>
    %c128_188 = arith.constant 128 : index
    %c0_189 = arith.constant 0 : index
    %393 = vector.load %arg9[%c128_188, %c0_189] : memref<256x128xbf16, #tpu.memory_space<vmem>>, vector<64x128xbf16>
    %394 = arith.truncf %392 : vector<1x64xf32> to vector<1x64xbf16>
    %cst_190 = arith.constant dense<0.000000e+00> : vector<1x128xf32>
    %395 = tpu.matmul %394, %393, %cst_190 {dimension_numbers = #tpu.dot_dimension_numbers<[1], [0], [0], [1], [0, 0, 1, 1], [], []>} : vector<1x64xbf16>, vector<64x128xbf16>, vector<1x128xf32> -> vector<1x128xf32>
    %396 = arith.addf %389, %395 : vector<1x128xf32>
    %397 = vector.extract_strided_slice %382 {offsets = [32, 0], sizes = [16, 64], strides = [1, 1]} : vector<48x64xf32> to vector<16x64xf32>
    %cst_191 = arith.constant dense<0xFF800000> : vector<64xf32>
    %398 = vector.multi_reduction <maximumf>, %397, %cst_191 [0] : vector<16x64xf32> to vector<64xf32>
    %399 = vector.shape_cast %398 : vector<64xf32> to vector<1x64xf32>
    %c192_192 = arith.constant 192 : index
    %c0_193 = arith.constant 0 : index
    %400 = vector.load %arg9[%c192_192, %c0_193] : memref<256x128xbf16, #tpu.memory_space<vmem>>, vector<64x128xbf16>
    %401 = arith.truncf %399 : vector<1x64xf32> to vector<1x64xbf16>
    %cst_194 = arith.constant dense<0.000000e+00> : vector<1x128xf32>
    %402 = tpu.matmul %401, %400, %cst_194 {dimension_numbers = #tpu.dot_dimension_numbers<[1], [0], [0], [1], [0, 0, 1, 1], [], []>} : vector<1x64xbf16>, vector<64x128xbf16>, vector<1x128xf32> -> vector<1x128xf32>
    %403 = arith.addf %396, %402 : vector<1x128xf32>
    %c1_195 = arith.constant 1 : index
    %c0_196 = arith.constant 0 : index
    %404 = vector.load %arg16[%c1_195, %c0_196] : memref<2x128xf32, #tpu.memory_space<vmem>>, vector<1x128xf32>
    tpu.vector_store %arg16[%c1_195, %c0_196], %403 {strides = array<i32>} : memref<2x128xf32, #tpu.memory_space<vmem>>, vector<1x128xf32>,
    return
  }
  func.func @transform_0(%arg0: i32) -> (i32, i32) {
    %c0_i32 = arith.constant 0 : i32
    %c0_i32_0 = arith.constant 0 : i32
    %c0_i32_1 = arith.constant 0 : i32
    return %c0_i32, %c0_i32_0 : i32, i32
  }
  func.func @transform_1(%arg0: i32) -> (i32, i32) {
    %c0_i32 = arith.constant 0 : i32
    %c0_i32_0 = arith.constant 0 : i32
    %c0_i32_1 = arith.constant 0 : i32
    return %c0_i32, %c0_i32_0 : i32, i32
  }
  func.func @transform_2(%arg0: i32) -> (i32, i32) {
    %c0_i32 = arith.constant 0 : i32
    %c0_i32_0 = arith.constant 0 : i32
    %c0_i32_1 = arith.constant 0 : i32
    return %c0_i32, %c0_i32_0 : i32, i32
  }
  func.func @transform_3(%arg0: i32) -> (i32, i32) {
    %c0_i32 = arith.constant 0 : i32
    %c0_i32_0 = arith.constant 0 : i32
    %c0_i32_1 = arith.constant 0 : i32
    return %c0_i32, %c0_i32_0 : i32, i32
  }
  func.func @transform_4(%arg0: i32) -> (i32, i32) {
    %c0_i32 = arith.constant 0 : i32
    %c0_i32_0 = arith.constant 0 : i32
    %c0_i32_1 = arith.constant 0 : i32
    return %c0_i32, %c0_i32_0 : i32, i32
  }
  func.func @transform_5(%arg0: i32) -> (i32, i32) {
    %c0_i32 = arith.constant 0 : i32
    %c0_i32_0 = arith.constant 0 : i32
    %c0_i32_1 = arith.constant 0 : i32
    return %c0_i32, %c0_i32_0 : i32, i32
  }
  func.func @transform_6(%arg0: i32) -> (i32, i32) {
    %c0_i32 = arith.constant 0 : i32
    %c0_i32_0 = arith.constant 0 : i32
    %c0_i32_1 = arith.constant 0 : i32
    return %c0_i32, %c0_i32_0 : i32, i32
  }
  func.func @transform_7(%arg0: i32) -> (i32, i32) {
    %c0_i32 = arith.constant 0 : i32
    %c0_i32_0 = arith.constant 0 : i32
    %c0_i32_1 = arith.constant 0 : i32
    return %c0_i32, %c0_i32_0 : i32, i32
  }
  func.func @transform_8(%arg0: i32) -> (i32, i32) {
    %c0_i32 = arith.constant 0 : i32
    %c0_i32_0 = arith.constant 0 : i32
    %c0_i32_1 = arith.constant 0 : i32
    return %c0_i32, %c0_i32_0 : i32, i32
  }
  func.func @transform_9(%arg0: i32) -> (i32, i32) {
    %c0_i32 = arith.constant 0 : i32
    %c0_i32_0 = arith.constant 0 : i32
    %c0_i32_1 = arith.constant 0 : i32
    return %c0_i32, %c0_i32_0 : i32, i32
  }
  func.func @transform_10(%arg0: i32) -> (i32, i32) {
    %c0_i32 = arith.constant 0 : i32
    %c0_i32_0 = arith.constant 0 : i32
    %c0_i32_1 = arith.constant 0 : i32
    return %c0_i32, %c0_i32_0 : i32, i32
  }
  func.func @transform_11(%arg0: i32) -> (i32, i32) {
    %c0_i32 = arith.constant 0 : i32
    %c0_i32_0 = arith.constant 0 : i32
    %c0_i32_1 = arith.constant 0 : i32
    return %c0_i32, %c0_i32_0 : i32, i32
  }
  func.func @transform_12(%arg0: i32) -> (i32, i32) {
    %c0_i32 = arith.constant 0 : i32
    %c0_i32_0 = arith.constant 0 : i32
    %c0_i32_1 = arith.constant 0 : i32
    return %c0_i32, %c0_i32_0 : i32, i32
  }
  func.func @transform_13(%arg0: i32) -> (i32, i32) {
    %c0_i32 = arith.constant 0 : i32
    %c0_i32_0 = arith.constant 0 : i32
    %c0_i32_1 = arith.constant 0 : i32
    return %c0_i32, %c0_i32_0 : i32, i32
  }
  func.func @transform_14(%arg0: i32) -> (i32, i32) {
    %c0_i32 = arith.constant 0 : i32
    %c0_i32_0 = arith.constant 0 : i32
    %c0_i32_1 = arith.constant 0 : i32
    return %c0_i32, %c0_i32_0 : i32, i32
  }
  func.func @transform_15(%arg0: i32) -> (i32, i32) {
    %c0_i32 = arith.constant 0 : i32
    %c0_i32_0 = arith.constant 0 : i32
    %c0_i32_1 = arith.constant 0 : i32
    return %c0_i32, %c0_i32_0 : i32, i32
  }
}

</mosaic_0001>

<bundles_post_ra>
// kernel: mvt_forward.1
= control target key start
LH: loop header
LB: loop body
LE: loop exit
PB: predicated region body
PF: predicated region fallthrough
CT: control target
= control target key end

     0   :  { %vm351_vm0 = vcmask 392192   ;;  %s16292_s0 = inlined_call_operand.vmem [shape: f32[96,176], index: 0, kind: input, shape index: {}]   ;;  %s16293_s1 = inlined_call_operand.vmem [shape: f32[2,16], index: 1, kind: input, shape index: {}]   ;;  %s16294_s2 = inlined_call_operand.vmem [shape: f32[16,48], index: 2, kind: input, shape index: {}]   ;;  %s16295_s3 = inlined_call_operand.vmem [shape: f32[48,64], index: 3, kind: input, shape index: {}]   ;;  %s16296_s4 = inlined_call_operand.vmem [shape: f32[112,112], index: 4, kind: input, shape index: {}]   ;;  %s16297_s5 = inlined_call_operand.vmem [shape: bf16[176,512], index: 5, kind: input, shape index: {}]   ;;  %s16298_s6 = inlined_call_operand.vmem [shape: bf16[1296,32], index: 6, kind: input, shape index: {}]   ;;  %s16299_s7 = inlined_call_operand.vmem [shape: bf16[816,64], index: 7, kind: input, shape index: {}]   ;;  %s16300_s8 = inlined_call_operand.vmem [shape: bf16[256,128], index: 8, kind: input, shape index: {}]   ;;  %s16301_s9 = inlined_call_operand.vmem [shape: bf16[128,256], index: 9, kind: input, shape index: {}]   ;;  %s16302_s10 = inlined_call_operand.vmem [shape: f32[1,32], index: 10, kind: input, shape index: {}]   ;;  %s16303_s11 = inlined_call_operand.vmem [shape: f32[14,64], index: 11, kind: input, shape index: {}]   ;;  %s16304_s12 = inlined_call_operand.vmem [shape: f32[2,128], index: 12, kind: input, shape index: {}]   ;;  %s16305_s13 = inlined_call_operand.vmem [shape: f32[2,256], index: 13, kind: input, shape index: {}]   ;;  %s16306_s14 = inlined_call_operand.vmem [shape: f32[96,128], index: 14, kind: output, shape index: {0}]   ;;  %s16307_s15 = inlined_call_operand.hbm [shape: f32[2,128], index: 15, kind: output, shape index: {1}]  }
   0x1   :  { %v10862_v0 = vld [vmem:[%s16297_s5 + $0x4] ss:$16 sps:$4 sm:$0xff]   ;;  %v10864_v1 = vld [vmem:[%s16297_s5 + $0xc] ss:$16 sps:$4 sm:$0xff]   ;;  %v10866_v2 = vld [vmem:[%s16297_s5] ss:$16 sps:$4 sm:$0xff]  }
   0x2   :  { %370 = vmatprep.subr.bf16.mxu0 %v10862_v0  ;;  %v10867_v3 = vld [vmem:[%s16297_s5 + $0x8] ss:$16 sps:$4 sm:$0xff]   ;;  %463 = vmatprep.subr.bf16.mxu1 %v10864_v1  ;;  %v10868_v4 = vld [vmem:[%s16297_s5 + $0x24] ss:$16 sps:$4 sm:$0xff]   ;;  %v10870_v5 = vld [vmem:[%s16297_s5 + $0x2c] ss:$16 sps:$4 sm:$0xff]  }
   0x3   :  { %371 = vmatpush1.bf16.msra.mxu0 %v10866_v2  ;;  %464 = vmatpush1.bf16.msra.mxu1 %v10867_v3  ;;  %v10872_v6 = vld [vmem:[%s16297_s5 + $0x20] ss:$16 sps:$4 sm:$0xff]   ;;  %v10873_v7 = vld [vmem:[%s16297_s5 + $0x28] ss:$16 sps:$4 sm:$0xff]   ;;  %v10874_v8 = vld [vmem:[%s16297_s5 + $0x44] ss:$16 sps:$4 sm:$0xff]  }
   0x4   :  { %372 = vmatprep.subr.bf16.mxu0 %v10868_v4  ;;  %465 = vmatprep.subr.bf16.mxu1 %v10870_v5  ;;  %v10876_v9 = vld [vmem:[%s16297_s5 + $0x4c] ss:$16 sps:$4 sm:$0xff]   ;;  %v10878_v10 = vld [vmem:[%s16297_s5 + $0x40] ss:$16 sps:$4 sm:$0xff]   ;;  %v10879_v11 = vld [vmem:[%s16297_s5 + $0x48] ss:$16 sps:$4 sm:$0xff]  }
   0x5   :  { %v10880_v12 = vld [vmem:[%s16297_s5 + $0x64] ss:$16 sps:$4 sm:$0xff]   ;;  %v10882_v13 = vld [vmem:[%s16297_s5 + $0x6c] ss:$16 sps:$4 sm:$0xff]   ;;  %v10884_v14 = vld [vmem:[%s16297_s5 + $0x60] ss:$16 sps:$4 sm:$0xff]  }
   0x6   :  { %v10885_v15 = vld [vmem:[%s16297_s5 + $0x68] ss:$16 sps:$4 sm:$0xff]   ;;  %v10886_v16 = vld [vmem:[%s16297_s5 + $0x84] ss:$16 sps:$4 sm:$0xff]   ;;  %v10888_v17 = vld [vmem:[%s16297_s5 + $0x8c] ss:$16 sps:$4 sm:$0xff]  }
   0x7   :  { %373 = vmatpush1.bf16.msra.mxu0 %v10872_v6  ;;  %466 = vmatpush1.bf16.msra.mxu1 %v10873_v7  ;;  %v10890_v18 = vld [vmem:[%s16297_s5 + $0x80] ss:$16 sps:$4 sm:$0xff]   ;;  %v10891_v19 = vld [vmem:[%s16297_s5 + $0x88] ss:$16 sps:$4 sm:$0xff]   ;;  %v10892_v20 = vld [vmem:[%s16297_s5 + $0xa4] ss:$16 sps:$4 sm:$0xff]  }
   0x8   :  { %374 = vmatprep.subr.bf16.mxu0 %v10874_v8  ;;  %467 = vmatprep.subr.bf16.mxu1 %v10876_v9  ;;  %v10894_v21 = vld [vmem:[%s16297_s5 + $0xac] ss:$16 sps:$4 sm:$0xff]   ;;  %v10896_v22 = vld [vmem:[%s16297_s5 + $0xa0] ss:$16 sps:$4 sm:$0xff]   ;;  %v10897_v23 = vld [vmem:[%s16297_s5 + $0xa8] ss:$16 sps:$4 sm:$0xff]  }
   0x9   :  { %v10898_v24 = vld [vmem:[%s16297_s5 + $0xc4] ss:$16 sps:$4 sm:$0xff]   ;;  %v10900_v25 = vld [vmem:[%s16297_s5 + $0xcc] ss:$16 sps:$4 sm:$0xff]   ;;  %v10902_v26 = vld [vmem:[%s16297_s5 + $0xc0] ss:$16 sps:$4 sm:$0xff]  }
   0xa   :  { %v10903_v27 = vld [vmem:[%s16297_s5 + $0xc8] ss:$16 sps:$4 sm:$0xff]   ;;  %v10904_v28 = vld [vmem:[%s16297_s5 + $0xe4] ss:$16 sps:$4 sm:$0xff]   ;;  %v10906_v29 = vld [vmem:[%s16297_s5 + $0xec] ss:$16 sps:$4 sm:$0xff]  }
   0xb   :  { %375 = vmatpush1.bf16.msra.mxu0 %v10878_v10  ;;  %468 = vmatpush1.bf16.msra.mxu1 %v10879_v11  ;;  %v10908_v30 = vld [vmem:[%s16297_s5 + $0xe0] ss:$16 sps:$4 sm:$0xff]   ;;  %v10909_v31 = vld [vmem:[%s16297_s5 + $0xe8] ss:$16 sps:$4 sm:$0xff]   ;;  %v10910_v32 = vld [vmem:[%s16297_s5 + $0x104] ss:$16 sps:$4 sm:$0xff]  }
   0xc   :  { %376 = vmatprep.subr.bf16.mxu0 %v10880_v12  ;;  %469 = vmatprep.subr.bf16.mxu1 %v10882_v13  ;;  %v10912_v33 = vld [vmem:[%s16297_s5 + $0x10c] ss:$16 sps:$4 sm:$0xff]   ;;  %v10914_v37 = vld [vmem:[%s16297_s5 + $0x100] ss:$16 sps:$4 sm:$0xff]   ;;  %v10915_v38 = vld [vmem:[%s16297_s5 + $0x108] ss:$16 sps:$4 sm:$0xff]  }
   0xd   :  { %v52_v34 = vld [vmem:[%s16292_s0 + $0x8] sm:$0xff]  ;;  %v54_v35 = vld [vmem:[%s16292_s0 + $0x18] sm:$0xff]  ;;  %v10916_v39 = vld [vmem:[%s16297_s5 + $0x124] ss:$16 sps:$4 sm:$0xff]  }
   0xe   :  { %v120_v36 = vpack.c.bf16 %v54_v35, %v52_v34  ;;  %v10918_v40 = vld [vmem:[%s16297_s5 + $0x12c] ss:$16 sps:$4 sm:$0xff]   ;;  %v10920_v41 = vld [vmem:[%s16297_s5 + $0x120] ss:$16 sps:$4 sm:$0xff]   ;;  %v10921_v42 = vld [vmem:[%s16297_s5 + $0x128] ss:$16 sps:$4 sm:$0xff]  }
   0xf   :  { %377 = vmatpush1.bf16.msra.mxu0 %v10884_v14  ;;  %470 = vmatpush1.bf16.msra.mxu1 %v10885_v15  ;;  %v10922_v43 = vld [vmem:[%s16297_s5 + $0x144] ss:$16 sps:$4 sm:$0xff]   ;;  %v10924_v44 = vld [vmem:[%s16297_s5 + $0x14c] ss:$16 sps:$4 sm:$0xff]   ;;  %v10926_v45 = vld [vmem:[%s16297_s5 + $0x140] ss:$16 sps:$4 sm:$0xff]  }
  0x10   :  { %378 = vmatprep.subr.bf16.mxu0 %v10886_v16  ;;  %471 = vmatprep.subr.bf16.mxu1 %v10888_v17  ;;  %v10927_v46 = vld [vmem:[%s16297_s5 + $0x148] ss:$16 sps:$4 sm:$0xff]   ;;  %v51_v47 = vld [vmem:[%s16292_s0] sm:$0xff]  ;;  %v53_v48 = vld [vmem:[%s16292_s0 + $0x10] sm:$0xff] }
  0x11   :  { %8718 = vmatprep.mubr.msk.bf16.mxu0 %vm351_vm0, %v120_v36  ;;  %8724 = vmatprep.mubr.msk.bf16.mxu1 %vm351_vm0, %v120_v36  ;;  %v56_v49 = vld [vmem:[%s16292_s0 + $0x28] sm:$0xff]  ;;  %v58_v50 = vld [vmem:[%s16292_s0 + $0x38] sm:$0xff]  ;;  %v10928_v51 = vld [vmem:[%s16298_s6 + $0x40] sm:$0xff]   ;;  %v119_v53 = vpack.c.bf16 %v53_v48, %v51_v47  ;;  %v16316_v48 = vmov 0.0  }
  0x12   :  { %v10931_v52 = vld [vmem:[%s16298_s6 + $0xc0] sm:$0xff]   ;;  %v122_v55 = vpack.c.bf16 %v58_v50, %v56_v49  ;;  %v10930_v56 = vld [vmem:[%s16298_s6 + $0x48] sm:$0xff]   ;;  %v57_v59 = vld [vmem:[%s16292_s0 + $0x30] sm:$0xff] }
  0x13   :  { %379 = vmatpush1.bf16.msra.mxu0 %v10890_v18  ;;  %472 = vmatpush1.bf16.msra.mxu1 %v10891_v19  ;;  %v10929_v54 = vld [vmem:[%s16298_s6] sm:$0xff]   ;;  %v10935_v60 = vld [vmem:[%s16298_s6 + $0xc8] sm:$0xff]   ;;  %v62_v62 = vld [vmem:[%s16292_s0 + $0x58] sm:$0xff] }
  0x14   :  { %380 = vmatprep.subr.bf16.mxu0 %v10892_v20  ;;  %473 = vmatprep.subr.bf16.mxu1 %v10894_v21  ;;  %v10933_v57 = vld [vmem:[%s16298_s6 + $0x80] sm:$0xff]   ;;  %v60_v61 = vld [vmem:[%s16292_s0 + $0x48] sm:$0xff]  ;;  %v10934_v0 = vld [vmem:[%s16298_s6 + $0x50] sm:$0xff]  }
  0x15   :  { %v55_v58 = vld [vmem:[%s16292_s0 + $0x20] sm:$0xff]  ;;  %v10932_v63 = vld [vmem:[%s16298_s6 + $0x8] sm:$0xff]   ;;  %v10939_v2 = vld [vmem:[%s16298_s6 + $0xd0] sm:$0xff]   ;;  %v124_v5 = vpack.c.bf16 %v62_v62, %v60_v61 }
  0x16   :  { %v10937_v1 = vld [vmem:[%s16298_s6 + $0x88] sm:$0xff]   ;;  %v121_v3 = vpack.c.bf16 %v57_v59, %v55_v58  ;;  %v10936_v4 = vld [vmem:[%s16298_s6 + $0x10] sm:$0xff]   ;;  %v10938_v6 = vld [vmem:[%s16298_s6 + $0x58] sm:$0xff]  }
  0x17   :  { %381 = vmatpush1.bf16.msra.mxu0 %v10896_v22  ;;  %474 = vmatpush1.bf16.msra.mxu1 %v10897_v23  ;;  %v10941_v7 = vld [vmem:[%s16298_s6 + $0x90] sm:$0xff]   ;;  %v59_v8 = vld [vmem:[%s16292_s0 + $0x40] sm:$0xff]  ;;  %v10943_v10 = vld [vmem:[%s16298_s6 + $0xd8] sm:$0xff]  }
  0x18   :  { %382 = vmatprep.subr.bf16.mxu0 %v10898_v24  ;;  %475 = vmatprep.subr.bf16.mxu1 %v10900_v25  ;;  %v61_v9 = vld [vmem:[%s16292_s0 + $0x50] sm:$0xff]  ;;  %v64_v11 = vld [vmem:[%s16292_s0 + $0x68] sm:$0xff]  ;;  %v66_v12 = vld [vmem:[%s16292_s0 + $0x78] sm:$0xff] }
  0x19   :  { %v10940_v13 = vld [vmem:[%s16298_s6 + $0x18] sm:$0xff]   ;;  %v10942_v14 = vld [vmem:[%s16298_s6 + $0x60] sm:$0xff]   ;;  %v123_v17 = vpack.c.bf16 %v61_v9, %v59_v8  ;;  %v126_v19 = vpack.c.bf16 %v66_v12, %v64_v11  ;;  %v10946_v20 = vld [vmem:[%s16298_s6 + $0x68] sm:$0xff]  }
  0x1a   :  { %v10945_v15 = vld [vmem:[%s16298_s6 + $0x98] sm:$0xff]   ;;  %v10947_v16 = vld [vmem:[%s16298_s6 + $0xe0] sm:$0xff]   ;;  %v65_v23 = vld [vmem:[%s16292_s0 + $0x70] sm:$0xff] }
  0x1b   :  { %383 = vmatpush1.bf16.msra.mxu0 %v10902_v26  ;;  %476 = vmatpush1.bf16.msra.mxu1 %v10903_v27  ;;  %v10944_v18 = vld [vmem:[%s16298_s6 + $0x20] sm:$0xff]   ;;  %v10951_v24 = vld [vmem:[%s16298_s6 + $0xe8] sm:$0xff]   ;;  %v70_v26 = vld [vmem:[%s16292_s0 + $0x98] sm:$0xff] }
  0x1c   :  { %384 = vmatprep.subr.bf16.mxu0 %v10904_v28  ;;  %477 = vmatprep.subr.bf16.mxu1 %v10906_v29  ;;  %v10949_v21 = vld [vmem:[%s16298_s6 + $0xa0] sm:$0xff]   ;;  %v68_v25 = vld [vmem:[%s16292_s0 + $0x88] sm:$0xff]  ;;  %v10950_v29 = vld [vmem:[%s16298_s6 + $0x70] sm:$0xff]  }
  0x1d   :  { %v63_v22 = vld [vmem:[%s16292_s0 + $0x60] sm:$0xff]  ;;  %v10948_v27 = vld [vmem:[%s16298_s6 + $0x28] sm:$0xff]   ;;  %v69_v34 = vld [vmem:[%s16292_s0 + $0x90] sm:$0xff] }
  0x1e   :  { %v10953_v28 = vld [vmem:[%s16298_s6 + $0xa8] sm:$0xff]   ;;  %v74_v36 = vld [vmem:[%s16292_s0 + $0xb8] sm:$0xff] }
  0x1f   :  { %385 = vmatpush1.bf16.msra.mxu0 %v10908_v30  ;;  %478 = vmatpush1.bf16.msra.mxu1 %v10909_v31  ;;  %v125_v30 = vpack.c.bf16 %v65_v23, %v63_v22  ;;  %v10952_v31 = vld [vmem:[%s16298_s6 + $0x30] sm:$0xff]   ;;  %v72_v35 = vld [vmem:[%s16292_s0 + $0xa8] sm:$0xff]  ;;  %v10959_v47 = vld [vmem:[%s16298_s6 + $0xb8] sm:$0xff]  }
  0x20   :  { %386 = vmatprep.subr.bf16.mxu0 %v10910_v32  ;;  %479 = vmatprep.subr.bf16.mxu1 %v10912_v33  ;;  %v128_v32 = vpack.c.bf16 %v70_v26, %v68_v25  ;;  %v67_v33 = vld [vmem:[%s16292_s0 + $0x80] sm:$0xff] }
  0x23   :  { %387 = vmatpush1.bf16.msra.mxu0 %v10914_v37  ;;  %480 = vmatpush1.bf16.msra.mxu1 %v10915_v38  ;;  %v127_v37 = vpack.c.bf16 %v69_v34, %v67_v33  ;;  %v130_v38 = vpack.c.bf16 %v74_v36, %v72_v35 }
  0x24   :  { %388 = vmatprep.subr.bf16.mxu0 %v10916_v39  ;;  %481 = vmatprep.subr.bf16.mxu1 %v10918_v40  ;;  %v71_v39 = vld [vmem:[%s16292_s0 + $0xa0] sm:$0xff]  ;;  %v73_v40 = vld [vmem:[%s16292_s0 + $0xb0] sm:$0xff] }
  0x27   :  { %389 = vmatpush1.bf16.msra.mxu0 %v10920_v41  ;;  %482 = vmatpush1.bf16.msra.mxu1 %v10921_v42  ;;  %v129_v41 = vpack.c.bf16 %v73_v40, %v71_v39  ;;  %v10954_v42 = vld [vmem:[%s16298_s6 + $0xf0] sm:$0xff]  }
  0x28   :  { %390 = vmatprep.subr.bf16.mxu0 %v10922_v43  ;;  %483 = vmatprep.subr.bf16.mxu1 %v10924_v44  ;;  %v10955_v43 = vld [vmem:[%s16298_s6 + $0xb0] sm:$0xff]   ;;  %v10956_v44 = vld [vmem:[%s16298_s6 + $0x78] sm:$0xff]  }
  0x2b   :  { %391 = vmatpush1.bf16.msra.mxu0 %v10926_v45  ;;  %484 = vmatpush1.bf16.msra.mxu1 %v10927_v46  ;;  %v10958_v45 = vld [vmem:[%s16298_s6 + $0xf8] sm:$0xff]  }
  0x2c   :  { %9134 = vmatprep.subr.bf16.mxu0 %v10928_v51  ;;  %9186 = vmatprep.subr.bf16.mxu1 %v10931_v52  ;;  %v10957_v46 = vld [vmem:[%s16298_s6 + $0x38] sm:$0xff]  }
  0x2e   :  { %403 = vmatmul.mubr.bf16.vlgmr.msra.gmra.mrb[0].mxu0 %v119_v53  ;;  %496 = vmatmul.mubr.bf16.vlgmr.msra.gmra.mrb[0].mxu1 %v119_v53 }
  0x2f   :  { %8719 = vmatprep.mubr.msk.bf16.mxu0 %vm351_vm0, %v122_v55  ;;  %8725 = vmatprep.mubr.msk.bf16.mxu1 %vm351_vm0, %v122_v55 }
  0x30   :  { %9135 = vmatpush3.bf16.msra.mxu0 %v10929_v54  ;;  %9187 = vmatpush3.bf16.msra.mxu1 %v10933_v57 }
  0x31   :  { %9136 = vmatprep.subr.bf16.mxu0 %v10930_v56  ;;  %9188 = vmatprep.subr.bf16.mxu1 %v10935_v60 }
  0x34   :  { %9137 = vmatpush3.bf16.msra.mxu0 %v10932_v63  ;;  %9189 = vmatpush3.bf16.msra.mxu1 %v10937_v1 }
  0x35   :  { %9138 = vmatprep.subr.bf16.mxu0 %v10934_v0  ;;  %9190 = vmatprep.subr.bf16.mxu1 %v10939_v2 }
  0x36   :  { %413 = vmatmul.mubr.bf16.gmra.mrb[4].mxu0 %v121_v3  ;;  %506 = vmatmul.mubr.bf16.gmra.mrb[4].mxu1 %v121_v3 }
  0x37   :  { %8720 = vmatprep.mubr.msk.bf16.mxu0 %vm351_vm0, %v124_v5  ;;  %8726 = vmatprep.mubr.msk.bf16.mxu1 %vm351_vm0, %v124_v5 }
  0x38   :  { %9139 = vmatpush3.bf16.msra.mxu0 %v10936_v4  ;;  %9191 = vmatpush3.bf16.msra.mxu1 %v10941_v7 }
  0x39   :  { %9140 = vmatprep.subr.bf16.mxu0 %v10938_v6  ;;  %9192 = vmatprep.subr.bf16.mxu1 %v10943_v10 }
  0x3c   :  { %9141 = vmatpush3.bf16.msra.mxu0 %v10940_v13  ;;  %9193 = vmatpush3.bf16.msra.mxu1 %v10945_v15 }
  0x3d   :  { %9142 = vmatprep.subr.bf16.mxu0 %v10942_v14  ;;  %9194 = vmatprep.subr.bf16.mxu1 %v10947_v16 }
  0x3e   :  { %423 = vmatmul.mubr.bf16.gmra.mrb[8].mxu0 %v123_v17  ;;  %516 = vmatmul.mubr.bf16.gmra.mrb[8].mxu1 %v123_v17 }
  0x3f   :  { %8721 = vmatprep.mubr.msk.bf16.mxu0 %vm351_vm0, %v126_v19  ;;  %8727 = vmatprep.mubr.msk.bf16.mxu1 %vm351_vm0, %v126_v19 }
  0x40   :  { %9143 = vmatpush3.bf16.msra.mxu0 %v10944_v18  ;;  %9195 = vmatpush3.bf16.msra.mxu1 %v10949_v21 }
  0x41   :  { %9144 = vmatprep.subr.bf16.mxu0 %v10946_v20  ;;  %9196 = vmatprep.subr.bf16.mxu1 %v10951_v24 }
  0x44   :  { %9145 = vmatpush3.bf16.msra.mxu0 %v10948_v27  ;;  %9197 = vmatpush3.bf16.msra.mxu1 %v10953_v28 }
  0x45   :  { %9146 = vmatprep.subr.bf16.mxu0 %v10950_v29  ;;  %9198 = vmatprep.subr.bf16.mxu1 %v10954_v42 }
  0x46   :  { %433 = vmatmul.mubr.bf16.gmra.mrb[12].mxu0 %v125_v30  ;;  %526 = vmatmul.mubr.bf16.gmra.mrb[12].mxu1 %v125_v30 }
  0x47   :  { %8722 = vmatprep.mubr.msk.bf16.mxu0 %vm351_vm0, %v128_v32  ;;  %8728 = vmatprep.mubr.msk.bf16.mxu1 %vm351_vm0, %v128_v32 }
  0x48   :  { %9147 = vmatpush3.bf16.msra.mxu0 %v10952_v31  ;;  %9199 = vmatpush3.bf16.msra.mxu1 %v10955_v43 }
  0x49   :  { %9148 = vmatprep.subr.bf16.mxu0 %v10956_v44  ;;  %9200 = vmatprep.subr.bf16.mxu1 %v10958_v45 }
  0x4c   :  { %9149 = vmatpush3.bf16.msra.mxu0 %v10957_v46  ;;  %9201 = vmatpush3.bf16.msra.mxu1 %v10959_v47 }
  0x4d   :  { %9719 = vmatprep.subr.bf16.mxu0 %v16316_v48  ;;  %9725 = vmatprep.subr.bf16.mxu1 %v16316_v48 }
  0x4e   :  { %443 = vmatmul.mubr.bf16.gmra.mrb[16].mxu0 %v127_v37  ;;  %536 = vmatmul.mubr.bf16.gmra.mrb[16].mxu1 %v127_v37 }
  0x4f   :  { %8723 = vmatprep.mubr.msk.bf16.mxu0 %vm351_vm0, %v130_v38  ;;  %8729 = vmatprep.mubr.msk.bf16.mxu1 %vm351_vm0, %v130_v38 }
  0x56   :  { %453 = vmatmul.mubr.bf16.gmra.mrb[20].mxu0 %v129_v41  ;;  %546 = vmatmul.mubr.bf16.gmra.mrb[20].mxu1 %v129_v41 }
  0x57   :  { %21 = vsyncpa [#allocation4], 0  ;;  %v10960_v12 = vld [vmem:[%s16298_s6 + $0x100] sm:$0xff]   ;;  %v10962_v35 = vld [vmem:[%s16299_s7 + $0x8] sm:$0xff]  }
  0x58   :  { %v10961_v13 = vld [vmem:[%s16299_s7] sm:$0xff]   ;;  %v10963_v43 = vld [vmem:[%s16299_s7 + $0x10] sm:$0xff]  }
 0x101   :  { %v404_v49 = vpop.f32.mrb[0].mxu0  ;;  %v497_v50 = vpop.f32.mrb[0].mxu1 }
 0x102   :  { %v604_v51 = vmul.f32 0.02, %v404_v49  ;;  %vm558_vm1 = vcmp.ge.f32.partialorder %v497_v50, 0.0  ;;  %v606_v52 = vmul.f32 0.02, %v497_v50  ;;  %vm556_vm2 = vcmp.ge.f32.partialorder %v404_v49, 0.0 }
 0x103   :  { %v406_v53 = vpop.f32.mrb[1].mxu0  ;;  %v499_v54 = vpop.f32.mrb[1].mxu1 }
 0x104   :  { %v654_v55 = vsel %vm558_vm1, %v497_v50, %v606_v52  ;;  %v605_v56 = vmul.f32 0.02, %v406_v53  ;;  %v607_v57 = vmul.f32 0.02, %v499_v54  ;;  %v408_v58 = vpop.f32.mrb[2].mxu0  ;;  %v501_v59 = vpop.f32.mrb[2].mxu1  ;;  %v652_v62 = vsel %vm556_vm2, %v404_v49, %v604_v51 }
 0x105   :  { %vm560_vm3 = vcmp.ge.f32.partialorder %v408_v58, 0.0  ;;  %v608_v60 = vmul.f32 0.02, %v408_v58  ;;  %vm562_vm4 = vcmp.ge.f32.partialorder %v501_v59, 0.0  ;;  %v610_v61 = vmul.f32 0.02, %v501_v59 }
 0x106   :  { %v410_v63 = vpop.f32.mrb[3].mxu0  ;;  %v503_v0 = vpop.f32.mrb[3].mxu1  ;;  %vm557_vm5 = vcmp.ge.f32.partialorder %v406_v53, 0.0  ;;  %vm559_vm6 = vcmp.ge.f32.partialorder %v499_v54, 0.0 }
 0x107   :  { %v656_v1 = vsel %vm560_vm3, %v408_v58, %v608_v60  ;;  %v658_v2 = vsel %vm562_vm4, %v501_v59, %v610_v61  ;;  %v609_v3 = vmul.f32 0.02, %v410_v63  ;;  %v611_v4 = vmul.f32 0.02, %v503_v0 }
 0x108   :  { %v700_v5 = vpack.c.bf16 %v656_v1, %v652_v62  ;;  %v702_v6 = vpack.c.bf16 %v658_v2, %v654_v55  ;;  %vm561_vm7 = vcmp.ge.f32.partialorder %v410_v63, 0.0  ;;  %v653_v9 = vsel %vm557_vm5, %v406_v53, %v605_v56 }
 0x109   :  { %v414_v7 = vpop.f32.mrb[4].mxu0  ;;  %v507_v8 = vpop.f32.mrb[4].mxu1  ;;  %v657_v10 = vsel %vm561_vm7, %v410_v63, %v609_v3  ;;  %vm563_vm8 = vcmp.ge.f32.partialorder %v503_v0, 0.0  ;;  %v655_v11 = vsel %vm559_vm6, %v499_v54, %v607_v57 }
 0x10a   :  { %v612_v14 = vmul.f32 0.02, %v414_v7  ;;  %v614_v15 = vmul.f32 0.02, %v507_v8  ;;  %v416_v16 = vpop.f32.mrb[5].mxu0  ;;  %v509_v17 = vpop.f32.mrb[5].mxu1  ;;  %v701_v18 = vpack.c.bf16 %v657_v10, %v653_v9  ;;  %v659_v19 = vsel %vm563_vm8, %v503_v0, %v611_v4 }
 0x10b   :  { %v613_v20 = vmul.f32 0.02, %v416_v16  ;;  %v615_v21 = vmul.f32 0.02, %v509_v17  ;;  %v703_v22 = vpack.c.bf16 %v659_v19, %v655_v11  ;;  %v418_v23 = vpop.f32.mrb[6].mxu0  ;;  %v511_v24 = vpop.f32.mrb[6].mxu1 }
 0x10c   :  { %1019 = vmatprep.mubr.bf16.mxu0 %v701_v18  ;;  %v616_v25 = vmul.f32 0.02, %v418_v23  ;;  %v618_v26 = vmul.f32 0.02, %v511_v24  ;;  %v420_v27 = vpop.f32.mrb[7].mxu0  ;;  %v513_v28 = vpop.f32.mrb[7].mxu1 }
 0x10d   :  { %1100 = vmatprep.mubr.bf16.mxu1 %v703_v22  ;;  %1020 = vmatmul.mubr.bf16.vlgmr.msra.gmra.mrb[24].mxu0 %v700_v5  ;;  %v617_v29 = vmul.f32 0.02, %v420_v27  ;;  %v619_v30 = vmul.f32 0.02, %v513_v28  ;;  %vm565_vm9 = vcmp.ge.f32.partialorder %v416_v16, 0.0  ;;  %vm569_vm10 = vcmp.ge.f32.partialorder %v420_v27, 0.0 }
 0x10e   :  { %1101 = vmatmul.mubr.bf16.vlgmr.msra.gmra.mrb[24].mxu1 %v702_v6  ;;  %9720 = vmatpush3.bf16.msra.mxu0 %v10960_v12  ;;  %v661_v31 = vsel %vm565_vm9, %v416_v16, %v613_v20  ;;  %vm567_vm11 = vcmp.ge.f32.partialorder %v509_v17, 0.0  ;;  %vm571_vm12 = vcmp.ge.f32.partialorder %v513_v28, 0.0  ;;  %vm564_vm13 = vcmp.ge.f32.partialorder %v414_v7, 0.0 }
 0x10f   :  { %v665_v32 = vsel %vm569_vm10, %v420_v27, %v617_v29  ;;  %v663_v33 = vsel %vm567_vm11, %v509_v17, %v615_v21  ;;  %v667_v34 = vsel %vm571_vm12, %v513_v28, %v619_v30  ;;  %9726 = vmatpush3.bf16.msra.mxu1 %v10961_v13  ;;  %vm568_vm14 = vcmp.ge.f32.partialorder %v418_v23, 0.0  ;;  %9735 = vmatprep.subr.bf16.mxu0 %v16316_v48 }
 0x110   :  { %v705_v36 = vpack.c.bf16 %v665_v32, %v661_v31  ;;  %v707_v37 = vpack.c.bf16 %v667_v34, %v663_v33  ;;  %v660_v38 = vsel %vm564_vm13, %v414_v7, %v612_v14  ;;  %v664_v39 = vsel %vm568_vm14, %v418_v23, %v616_v25  ;;  %9727 = vmatprep.subr.bf16.mxu1 %v16316_v48 }
 0x111   :  { %v424_v40 = vpop.f32.mrb[8].mxu0  ;;  %v517_v41 = vpop.f32.mrb[8].mxu1  ;;  %v704_v42 = vpack.c.bf16 %v664_v39, %v660_v38  ;;  %vm566_vm15 = vcmp.ge.f32.partialorder %v507_v8, 0.0  ;;  %vm570_vm1 = vcmp.ge.f32.partialorder %v511_v24, 0.0 }
 0x112   :  { %v620_v44 = vmul.f32 0.02, %v424_v40  ;;  %v622_v45 = vmul.f32 0.02, %v517_v41  ;;  %v426_v46 = vpop.f32.mrb[9].mxu0  ;;  %v519_v47 = vpop.f32.mrb[9].mxu1  ;;  %1027 = vmatprep.mubr.bf16.mxu0 %v705_v36  ;;  %1108 = vmatprep.mubr.bf16.mxu1 %v707_v37  ;;  %v662_v49 = vsel %vm566_vm15, %v507_v8, %v614_v15  ;;  %v666_v50 = vsel %vm570_vm1, %v511_v24, %v618_v26 }
 0x113   :  { %v621_v51 = vmul.f32 0.02, %v426_v46  ;;  %v623_v52 = vmul.f32 0.02, %v519_v47  ;;  %v428_v53 = vpop.f32.mrb[10].mxu0  ;;  %v521_v54 = vpop.f32.mrb[10].mxu1  ;;  %v706_v55 = vpack.c.bf16 %v666_v50, %v662_v49  ;;  %9728 = vmatpush3.bf16.msra.mxu1 %v10962_v35 }
 0x114   :  { %v624_v56 = vmul.f32 0.02, %v428_v53  ;;  %v626_v57 = vmul.f32 0.02, %v521_v54  ;;  %v430_v58 = vpop.f32.mrb[11].mxu0  ;;  %v523_v59 = vpop.f32.mrb[11].mxu1  ;;  %9729 = vmatprep.subr.bf16.mxu1 %v16316_v48 }
 0x115   :  { %1028 = vmatmul.mubr.bf16.gmra.mrb[28].mxu0 %v704_v42  ;;  %v625_v60 = vmul.f32 0.02, %v430_v58  ;;  %v627_v61 = vmul.f32 0.02, %v523_v59  ;;  %vm573_vm2 = vcmp.ge.f32.partialorder %v426_v46, 0.0  ;;  %vm577_vm3 = vcmp.ge.f32.partialorder %v430_v58, 0.0 }
 0x116   :  { %1109 = vmatmul.mubr.bf16.gmra.mrb[28].mxu1 %v706_v55  ;;  %v669_v62 = vsel %vm573_vm2, %v426_v46, %v621_v51  ;;  %vm575_vm4 = vcmp.ge.f32.partialorder %v519_v47, 0.0  ;;  %vm579_vm5 = vcmp.ge.f32.partialorder %v523_v59, 0.0  ;;  %vm572_vm6 = vcmp.ge.f32.partialorder %v424_v40, 0.0 }
 0x117   :  { %v673_v63 = vsel %vm577_vm3, %v430_v58, %v625_v60  ;;  %v671_v0 = vsel %vm575_vm4, %v519_v47, %v623_v52  ;;  %v675_v1 = vsel %vm579_vm5, %v523_v59, %v627_v61  ;;  %vm576_vm7 = vcmp.ge.f32.partialorder %v428_v53, 0.0  ;;  %9730 = vmatpush3.bf16.msra.mxu1 %v10963_v43 }
 0x118   :  { %v709_v2 = vpack.c.bf16 %v673_v63, %v669_v62  ;;  %v711_v3 = vpack.c.bf16 %v675_v1, %v671_v0  ;;  %v668_v4 = vsel %vm572_vm6, %v424_v40, %v620_v44  ;;  %v672_v5 = vsel %vm576_vm7, %v428_v53, %v624_v56  ;;  %9747 = vmatprep.subr.bf16.mxu1 %v16316_v48 }
 0x119   :  { %v434_v6 = vpop.f32.mrb[12].mxu0  ;;  %v527_v7 = vpop.f32.mrb[12].mxu1  ;;  %v708_v8 = vpack.c.bf16 %v672_v5, %v668_v4  ;;  %vm574_vm8 = vcmp.ge.f32.partialorder %v517_v41, 0.0  ;;  %vm578_vm9 = vcmp.ge.f32.partialorder %v521_v54, 0.0 }
 0x11a   :  { %v628_v9 = vmul.f32 0.02, %v434_v6  ;;  %v630_v10 = vmul.f32 0.02, %v527_v7  ;;  %v436_v11 = vpop.f32.mrb[13].mxu0  ;;  %v529_v12 = vpop.f32.mrb[13].mxu1  ;;  %1035 = vmatprep.mubr.bf16.mxu0 %v709_v2  ;;  %1116 = vmatprep.mubr.bf16.mxu1 %v711_v3  ;;  %v670_v13 = vsel %vm574_vm8, %v517_v41, %v622_v45  ;;  %v674_v14 = vsel %vm578_vm9, %v521_v54, %v626_v57 }
 0x11b   :  { %v629_v15 = vmul.f32 0.02, %v436_v11  ;;  %v631_v16 = vmul.f32 0.02, %v529_v12  ;;  %v438_v17 = vpop.f32.mrb[14].mxu0  ;;  %v531_v18 = vpop.f32.mrb[14].mxu1  ;;  %v710_v19 = vpack.c.bf16 %v674_v14, %v670_v13 }
 0x11c   :  { %v632_v20 = vmul.f32 0.02, %v438_v17  ;;  %v634_v21 = vmul.f32 0.02, %v531_v18  ;;  %v440_v22 = vpop.f32.mrb[15].mxu0  ;;  %v533_v23 = vpop.f32.mrb[15].mxu1 }
 0x11d   :  { %1036 = vmatmul.mubr.bf16.gmra.mrb[32].mxu0 %v708_v8  ;;  %v633_v24 = vmul.f32 0.02, %v440_v22  ;;  %v635_v25 = vmul.f32 0.02, %v533_v23  ;;  %vm581_vm10 = vcmp.ge.f32.partialorder %v436_v11, 0.0  ;;  %vm585_vm11 = vcmp.ge.f32.partialorder %v440_v22, 0.0 }
 0x11e   :  { %1117 = vmatmul.mubr.bf16.gmra.mrb[32].mxu1 %v710_v19  ;;  %v677_v26 = vsel %vm581_vm10, %v436_v11, %v629_v15  ;;  %vm583_vm12 = vcmp.ge.f32.partialorder %v529_v12, 0.0  ;;  %vm587_vm13 = vcmp.ge.f32.partialorder %v533_v23, 0.0  ;;  %vm580_vm14 = vcmp.ge.f32.partialorder %v434_v6, 0.0 }
 0x11f   :  { %v681_v27 = vsel %vm585_vm11, %v440_v22, %v633_v24  ;;  %v679_v28 = vsel %vm583_vm12, %v529_v12, %v631_v16  ;;  %v683_v29 = vsel %vm587_vm13, %v533_v23, %v635_v25  ;;  %vm584_vm15 = vcmp.ge.f32.partialorder %v438_v17, 0.0 }
 0x120   :  { %v713_v30 = vpack.c.bf16 %v681_v27, %v677_v26  ;;  %v715_v31 = vpack.c.bf16 %v683_v29, %v679_v28  ;;  %v676_v32 = vsel %vm580_vm14, %v434_v6, %v628_v9  ;;  %v680_v33 = vsel %vm584_vm15, %v438_v17, %v632_v20 }
 0x121   :  { %v444_v34 = vpop.f32.mrb[16].mxu0  ;;  %v537_v35 = vpop.f32.mrb[16].mxu1  ;;  %v712_v36 = vpack.c.bf16 %v680_v33, %v676_v32  ;;  %vm582_vm1 = vcmp.ge.f32.partialorder %v527_v7, 0.0  ;;  %vm586_vm2 = vcmp.ge.f32.partialorder %v531_v18, 0.0  ;;  %v1242_v32 = vld [vmem:[%s16294_s2] sm:$0xff]  ;;  %v1243_v33 = vld [vmem:[%s16294_s2 + $0x8] sm:$0xff] }
 0x122   :  { %v636_v37 = vmul.f32 0.02, %v444_v34  ;;  %v638_v38 = vmul.f32 0.02, %v537_v35  ;;  %v446_v39 = vpop.f32.mrb[17].mxu0  ;;  %v539_v40 = vpop.f32.mrb[17].mxu1  ;;  %1043 = vmatprep.mubr.bf16.mxu0 %v713_v30  ;;  %1124 = vmatprep.mubr.bf16.mxu1 %v715_v31  ;;  %v678_v41 = vsel %vm582_vm1, %v527_v7, %v630_v10  ;;  %v682_v42 = vsel %vm586_vm2, %v531_v18, %v634_v21 }
 0x123   :  { %v637_v43 = vmul.f32 0.02, %v446_v39  ;;  %v639_v44 = vmul.f32 0.02, %v539_v40  ;;  %v448_v45 = vpop.f32.mrb[18].mxu0  ;;  %v541_v46 = vpop.f32.mrb[18].mxu1  ;;  %v714_v47 = vpack.c.bf16 %v682_v42, %v678_v41 }
 0x124   :  { %v640_v49 = vmul.f32 0.02, %v448_v45  ;;  %v642_v50 = vmul.f32 0.02, %v541_v46  ;;  %v450_v51 = vpop.f32.mrb[19].mxu0  ;;  %v543_v52 = vpop.f32.mrb[19].mxu1 }
 0x125   :  { %1044 = vmatmul.mubr.bf16.gmra.mrb[36].mxu0 %v712_v36  ;;  %v641_v53 = vmul.f32 0.02, %v450_v51  ;;  %v643_v54 = vmul.f32 0.02, %v543_v52  ;;  %vm589_vm3 = vcmp.ge.f32.partialorder %v446_v39, 0.0  ;;  %vm593_vm4 = vcmp.ge.f32.partialorder %v450_v51, 0.0 }
 0x126   :  { %1125 = vmatmul.mubr.bf16.gmra.mrb[36].mxu1 %v714_v47  ;;  %v685_v55 = vsel %vm589_vm3, %v446_v39, %v637_v43  ;;  %vm591_vm5 = vcmp.ge.f32.partialorder %v539_v40, 0.0  ;;  %vm595_vm6 = vcmp.ge.f32.partialorder %v543_v52, 0.0  ;;  %vm588_vm7 = vcmp.ge.f32.partialorder %v444_v34, 0.0  ;;  %v1185_v31 = vld [vmem:[%s16293_s1] sm:$0x3]  ;;  %v12047_v36 = vld [vmem:[%s16299_s7 + $0x18] sm:$0xff]  }
 0x127   :  { %v689_v56 = vsel %vm593_vm4, %v450_v51, %v641_v53  ;;  %v687_v57 = vsel %vm591_vm5, %v539_v40, %v639_v44  ;;  %v691_v58 = vsel %vm595_vm6, %v543_v52, %v643_v54  ;;  %vm592_vm8 = vcmp.ge.f32.partialorder %v448_v45, 0.0  ;;  %v12069_v39 = vld [vmem:[%s16299_s7 + $0x30] sm:$0xff]   ;;  %v12079_v42 = vld [vmem:[%s16302_s10] ss:$0 sm:$0xff] }
 0x128   :  { %v717_v59 = vpack.c.bf16 %v689_v56, %v685_v55  ;;  %v719_v60 = vpack.c.bf16 %v691_v58, %v687_v57  ;;  %v684_v61 = vsel %vm588_vm7, %v444_v34, %v636_v37  ;;  %v688_v62 = vsel %vm592_vm8, %v448_v45, %v640_v49  ;;  %v12054_v37 = vld [vmem:[%s16299_s7 + $0x20] sm:$0xff]  }
 0x129   :  { %v454_v63 = vpop.f32.mrb[20].mxu0  ;;  %v547_v0 = vpop.f32.mrb[20].mxu1  ;;  %v716_v1 = vpack.c.bf16 %v688_v62, %v684_v61  ;;  %vm590_vm9 = vcmp.ge.f32.partialorder %v537_v35, 0.0  ;;  %vm594_vm10 = vcmp.ge.f32.partialorder %v541_v46, 0.0  ;;  %vm11613_vm4 = vmmov 0  }
 0x12a   :  { %v644_v2 = vmul.f32 0.02, %v454_v63  ;;  %v646_v3 = vmul.f32 0.02, %v547_v0  ;;  %v456_v4 = vpop.f32.mrb[21].mxu0  ;;  %v549_v5 = vpop.f32.mrb[21].mxu1  ;;  %1051 = vmatprep.mubr.bf16.mxu0 %v717_v59  ;;  %1132 = vmatprep.mubr.bf16.mxu1 %v719_v60  ;;  %v686_v6 = vsel %vm590_vm9, %v537_v35, %v638_v38  ;;  %v690_v7 = vsel %vm594_vm10, %v541_v46, %v642_v50 }
 0x12b   :  { %v645_v8 = vmul.f32 0.02, %v456_v4  ;;  %v647_v9 = vmul.f32 0.02, %v549_v5  ;;  %v458_v10 = vpop.f32.mrb[22].mxu0  ;;  %v551_v11 = vpop.f32.mrb[22].mxu1  ;;  %v718_v12 = vpack.c.bf16 %v690_v7, %v686_v6  ;;  %v1188_v34 = vpack.c.bf16 %v1185_v31, %v1185_v31 }
 0x12c   :  { %v648_v13 = vmul.f32 0.02, %v458_v10  ;;  %v650_v14 = vmul.f32 0.02, %v551_v11  ;;  %v460_v15 = vpop.f32.mrb[23].mxu0  ;;  %v553_v16 = vpop.f32.mrb[23].mxu1  ;;  %v1250_v35 = vpack.c.bf16 %v1243_v33, %v1242_v32 }
 0x12d   :  { %1052 = vmatmul.mubr.bf16.gmra.mrb[40].mxu0 %v716_v1  ;;  %v649_v17 = vmul.f32 0.02, %v460_v15  ;;  %v651_v18 = vmul.f32 0.02, %v553_v16  ;;  %vm597_vm11 = vcmp.ge.f32.partialorder %v456_v4, 0.0  ;;  %vm601_vm12 = vcmp.ge.f32.partialorder %v460_v15, 0.0 }
 0x12e   :  { %1133 = vmatmul.mubr.bf16.gmra.mrb[40].mxu1 %v718_v12  ;;  %v693_v19 = vsel %vm597_vm11, %v456_v4, %v645_v8  ;;  %vm599_vm13 = vcmp.ge.f32.partialorder %v549_v5, 0.0  ;;  %vm603_vm14 = vcmp.ge.f32.partialorder %v553_v16, 0.0  ;;  %vm596_vm15 = vcmp.ge.f32.partialorder %v454_v63, 0.0  ;;  %v12060_v38 = vld [vmem:[%s16299_s7 + $0x28] sm:$0xff]  }
 0x12f   :  { %v697_v20 = vsel %vm601_vm12, %v460_v15, %v649_v17  ;;  %v695_v21 = vsel %vm599_vm13, %v549_v5, %v647_v9  ;;  %v699_v22 = vsel %vm603_vm14, %v553_v16, %v651_v18  ;;  %vm600_vm1 = vcmp.ge.f32.partialorder %v458_v10, 0.0 }
 0x130   :  { %v721_v23 = vpack.c.bf16 %v697_v20, %v693_v19  ;;  %v723_v24 = vpack.c.bf16 %v699_v22, %v695_v21  ;;  %v692_v25 = vsel %vm596_vm15, %v454_v63, %v644_v2  ;;  %v696_v26 = vsel %vm600_vm1, %v458_v10, %v648_v13 }
 0x131   :  { %v720_v27 = vpack.c.bf16 %v696_v26, %v692_v25  ;;  %vm598_vm2 = vcmp.ge.f32.partialorder %v547_v0, 0.0  ;;  %vm602_vm3 = vcmp.ge.f32.partialorder %v551_v11, 0.0  ;;  %vm1195_vm5 = vcmask 130048  }
 0x132   :  { %1059 = vmatprep.mubr.bf16.mxu0 %v721_v23  ;;  %1140 = vmatprep.mubr.bf16.mxu1 %v723_v24  ;;  %v694_v28 = vsel %vm598_vm2, %v547_v0, %v646_v3  ;;  %v698_v29 = vsel %vm602_vm3, %v551_v11, %v650_v14 }
 0x133   :  { %v722_v30 = vpack.c.bf16 %v698_v29, %v694_v28 }
 0x135   :  { %1060 = vmatmul.mubr.bf16.gmra.mrb[44].mxu0 %v720_v27 }
 0x136   :  { %1141 = vmatmul.mubr.bf16.gmra.mrb[44].mxu1 %v722_v30  ;;  %9721 = vmatprep.mubr.msk.bf16.mxu0 %vm11613_vm4, %v16316_v48 }
 0x137   :  { %9731 = vmatprep.mubr.msk.bf16.mxu1 %vm11613_vm4, %v16316_v48 }
 0x13d   :  { %9722 = vmatmul.mubr.msk.bf16.vlgmr.msra.gmra.mrb[48].mxu0 %vm1195_vm5, %v1188_v34  ;;  %vm1413_vm5 = vcmask 261120  }
 0x13e   :  { %9732 = vmatmul.mubr.msk.bf16.vlgmr.msra.gmra.mrb[48].mxu1 %vm351_vm0, %v1250_v35  ;;  %9743 = vmatprep.mubr.msk.bf16.mxu0 %vm11613_vm4, %v16316_v48 }
 0x13f   :  { %9751 = vmatprep.mubr.msk.bf16.mxu1 %vm11613_vm4, %v16316_v48  ;;  %9736 = vmatpush3.bf16.msra.mxu0 %v12047_v36 }
 0x140   :  { %9737 = vmatprep.subr.bf16.mxu0 %v16316_v48  ;;  %9748 = vmatpush3.bf16.msra.mxu1 %v12060_v38 }
 0x141   :  { %9749 = vmatprep.subr.bf16.mxu1 %v16316_v48 }
 0x143   :  { %9738 = vmatpush3.bf16.msra.mxu0 %v12054_v37 }
 0x144   :  { %9739 = vmatprep.subr.bf16.mxu0 %v16316_v48  ;;  %9750 = vmatpush3.bf16.msra.mxu1 %v12069_v39 }
 0x145   :  { %9755 = vmatprep.subr.bf16.mxu1 %v16316_v48 }
 0x147   :  { %9740 = vmatpush3.bf16.msra.mxu0 %v12060_v38 }
 0x148   :  { %9741 = vmatprep.subr.bf16.mxu0 %v16316_v48 }
 0x14b   :  { %9742 = vmatpush3.bf16.msra.mxu0 %v12069_v39 }
 0x14c   :  { %9771 = vmatprep.subr.bf16.mxu0 %v16316_v48 }
 0x1e0   :  { %v9150_v40 = vpop.f32.mrb[24].mxu0 }
 0x1e1   :  { %v9202_v41 = vpop.f32.mrb[24].mxu1  ;;  %v9151_v43 = vpop.f32.mrb[25].mxu0 }
 0x1e2   :  { %v9152_v44 = vadd.f32 %v9151_v43, %v9150_v40  ;;  %v9203_v45 = vpop.f32.mrb[25].mxu1  ;;  %v9153_v46 = vpop.f32.mrb[26].mxu0 }
 0x1e3   :  { %v9204_v47 = vadd.f32 %v9203_v45, %v9202_v41  ;;  %v9205_v49 = vpop.f32.mrb[26].mxu1  ;;  %v9154_v50 = vpop.f32.mrb[27].mxu0 }
 0x1e4   :  { %v1022_v51 = vadd.f32 %v9152_v44, %v12079_v42  ;;  %v9155_v52 = vadd.f32 %v9154_v50, %v9153_v46  ;;  %v9206_v53 = vpop.f32.mrb[27].mxu1 }
 0x1e5   :  { %v9207_v54 = vadd.f32 %v9206_v53, %v9205_v49 }
 0x1e6   :  { %v1103_v55 = vadd.f32 %v9204_v47, %v1022_v51  ;;  %v1025_v56 = vadd.f32 %v9155_v52, %v12079_v42 }
 0x1e8   :  { %v1161_v57 = vmul.f32 0.02, %v1103_v55  ;;  %v1106_v58 = vadd.f32 %v9207_v54, %v1025_v56  ;;  %v9156_v59 = vpop.f32.mrb[28].mxu0  ;;  %vm1149_vm0 = vcmp.ge.f32.partialorder %v1103_v55, 0.0 }
 0x1e9   :  { %v9208_v60 = vpop.f32.mrb[28].mxu1  ;;  %v9157_v61 = vpop.f32.mrb[29].mxu0 }
 0x1ea   :  { %vm1150_vm6 = vcmp.ge.f32.partialorder %v1106_v58, 0.0  ;;  %v1162_v62 = vmul.f32 0.02, %v1106_v58  ;;  %v9158_v63 = vadd.f32 %v9157_v61, %v9156_v59  ;;  %v9209_v0 = vpop.f32.mrb[29].mxu1  ;;  %v9159_v1 = vpop.f32.mrb[30].mxu0  ;;  %v12083_v5 = vsel %vm1149_vm0, %v1103_v55, %v1161_v57 }
 0x1eb   :  { %v9210_v2 = vadd.f32 %v9209_v0, %v9208_v60  ;;  %v9211_v3 = vpop.f32.mrb[30].mxu1  ;;  %v9160_v4 = vpop.f32.mrb[31].mxu0 }
 0x1ec   :  { %v12085_v6 = vsel %vm1150_vm6, %v1106_v58, %v1162_v62  ;;  %v1030_v7 = vadd.f32 %v9158_v63, %v12079_v42  ;;  %v9161_v8 = vadd.f32 %v9160_v4, %v9159_v1  ;;  %v9212_v9 = vpop.f32.mrb[31].mxu1  ;;  %vm1357_vm6 = vcmask 523264  }
 0x1ed   :  { %v1409_v10 = vpack.c.bf16 %v12085_v6, %v12083_v5  ;;  %v9213_v11 = vadd.f32 %v9212_v9, %v9211_v3  ;;  %v12177_v6 = vld [vmem:[%s16303_s11] ss:$0 sm:$0xff] }
 0x1ee   :  { %v1111_v12 = vadd.f32 %v9210_v2, %v1030_v7  ;;  %v1033_v13 = vadd.f32 %v9161_v8, %v12079_v42 }
 0x1f0   :  { %v1163_v14 = vmul.f32 0.02, %v1111_v12  ;;  %v1114_v15 = vadd.f32 %v9213_v11, %v1033_v13  ;;  %v9162_v16 = vpop.f32.mrb[32].mxu0  ;;  %vm1151_vm7 = vcmp.ge.f32.partialorder %v1111_v12, 0.0 }
 0x1f1   :  { %v9214_v17 = vpop.f32.mrb[32].mxu1  ;;  %v9163_v18 = vpop.f32.mrb[33].mxu0 }
 0x1f2   :  { %vm1152_vm8 = vcmp.ge.f32.partialorder %v1114_v15, 0.0  ;;  %v1164_v19 = vmul.f32 0.02, %v1114_v15  ;;  %v9164_v20 = vadd.f32 %v9163_v18, %v9162_v16  ;;  %v9215_v21 = vpop.f32.mrb[33].mxu1  ;;  %v9165_v22 = vpop.f32.mrb[34].mxu0  ;;  %v12092_v29 = vsel %vm1151_vm7, %v1111_v12, %v1163_v14 }
 0x1f3   :  { %v9216_v23 = vadd.f32 %v9215_v21, %v9214_v17  ;;  %v9217_v24 = vpop.f32.mrb[34].mxu1  ;;  %v9166_v25 = vpop.f32.mrb[35].mxu0  ;;  %vm2472_vm7 = vcmask 916480  }
 0x1f4   :  { %v1038_v26 = vadd.f32 %v9164_v20, %v12079_v42  ;;  %v9167_v27 = vadd.f32 %v9166_v25, %v9165_v22  ;;  %v9218_v28 = vpop.f32.mrb[35].mxu1  ;;  %v12094_v30 = vsel %vm1152_vm8, %v1114_v15, %v1164_v19 }
 0x1f5   :  { %v9219_v31 = vadd.f32 %v9218_v28, %v9217_v24  ;;  %v1410_v32 = vpack.c.bf16 %v12094_v30, %v12092_v29 }
 0x1f6   :  { %v1119_v33 = vadd.f32 %v9216_v23, %v1038_v26  ;;  %v1041_v34 = vadd.f32 %v9167_v27, %v12079_v42 }
 0x1f8   :  { %v1165_v35 = vmul.f32 0.02, %v1119_v33  ;;  %v1122_v40 = vadd.f32 %v9219_v31, %v1041_v34  ;;  %v9168_v41 = vpop.f32.mrb[36].mxu0  ;;  %vm1153_vm9 = vcmp.ge.f32.partialorder %v1119_v33, 0.0 }
 0x1f9   :  { %v9220_v43 = vpop.f32.mrb[36].mxu1  ;;  %v9169_v44 = vpop.f32.mrb[37].mxu0 }
 0x1fa   :  { %vm1154_vm10 = vcmp.ge.f32.partialorder %v1122_v40, 0.0  ;;  %v1166_v45 = vmul.f32 0.02, %v1122_v40  ;;  %v9170_v46 = vadd.f32 %v9169_v44, %v9168_v41  ;;  %v9221_v47 = vpop.f32.mrb[37].mxu1  ;;  %v9171_v49 = vpop.f32.mrb[38].mxu0  ;;  %v12100_v56 = vsel %vm1153_vm9, %v1119_v33, %v1165_v35 }
 0x1fb   :  { %v9222_v50 = vadd.f32 %v9221_v47, %v9220_v43  ;;  %v9223_v51 = vpop.f32.mrb[38].mxu1  ;;  %v9172_v52 = vpop.f32.mrb[39].mxu0 }
 0x1fc   :  { %v1046_v53 = vadd.f32 %v9170_v46, %v12079_v42  ;;  %v9173_v54 = vadd.f32 %v9172_v52, %v9171_v49  ;;  %v9224_v55 = vpop.f32.mrb[39].mxu1  ;;  %v12102_v57 = vsel %vm1154_vm10, %v1122_v40, %v1166_v45 }
 0x1fd   :  { %v9225_v58 = vadd.f32 %v9224_v55, %v9223_v51  ;;  %v1411_v59 = vpack.c.bf16 %v12102_v57, %v12100_v56 }
 0x1fe   :  { %v1127_v60 = vadd.f32 %v9222_v50, %v1046_v53  ;;  %v1049_v61 = vadd.f32 %v9173_v54, %v12079_v42 }
 0x200   :  { %v1167_v62 = vmul.f32 0.02, %v1127_v60  ;;  %v1130_v63 = vadd.f32 %v9225_v58, %v1049_v61  ;;  %v9174_v0 = vpop.f32.mrb[40].mxu0  ;;  %vm1155_vm11 = vcmp.ge.f32.partialorder %v1127_v60, 0.0 }
 0x201   :  { %v9226_v1 = vpop.f32.mrb[40].mxu1  ;;  %v9175_v2 = vpop.f32.mrb[41].mxu0 }
 0x202   :  { %vm1156_vm12 = vcmp.ge.f32.partialorder %v1130_v63, 0.0  ;;  %v1168_v3 = vmul.f32 0.02, %v1130_v63  ;;  %v9176_v4 = vadd.f32 %v9175_v2, %v9174_v0  ;;  %v9227_v7 = vpop.f32.mrb[41].mxu1  ;;  %v9177_v8 = vpop.f32.mrb[42].mxu0  ;;  %v12107_v13 = vsel %vm1155_vm11, %v1127_v60, %v1167_v62 }
 0x203   :  { %v9228_v9 = vadd.f32 %v9227_v7, %v9226_v1  ;;  %v9229_v11 = vpop.f32.mrb[42].mxu1  ;;  %v9178_v12 = vpop.f32.mrb[43].mxu0 }
 0x204   :  { %v12109_v14 = vsel %vm1156_vm12, %v1130_v63, %v1168_v3  ;;  %v1054_v15 = vadd.f32 %v9176_v4, %v12079_v42  ;;  %v9179_v16 = vadd.f32 %v9178_v12, %v9177_v8  ;;  %v9230_v17 = vpop.f32.mrb[43].mxu1 }
 0x205   :  { %v1546_v18 = vpack.c.bf16 %v12109_v14, %v12107_v13  ;;  %v9231_v19 = vadd.f32 %v9230_v17, %v9229_v11 }
 0x206   :  { %v1135_v20 = vadd.f32 %v9228_v9, %v1054_v15  ;;  %v1057_v21 = vadd.f32 %v9179_v16, %v12079_v42 }
 0x208   :  { %v1169_v22 = vmul.f32 0.02, %v1135_v20  ;;  %v1138_v23 = vadd.f32 %v9231_v19, %v1057_v21  ;;  %v9180_v24 = vpop.f32.mrb[44].mxu0  ;;  %vm1157_vm13 = vcmp.ge.f32.partialorder %v1135_v20, 0.0 }
 0x209   :  { %v9232_v25 = vpop.f32.mrb[44].mxu1  ;;  %v9181_v26 = vpop.f32.mrb[45].mxu0 }
 0x20a   :  { %vm1158_vm14 = vcmp.ge.f32.partialorder %v1138_v23, 0.0  ;;  %v1170_v27 = vmul.f32 0.02, %v1138_v23  ;;  %v9182_v28 = vadd.f32 %v9181_v26, %v9180_v24  ;;  %v9233_v31 = vpop.f32.mrb[45].mxu1  ;;  %v9183_v33 = vpop.f32.mrb[46].mxu0  ;;  %v12116_v45 = vsel %vm1157_vm13, %v1135_v20, %v1169_v22  ;;  %v1403_v22 = vld [vmem:[%s16295_s3 + $0x8] sm:$0xff] }
 0x20b   :  { %v9234_v34 = vadd.f32 %v9233_v31, %v9232_v25  ;;  %v9235_v35 = vpop.f32.mrb[46].mxu1  ;;  %v9184_v40 = vpop.f32.mrb[47].mxu0 }
 0x20c   :  { %v1062_v41 = vadd.f32 %v9182_v28, %v12079_v42  ;;  %v9185_v43 = vadd.f32 %v9184_v40, %v9183_v33  ;;  %v9236_v44 = vpop.f32.mrb[47].mxu1  ;;  %v1182_v46 = vsel %vm1158_vm14, %v1138_v23, %v1170_v27 }
 0x20d   :  { %v9237_v47 = vadd.f32 %v9236_v44, %v9235_v35  ;;  %v1547_v49 = vpack.c.bf16 %v1182_v46, %v12116_v45  ;;  %v1404_v44 = vld [vmem:[%s16295_s3 + $0x10] sm:$0xff] }
 0x20e   :  { %v1143_v50 = vadd.f32 %v9234_v34, %v1062_v41  ;;  %v1065_v51 = vadd.f32 %v9185_v43, %v12079_v42 }
 0x210   :  { %v1171_v52 = vmul.f32 0.02, %v1143_v50  ;;  %v1146_v53 = vadd.f32 %v9237_v47, %v1065_v51  ;;  %v1233_v54 = vpop.f32.mrb[48].mxu0  ;;  %vm1159_vm15 = vcmp.ge.f32.partialorder %v1143_v50, 0.0 }
 0x211   :  { %vm1239_vm1 = vcmp.ge.f32.partialorder %v1233_v54, 0.0  ;;  %v1240_v55 = vmul.f32 0.02, %v1233_v54  ;;  %v1306_v58 = vpop.f32.mrb[48].mxu1  ;;  %v9723_v60 = vpop.f32.mrb[49].mxu0 }
 0x212   :  { %vm1160_vm2 = vcmp.ge.f32.partialorder %v1146_v53, 0.0  ;;  %v1172_v61 = vmul.f32 0.02, %v1146_v53  ;;  %vm1313_vm3 = vcmp.ge.f32.partialorder %v1306_v58, 0.0  ;;  %v1315_v62 = vmul.f32 0.02, %v1306_v58 }
 0x213   :  { %v1241_v63 = vsel %vm1239_vm1, %v1233_v54, %v1240_v55  ;;  %v9733_v0 = vpop.f32.mrb[49].mxu1  ;;  %v1236_v1 = vpop.f32.mrb[50].mxu0  ;;  %v1183_v42 = vsel %vm1159_vm15, %v1143_v50, %v1171_v52 }
 0x214   :  { %v1412_v2 = vpack.c.bf16 %v1241_v63, %v1241_v63  ;;  %v1309_v3 = vpop.f32.mrb[50].mxu1  ;;  %v9724_v4 = vpop.f32.mrb[51].mxu0  ;;  %v1184_v7 = vsel %vm1160_vm2, %v1146_v53, %v1172_v61  ;;  %v1317_v8 = vsel %vm1313_vm3, %v1306_v58, %v1315_v62 }
 0x215   :  { %vm1314_vm0 = vcmp.ge.f32.partialorder %v1309_v3, 0.0  ;;  %v1316_v9 = vmul.f32 0.02, %v1309_v3  ;;  %v9734_v11 = vpop.f32.mrb[51].mxu1  ;;  %v1548_v12 = vpack.c.bf16 %v1184_v7, %v1183_v42  ;;  %v1406_v7 = vld [vmem:[%s16295_s3 + $0x20] sm:$0xff] }
 0x216   :  { %9752 = vmatmul.mubr.msk.bf16.vlgmr.msra.gmra.mrb[52].mxu1 %vm1413_vm5, %v1412_v2 }
 0x217   :  { %v1318_v15 = vsel %vm1314_vm0, %v1309_v3, %v1316_v9  ;;  %9756 = vmatpush3.bf16.msra.mxu1 %v12047_v36  ;;  %9759 = vmatprep.mubr.msk.bf16.mxu1 %vm11613_vm4, %v16316_v48 }
 0x218   :  { %v1328_v16 = vpack.c.bf16 %v1318_v15, %v1317_v8  ;;  %9757 = vmatprep.subr.bf16.mxu1 %v16316_v48 }
 0x21a   :  { %9744 = vmatmul.mubr.msk.bf16.vlgmr.msra.gmra.mrb[52].mxu0 %vm1357_vm6, %v1328_v16 }
 0x21b   :  { %9772 = vmatpush3.bf16.msra.mxu0 %v12060_v38  ;;  %9758 = vmatpush3.bf16.msra.mxu1 %v12054_v37  ;;  %v1549_v38 = vshrl.u32 %v1412_v2, 16 }
 0x21c   :  { %9773 = vmatprep.subr.bf16.mxu0 %v16316_v48  ;;  %9775 = vmatprep.mubr.msk.bf16.mxu0 %vm11613_vm4, %v16316_v48 }
 0x21d   :  { %9795 = vmatprep.subr.bf16.mxu1 %v16316_v48 }
 0x21e   :  { %9760 = vmatmul.mubr.msk.bf16.vlgmr.msra.gmra.mrb[56].mxu1 %vm1413_vm5, %v1409_v10 }
 0x21f   :  { %9774 = vmatpush3.bf16.msra.mxu0 %v12069_v39  ;;  %9763 = vmatprep.mubr.msk.bf16.mxu1 %vm11613_vm4, %v16316_v48 }
 0x220   :  { %9779 = vmatprep.subr.bf16.mxu0 %v16316_v48 }
 0x222   :  { %9776 = vmatmul.mubr.msk.bf16.vlgmr.msra.gmra.mrb[56].mxu0 %vm1413_vm5, %v1549_v38 }
 0x223   :  { %9780 = vmatpush3.bf16.msra.mxu0 %v12047_v36  ;;  %9783 = vmatprep.mubr.msk.bf16.mxu0 %vm11613_vm4, %v16316_v48  ;;  %v1457_v36 = vlaneseq }
 0x224   :  { %9781 = vmatprep.subr.bf16.mxu0 %v16316_v48 }
 0x226   :  { %9764 = vmatmul.mubr.msk.bf16.gmra.mrb[60].mxu1 %vm1413_vm5, %v1410_v32 }
 0x227   :  { %9782 = vmatpush3.bf16.msra.mxu0 %v12054_v37  ;;  %9767 = vmatprep.mubr.msk.bf16.mxu1 %vm11613_vm4, %v16316_v48  ;;  %v12172_v37 = vshrl.u32 %v1457_v36, 7  ;;  %v1407_v36 = vld [vmem:[%s16295_s3 + $0x28] sm:$0xff] }
 0x228   :  { %9831 = vmatprep.subr.bf16.mxu0 %v16316_v48 }
 0x229   :  { %16337 = vst [vmem:[#allocation6_spill] sm:$0xff] %v12172_v37  ;;  %v12180_v29 = vsub.s32 0, %v12172_v37 }
 0x22a   :  { %9784 = vmatmul.mubr.msk.bf16.vlgmr.msra.gmra.mrb[60].mxu0 %vm1413_vm5, %v1546_v18  ;;  %v1402_v18 = vld [vmem:[%s16295_s3] sm:$0xff] }
 0x22b   :  { %9787 = vmatprep.mubr.msk.bf16.mxu0 %vm11613_vm4, %v16316_v48  ;;  %16338 = vst [vmem:[#allocation7_spill] sm:$0xff] %v12180_v29 }
 0x22e   :  { %9768 = vmatmul.mubr.msk.bf16.gmra.mrb[64].mxu1 %vm1413_vm5, %v1411_v59 }
 0x22f   :  { %9803 = vmatprep.mubr.msk.bf16.mxu1 %vm11613_vm4, %v16316_v48 }
 0x232   :  { %9788 = vmatmul.mubr.msk.bf16.gmra.mrb[64].mxu0 %vm1413_vm5, %v1547_v49  ;;  %v1405_v49 = vld [vmem:[%s16295_s3 + $0x18] sm:$0xff] }
 0x233   :  { %9791 = vmatprep.mubr.msk.bf16.mxu0 %vm11613_vm4, %v16316_v48 }
 0x23a   :  { %9792 = vmatmul.mubr.msk.bf16.gmra.mrb[68].mxu0 %vm1413_vm5, %v1548_v12 }
 0x23b   :  { %9839 = vmatprep.mubr.msk.bf16.mxu0 %vm11613_vm4, %v16316_v48 }
 0x2e9   :  { %v1451_v39 = vpop.f32.mrb[52].mxu1 }
 0x2ea   :  { %v9753_v5 = vpop.f32.mrb[53].mxu1  ;;  %v12184_v13 = vrot.slane %v1451_v39, %v12180_v29 }
 0x2eb   :  { %v1454_v10 = vpop.f32.mrb[54].mxu1 }
 0x2ec   :  { %v9754_v30 = vpop.f32.mrb[55].mxu1 }
 0x2ed   :  { %v1395_v32 = vpop.f32.mrb[52].mxu0 }
 0x2ee   :  { %v1396_v56 = vadd.f32 %v12177_v6, %v1395_v32  ;;  %v9745_v57 = vpop.f32.mrb[53].mxu0 }
 0x2ef   :  { %v1398_v59 = vpop.f32.mrb[54].mxu0 }
 0x2f0   :  { %1408 = vst.msk [vmem:[#allocation2] sm:$0xff] %vm1357_vm6, %v1396_v56  ;;  %v1399_v14 = vadd.f32 %v12177_v6, %v1398_v59  ;;  %v9746_v17 = vpop.f32.mrb[55].mxu0 }
 0x2f1   :  { %v1504_v19 = vpop.f32.mrb[56].mxu1 }
 0x2f2   :  { %1545 = vst.msk [vmem:[#allocation2 + $0x38] sm:$0xff] %vm1357_vm6, %v1399_v14  ;;  %v1505_v20 = vadd.f32 %v1504_v19, %v12184_v13  ;;  %v9761_v21 = vpop.f32.mrb[57].mxu1 }
 0x2f3   :  { %v1507_v23 = vpop.f32.mrb[58].mxu1 }
 0x2f4   :  { %v1527_v24 = vadd.f32 %v1505_v20, %v1402_v18  ;;  %v1508_v25 = vadd.f32 %v1507_v23, %v12184_v13  ;;  %v9762_v26 = vpop.f32.mrb[59].mxu1 }
 0x2f5   :  { %v1588_v27 = vpop.f32.mrb[56].mxu0 }
 0x2f6   :  { %v1533_v28 = vadd.f32 %v12177_v6, %v1527_v24  ;;  %v1528_v31 = vadd.f32 %v1508_v25, %v1403_v22  ;;  %v9777_v33 = vpop.f32.mrb[57].mxu0  ;;  %v12213_v51 = vrot.slane %v1588_v27, %v12180_v29 }
 0x2f7   :  { %v1591_v34 = vpop.f32.mrb[58].mxu0  ;;  %v12198_v35 = vld [vmem:[#allocation2] sm:$0xff] }
 0x2f8   :  { %1539 = vst.msk [vmem:[#allocation2 + $0x8] sm:$0xff] %vm1357_vm6, %v1533_v28  ;;  %v1534_v40 = vadd.f32 %v12177_v6, %v1528_v31  ;;  %v9778_v41 = vpop.f32.mrb[59].mxu0  ;;  %v1703_v43 = vsel %vm1357_vm6, %v12198_v35, 0.0 }
 0x2f9   :  { %1704 = vadd.xlane.f32.xlu0 %v1703_v43  ;;  %v1512_v45 = vpop.f32.mrb[60].mxu1 }
 0x2fa   :  { %1540 = vst.msk [vmem:[#allocation2 + $0x10] sm:$0xff] %vm1357_vm6, %v1534_v40  ;;  %v1513_v46 = vadd.f32 %v1512_v45, %v12184_v13  ;;  %v9765_v47 = vpop.f32.mrb[61].mxu1 }
 0x2fb   :  { %v1515_v50 = vpop.f32.mrb[62].mxu1 }
 0x2fc   :  { %v1529_v52 = vadd.f32 %v1513_v46, %v1404_v44  ;;  %v1516_v53 = vadd.f32 %v1515_v50, %v12184_v13  ;;  %v9766_v54 = vpop.f32.mrb[63].mxu1 }
 0x2fd   :  { %v1641_v55 = vpop.f32.mrb[60].mxu0 }
 0x2fe   :  { %v1535_v58 = vadd.f32 %v12177_v6, %v1529_v52  ;;  %v1530_v60 = vadd.f32 %v1516_v53, %v1405_v49  ;;  %v1642_v61 = vadd.f32 %v1641_v55, %v12213_v51  ;;  %v9785_v62 = vpop.f32.mrb[61].mxu0 }
 0x2ff   :  { %v1644_v63 = vpop.f32.mrb[62].mxu0  ;;  %v12218_v0 = vld [vmem:[#allocation2 + $0x8] sm:$0xff] }
 0x300   :  { %1541 = vst.msk [vmem:[#allocation2 + $0x18] sm:$0xff] %vm1357_vm6, %v1535_v58  ;;  %v1536_v1 = vadd.f32 %v12177_v6, %v1530_v60  ;;  %v1664_v2 = vadd.f32 %v1642_v61, %v1402_v18  ;;  %v1645_v3 = vadd.f32 %v1644_v63, %v12213_v51  ;;  %v9786_v4 = vpop.f32.mrb[63].mxu0  ;;  %v1706_v42 = vsel %vm1357_vm6, %v12218_v0, 0.0 }
 0x301   :  { %v1520_v8 = vpop.f32.mrb[64].mxu1  ;;  %1707 = vadd.xlane.f32.xlu0 %v1706_v42  ;;  %v12228_v9 = vld [vmem:[#allocation2 + $0x10] sm:$0xff] }
 0x302   :  { %1542 = vst.msk [vmem:[#allocation2 + $0x20] sm:$0xff] %vm1357_vm6, %v1536_v1  ;;  %v1670_v11 = vadd.f32 %v12177_v6, %v1664_v2  ;;  %v1665_v12 = vadd.f32 %v1645_v3, %v1403_v22  ;;  %v1521_v15 = vadd.f32 %v1520_v8, %v12184_v13  ;;  %v9769_v16 = vpop.f32.mrb[65].mxu1  ;;  %v1709_v38 = vsel %vm1357_vm6, %v12228_v9, 0.0 }
 0x303   :  { %1710 = vadd.xlane.f32.xlu1 %v1709_v38  ;;  %v1523_v39 = vpop.f32.mrb[66].mxu1 }
 0x304   :  { %1676 = vst.msk [vmem:[#allocation2 + $0x40] sm:$0xff] %vm1357_vm6, %v1670_v11  ;;  %v1671_v5 = vadd.f32 %v12177_v6, %v1665_v12  ;;  %v1531_v10 = vadd.f32 %v1521_v15, %v1406_v7  ;;  %v1524_v30 = vadd.f32 %v1523_v39, %v12184_v13  ;;  %v9770_v32 = vpop.f32.mrb[67].mxu1 }
 0x305   :  { %v1649_v56 = vpop.f32.mrb[64].mxu0 }
 0x306   :  { %1677 = vst.msk [vmem:[#allocation2 + $0x48] sm:$0xff] %vm1357_vm6, %v1671_v5  ;;  %v1537_v57 = vadd.f32 %v12177_v6, %v1531_v10  ;;  %v1532_v59 = vadd.f32 %v1524_v30, %v1407_v36  ;;  %v1650_v14 = vadd.f32 %v1649_v56, %v12213_v51  ;;  %v9789_v17 = vpop.f32.mrb[65].mxu0 }
 0x307   :  { %v1652_v18 = vpop.f32.mrb[66].mxu0  ;;  %v12244_v19 = vld [vmem:[#allocation2 + $0x18] sm:$0xff] }
 0x308   :  { %1543 = vst.msk [vmem:[#allocation2 + $0x28] sm:$0xff] %vm1357_vm6, %v1537_v57  ;;  %v1538_v20 = vadd.f32 %v12177_v6, %v1532_v59  ;;  %v1666_v21 = vadd.f32 %v1650_v14, %v1404_v44  ;;  %v1653_v13 = vadd.f32 %v1652_v18, %v12213_v51  ;;  %v9790_v22 = vpop.f32.mrb[67].mxu0  ;;  %v1712_v23 = vsel %vm1357_vm6, %v12244_v19, 0.0 }
 0x309   :  { %1713 = vadd.xlane.f32.xlu1 %v1712_v23  ;;  %v12251_v24 = vld [vmem:[#allocation2 + $0x20] sm:$0xff] }
 0x30a   :  { %1544 = vst.msk [vmem:[#allocation2 + $0x30] sm:$0xff] %vm1357_vm6, %v1538_v20  ;;  %v1672_v25 = vadd.f32 %v12177_v6, %v1666_v21  ;;  %v1667_v26 = vadd.f32 %v1653_v13, %v1405_v49  ;;  %v1715_v27 = vsel %vm1357_vm6, %v12251_v24, 0.0  ;;  %v12268_v49 = vld [vmem:[#allocation2 + $0x38] sm:$0xff] }
 0x30b   :  { %1716 = vadd.xlane.f32.xlu0 %v1715_v27  ;;  %v12273_v54 = vld [vmem:[#allocation2 + $0x40] sm:$0xff]  ;;  %v1724_v55 = vsel %vm1357_vm6, %v12268_v49, 0.0 }
 0x30c   :  { %1678 = vst.msk [vmem:[#allocation2 + $0x50] sm:$0xff] %vm1357_vm6, %v1672_v25  ;;  %v1673_v28 = vadd.f32 %v12177_v6, %v1667_v26  ;;  %v1727_v60 = vsel %vm1357_vm6, %v12273_v54, 0.0 }
 0x30d   :  { %v1657_v31 = vpop.f32.mrb[68].mxu0  ;;  %v12279_v58 = vld [vmem:[#allocation2 + $0x48] sm:$0xff] }
 0x30e   :  { %1679 = vst.msk [vmem:[#allocation2 + $0x58] sm:$0xff] %vm1357_vm6, %v1673_v28  ;;  %v1658_v33 = vadd.f32 %v1657_v31, %v12213_v51  ;;  %v9793_v34 = vpop.f32.mrb[69].mxu0  ;;  %v1730_v62 = vsel %vm1357_vm6, %v12279_v58, 0.0 }
 0x30f   :  { %v1660_v40 = vpop.f32.mrb[70].mxu0  ;;  %v12261_v41 = vld [vmem:[#allocation2 + $0x28] sm:$0xff] }
 0x310   :  { %v1668_v43 = vadd.f32 %v1658_v33, %v1406_v7  ;;  %v1661_v44 = vadd.f32 %v1660_v40, %v12213_v51  ;;  %v9794_v45 = vpop.f32.mrb[71].mxu0  ;;  %v1718_v46 = vsel %vm1357_vm6, %v12261_v41, 0.0 }
 0x311   :  { %1719 = vadd.xlane.f32.xlu1 %v1718_v46  ;;  %v12266_v47 = vld [vmem:[#allocation2 + $0x30] sm:$0xff] }
 0x312   :  { %v1674_v50 = vadd.f32 %v12177_v6, %v1668_v43  ;;  %v1669_v52 = vadd.f32 %v1661_v44, %v1407_v36  ;;  %v1721_v53 = vsel %vm1357_vm6, %v12266_v47, 0.0 }
 0x313   :  { %1722 = vadd.xlane.f32.xlu0 %v1721_v53  ;;  %v12284_v61 = vld [vmem:[#allocation2 + $0x50] sm:$0xff] }
 0x314   :  { %1680 = vst.msk [vmem:[#allocation2 + $0x60] sm:$0xff] %vm1357_vm6, %v1674_v50  ;;  %v1675_v51 = vadd.f32 %v12177_v6, %v1669_v52  ;;  %v1733_v6 = vsel %vm1357_vm6, %v12284_v61, 0.0 }
 0x315   :  { %1725 = vadd.xlane.f32.xlu1 %v1724_v55  ;;  %v12288_v63 = vld [vmem:[#allocation2 + $0x58] sm:$0xff] }
 0x316   :  { %1681 = vst.msk [vmem:[#allocation2 + $0x68] sm:$0xff] %vm1357_vm6, %v1675_v51  ;;  %v1736_v2 = vsel %vm1357_vm6, %v12288_v63, 0.0 }
 0x317   :  { %1728 = vadd.xlane.f32.xlu0 %v1727_v60 }
 0x319   :  { %1731 = vadd.xlane.f32.xlu1 %v1730_v62 }
 0x31b   :  { %1734 = vadd.xlane.f32.xlu0 %v1733_v6  ;;  %v12292_v1 = vld [vmem:[#allocation2 + $0x60] sm:$0xff] }
 0x31c   :  { %v1739_v4 = vsel %vm1357_vm6, %v12292_v1, 0.0 }
 0x31d   :  { %1737 = vadd.xlane.f32.xlu1 %v1736_v2  ;;  %v12296_v3 = vld [vmem:[#allocation2 + $0x68] sm:$0xff] }
 0x31e   :  { %v1742_v42 = vsel %vm1357_vm6, %v12296_v3, 0.0 }
 0x31f   :  { %1740 = vadd.xlane.f32.xlu0 %v1739_v4  ;;  %v10968_v4 = vld [vmem:[%s16298_s6 + $0x128] sm:$0xff]  }
 0x320   :  { %9832 = vmatpush3.bf16.msra.mxu0 %v10968_v4 }
 0x321   :  { %1743 = vadd.xlane.f32.xlu1 %v1742_v42  ;;  %v10970_v42 = vld [vmem:[%s16298_s6 + $0x108] sm:$0xff]   ;;  %9833 = vmatprep.subr.bf16.mxu0 %v16316_v48 }
 0x322   :  { %9796 = vmatpush3.bf16.msra.mxu1 %v10970_v42 }
 0x323   :  { %9797 = vmatprep.subr.bf16.mxu1 %v16316_v48 }
 0x386   :  { %v1705_v7 = vpop.xlane.xlu0 %1704 }
 0x387   :  { %v1746_v8 = vmul.f32 0.015625, %v1705_v7 }
 0x389   :  { %v12303_v11 = vsub.f32 %v12198_v35, %v1746_v8 }
 0x38b   :  { %v1774_v12 = vmul.f32 %v12303_v11, %v12303_v11 }
 0x38d   :  { %v1788_v15 = vsel %vm1357_vm6, %v1774_v12, 0.0 }
 0x38e   :  { %1789 = vadd.xlane.f32.xlu0 %v1788_v15  ;;  %v1708_v16 = vpop.xlane.xlu0 %1707 }
 0x38f   :  { %v1747_v38 = vmul.f32 0.015625, %v1708_v16 }
 0x390   :  { %v1711_v36 = vpop.xlane.xlu1 %1710 }
 0x391   :  { %v12309_v39 = vsub.f32 %v12218_v0, %v1747_v38  ;;  %v1748_v5 = vmul.f32 0.015625, %v1711_v36 }
 0x393   :  { %v12312_v10 = vsub.f32 %v12228_v9, %v1748_v5  ;;  %v1775_v35 = vmul.f32 %v12309_v39, %v12309_v39 }
 0x395   :  { %v1791_v30 = vsel %vm1357_vm6, %v1775_v35, 0.0  ;;  %v1776_v32 = vmul.f32 %v12312_v10, %v12312_v10 }
 0x396   :  { %v1714_v56 = vpop.xlane.xlu1 %1713  ;;  %1792 = vadd.xlane.f32.xlu1 %v1791_v30 }
 0x397   :  { %v1749_v57 = vmul.f32 0.015625, %v1714_v56  ;;  %v1794_v59 = vsel %vm1357_vm6, %v1776_v32, 0.0 }
 0x398   :  { %v1717_v14 = vpop.xlane.xlu0 %1716  ;;  %1795 = vadd.xlane.f32.xlu0 %v1794_v59  ;;  %v10973_v59 = vld [vmem:[%s16298_s6 + $0x118] sm:$0xff]  }
 0x399   :  { %v12321_v0 = vsub.f32 %v12244_v19, %v1749_v57  ;;  %v1750_v9 = vmul.f32 0.015625, %v1717_v14 }
 0x39b   :  { %v12324_v17 = vsub.f32 %v12251_v24, %v1750_v9  ;;  %v1777_v18 = vmul.f32 %v12321_v0, %v12321_v0  ;;  %v10974_v9 = vld [vmem:[%s16298_s6 + $0x140] sm:$0xff]  }
 0x39d   :  { %v1797_v20 = vsel %vm1357_vm6, %v1777_v18, 0.0  ;;  %v1778_v21 = vmul.f32 %v12324_v17, %v12324_v17  ;;  %v10975_v18 = vld [vmem:[%s16298_s6 + $0x120] sm:$0xff]  }
 0x39e   :  { %v1720_v13 = vpop.xlane.xlu1 %1719  ;;  %1798 = vadd.xlane.f32.xlu1 %v1797_v20 }
 0x39f   :  { %v1751_v22 = vmul.f32 0.015625, %v1720_v13  ;;  %v1800_v23 = vsel %vm1357_vm6, %v1778_v21, 0.0 }
 0x3a0   :  { %v1723_v25 = vpop.xlane.xlu0 %1722  ;;  %1801 = vadd.xlane.f32.xlu0 %v1800_v23 }
 0x3a1   :  { %v12333_v19 = vsub.f32 %v12261_v41, %v1751_v22  ;;  %v1752_v24 = vmul.f32 0.015625, %v1723_v25 }
 0x3a2   :  { %v1726_v26 = vpop.xlane.xlu1 %1725 }
 0x3a3   :  { %v12336_v27 = vsub.f32 %v12266_v47, %v1752_v24  ;;  %v1753_v28 = vmul.f32 0.015625, %v1726_v26  ;;  %v1779_v31 = vmul.f32 %v12333_v19, %v12333_v19 }
 0x3a4   :  { %v1729_v33 = vpop.xlane.xlu0 %1728 }
 0x3a5   :  { %v12341_v34 = vsub.f32 %v12268_v49, %v1753_v28  ;;  %v1754_v40 = vmul.f32 0.015625, %v1729_v33  ;;  %v1803_v43 = vsel %vm1357_vm6, %v1779_v31, 0.0  ;;  %v1780_v41 = vmul.f32 %v12336_v27, %v12336_v27 }
 0x3a6   :  { %v1732_v44 = vpop.xlane.xlu1 %1731  ;;  %1804 = vadd.xlane.f32.xlu1 %v1803_v43 }
 0x3a7   :  { %v12347_v45 = vsub.f32 %v12273_v54, %v1754_v40  ;;  %v1755_v46 = vmul.f32 0.015625, %v1732_v44  ;;  %v1806_v47 = vsel %vm1357_vm6, %v1780_v41, 0.0  ;;  %v1781_v50 = vmul.f32 %v12341_v34, %v12341_v34 }
 0x3a8   :  { %v1735_v52 = vpop.xlane.xlu0 %1734  ;;  %1807 = vadd.xlane.f32.xlu0 %v1806_v47  ;;  %v12422_v47 = vld [vmem:[%s16303_s11 + $0x2] ss:$0 sm:$0xff] }
 0x3a9   :  { %v12353_v49 = vsub.f32 %v12279_v58, %v1755_v46  ;;  %v1756_v53 = vmul.f32 0.015625, %v1735_v52  ;;  %v1809_v51 = vsel %vm1357_vm6, %v1781_v50, 0.0  ;;  %v1782_v55 = vmul.f32 %v12347_v45, %v12347_v45 }
 0x3aa   :  { %v1738_v60 = vpop.xlane.xlu1 %1737  ;;  %1810 = vadd.xlane.f32.xlu1 %v1809_v51 }
 0x3ab   :  { %v12359_v54 = vsub.f32 %v12284_v61, %v1756_v53  ;;  %v1757_v62 = vmul.f32 0.015625, %v1738_v60  ;;  %v1812_v6 = vsel %vm1357_vm6, %v1782_v55, 0.0  ;;  %v1783_v2 = vmul.f32 %v12353_v49, %v12353_v49 }
 0x3ac   :  { %1813 = vadd.xlane.f32.xlu0 %v1812_v6  ;;  %v1741_v58 = vpop.xlane.xlu0 %1740 }
 0x3ad   :  { %v12371_v7 = vsub.f32 %v12288_v63, %v1757_v62  ;;  %v1758_v61 = vmul.f32 0.015625, %v1741_v58  ;;  %v1815_v8 = vsel %vm1357_vm6, %v1783_v2, 0.0  ;;  %v1784_v12 = vmul.f32 %v12359_v54, %v12359_v54  ;;  %v10969_v63 = vld [vmem:[%s16298_s6 + $0x130] sm:$0xff]   ;;  %v12429_v62 = vld [vmem:[%s16303_s11 + $0x3] ss:$0 sm:$0xff] }
 0x3ae   :  { %1816 = vadd.xlane.f32.xlu1 %v1815_v8  ;;  %v1744_v15 = vpop.xlane.xlu1 %1743  ;;  %9834 = vmatpush3.bf16.msra.mxu0 %v10969_v63 }
 0x3af   :  { %v12377_v16 = vsub.f32 %v12292_v1, %v1758_v61  ;;  %v1759_v38 = vmul.f32 0.015625, %v1744_v15  ;;  %v1818_v36 = vsel %vm1357_vm6, %v1784_v12, 0.0  ;;  %v1785_v5 = vmul.f32 %v12371_v7, %v12371_v7  ;;  %v10971_v1 = vld [vmem:[%s16298_s6 + $0x110] sm:$0xff]   ;;  %9835 = vmatprep.subr.bf16.mxu0 %v16316_v48 }
 0x3b0   :  { %1819 = vadd.xlane.f32.xlu0 %v1818_v36  ;;  %9798 = vmatpush3.bf16.msra.mxu1 %v10971_v1 }
 0x3b1   :  { %v12391_v35 = vsub.f32 %v12296_v3, %v1759_v38  ;;  %v1821_v30 = vsel %vm1357_vm6, %v1785_v5, 0.0  ;;  %v1786_v32 = vmul.f32 %v12377_v16, %v12377_v16  ;;  %v10972_v3 = vld [vmem:[%s16298_s6 + $0x138] sm:$0xff]   ;;  %9799 = vmatprep.subr.bf16.mxu1 %v16316_v48  ;;  %v10976_v5 = vld [vmem:[%s16298_s6 + $0x148] sm:$0xff]  }
 0x3b2   :  { %1822 = vadd.xlane.f32.xlu1 %v1821_v30  ;;  %9836 = vmatpush3.bf16.msra.mxu0 %v10972_v3 }
 0x3b3   :  { %v1824_v56 = vsel %vm1357_vm6, %v1786_v32, 0.0  ;;  %v1787_v57 = vmul.f32 %v12391_v35, %v12391_v35  ;;  %9837 = vmatprep.subr.bf16.mxu0 %v16316_v48 }
 0x3b4   :  { %1825 = vadd.xlane.f32.xlu0 %v1824_v56  ;;  %9800 = vmatpush3.bf16.msra.mxu1 %v10973_v59 }
 0x3b5   :  { %v1827_v14 = vsel %vm1357_vm6, %v1787_v57, 0.0  ;;  %9801 = vmatprep.subr.bf16.mxu1 %v16316_v48 }
 0x3b6   :  { %1828 = vadd.xlane.f32.xlu1 %v1827_v14  ;;  %9838 = vmatpush3.bf16.msra.mxu0 %v10974_v9 }
 0x3b7   :  { %9903 = vmatprep.subr.bf16.mxu0 %v16316_v48 }
 0x3b8   :  { %9802 = vmatpush3.bf16.msra.mxu1 %v10975_v18 }
 0x3b9   :  { %9867 = vmatprep.subr.bf16.mxu1 %v16316_v48 }
 0x41b   :  { %v1790_v20 = vpop.xlane.xlu0 %1789 }
 0x41c   :  { %v1830_v21 = vmul.f32 0.015625, %v1790_v20 }
 0x41e   :  { %v1844_v13 = vadd.f32 1e-05, %v1830_v21 }
 0x420   :  { %11112 = vrsqrt.f32 %v1844_v13 }
 0x423   :  { %v1793_v22 = vpop.xlane.xlu1 %1792 }
 0x424   :  { %v1831_v23 = vmul.f32 0.015625, %v1793_v22 }
 0x425   :  { %v1796_v25 = vpop.xlane.xlu0 %1795 }
 0x426   :  { %v1845_v24 = vadd.f32 1e-05, %v1831_v23  ;;  %v1832_v26 = vmul.f32 0.015625, %v1796_v25 }
 0x428   :  { %11114 = vrsqrt.f32 %v1845_v24  ;;  %v1846_v28 = vadd.f32 1e-05, %v1832_v26  ;;  %v10978_v24 = vld [vmem:[%s16298_s6 + $0x158] sm:$0xff]  }
 0x42a   :  { %11116 = vrsqrt.f32 %v1846_v28  ;;  %v11113_v33 = vpop.eup %11112 }
 0x42b   :  { %v1799_v31 = vpop.xlane.xlu1 %1798  ;;  %v1872_v46 = vmul.f32 %v11113_v33, %v12303_v11 }
 0x42c   :  { %v1833_v40 = vmul.f32 0.015625, %v1799_v31 }
 0x42d   :  { %v1802_v43 = vpop.xlane.xlu0 %1801  ;;  %v1890_v53 = vmul.f32 %v12422_v47, %v1872_v46 }
 0x42e   :  { %v1847_v41 = vadd.f32 1e-05, %v1833_v40  ;;  %v1834_v44 = vmul.f32 0.015625, %v1802_v43 }
 0x42f   :  { %v1908_v42 = vadd.f32 %v12429_v62, %v1890_v53 }
 0x430   :  { %11118 = vrsqrt.f32 %v1847_v41  ;;  %v1848_v50 = vadd.f32 1e-05, %v1834_v44 }
 0x432   :  { %v11115_v52 = vpop.eup %11114  ;;  %11120 = vrsqrt.f32 %v1848_v50 }
 0x433   :  { %v1873_v51 = vmul.f32 %v11115_v52, %v12309_v39  ;;  %v1805_v55 = vpop.xlane.xlu1 %1804 }
 0x434   :  { %v11117_v60 = vpop.eup %11116  ;;  %v1835_v11 = vmul.f32 0.015625, %v1805_v55 }
 0x435   :  { %v1891_v6 = vmul.f32 %v12422_v47, %v1873_v51  ;;  %v1808_v2 = vpop.xlane.xlu0 %1807  ;;  %v1874_v8 = vmul.f32 %v11117_v60, %v12312_v10 }
 0x436   :  { %v1849_v58 = vadd.f32 1e-05, %v1835_v11  ;;  %v1836_v4 = vmul.f32 0.015625, %v1808_v2 }
 0x437   :  { %v1909_v61 = vadd.f32 %v12429_v62, %v1891_v6  ;;  %v1811_v39 = vpop.xlane.xlu1 %1810  ;;  %v1892_v32 = vmul.f32 %v12422_v47, %v1874_v8 }
 0x438   :  { %11122 = vrsqrt.f32 %v1849_v58  ;;  %v1850_v12 = vadd.f32 1e-05, %v1836_v4  ;;  %v1837_v15 = vmul.f32 0.015625, %v1811_v39 }
 0x439   :  { %v1814_v38 = vpop.xlane.xlu0 %1813  ;;  %v12435_v36 = vpack.c.bf16 %v1909_v61, %v1908_v42  ;;  %v1910_v18 = vadd.f32 %v12429_v62, %v1892_v32 }
 0x43a   :  { %v11119_v63 = vpop.eup %11118  ;;  %11124 = vrsqrt.f32 %v1850_v12  ;;  %v1851_v1 = vadd.f32 1e-05, %v1837_v15  ;;  %v1838_v30 = vmul.f32 0.015625, %v1814_v38 }
 0x43b   :  { %v1875_v56 = vmul.f32 %v11119_v63, %v12321_v0  ;;  %9804 = vmatmul.mubr.msk.bf16.vlgmr.msra.gmra.mrb[68].mxu1 %vm1357_vm6, %v12435_v36  ;;  %9840 = vmatmul.mubr.msk.bf16.vlgmr.msra.gmra.mrb[72].mxu0 %vm1357_vm6, %v12435_v36  ;;  %v1817_v10 = vpop.xlane.xlu1 %1816  ;;  %v10977_v0 = vld [vmem:[%s16298_s6 + $0x150] sm:$0xff]  }
 0x43c   :  { %v11121_v57 = vpop.eup %11120  ;;  %11126 = vrsqrt.f32 %v1851_v1  ;;  %v1839_v3 = vmul.f32 0.015625, %v1817_v10  ;;  %9807 = vmatprep.mubr.msk.bf16.mxu1 %vm11613_vm4, %v16316_v48  ;;  %9843 = vmatprep.mubr.msk.bf16.mxu0 %vm11613_vm4, %v16316_v48  ;;  %v1852_v14 = vadd.f32 1e-05, %v1838_v30 }
 0x43d   :  { %v1893_v59 = vmul.f32 %v12422_v47, %v1875_v56  ;;  %9868 = vmatpush3.bf16.msra.mxu1 %v10976_v5  ;;  %v1876_v21 = vmul.f32 %v11121_v57, %v12324_v17  ;;  %v1820_v13 = vpop.xlane.xlu0 %1819 }
 0x43e   :  { %v1853_v9 = vadd.f32 1e-05, %v1839_v3  ;;  %9869 = vmatprep.subr.bf16.mxu1 %v16316_v48  ;;  %v1840_v28 = vmul.f32 0.015625, %v1820_v13 }
 0x43f   :  { %v1911_v20 = vadd.f32 %v12429_v62, %v1893_v59  ;;  %v1823_v22 = vpop.xlane.xlu1 %1822  ;;  %v1894_v31 = vmul.f32 %v12422_v47, %v1876_v21 }
 0x440   :  { %11128 = vrsqrt.f32 %v1853_v9  ;;  %v1841_v23 = vmul.f32 0.015625, %v1823_v22  ;;  %v1854_v46 = vadd.f32 1e-05, %v1840_v28 }
 0x441   :  { %v12458_v25 = vpack.c.bf16 %v1911_v20, %v1910_v18  ;;  %9870 = vmatpush3.bf16.msra.mxu1 %v10977_v0  ;;  %11130 = vrsqrt.f32 %v1852_v14  ;;  %v1912_v50 = vadd.f32 %v12429_v62, %v1894_v31  ;;  %v1826_v55 = vpop.xlane.xlu0 %1825 }
 0x442   :  { %v11123_v26 = vpop.eup %11122  ;;  %9871 = vmatprep.subr.bf16.mxu1 %v16316_v48  ;;  %v1855_v40 = vadd.f32 1e-05, %v1841_v23  ;;  %v1842_v58 = vmul.f32 0.015625, %v1826_v55 }
 0x443   :  { %v1877_v17 = vmul.f32 %v11123_v26, %v12333_v19  ;;  %9808 = vmatmul.mubr.msk.bf16.gmra.mrb[72].mxu1 %vm1357_vm6, %v12458_v25  ;;  %9844 = vmatmul.mubr.msk.bf16.gmra.mrb[76].mxu0 %vm1357_vm6, %v12458_v25  ;;  %v1829_v41 = vpop.xlane.xlu1 %1828  ;;  %v10979_v19 = vld [vmem:[%s16298_s6 + $0x160] sm:$0xff]  }
 0x444   :  { %v11125_v33 = vpop.eup %11124  ;;  %9811 = vmatprep.mubr.msk.bf16.mxu1 %vm11613_vm4, %v16316_v48  ;;  %9847 = vmatprep.mubr.msk.bf16.mxu0 %vm11613_vm4, %v16316_v48  ;;  %11132 = vrsqrt.f32 %v1855_v40  ;;  %v1843_v60 = vmul.f32 0.015625, %v1829_v41  ;;  %v1856_v8 = vadd.f32 1e-05, %v1842_v58 }
 0x445   :  { %v1895_v43 = vmul.f32 %v12422_v47, %v1877_v17  ;;  %9872 = vmatpush3.bf16.msra.mxu1 %v10978_v24  ;;  %v1878_v53 = vmul.f32 %v11125_v33, %v12336_v27  ;;  %11134 = vrsqrt.f32 %v1854_v46 }
 0x446   :  { %v11127_v44 = vpop.eup %11126  ;;  %9873 = vmatprep.subr.bf16.mxu1 %v16316_v48 }
 0x447   :  { %v1913_v52 = vadd.f32 %v12429_v62, %v1895_v43  ;;  %v1879_v51 = vmul.f32 %v11127_v44, %v12341_v34  ;;  %v1896_v4 = vmul.f32 %v12422_v47, %v1878_v53  ;;  %v1857_v34 = vadd.f32 1e-05, %v1843_v60 }
 0x449   :  { %v1897_v11 = vmul.f32 %v12422_v47, %v1879_v51  ;;  %v12484_v6 = vpack.c.bf16 %v1913_v52, %v1912_v50  ;;  %9874 = vmatpush3.bf16.msra.mxu1 %v10979_v19  ;;  %v1914_v39 = vadd.f32 %v12429_v62, %v1896_v4  ;;  %11136 = vrsqrt.f32 %v1857_v34 }
 0x44a   :  { %v11129_v2 = vpop.eup %11128  ;;  %9945 = vmatprep.subr.bf16.mxu1 %v16316_v48  ;;  %11138 = vrsqrt.f32 %v1856_v8 }
 0x44b   :  { %9812 = vmatmul.mubr.msk.bf16.gmra.mrb[76].mxu1 %vm1357_vm6, %v12484_v6  ;;  %9848 = vmatmul.mubr.msk.bf16.gmra.mrb[80].mxu0 %vm1357_vm6, %v12484_v6  ;;  %v11131_v27 = vpop.eup %11130  ;;  %v1915_v42 = vadd.f32 %v12429_v62, %v1897_v11  ;;  %v1881_v61 = vmul.f32 %v11129_v2, %v12353_v49 }
 0x44c   :  { %9815 = vmatprep.mubr.msk.bf16.mxu1 %vm11613_vm4, %v16316_v48  ;;  %9851 = vmatprep.mubr.msk.bf16.mxu0 %vm11613_vm4, %v16316_v48  ;;  %v1880_v12 = vmul.f32 %v11131_v27, %v12347_v45 }
 0x44d   :  { %v1899_v15 = vmul.f32 %v12422_v47, %v1881_v61  ;;  %v12501_v38 = vpack.c.bf16 %v1915_v42, %v1914_v39 }
 0x44e   :  { %v11133_v5 = vpop.eup %11132  ;;  %v1898_v63 = vmul.f32 %v12422_v47, %v1880_v12 }
 0x44f   :  { %v11135_v49 = vpop.eup %11134  ;;  %v1917_v45 = vadd.f32 %v12429_v62, %v1899_v15  ;;  %v1883_v1 = vmul.f32 %v11133_v5, %v12371_v7 }
 0x450   :  { %v1916_v30 = vadd.f32 %v12429_v62, %v1898_v63  ;;  %v1882_v32 = vmul.f32 %v11135_v49, %v12359_v54 }
 0x451   :  { %v1901_v56 = vmul.f32 %v12422_v47, %v1883_v1 }
 0x452   :  { %v12517_v10 = vpack.c.bf16 %v1917_v45, %v1916_v30  ;;  %v1900_v3 = vmul.f32 %v12422_v47, %v1882_v32 }
 0x453   :  { %9816 = vmatmul.mubr.msk.bf16.gmra.mrb[80].mxu1 %vm1357_vm6, %v12501_v38  ;;  %9852 = vmatmul.mubr.msk.bf16.gmra.mrb[84].mxu0 %vm1357_vm6, %v12501_v38  ;;  %v11137_v57 = vpop.eup %11136  ;;  %v1919_v54 = vadd.f32 %v12429_v62, %v1901_v56 }
 0x454   :  { %9819 = vmatprep.mubr.msk.bf16.mxu1 %vm11613_vm4, %v16316_v48  ;;  %9855 = vmatprep.mubr.msk.bf16.mxu0 %vm11613_vm4, %v16316_v48  ;;  %v11139_v59 = vpop.eup %11138  ;;  %v1885_v7 = vmul.f32 %v11137_v57, %v12391_v35  ;;  %v1918_v0 = vadd.f32 %v12429_v62, %v1900_v3 }
 0x455   :  { %v1884_v14 = vmul.f32 %v11139_v59, %v12377_v16 }
 0x456   :  { %v1903_v9 = vmul.f32 %v12422_v47, %v1885_v7  ;;  %v12533_v18 = vpack.c.bf16 %v1919_v54, %v1918_v0 }
 0x457   :  { %v1902_v20 = vmul.f32 %v12422_v47, %v1884_v14 }
 0x458   :  { %v1921_v16 = vadd.f32 %v12429_v62, %v1903_v9 }
 0x459   :  { %v1920_v35 = vadd.f32 %v12429_v62, %v1902_v20 }
 0x45b   :  { %9820 = vmatmul.mubr.msk.bf16.gmra.mrb[84].mxu1 %vm1357_vm6, %v12517_v10  ;;  %9856 = vmatmul.mubr.msk.bf16.gmra.mrb[88].mxu0 %vm1357_vm6, %v12517_v10  ;;  %v12546_v21 = vpack.c.bf16 %v1921_v16, %v1920_v35 }
 0x45c   :  { %9823 = vmatprep.mubr.msk.bf16.mxu1 %vm11613_vm4, %v16316_v48  ;;  %9859 = vmatprep.mubr.msk.bf16.mxu0 %vm11613_vm4, %v16316_v48 }
 0x463   :  { %9824 = vmatmul.mubr.msk.bf16.gmra.mrb[88].mxu1 %vm1357_vm6, %v12533_v18  ;;  %9860 = vmatmul.mubr.msk.bf16.gmra.mrb[92].mxu0 %vm1357_vm6, %v12533_v18 }
 0x464   :  { %9827 = vmatprep.mubr.msk.bf16.mxu1 %vm11613_vm4, %v16316_v48  ;;  %9863 = vmatprep.mubr.msk.bf16.mxu0 %vm11613_vm4, %v16316_v48 }
 0x46b   :  { %9828 = vmatmul.mubr.msk.bf16.gmra.mrb[92].mxu1 %vm1357_vm6, %v12546_v21  ;;  %9864 = vmatmul.mubr.msk.bf16.gmra.mrb[96].mxu0 %vm1357_vm6, %v12546_v21 }
 0x46c   :  { %9875 = vmatprep.mubr.msk.bf16.mxu1 %vm11613_vm4, %v16316_v48  ;;  %9917 = vmatprep.mubr.msk.bf16.mxu0 %vm11613_vm4, %v16316_v48 }
 0x473   :  { %9876 = vmatmul.mubr.msk.bf16.vlgmr.msra.gmra.mrb[96].mxu1 %vm1357_vm6, %v12435_v36 }
 0x474   :  { %9879 = vmatprep.mubr.msk.bf16.mxu1 %vm11613_vm4, %v16316_v48 }
 0x47b   :  { %9880 = vmatmul.mubr.msk.bf16.gmra.mrb[100].mxu1 %vm1357_vm6, %v12458_v25 }
 0x47c   :  { %9883 = vmatprep.mubr.msk.bf16.mxu1 %vm11613_vm4, %v16316_v48 }
 0x483   :  { %9884 = vmatmul.mubr.msk.bf16.gmra.mrb[104].mxu1 %vm1357_vm6, %v12484_v6 }
 0x484   :  { %9887 = vmatprep.mubr.msk.bf16.mxu1 %vm11613_vm4, %v16316_v48 }
 0x48b   :  { %9888 = vmatmul.mubr.msk.bf16.gmra.mrb[108].mxu1 %vm1357_vm6, %v12501_v38 }
 0x48c   :  { %9891 = vmatprep.mubr.msk.bf16.mxu1 %vm11613_vm4, %v16316_v48 }
 0x493   :  { %9892 = vmatmul.mubr.msk.bf16.gmra.mrb[112].mxu1 %vm1357_vm6, %v12517_v10 }
 0x494   :  { %9895 = vmatprep.mubr.msk.bf16.mxu1 %vm11613_vm4, %v16316_v48 }
 0x49b   :  { %9896 = vmatmul.mubr.msk.bf16.gmra.mrb[116].mxu1 %vm1357_vm6, %v12533_v18 }
 0x49c   :  { %9899 = vmatprep.mubr.msk.bf16.mxu1 %vm11613_vm4, %v16316_v48 }
 0x4a3   :  { %9900 = vmatmul.mubr.msk.bf16.gmra.mrb[120].mxu1 %vm1357_vm6, %v12546_v21 }
 0x4a4   :  { %9959 = vmatprep.mubr.msk.bf16.mxu1 %vm11613_vm4, %v16316_v48 }
 0x50e   :  { %v12584_v47 = vpop.f32.mrb[68].mxu1  ;;  %v2137_v62 = vpop.f32.mrb[72].mxu0 }
 0x50f   :  { %v9805_v13 = vpop.f32.mrb[69].mxu1  ;;  %v9841_v22 = vpop.f32.mrb[73].mxu0 }
 0x510   :  { %v12586_v23 = vpop.f32.mrb[70].mxu1  ;;  %v2140_v24 = vpop.f32.mrb[74].mxu0 }
 0x511   :  { %v2313_v26 = vpack.c.bf16 %v12586_v23, %v12584_v47  ;;  %v2320_v28 = vpack.c.bf16 %v2140_v24, %v2137_v62  ;;  %v9806_v31 = vpop.f32.mrb[71].mxu1  ;;  %v9842_v17 = vpop.f32.mrb[75].mxu0  ;;  %v10982_v23 = vld [vmem:[%s16298_s6 + $0x178] sm:$0xff]  }
 0x513   :  { %v2363_v33 = vsel %vm1413_vm5, %v2320_v28, 0 }
 0x514   :  { %9904 = vmatpush3.bf16.xpose.msra.mxu0 %v2363_v33 }
 0x515   :  { %9905 = vmatprep.subr.bf16.mxu0 %v16316_v48 }
 0x516   :  { %v12592_v40 = vpop.f32.mrb[72].mxu1  ;;  %v2145_v43 = vpop.f32.mrb[76].mxu0 }
 0x517   :  { %v9809_v41 = vpop.f32.mrb[73].mxu1  ;;  %v9845_v19 = vpop.f32.mrb[77].mxu0 }
 0x518   :  { %v12594_v44 = vpop.f32.mrb[74].mxu1  ;;  %v2148_v46 = vpop.f32.mrb[78].mxu0 }
 0x519   :  { %v2314_v50 = vpack.c.bf16 %v12594_v44, %v12592_v40  ;;  %v2321_v52 = vpack.c.bf16 %v2148_v46, %v2145_v43  ;;  %v9810_v53 = vpop.f32.mrb[75].mxu1  ;;  %v9846_v51 = vpop.f32.mrb[79].mxu0 }
 0x51b   :  { %v2366_v55 = vsel %vm1413_vm5, %v2321_v52, 0 }
 0x51c   :  { %9906 = vmatpush3.bf16.xpose.msra.mxu0 %v2366_v55 }
 0x51d   :  { %9907 = vmatprep.subr.bf16.mxu0 %v16316_v48 }
 0x51e   :  { %v12600_v60 = vpop.f32.mrb[76].mxu1  ;;  %v2153_v11 = vpop.f32.mrb[80].mxu0 }
 0x51f   :  { %v9813_v2 = vpop.f32.mrb[77].mxu1  ;;  %v9849_v58 = vpop.f32.mrb[81].mxu0 }
 0x520   :  { %v12602_v4 = vpop.f32.mrb[78].mxu1  ;;  %v2156_v27 = vpop.f32.mrb[82].mxu0 }
 0x521   :  { %v2315_v34 = vpack.c.bf16 %v12602_v4, %v12600_v60  ;;  %v2322_v42 = vpack.c.bf16 %v2156_v27, %v2153_v11  ;;  %v9814_v61 = vpop.f32.mrb[79].mxu1  ;;  %v9850_v8 = vpop.f32.mrb[83].mxu0 }
 0x523   :  { %v2369_v39 = vsel %vm1413_vm5, %v2322_v42, 0 }
 0x524   :  { %9908 = vmatpush3.bf16.xpose.msra.mxu0 %v2369_v39 }
 0x525   :  { %9909 = vmatprep.subr.bf16.mxu0 %v16316_v48 }
 0x526   :  { %v12608_v12 = vpop.f32.mrb[80].mxu1  ;;  %v2161_v15 = vpop.f32.mrb[84].mxu0 }
 0x527   :  { %v9817_v5 = vpop.f32.mrb[81].mxu1  ;;  %v9853_v63 = vpop.f32.mrb[85].mxu0 }
 0x528   :  { %v12610_v49 = vpop.f32.mrb[82].mxu1  ;;  %v2164_v45 = vpop.f32.mrb[86].mxu0 }
 0x529   :  { %v2316_v1 = vpack.c.bf16 %v12610_v49, %v12608_v12  ;;  %v2323_v30 = vpack.c.bf16 %v2164_v45, %v2161_v15  ;;  %v9818_v32 = vpop.f32.mrb[83].mxu1  ;;  %v9854_v56 = vpop.f32.mrb[87].mxu0 }
 0x52a   :  { %v10981_v32 = vld [vmem:[%s16298_s6 + $0x170] sm:$0xff]  }
 0x52b   :  { %v2372_v57 = vsel %vm1413_vm5, %v2323_v30, 0  ;;  %v10980_v30 = vld [vmem:[%s16298_s6 + $0x168] sm:$0xff]  }
 0x52c   :  { %9910 = vmatpush3.bf16.xpose.msra.mxu0 %v2372_v57 }
 0x52d   :  { %9911 = vmatprep.subr.bf16.mxu0 %v16316_v48 }
 0x52e   :  { %v12616_v3 = vpop.f32.mrb[84].mxu1  ;;  %v2169_v59 = vpop.f32.mrb[88].mxu0 }
 0x52f   :  { %v9821_v54 = vpop.f32.mrb[85].mxu1  ;;  %v9857_v7 = vpop.f32.mrb[89].mxu0 }
 0x530   :  { %v12618_v0 = vpop.f32.mrb[86].mxu1  ;;  %v2172_v14 = vpop.f32.mrb[90].mxu0 }
 0x531   :  { %v2317_v9 = vpack.c.bf16 %v12618_v0, %v12616_v3  ;;  %v2324_v20 = vpack.c.bf16 %v2172_v14, %v2169_v59  ;;  %v9822_v16 = vpop.f32.mrb[87].mxu1  ;;  %v9858_v35 = vpop.f32.mrb[91].mxu0 }
 0x533   :  { %v2375_v62 = vsel %vm1413_vm5, %v2324_v20, 0 }
 0x534   :  { %9912 = vmatpush3.bf16.xpose.msra.mxu0 %v2375_v62 }
 0x535   :  { %9913 = vmatprep.subr.bf16.mxu0 %v16316_v48 }
 0x536   :  { %v12624_v13 = vpop.f32.mrb[88].mxu1  ;;  %v2177_v22 = vpop.f32.mrb[92].mxu0 }
 0x537   :  { %v9825_v24 = vpop.f32.mrb[89].mxu1  ;;  %v9861_v28 = vpop.f32.mrb[93].mxu0 }
 0x538   :  { %v12626_v31 = vpop.f32.mrb[90].mxu1  ;;  %v2180_v17 = vpop.f32.mrb[94].mxu0 }
 0x539   :  { %v2318_v33 = vpack.c.bf16 %v12626_v31, %v12624_v13  ;;  %v2325_v43 = vpack.c.bf16 %v2180_v17, %v2177_v22  ;;  %v9826_v41 = vpop.f32.mrb[91].mxu1  ;;  %v9862_v19 = vpop.f32.mrb[95].mxu0  ;;  %v10984_v13 = vld [vmem:[%s16298_s6 + $0x1a8] sm:$0xff]   ;;  %v10985_v31 = vld [vmem:[%s16298_s6 + $0x1b0] sm:$0xff]  }
 0x53b   :  { %v2378_v46 = vsel %vm1413_vm5, %v2325_v43, 0 }
 0x53c   :  { %9914 = vmatpush3.bf16.xpose.msra.mxu0 %v2378_v46  ;;  %v10987_v46 = vld [vmem:[%s16298_s6 + $0x1c0] sm:$0xff]  }
 0x53d   :  { %9915 = vmatprep.subr.bf16.mxu0 %v16316_v48 }
 0x53e   :  { %v12632_v52 = vpop.f32.mrb[92].mxu1  ;;  %v2185_v53 = vpop.f32.mrb[96].mxu0 }
 0x53f   :  { %v9829_v51 = vpop.f32.mrb[93].mxu1  ;;  %v9865_v55 = vpop.f32.mrb[97].mxu0 }
 0x540   :  { %v12634_v11 = vpop.f32.mrb[94].mxu1  ;;  %v2188_v2 = vpop.f32.mrb[98].mxu0  ;;  %v12785_v51 = vld [vmem:[%s16296_s4 + $0x8] sm:$0xff] }
 0x541   :  { %v2319_v58 = vpack.c.bf16 %v12634_v11, %v12632_v52  ;;  %v2326_v27 = vpack.c.bf16 %v2188_v2, %v2185_v53  ;;  %v9830_v42 = vpop.f32.mrb[95].mxu1  ;;  %v9866_v61 = vpop.f32.mrb[99].mxu0  ;;  %v12780_v52 = vld [vmem:[%s16296_s4] sm:$0xff] }
 0x543   :  { %v2381_v8 = vsel %vm1413_vm5, %v2326_v27, 0 }
 0x544   :  { %9916 = vmatpush3.bf16.xpose.msra.mxu0 %v2381_v8  ;;  %v12800_v8 = vld [vmem:[%s16296_s4 + $0x10] sm:$0xff] }
 0x545   :  { %9987 = vmatprep.subr.bf16.mxu0 %v16316_v48 }
 0x546   :  { %v2258_v39 = vpop.f32.mrb[96].mxu1 }
 0x547   :  { %v9877_v15 = vpop.f32.mrb[97].mxu1 }
 0x548   :  { %v2261_v5 = vpop.f32.mrb[98].mxu1  ;;  %v12805_v15 = vld [vmem:[%s16296_s4 + $0x18] sm:$0xff] }
 0x549   :  { %v2634_v63 = vpack.c.bf16 %v2261_v5, %v2258_v39  ;;  %v9878_v45 = vpop.f32.mrb[99].mxu1 }
 0x54b   :  { %9918 = vmatmul.mubr.msk.bf16.vlgmr.msra.gmra.mrb[100].mxu0 %vm1413_vm5, %v2313_v26  ;;  %9946 = vmatpush3.bf16.msra.mxu1 %v2634_v63  ;;  %v10983_v26 = vld [vmem:[%s16298_s6 + $0x180] sm:$0xff]  }
 0x54c   :  { %9921 = vmatprep.mubr.msk.bf16.mxu0 %vm11613_vm4, %v16316_v48  ;;  %9947 = vmatprep.subr.bf16.mxu1 %v16316_v48 }
 0x54d   :  { %9988 = vmatpush3.bf16.msra.mxu0 %v10980_v30 }
 0x54e   :  { %v2266_v56 = vpop.f32.mrb[100].mxu1  ;;  %9989 = vmatprep.subr.bf16.mxu0 %v16316_v48 }
 0x54f   :  { %v9881_v57 = vpop.f32.mrb[101].mxu1 }
 0x550   :  { %v2269_v59 = vpop.f32.mrb[102].mxu1 }
 0x551   :  { %v2635_v54 = vpack.c.bf16 %v2269_v59, %v2266_v56  ;;  %v9882_v47 = vpop.f32.mrb[103].mxu1  ;;  %9990 = vmatpush3.bf16.msra.mxu0 %v10981_v32  ;;  %v12820_v59 = vld [vmem:[%s16296_s4 + $0x20] sm:$0xff] }
 0x552   :  { %9991 = vmatprep.subr.bf16.mxu0 %v16316_v48  ;;  %v12825_v47 = vld [vmem:[%s16296_s4 + $0x28] sm:$0xff] }
 0x553   :  { %9922 = vmatmul.mubr.msk.bf16.gmra.mrb[104].mxu0 %vm1413_vm5, %v2314_v50  ;;  %9948 = vmatpush3.bf16.msra.mxu1 %v2635_v54 }
 0x554   :  { %9925 = vmatprep.mubr.msk.bf16.mxu0 %vm11613_vm4, %v16316_v48  ;;  %9949 = vmatprep.subr.bf16.mxu1 %v16316_v48 }
 0x555   :  { %9992 = vmatpush3.bf16.msra.mxu0 %v10982_v23 }
 0x556   :  { %v2274_v7 = vpop.f32.mrb[104].mxu1  ;;  %9993 = vmatprep.subr.bf16.mxu0 %v16316_v48 }
 0x557   :  { %v9885_v14 = vpop.f32.mrb[105].mxu1 }
 0x558   :  { %v2277_v20 = vpop.f32.mrb[106].mxu1 }
 0x559   :  { %v2636_v16 = vpack.c.bf16 %v2277_v20, %v2274_v7  ;;  %v9886_v40 = vpop.f32.mrb[107].mxu1  ;;  %9994 = vmatpush3.bf16.msra.mxu0 %v10983_v26 }
 0x55a   :  { %10059 = vmatprep.subr.bf16.mxu0 %v16316_v48 }
 0x55b   :  { %9926 = vmatmul.mubr.msk.bf16.gmra.mrb[108].mxu0 %vm1413_vm5, %v2315_v34  ;;  %9950 = vmatpush3.bf16.msra.mxu1 %v2636_v16 }
 0x55c   :  { %9929 = vmatprep.mubr.msk.bf16.mxu0 %vm11613_vm4, %v16316_v48  ;;  %9951 = vmatprep.subr.bf16.mxu1 %v16316_v48 }
 0x55e   :  { %v2282_v44 = vpop.f32.mrb[108].mxu1 }
 0x55f   :  { %v9889_v50 = vpop.f32.mrb[109].mxu1 }
 0x560   :  { %v2285_v35 = vpop.f32.mrb[110].mxu1 }
 0x561   :  { %v2637_v62 = vpack.c.bf16 %v2285_v35, %v2282_v44  ;;  %v9890_v22 = vpop.f32.mrb[111].mxu1  ;;  %v12840_v44 = vld [vmem:[%s16296_s4 + $0x30] sm:$0xff]  ;;  %v12845_v35 = vld [vmem:[%s16296_s4 + $0x38] sm:$0xff] }
 0x563   :  { %9930 = vmatmul.mubr.msk.bf16.gmra.mrb[112].mxu0 %vm1413_vm5, %v2316_v1  ;;  %9952 = vmatpush3.bf16.msra.mxu1 %v2637_v62 }
 0x564   :  { %9933 = vmatprep.mubr.msk.bf16.mxu0 %vm11613_vm4, %v16316_v48  ;;  %9953 = vmatprep.subr.bf16.mxu1 %v16316_v48 }
 0x566   :  { %v2290_v60 = vpop.f32.mrb[112].mxu1 }
 0x567   :  { %v9893_v4 = vpop.f32.mrb[113].mxu1 }
 0x568   :  { %v2293_v34 = vpop.f32.mrb[114].mxu1 }
 0x569   :  { %v2638_v24 = vpack.c.bf16 %v2293_v34, %v2290_v60  ;;  %v9894_v28 = vpop.f32.mrb[115].mxu1 }
 0x56b   :  { %9934 = vmatmul.mubr.msk.bf16.gmra.mrb[116].mxu0 %vm1413_vm5, %v2317_v9  ;;  %9954 = vmatpush3.bf16.msra.mxu1 %v2638_v24 }
 0x56c   :  { %9937 = vmatprep.mubr.msk.bf16.mxu0 %vm11613_vm4, %v16316_v48  ;;  %9955 = vmatprep.subr.bf16.mxu1 %v16316_v48 }
 0x56e   :  { %v2298_v12 = vpop.f32.mrb[116].mxu1 }
 0x56f   :  { %v9897_v49 = vpop.f32.mrb[117].mxu1 }
 0x570   :  { %v2301_v1 = vpop.f32.mrb[118].mxu1 }
 0x571   :  { %v2639_v17 = vpack.c.bf16 %v2301_v1, %v2298_v12  ;;  %v9898_v43 = vpop.f32.mrb[119].mxu1  ;;  %v12860_v12 = vld [vmem:[%s16296_s4 + $0x40] sm:$0xff]  ;;  %v12865_v1 = vld [vmem:[%s16296_s4 + $0x48] sm:$0xff] }
 0x573   :  { %9938 = vmatmul.mubr.msk.bf16.gmra.mrb[120].mxu0 %vm1413_vm5, %v2318_v33  ;;  %9956 = vmatpush3.bf16.msra.mxu1 %v2639_v17  ;;  %v10986_v33 = vld [vmem:[%s16298_s6 + $0x1b8] sm:$0xff]  }
 0x574   :  { %9941 = vmatprep.mubr.msk.bf16.mxu0 %vm11613_vm4, %v16316_v48  ;;  %9957 = vmatprep.subr.bf16.mxu1 %v16316_v48 }
 0x576   :  { %v2306_v3 = vpop.f32.mrb[120].mxu1 }
 0x577   :  { %v9901_v0 = vpop.f32.mrb[121].mxu1 }
 0x578   :  { %v2309_v9 = vpop.f32.mrb[122].mxu1 }
 0x579   :  { %v2640_v41 = vpack.c.bf16 %v2309_v9, %v2306_v3  ;;  %v9902_v19 = vpop.f32.mrb[123].mxu1 }
 0x57b   :  { %9942 = vmatmul.mubr.msk.bf16.gmra.mrb[124].mxu0 %vm1413_vm5, %v2319_v58  ;;  %9958 = vmatpush3.bf16.msra.mxu1 %v2640_v41 }
 0x57c   :  { %9995 = vmatprep.mubr.msk.bf16.mxu0 %vm11613_vm4, %v16316_v48  ;;  %10023 = vmatprep.subr.bf16.mxu1 %v16316_v48 }
 0x583   :  { %9996 = vmatmul.mubr.msk.bf16.vlgmr.msra.gmra.mrb[128].mxu0 %vm1357_vm6, %v12435_v36 }
 0x584   :  { %9999 = vmatprep.mubr.msk.bf16.mxu0 %vm11613_vm4, %v16316_v48  ;;  %10060 = vmatpush3.bf16.msra.mxu0 %v10984_v13  ;;  %v12880_v13 = vld [vmem:[%s16296_s4 + $0x50] sm:$0xff] }
 0x585   :  { %10061 = vmatprep.subr.bf16.mxu0 %v16316_v48 }
 0x588   :  { %10062 = vmatpush3.bf16.msra.mxu0 %v10985_v31 }
 0x589   :  { %10063 = vmatprep.subr.bf16.mxu0 %v16316_v48 }
 0x58b   :  { %10000 = vmatmul.mubr.msk.bf16.gmra.mrb[132].mxu0 %vm1357_vm6, %v12458_v25 }
 0x58c   :  { %10003 = vmatprep.mubr.msk.bf16.mxu0 %vm11613_vm4, %v16316_v48  ;;  %10064 = vmatpush3.bf16.msra.mxu0 %v10986_v33  ;;  %v12885_v33 = vld [vmem:[%s16296_s4 + $0x58] sm:$0xff] }
 0x58d   :  { %10065 = vmatprep.subr.bf16.mxu0 %v16316_v48 }
 0x590   :  { %10066 = vmatpush3.bf16.msra.mxu0 %v10987_v46 }
 0x591   :  { %10137 = vmatprep.subr.bf16.mxu0 %v16316_v48 }
 0x593   :  { %10004 = vmatmul.mubr.msk.bf16.gmra.mrb[136].mxu0 %vm1357_vm6, %v12484_v6 }
 0x594   :  { %10007 = vmatprep.mubr.msk.bf16.mxu0 %vm11613_vm4, %v16316_v48 }
 0x59b   :  { %10008 = vmatmul.mubr.msk.bf16.gmra.mrb[140].mxu0 %vm1357_vm6, %v12501_v38 }
 0x59c   :  { %10011 = vmatprep.mubr.msk.bf16.mxu0 %vm11613_vm4, %v16316_v48 }
 0x5a3   :  { %10012 = vmatmul.mubr.msk.bf16.gmra.mrb[144].mxu0 %vm1357_vm6, %v12517_v10 }
 0x5a4   :  { %10015 = vmatprep.mubr.msk.bf16.mxu0 %vm11613_vm4, %v16316_v48 }
 0x5ab   :  { %10016 = vmatmul.mubr.msk.bf16.gmra.mrb[148].mxu0 %vm1357_vm6, %v12533_v18 }
 0x5ac   :  { %10019 = vmatprep.mubr.msk.bf16.mxu0 %vm11613_vm4, %v16316_v48 }
 0x5b3   :  { %10020 = vmatmul.mubr.msk.bf16.gmra.mrb[152].mxu0 %vm1357_vm6, %v12546_v21 }
 0x5b4   :  { %10067 = vmatprep.mubr.msk.bf16.mxu0 %vm11613_vm4, %v16316_v48 }
 0x5bb   :  { %10068 = vmatmul.mubr.msk.bf16.vlgmr.msra.gmra.mrb[156].mxu0 %vm1357_vm6, %v12435_v36 }
 0x5bc   :  { %10071 = vmatprep.mubr.msk.bf16.mxu0 %vm11613_vm4, %v16316_v48 }
 0x5c3   :  { %10072 = vmatmul.mubr.msk.bf16.gmra.mrb[160].mxu0 %vm1357_vm6, %v12458_v25 }
 0x5c4   :  { %10075 = vmatprep.mubr.msk.bf16.mxu0 %vm11613_vm4, %v16316_v48 }
 0x5cb   :  { %10076 = vmatmul.mubr.msk.bf16.gmra.mrb[164].mxu0 %vm1357_vm6, %v12484_v6 }
 0x5cc   :  { %10079 = vmatprep.mubr.msk.bf16.mxu0 %vm11613_vm4, %v16316_v48 }
 0x5d3   :  { %10080 = vmatmul.mubr.msk.bf16.gmra.mrb[168].mxu0 %vm1357_vm6, %v12501_v38 }
 0x5d4   :  { %10083 = vmatprep.mubr.msk.bf16.mxu0 %vm11613_vm4, %v16316_v48 }
 0x5db   :  { %10084 = vmatmul.mubr.msk.bf16.gmra.mrb[172].mxu0 %vm1357_vm6, %v12517_v10 }
 0x5dc   :  { %10087 = vmatprep.mubr.msk.bf16.mxu0 %vm11613_vm4, %v16316_v48 }
 0x5e3   :  { %10088 = vmatmul.mubr.msk.bf16.gmra.mrb[176].mxu0 %vm1357_vm6, %v12533_v18 }
 0x5e4   :  { %10091 = vmatprep.mubr.msk.bf16.mxu0 %vm11613_vm4, %v16316_v48 }
 0x5eb   :  { %10092 = vmatmul.mubr.msk.bf16.gmra.mrb[180].mxu0 %vm1357_vm6, %v12546_v21 }
 0x5ec   :  { %10151 = vmatprep.mubr.msk.bf16.mxu0 %vm11613_vm4, %v16316_v48 }
 0x61e   :  { %v2417_v53 = vpop.f32.mrb[100].mxu0 }
 0x61f   :  { %v9919_v55 = vpop.f32.mrb[101].mxu0  ;;  %v12788_v11 = vadd.f32 %v2417_v53, %v12780_v52 }
 0x620   :  { %v2420_v2 = vpop.f32.mrb[102].mxu0 }
 0x621   :  { %v9920_v58 = vpop.f32.mrb[103].mxu0  ;;  %v2473_v27 = vsel %vm2472_vm7, %v12788_v11, -inf  ;;  %v12793_v42 = vadd.f32 %v2420_v2, %v12785_v51 }
 0x622   :  { %2474 = vmax.xlane.f32.xlu0 %v2473_v27 }
 0x623   :  { %v2476_v61 = vsel %vm2472_vm7, %v12793_v42, -inf }
 0x624   :  { %2477 = vmax.xlane.f32.xlu1 %v2476_v61 }
 0x626   :  { %v2425_v39 = vpop.f32.mrb[104].mxu0 }
 0x627   :  { %v9923_v5 = vpop.f32.mrb[105].mxu0  ;;  %v12808_v63 = vadd.f32 %v2425_v39, %v12800_v8  ;;  %v12900_v39 = vld [vmem:[%s16296_s4 + $0x60] sm:$0xff] }
 0x628   :  { %v2428_v45 = vpop.f32.mrb[106].mxu0 }
 0x629   :  { %v9924_v30 = vpop.f32.mrb[107].mxu0  ;;  %v2479_v32 = vsel %vm2472_vm7, %v12808_v63, -inf  ;;  %v12813_v56 = vadd.f32 %v2428_v45, %v12805_v15  ;;  %v12905_v45 = vld [vmem:[%s16296_s4 + $0x68] sm:$0xff] }
 0x62a   :  { %2480 = vmax.xlane.f32.xlu0 %v2479_v32  ;;  %16339 = vst [vmem:[#allocation8_spill] sm:$0xff] %v12905_v45 }
 0x62b   :  { %v2482_v57 = vsel %vm2472_vm7, %v12813_v56, -inf }
 0x62c   :  { %2483 = vmax.xlane.f32.xlu1 %v2482_v57 }
 0x62e   :  { %v2433_v54 = vpop.f32.mrb[108].mxu0 }
 0x62f   :  { %v9927_v23 = vpop.f32.mrb[109].mxu0  ;;  %v12828_v26 = vadd.f32 %v2433_v54, %v12820_v59 }
 0x630   :  { %v2436_v7 = vpop.f32.mrb[110].mxu0 }
 0x631   :  { %v9928_v14 = vpop.f32.mrb[111].mxu0  ;;  %v2485_v20 = vsel %vm2472_vm7, %v12828_v26, -inf  ;;  %v12833_v16 = vadd.f32 %v2436_v7, %v12825_v47 }
 0x632   :  { %2486 = vmax.xlane.f32.xlu0 %v2485_v20 }
 0x633   :  { %v2488_v40 = vsel %vm2472_vm7, %v12833_v16, -inf }
 0x634   :  { %2489 = vmax.xlane.f32.xlu1 %v2488_v40 }
 0x636   :  { %v2441_v50 = vpop.f32.mrb[112].mxu0 }
 0x637   :  { %v9931_v62 = vpop.f32.mrb[113].mxu0  ;;  %v12848_v22 = vadd.f32 %v2441_v50, %v12840_v44 }
 0x638   :  { %v2444_v60 = vpop.f32.mrb[114].mxu0 }
 0x639   :  { %v9932_v4 = vpop.f32.mrb[115].mxu0  ;;  %v2491_v34 = vsel %vm2472_vm7, %v12848_v22, -inf  ;;  %v12853_v24 = vadd.f32 %v2444_v60, %v12845_v35 }
 0x63a   :  { %2492 = vmax.xlane.f32.xlu0 %v2491_v34 }
 0x63b   :  { %v2494_v28 = vsel %vm2472_vm7, %v12853_v24, -inf }
 0x63c   :  { %2495 = vmax.xlane.f32.xlu1 %v2494_v28 }
 0x63e   :  { %v2449_v49 = vpop.f32.mrb[116].mxu0 }
 0x63f   :  { %v9935_v17 = vpop.f32.mrb[117].mxu0  ;;  %v12868_v43 = vadd.f32 %v2449_v49, %v12860_v12 }
 0x640   :  { %v2452_v3 = vpop.f32.mrb[118].mxu0 }
 0x641   :  { %v9936_v0 = vpop.f32.mrb[119].mxu0  ;;  %v2497_v9 = vsel %vm2472_vm7, %v12868_v43, -inf  ;;  %v12873_v41 = vadd.f32 %v2452_v3, %v12865_v1 }
 0x642   :  { %2498 = vmax.xlane.f32.xlu0 %v2497_v9 }
 0x643   :  { %v2500_v19 = vsel %vm2472_vm7, %v12873_v41, -inf }
 0x644   :  { %2501 = vmax.xlane.f32.xlu1 %v2500_v19 }
 0x646   :  { %v2457_v31 = vpop.f32.mrb[120].mxu0 }
 0x647   :  { %v9939_v46 = vpop.f32.mrb[121].mxu0  ;;  %v12888_v53 = vadd.f32 %v2457_v31, %v12880_v13 }
 0x648   :  { %v2460_v55 = vpop.f32.mrb[122].mxu0 }
 0x649   :  { %v9940_v2 = vpop.f32.mrb[123].mxu0  ;;  %v2503_v58 = vsel %vm2472_vm7, %v12888_v53, -inf  ;;  %v12893_v27 = vadd.f32 %v2460_v55, %v12885_v33 }
 0x64a   :  { %2504 = vmax.xlane.f32.xlu0 %v2503_v58 }
 0x64b   :  { %v2506_v61 = vsel %vm2472_vm7, %v12893_v27, -inf }
 0x64c   :  { %2507 = vmax.xlane.f32.xlu1 %v2506_v61 }
 0x64e   :  { %v2465_v5 = vpop.f32.mrb[124].mxu0 }
 0x64f   :  { %v9943_v30 = vpop.f32.mrb[125].mxu0  ;;  %v12908_v32 = vadd.f32 %v2465_v5, %v12900_v39 }
 0x650   :  { %v2468_v57 = vpop.f32.mrb[126].mxu0 }
 0x651   :  { %v9944_v54 = vpop.f32.mrb[127].mxu0  ;;  %v2509_v23 = vsel %vm2472_vm7, %v12908_v32, -inf  ;;  %v12913_v7 = vadd.f32 %v2468_v57, %v12905_v45 }
 0x652   :  { %2510 = vmax.xlane.f32.xlu0 %v2509_v23 }
 0x653   :  { %v2512_v14 = vsel %vm2472_vm7, %v12913_v7, -inf }
 0x654   :  { %2513 = vmax.xlane.f32.xlu1 %v2512_v14 }
 0x656   :  { %v12917_v20 = vpop.f32.mrb[128].mxu0 }
 0x657   :  { %v9997_v40 = vpop.f32.mrb[129].mxu0 }
 0x658   :  { %v12919_v50 = vpop.f32.mrb[130].mxu0 }
 0x659   :  { %v9998_v60 = vpop.f32.mrb[131].mxu0 }
 0x65e   :  { %v12923_v4 = vpop.f32.mrb[132].mxu0 }
 0x65f   :  { %v10001_v34 = vpop.f32.mrb[133].mxu0 }
 0x660   :  { %v12925_v28 = vpop.f32.mrb[134].mxu0 }
 0x661   :  { %v10002_v17 = vpop.f32.mrb[135].mxu0 }
 0x666   :  { %v12929_v3 = vpop.f32.mrb[136].mxu0 }
 0x667   :  { %v10005_v0 = vpop.f32.mrb[137].mxu0 }
 0x668   :  { %v12931_v9 = vpop.f32.mrb[138].mxu0 }
 0x669   :  { %v10006_v31 = vpop.f32.mrb[139].mxu0 }
 0x66e   :  { %v12935_v46 = vpop.f32.mrb[140].mxu0 }
 0x66f   :  { %v10009_v55 = vpop.f32.mrb[141].mxu0 }
 0x670   :  { %v12937_v2 = vpop.f32.mrb[142].mxu0 }
 0x671   :  { %v10010_v61 = vpop.f32.mrb[143].mxu0 }
 0x676   :  { %v12941_v5 = vpop.f32.mrb[144].mxu0 }
 0x677   :  { %v10013_v30 = vpop.f32.mrb[145].mxu0 }
 0x678   :  { %v12943_v57 = vpop.f32.mrb[146].mxu0 }
 0x679   :  { %v10014_v23 = vpop.f32.mrb[147].mxu0 }
 0x67e   :  { %v12947_v14 = vpop.f32.mrb[148].mxu0 }
 0x67f   :  { %v10017_v40 = vpop.f32.mrb[149].mxu0 }
 0x680   :  { %v12949_v60 = vpop.f32.mrb[150].mxu0 }
 0x681   :  { %v10018_v17 = vpop.f32.mrb[151].mxu0 }
 0x686   :  { %v12953_v0 = vpop.f32.mrb[152].mxu0 }
 0x687   :  { %v10021_v31 = vpop.f32.mrb[153].mxu0 }
 0x688   :  { %v12955_v55 = vpop.f32.mrb[154].mxu0 }
 0x689   :  { %v10022_v30 = vpop.f32.mrb[155].mxu0 }
 0x68e   :  { %v3070_v54 = vpop.f32.mrb[156].mxu0 }
 0x68f   :  { %v10069_v23 = vpop.f32.mrb[157].mxu0 }
 0x690   :  { %v3073_v58 = vpop.f32.mrb[158].mxu0 }
 0x691   :  { %v3431_v19 = vpack.c.bf16 %v3073_v58, %v3070_v54  ;;  %v10070_v40 = vpop.f32.mrb[159].mxu0 }
 0x693   :  { %10138 = vmatpush3.bf16.msra.mxu0 %v3431_v19 }
 0x694   :  { %10139 = vmatprep.subr.bf16.mxu0 %v16316_v48 }
 0x696   :  { %v3078_v49 = vpop.f32.mrb[160].mxu0 }
 0x697   :  { %v10073_v34 = vpop.f32.mrb[161].mxu0 }
 0x698   :  { %v3081_v17 = vpop.f32.mrb[162].mxu0 }
 0x699   :  { %v3432_v62 = vpack.c.bf16 %v3081_v17, %v3078_v49  ;;  %v10074_v29 = vpop.f32.mrb[163].mxu0 }
 0x69b   :  { %10140 = vmatpush3.bf16.msra.mxu0 %v3432_v62 }
 0x69c   :  { %10141 = vmatprep.subr.bf16.mxu0 %v16316_v48 }
 0x69e   :  { %v3086_v31 = vpop.f32.mrb[164].mxu0 }
 0x69f   :  { %v10077_v37 = vpop.f32.mrb[165].mxu0 }
 0x6a0   :  { %v3089_v61 = vpop.f32.mrb[166].mxu0 }
 0x6a1   :  { %v3433_v30 = vpack.c.bf16 %v3089_v61, %v3086_v31  ;;  %v10078_v45 = vpop.f32.mrb[167].mxu0 }
 0x6a3   :  { %10142 = vmatpush3.bf16.msra.mxu0 %v3433_v30 }
 0x6a4   :  { %10143 = vmatprep.subr.bf16.mxu0 %v16316_v48 }
 0x6a6   :  { %v3094_v58 = vpop.f32.mrb[168].mxu0 }
 0x6a7   :  { %v10081_v19 = vpop.f32.mrb[169].mxu0 }
 0x6a8   :  { %v3097_v54 = vpop.f32.mrb[170].mxu0 }
 0x6a9   :  { %v3434_v23 = vpack.c.bf16 %v3097_v54, %v3094_v58  ;;  %v10082_v40 = vpop.f32.mrb[171].mxu0 }
 0x6ab   :  { %10144 = vmatpush3.bf16.msra.mxu0 %v3434_v23 }
 0x6ac   :  { %10145 = vmatprep.subr.bf16.mxu0 %v16316_v48 }
 0x6ae   :  { %v3102_v29 = vpop.f32.mrb[172].mxu0 }
 0x6af   :  { %v2475_v62 = vpop.xlane.xlu0 %2474  ;;  %v10085_v49 = vpop.f32.mrb[173].mxu0 }
 0x6b0   :  { %v2515_v34 = vsub.f32 %v12788_v11, %v2475_v62  ;;  %v3105_v37 = vpop.f32.mrb[174].mxu0 }
 0x6b1   :  { %v3435_v17 = vpack.c.bf16 %v3105_v37, %v3102_v29  ;;  %v2478_v61 = vpop.xlane.xlu1 %2477  ;;  %v10086_v45 = vpop.f32.mrb[175].mxu0 }
 0x6b2   :  { %v2529_v31 = vmul.f32 1.442695, %v2515_v34  ;;  %v2516_v30 = vsub.f32 %v12793_v42, %v2478_v61 }
 0x6b3   :  { %10146 = vmatpush3.bf16.msra.mxu0 %v3435_v17 }
 0x6b4   :  { %11140 = vpow2.f32 %v2529_v31  ;;  %v2531_v19 = vmul.f32 1.442695, %v2516_v30  ;;  %10147 = vmatprep.subr.bf16.mxu0 %v16316_v48 }
 0x6b6   :  { %11142 = vpow2.f32 %v2531_v19  ;;  %v3110_v58 = vpop.f32.mrb[176].mxu0 }
 0x6b7   :  { %v2481_v54 = vpop.xlane.xlu0 %2480  ;;  %v10089_v23 = vpop.f32.mrb[177].mxu0 }
 0x6b8   :  { %v2517_v40 = vsub.f32 %v12808_v63, %v2481_v54  ;;  %v3113_v49 = vpop.f32.mrb[178].mxu0 }
 0x6b9   :  { %v3436_v11 = vpack.c.bf16 %v3113_v49, %v3110_v58  ;;  %v2484_v62 = vpop.xlane.xlu1 %2483  ;;  %v10090_v29 = vpop.f32.mrb[179].mxu0 }
 0x6ba   :  { %v2533_v37 = vmul.f32 1.442695, %v2517_v40  ;;  %v2518_v34 = vsub.f32 %v12813_v56, %v2484_v62 }
 0x6bb   :  { %10148 = vmatpush3.bf16.msra.mxu0 %v3436_v11 }
 0x6bc   :  { %11144 = vpow2.f32 %v2533_v37  ;;  %v2535_v42 = vmul.f32 1.442695, %v2518_v34  ;;  %10149 = vmatprep.subr.bf16.mxu0 %v16316_v48 }
 0x6be   :  { %v12969_v17 = vpop.eup %11140  ;;  %11146 = vpow2.f32 %v2535_v42  ;;  %v3118_v61 = vpop.f32.mrb[180].mxu0 }
 0x6bf   :  { %v2487_v45 = vpop.xlane.xlu0 %2486  ;;  %v10093_v31 = vpop.f32.mrb[181].mxu0  ;;  %v2557_v63 = vsel %vm2472_vm7, %v12969_v17, 0.0 }
 0x6c0   :  { %v12973_v30 = vpop.eup %11142  ;;  %v2519_v19 = vsub.f32 %v12828_v26, %v2487_v45  ;;  %2558 = vadd.xlane.f32.xlu0 %v2557_v63  ;;  %v3121_v56 = vpop.f32.mrb[182].mxu0 }
 0x6c1   :  { %v3437_v58 = vpack.c.bf16 %v3121_v56, %v3118_v61  ;;  %v2490_v54 = vpop.xlane.xlu1 %2489  ;;  %v10094_v23 = vpop.f32.mrb[183].mxu0  ;;  %v2560_v40 = vsel %vm2472_vm7, %v12973_v30, 0.0 }
 0x6c2   :  { %v2537_v49 = vmul.f32 1.442695, %v2519_v19  ;;  %v2520_v11 = vsub.f32 %v12833_v16, %v2490_v54  ;;  %2561 = vadd.xlane.f32.xlu1 %v2560_v40 }
 0x6c3   :  { %10150 = vmatpush3.bf16.msra.mxu0 %v3437_v58 }
 0x6c4   :  { %11148 = vpow2.f32 %v2537_v49  ;;  %v2539_v62 = vmul.f32 1.442695, %v2520_v11  ;;  %10211 = vmatprep.subr.bf16.mxu0 %v16316_v48 }
 0x6c6   :  { %v12980_v29 = vpop.eup %11144  ;;  %11150 = vpow2.f32 %v2539_v62 }
 0x6c7   :  { %v2493_v26 = vpop.xlane.xlu0 %2492  ;;  %v2563_v37 = vsel %vm2472_vm7, %v12980_v29, 0.0 }
 0x6c8   :  { %v12984_v34 = vpop.eup %11146  ;;  %v2521_v42 = vsub.f32 %v12848_v22, %v2493_v26  ;;  %2564 = vadd.xlane.f32.xlu0 %v2563_v37 }
 0x6c9   :  { %v2496_v61 = vpop.xlane.xlu1 %2495  ;;  %v2566_v16 = vsel %vm2472_vm7, %v12984_v34, 0.0 }
 0x6ca   :  { %v2541_v45 = vmul.f32 1.442695, %v2521_v42  ;;  %v2522_v31 = vsub.f32 %v12853_v24, %v2496_v61  ;;  %2567 = vadd.xlane.f32.xlu1 %v2566_v16 }
 0x6cc   :  { %11152 = vpow2.f32 %v2541_v45  ;;  %v2543_v63 = vmul.f32 1.442695, %v2522_v31 }
 0x6ce   :  { %v12990_v19 = vpop.eup %11148  ;;  %11154 = vpow2.f32 %v2543_v63 }
 0x6cf   :  { %v2499_v56 = vpop.xlane.xlu0 %2498  ;;  %v2569_v58 = vsel %vm2472_vm7, %v12990_v19, 0.0 }
 0x6d0   :  { %v12994_v54 = vpop.eup %11150  ;;  %v2523_v22 = vsub.f32 %v12868_v43, %v2499_v56  ;;  %2570 = vadd.xlane.f32.xlu0 %v2569_v58 }
 0x6d1   :  { %v2502_v23 = vpop.xlane.xlu1 %2501  ;;  %v2572_v40 = vsel %vm2472_vm7, %v12994_v54, 0.0 }
 0x6d2   :  { %v2545_v24 = vmul.f32 1.442695, %v2523_v22  ;;  %v2524_v49 = vsub.f32 %v12873_v41, %v2502_v23  ;;  %2573 = vadd.xlane.f32.xlu1 %v2572_v40 }
 0x6d4   :  { %11156 = vpow2.f32 %v2545_v24  ;;  %v2547_v11 = vmul.f32 1.442695, %v2524_v49 }
 0x6d6   :  { %v13000_v62 = vpop.eup %11152  ;;  %11158 = vpow2.f32 %v2547_v11 }
 0x6d7   :  { %v2505_v26 = vpop.xlane.xlu0 %2504  ;;  %v2575_v37 = vsel %vm2472_vm7, %v13000_v62, 0.0 }
 0x6d8   :  { %v13004_v42 = vpop.eup %11154  ;;  %v2525_v43 = vsub.f32 %v12888_v53, %v2505_v26  ;;  %2576 = vadd.xlane.f32.xlu0 %v2575_v37 }
 0x6d9   :  { %v2508_v61 = vpop.xlane.xlu1 %2507  ;;  %v2578_v16 = vsel %vm2472_vm7, %v13004_v42, 0.0 }
 0x6da   :  { %v2549_v41 = vmul.f32 1.442695, %v2525_v43  ;;  %v2526_v45 = vsub.f32 %v12893_v27, %v2508_v61  ;;  %2579 = vadd.xlane.f32.xlu1 %v2578_v16 }
 0x6dc   :  { %11160 = vpow2.f32 %v2549_v41  ;;  %v2551_v31 = vmul.f32 1.442695, %v2526_v45 }
 0x6de   :  { %v13010_v63 = vpop.eup %11156  ;;  %11162 = vpow2.f32 %v2551_v31 }
 0x6df   :  { %v2511_v56 = vpop.xlane.xlu0 %2510  ;;  %v2581_v58 = vsel %vm2472_vm7, %v13010_v63, 0.0 }
 0x6e0   :  { %v13014_v22 = vpop.eup %11158  ;;  %v2527_v53 = vsub.f32 %v12908_v32, %v2511_v56  ;;  %2582 = vadd.xlane.f32.xlu0 %v2581_v58 }
 0x6e1   :  { %v2514_v23 = vpop.xlane.xlu1 %2513  ;;  %v2584_v40 = vsel %vm2472_vm7, %v13014_v22, 0.0 }
 0x6e2   :  { %v2553_v27 = vmul.f32 1.442695, %v2527_v53  ;;  %v2528_v24 = vsub.f32 %v12913_v7, %v2514_v23  ;;  %2585 = vadd.xlane.f32.xlu1 %v2584_v40 }
 0x6e4   :  { %11164 = vpow2.f32 %v2553_v27  ;;  %v2555_v49 = vmul.f32 1.442695, %v2528_v24  ;;  %v10988_v27 = vld [vmem:[%s16298_s6 + $0x188] sm:$0xff]  }
 0x6e6   :  { %v13020_v11 = vpop.eup %11160  ;;  %11166 = vpow2.f32 %v2555_v49 }
 0x6e7   :  { %v2587_v26 = vsel %vm2472_vm7, %v13020_v11, 0.0 }
 0x6e8   :  { %v13024_v37 = vpop.eup %11162  ;;  %2588 = vadd.xlane.f32.xlu0 %v2587_v26 }
 0x6e9   :  { %v2590_v32 = vsel %vm2472_vm7, %v13024_v37, 0.0 }
 0x6ea   :  { %2591 = vadd.xlane.f32.xlu1 %v2590_v32 }
 0x6ee   :  { %v13028_v43 = vpop.eup %11164 }
 0x6ef   :  { %v2593_v7 = vsel %vm2472_vm7, %v13028_v43, 0.0 }
 0x6f0   :  { %v13032_v61 = vpop.eup %11166  ;;  %2594 = vadd.xlane.f32.xlu0 %v2593_v7 }
 0x6f1   :  { %v2596_v16 = vsel %vm2472_vm7, %v13032_v61, 0.0 }
 0x6f2   :  { %2597 = vadd.xlane.f32.xlu1 %v2596_v16 }
 0x74d   :  { %v2559_v41 = vpop.xlane.xlu0 %2558 }
 0x74e   :  { %11168 = vrcp.f32 %v2559_v41  ;;  %v10990_v41 = vld [vmem:[%s16298_s6 + $0x198] sm:$0xff]  }
 0x74f   :  { %v2562_v45 = vpop.xlane.xlu1 %2561 }
 0x750   :  { %11170 = vrcp.f32 %v2562_v45 }
 0x755   :  { %v2565_v31 = vpop.xlane.xlu0 %2564 }
 0x756   :  { %11172 = vrcp.f32 %v2565_v31 }
 0x757   :  { %v2568_v56 = vpop.xlane.xlu1 %2567 }
 0x758   :  { %v11169_v58 = vpop.eup %11168  ;;  %11174 = vrcp.f32 %v2568_v56 }
 0x759   :  { %v2600_v23 = vmul.f32 %v11169_v58, %v12969_v17  ;;  %v10989_v17 = vld [vmem:[%s16298_s6 + $0x190] sm:$0xff]  }
 0x75a   :  { %v11171_v53 = vpop.eup %11170 }
 0x75b   :  { %v2602_v40 = vmul.f32 %v11171_v53, %v12973_v30 }
 0x75d   :  { %v2627_v24 = vpack.c.bf16 %v2602_v40, %v2600_v23  ;;  %v2571_v49 = vpop.xlane.xlu0 %2570 }
 0x75e   :  { %11176 = vrcp.f32 %v2571_v49 }
 0x75f   :  { %9960 = vmatmul.mubr.msk.bf16.vlgmr.msra.gmra.mrb[124].mxu1 %vm2472_vm7, %v2627_v24  ;;  %v2574_v26 = vpop.xlane.xlu1 %2573 }
 0x760   :  { %v11173_v32 = vpop.eup %11172  ;;  %11178 = vrcp.f32 %v2574_v26  ;;  %10024 = vmatpush3.bf16.msra.mxu1 %v10988_v27  ;;  %9963 = vmatprep.mubr.msk.bf16.mxu1 %vm11613_vm4, %v16316_v48 }
 0x761   :  { %10025 = vmatprep.subr.bf16.mxu1 %v16316_v48  ;;  %v2604_v7 = vmul.f32 %v11173_v32, %v12980_v29  ;;  %v10991_v29 = vld [vmem:[%s16298_s6 + $0x1a0] sm:$0xff]  }
 0x762   :  { %v11175_v30 = vpop.eup %11174 }
 0x763   :  { %v2606_v16 = vmul.f32 %v11175_v30, %v12984_v34 }
 0x764   :  { %10026 = vmatpush3.bf16.msra.mxu1 %v10989_v17 }
 0x765   :  { %v2577_v45 = vpop.xlane.xlu0 %2576  ;;  %v2628_v31 = vpack.c.bf16 %v2606_v16, %v2604_v7  ;;  %10027 = vmatprep.subr.bf16.mxu1 %v16316_v48 }
 0x766   :  { %11180 = vrcp.f32 %v2577_v45 }
 0x767   :  { %9964 = vmatmul.mubr.msk.bf16.gmra.mrb[128].mxu1 %vm2472_vm7, %v2628_v31  ;;  %v2580_v56 = vpop.xlane.xlu1 %2579 }
 0x768   :  { %v11177_v58 = vpop.eup %11176  ;;  %11182 = vrcp.f32 %v2580_v56  ;;  %9967 = vmatprep.mubr.msk.bf16.mxu1 %vm11613_vm4, %v16316_v48  ;;  %10028 = vmatpush3.bf16.msra.mxu1 %v10990_v41 }
 0x769   :  { %10029 = vmatprep.subr.bf16.mxu1 %v16316_v48  ;;  %v2608_v53 = vmul.f32 %v11177_v58, %v12990_v19 }
 0x76a   :  { %v11179_v34 = vpop.eup %11178 }
 0x76b   :  { %v2610_v23 = vmul.f32 %v11179_v34, %v12994_v54 }
 0x76c   :  { %10030 = vmatpush3.bf16.msra.mxu1 %v10991_v29 }
 0x76d   :  { %v2583_v40 = vpop.xlane.xlu0 %2582  ;;  %v2629_v27 = vpack.c.bf16 %v2610_v23, %v2608_v53  ;;  %10095 = vmatprep.subr.bf16.mxu1 %v16316_v48 }
 0x76e   :  { %11184 = vrcp.f32 %v2583_v40 }
 0x76f   :  { %9968 = vmatmul.mubr.msk.bf16.gmra.mrb[132].mxu1 %vm2472_vm7, %v2629_v27  ;;  %v2586_v24 = vpop.xlane.xlu1 %2585 }
 0x770   :  { %v11181_v49 = vpop.eup %11180  ;;  %11186 = vrcp.f32 %v2586_v24  ;;  %9971 = vmatprep.mubr.msk.bf16.mxu1 %vm11613_vm4, %v16316_v48 }
 0x771   :  { %v2612_v32 = vmul.f32 %v11181_v49, %v13000_v62 }
 0x772   :  { %v11183_v26 = vpop.eup %11182 }
 0x773   :  { %v2614_v19 = vmul.f32 %v11183_v26, %v13004_v42 }
 0x775   :  { %v2589_v54 = vpop.xlane.xlu0 %2588  ;;  %v2630_v17 = vpack.c.bf16 %v2614_v19, %v2612_v32 }
 0x776   :  { %11188 = vrcp.f32 %v2589_v54 }
 0x777   :  { %9972 = vmatmul.mubr.msk.bf16.gmra.mrb[136].mxu1 %vm2472_vm7, %v2630_v17  ;;  %v2592_v30 = vpop.xlane.xlu1 %2591 }
 0x778   :  { %v11185_v7 = vpop.eup %11184  ;;  %11190 = vrcp.f32 %v2592_v30  ;;  %9975 = vmatprep.mubr.msk.bf16.mxu1 %vm11613_vm4, %v16316_v48 }
 0x779   :  { %v2616_v41 = vmul.f32 %v11185_v7, %v13010_v63 }
 0x77a   :  { %v11187_v16 = vpop.eup %11186 }
 0x77b   :  { %v2618_v45 = vmul.f32 %v11187_v16, %v13014_v22 }
 0x77d   :  { %v2595_v31 = vpop.xlane.xlu0 %2594  ;;  %v2631_v62 = vpack.c.bf16 %v2618_v45, %v2616_v41 }
 0x77e   :  { %11192 = vrcp.f32 %v2595_v31 }
 0x77f   :  { %9976 = vmatmul.mubr.msk.bf16.gmra.mrb[140].mxu1 %vm2472_vm7, %v2631_v62  ;;  %v2598_v42 = vpop.xlane.xlu1 %2597 }
 0x780   :  { %v11189_v56 = vpop.eup %11188  ;;  %11194 = vrcp.f32 %v2598_v42  ;;  %9979 = vmatprep.mubr.msk.bf16.mxu1 %vm11613_vm4, %v16316_v48 }
 0x781   :  { %v2620_v29 = vmul.f32 %v11189_v56, %v13020_v11 }
 0x782   :  { %v11191_v58 = vpop.eup %11190 }
 0x783   :  { %v2622_v34 = vmul.f32 %v11191_v58, %v13024_v37 }
 0x785   :  { %v2632_v53 = vpack.c.bf16 %v2622_v34, %v2620_v29 }
 0x787   :  { %9980 = vmatmul.mubr.msk.bf16.gmra.mrb[144].mxu1 %vm2472_vm7, %v2632_v53 }
 0x788   :  { %v11193_v63 = vpop.eup %11192  ;;  %9983 = vmatprep.mubr.msk.bf16.mxu1 %vm11613_vm4, %v16316_v48 }
 0x789   :  { %v2624_v23 = vmul.f32 %v11193_v63, %v13028_v43 }
 0x78a   :  { %v11195_v22 = vpop.eup %11194 }
 0x78b   :  { %v2626_v40 = vmul.f32 %v11195_v22, %v13032_v61 }
 0x78d   :  { %v2633_v27 = vpack.c.bf16 %v2626_v40, %v2624_v23 }
 0x78f   :  { %9984 = vmatmul.mubr.msk.bf16.gmra.mrb[148].mxu1 %vm2472_vm7, %v2633_v27 }
 0x790   :  { %10031 = vmatprep.mubr.msk.bf16.mxu1 %vm11613_vm4, %v16316_v48 }
 0x797   :  { %10032 = vmatmul.mubr.msk.bf16.vlgmr.msra.gmra.mrb[152].mxu1 %vm1357_vm6, %v12435_v36 }
 0x798   :  { %10035 = vmatprep.mubr.msk.bf16.mxu1 %vm11613_vm4, %v16316_v48 }
 0x79f   :  { %10036 = vmatmul.mubr.msk.bf16.gmra.mrb[156].mxu1 %vm1357_vm6, %v12458_v25 }
 0x7a0   :  { %10039 = vmatprep.mubr.msk.bf16.mxu1 %vm11613_vm4, %v16316_v48 }
 0x7a7   :  { %10040 = vmatmul.mubr.msk.bf16.gmra.mrb[160].mxu1 %vm1357_vm6, %v12484_v6 }
 0x7a8   :  { %10043 = vmatprep.mubr.msk.bf16.mxu1 %vm11613_vm4, %v16316_v48 }
 0x7af   :  { %10044 = vmatmul.mubr.msk.bf16.gmra.mrb[164].mxu1 %vm1357_vm6, %v12501_v38 }
 0x7b0   :  { %10047 = vmatprep.mubr.msk.bf16.mxu1 %vm11613_vm4, %v16316_v48 }
 0x7b7   :  { %10048 = vmatmul.mubr.msk.bf16.gmra.mrb[168].mxu1 %vm1357_vm6, %v12517_v10 }
 0x7b8   :  { %10051 = vmatprep.mubr.msk.bf16.mxu1 %vm11613_vm4, %v16316_v48 }
 0x7bf   :  { %10052 = vmatmul.mubr.msk.bf16.gmra.mrb[172].mxu1 %vm1357_vm6, %v12533_v18 }
 0x7c0   :  { %10055 = vmatprep.mubr.msk.bf16.mxu1 %vm11613_vm4, %v16316_v48 }
 0x7c7   :  { %10056 = vmatmul.mubr.msk.bf16.gmra.mrb[176].mxu1 %vm1357_vm6, %v12546_v21 }
 0x7c8   :  { %10109 = vmatprep.mubr.msk.bf16.mxu1 %vm11613_vm4, %v16316_v48 }
 0x832   :  { %v13115_v36 = vpop.f32.mrb[124].mxu1 }
 0x833   :  { %v9961_v25 = vpop.f32.mrb[125].mxu1 }
 0x834   :  { %v13117_v6 = vpop.f32.mrb[126].mxu1 }
 0x835   :  { %v2755_v38 = vpack.c.bf16 %v13117_v6, %v13115_v36  ;;  %v9962_v10 = vpop.f32.mrb[127].mxu1 }
 0x83a   :  { %v13121_v11 = vpop.f32.mrb[128].mxu1 }
 0x83b   :  { %v9965_v18 = vpop.f32.mrb[129].mxu1 }
 0x83c   :  { %v13123_v37 = vpop.f32.mrb[130].mxu1 }
 0x83d   :  { %v2756_v21 = vpack.c.bf16 %v13123_v37, %v13121_v11  ;;  %v9966_v43 = vpop.f32.mrb[131].mxu1 }
 0x842   :  { %v13127_v61 = vpop.f32.mrb[132].mxu1 }
 0x843   :  { %v9969_v24 = vpop.f32.mrb[133].mxu1 }
 0x844   :  { %v13129_v49 = vpop.f32.mrb[134].mxu1 }
 0x845   :  { %v2757_v26 = vpack.c.bf16 %v13129_v49, %v13127_v61  ;;  %v9970_v32 = vpop.f32.mrb[135].mxu1 }
 0x84a   :  { %v13133_v19 = vpop.f32.mrb[136].mxu1 }
 0x84b   :  { %v9973_v54 = vpop.f32.mrb[137].mxu1 }
 0x84c   :  { %v13135_v17 = vpop.f32.mrb[138].mxu1 }
 0x84d   :  { %v2758_v30 = vpack.c.bf16 %v13135_v17, %v13133_v19  ;;  %v9974_v7 = vpop.f32.mrb[139].mxu1 }
 0x852   :  { %v13139_v16 = vpop.f32.mrb[140].mxu1 }
 0x853   :  { %v9977_v41 = vpop.f32.mrb[141].mxu1 }
 0x854   :  { %v13141_v45 = vpop.f32.mrb[142].mxu1 }
 0x855   :  { %v2759_v31 = vpack.c.bf16 %v13141_v45, %v13139_v16  ;;  %v9978_v62 = vpop.f32.mrb[143].mxu1 }
 0x85a   :  { %v13145_v42 = vpop.f32.mrb[144].mxu1 }
 0x85b   :  { %v9981_v56 = vpop.f32.mrb[145].mxu1 }
 0x85c   :  { %v13147_v58 = vpop.f32.mrb[146].mxu1 }
 0x85d   :  { %v2760_v29 = vpack.c.bf16 %v13147_v58, %v13145_v42  ;;  %v9982_v34 = vpop.f32.mrb[147].mxu1 }
 0x862   :  { %v13151_v53 = vpop.f32.mrb[148].mxu1 }
 0x863   :  { %v9985_v63 = vpop.f32.mrb[149].mxu1 }
 0x864   :  { %v13153_v22 = vpop.f32.mrb[150].mxu1 }
 0x865   :  { %v2761_v23 = vpack.c.bf16 %v13153_v22, %v13151_v53  ;;  %v9986_v40 = vpop.f32.mrb[151].mxu1 }
 0x86a   :  { %v2949_v27 = vpop.f32.mrb[152].mxu1 }
 0x86b   :  { %v10033_v25 = vpop.f32.mrb[153].mxu1 }
 0x86c   :  { %v2952_v10 = vpop.f32.mrb[154].mxu1 }
 0x86d   :  { %v3132_v18 = vpack.c.bf16 %v2952_v10, %v2949_v27  ;;  %v10034_v43 = vpop.f32.mrb[155].mxu1 }
 0x86f   :  { %v3161_v24 = vsel %vm1413_vm5, %v3132_v18, 0 }
 0x870   :  { %10096 = vmatpush3.bf16.xpose.msra.mxu1 %v3161_v24 }
 0x871   :  { %10097 = vmatprep.subr.bf16.mxu1 %v16316_v48 }
 0x872   :  { %v2957_v32 = vpop.f32.mrb[156].mxu1 }
 0x873   :  { %v10037_v54 = vpop.f32.mrb[157].mxu1 }
 0x874   :  { %v2960_v7 = vpop.f32.mrb[158].mxu1 }
 0x875   :  { %v3133_v41 = vpack.c.bf16 %v2960_v7, %v2957_v32  ;;  %v10038_v62 = vpop.f32.mrb[159].mxu1 }
 0x877   :  { %v3164_v56 = vsel %vm1413_vm5, %v3133_v41, 0 }
 0x878   :  { %10098 = vmatpush3.bf16.xpose.msra.mxu1 %v3164_v56 }
 0x879   :  { %10099 = vmatprep.subr.bf16.mxu1 %v16316_v48 }
 0x87a   :  { %v2965_v34 = vpop.f32.mrb[160].mxu1 }
 0x87b   :  { %v10041_v63 = vpop.f32.mrb[161].mxu1 }
 0x87c   :  { %v2968_v40 = vpop.f32.mrb[162].mxu1 }
 0x87d   :  { %v3134_v27 = vpack.c.bf16 %v2968_v40, %v2965_v34  ;;  %v10042_v25 = vpop.f32.mrb[163].mxu1 }
 0x87f   :  { %v3167_v10 = vsel %vm1413_vm5, %v3134_v27, 0 }
 0x880   :  { %10100 = vmatpush3.bf16.xpose.msra.mxu1 %v3167_v10 }
 0x881   :  { %10101 = vmatprep.subr.bf16.mxu1 %v16316_v48 }
 0x882   :  { %v2973_v18 = vpop.f32.mrb[164].mxu1 }
 0x883   :  { %v10045_v43 = vpop.f32.mrb[165].mxu1 }
 0x884   :  { %v2976_v24 = vpop.f32.mrb[166].mxu1 }
 0x885   :  { %v3135_v32 = vpack.c.bf16 %v2976_v24, %v2973_v18  ;;  %v10046_v54 = vpop.f32.mrb[167].mxu1 }
 0x887   :  { %v3170_v7 = vsel %vm1413_vm5, %v3135_v32, 0 }
 0x888   :  { %10102 = vmatpush3.bf16.xpose.msra.mxu1 %v3170_v7 }
 0x889   :  { %10103 = vmatprep.subr.bf16.mxu1 %v16316_v48 }
 0x88a   :  { %v2981_v41 = vpop.f32.mrb[168].mxu1 }
 0x88b   :  { %v10049_v62 = vpop.f32.mrb[169].mxu1 }
 0x88c   :  { %v2984_v56 = vpop.f32.mrb[170].mxu1 }
 0x88d   :  { %v3136_v34 = vpack.c.bf16 %v2984_v56, %v2981_v41  ;;  %v10050_v63 = vpop.f32.mrb[171].mxu1 }
 0x88e   :  { %v16341_v63 = vpack.c.bf16 %v12925_v28, %v12923_v4  ;;  %v16345_v4 = vpack.c.bf16 %v12949_v60, %v12947_v14  ;;  %v16346_v28 = vpack.c.bf16 %v12955_v55, %v12953_v0 }
 0x88f   :  { %v3173_v40 = vsel %vm1413_vm5, %v3136_v34, 0  ;;  %v16340_v34 = vpack.c.bf16 %v12919_v50, %v12917_v20  ;;  %v16343_v20 = vpack.c.bf16 %v12937_v2, %v12935_v46  ;;  %v16344_v50 = vpack.c.bf16 %v12943_v57, %v12941_v5 }
 0x890   :  { %10104 = vmatpush3.bf16.xpose.msra.mxu1 %v3173_v40  ;;  %v16342_v40 = vpack.c.bf16 %v12931_v9, %v12929_v3 }
 0x891   :  { %10105 = vmatprep.subr.bf16.mxu1 %v16316_v48 }
 0x892   :  { %v2989_v27 = vpop.f32.mrb[172].mxu1 }
 0x893   :  { %v10053_v25 = vpop.f32.mrb[173].mxu1 }
 0x894   :  { %v2992_v10 = vpop.f32.mrb[174].mxu1 }
 0x895   :  { %v3137_v18 = vpack.c.bf16 %v2992_v10, %v2989_v27  ;;  %v10054_v43 = vpop.f32.mrb[175].mxu1 }
 0x897   :  { %v3176_v24 = vsel %vm1413_vm5, %v3137_v18, 0 }
 0x898   :  { %10106 = vmatpush3.bf16.xpose.msra.mxu1 %v3176_v24 }
 0x899   :  { %10107 = vmatprep.subr.bf16.mxu1 %v16316_v48 }
 0x89a   :  { %v2997_v32 = vpop.f32.mrb[176].mxu1 }
 0x89b   :  { %v10057_v54 = vpop.f32.mrb[177].mxu1 }
 0x89c   :  { %v3000_v7 = vpop.f32.mrb[178].mxu1 }
 0x89d   :  { %v3138_v41 = vpack.c.bf16 %v3000_v7, %v2997_v32  ;;  %v10058_v62 = vpop.f32.mrb[179].mxu1 }
 0x89f   :  { %v3179_v56 = vsel %vm1413_vm5, %v3138_v41, 0 }
 0x8a0   :  { %10108 = vmatpush3.bf16.xpose.msra.mxu1 %v3179_v56 }
 0x8a1   :  { %10179 = vmatprep.subr.bf16.mxu1 %v16316_v48 }
 0x8a7   :  { %10110 = vmatmul.mubr.msk.bf16.vlgmr.msra.gmra.mrb[180].mxu1 %vm1413_vm5, %v16340_v34 }
 0x8a8   :  { %10113 = vmatprep.mubr.msk.bf16.mxu1 %vm11613_vm4, %v16316_v48 }
 0x8af   :  { %10114 = vmatmul.mubr.msk.bf16.gmra.mrb[184].mxu1 %vm1413_vm5, %v16341_v63 }
 0x8b0   :  { %10117 = vmatprep.mubr.msk.bf16.mxu1 %vm11613_vm4, %v16316_v48 }
 0x8b7   :  { %10118 = vmatmul.mubr.msk.bf16.gmra.mrb[188].mxu1 %vm1413_vm5, %v16342_v40 }
 0x8b8   :  { %10121 = vmatprep.mubr.msk.bf16.mxu1 %vm11613_vm4, %v16316_v48 }
 0x8bf   :  { %10122 = vmatmul.mubr.msk.bf16.gmra.mrb[192].mxu1 %vm1413_vm5, %v16343_v20 }
 0x8c0   :  { %10125 = vmatprep.mubr.msk.bf16.mxu1 %vm11613_vm4, %v16316_v48 }
 0x8c7   :  { %10126 = vmatmul.mubr.msk.bf16.gmra.mrb[196].mxu1 %vm1413_vm5, %v16344_v50 }
 0x8c8   :  { %10129 = vmatprep.mubr.msk.bf16.mxu1 %vm11613_vm4, %v16316_v48 }
 0x8cf   :  { %10130 = vmatmul.mubr.msk.bf16.gmra.mrb[200].mxu1 %vm1413_vm5, %v16345_v4 }
 0x8d0   :  { %10133 = vmatprep.mubr.msk.bf16.mxu1 %vm11613_vm4, %v16316_v48 }
 0x8d7   :  { %10134 = vmatmul.mubr.msk.bf16.gmra.mrb[204].mxu1 %vm1413_vm5, %v16346_v28 }
 0x8d8   :  { %10183 = vmatprep.mubr.msk.bf16.mxu1 %vm11613_vm4, %v16316_v48 }
 0x97a   :  { %v3215_v3 = vpop.f32.mrb[180].mxu1 }
 0x97b   :  { %v10111_v9 = vpop.f32.mrb[181].mxu1  ;;  %v13214_v46 = vadd.f32 %v3215_v3, %v12780_v52 }
 0x97c   :  { %v3218_v2 = vpop.f32.mrb[182].mxu1 }
 0x97d   :  { %v10112_v5 = vpop.f32.mrb[183].mxu1  ;;  %v3270_v57 = vsel %vm2472_vm7, %v13214_v46, -inf  ;;  %v13219_v14 = vadd.f32 %v3218_v2, %v12785_v51 }
 0x97e   :  { %3271 = vmax.xlane.f32.xlu0 %v3270_v57 }
 0x97f   :  { %v3273_v60 = vsel %vm2472_vm7, %v13219_v14, -inf }
 0x980   :  { %3274 = vmax.xlane.f32.xlu1 %v3273_v60 }
 0x982   :  { %v3223_v0 = vpop.f32.mrb[184].mxu1 }
 0x983   :  { %v10115_v55 = vpop.f32.mrb[185].mxu1  ;;  %v13224_v27 = vadd.f32 %v3223_v0, %v12800_v8 }
 0x984   :  { %v3226_v52 = vpop.f32.mrb[186].mxu1 }
 0x985   :  { %v10116_v25 = vpop.f32.mrb[187].mxu1  ;;  %v3276_v10 = vsel %vm2472_vm7, %v13224_v27, -inf  ;;  %v13229_v18 = vadd.f32 %v3226_v52, %v12805_v15 }
 0x986   :  { %3277 = vmax.xlane.f32.xlu0 %v3276_v10 }
 0x987   :  { %v3279_v51 = vsel %vm2472_vm7, %v13229_v18, -inf }
 0x988   :  { %3280 = vmax.xlane.f32.xlu1 %v3279_v51 }
 0x98a   :  { %v3231_v43 = vpop.f32.mrb[188].mxu1 }
 0x98b   :  { %v10119_v24 = vpop.f32.mrb[189].mxu1  ;;  %v13234_v32 = vadd.f32 %v3231_v43, %v12820_v59 }
 0x98c   :  { %v3234_v8 = vpop.f32.mrb[190].mxu1 }
 0x98d   :  { %v10120_v54 = vpop.f32.mrb[191].mxu1  ;;  %v3282_v7 = vsel %vm2472_vm7, %v13234_v32, -inf  ;;  %v13239_v41 = vadd.f32 %v3234_v8, %v12825_v47  ;;  %v16347_v8 = vld [vmem:[#allocation8_spill] sm:$0xff] }
 0x98e   :  { %3283 = vmax.xlane.f32.xlu0 %v3282_v7 }
 0x98f   :  { %v3285_v15 = vsel %vm2472_vm7, %v13239_v41, -inf }
 0x990   :  { %3286 = vmax.xlane.f32.xlu1 %v3285_v15 }
 0x992   :  { %v3239_v62 = vpop.f32.mrb[192].mxu1 }
 0x993   :  { %v10123_v56 = vpop.f32.mrb[193].mxu1  ;;  %v13244_v34 = vadd.f32 %v3239_v62, %v12840_v44 }
 0x994   :  { %v3242_v59 = vpop.f32.mrb[194].mxu1 }
 0x995   :  { %v10124_v63 = vpop.f32.mrb[195].mxu1  ;;  %v3288_v40 = vsel %vm2472_vm7, %v13244_v34, -inf  ;;  %v13249_v20 = vadd.f32 %v3242_v59, %v12845_v35 }
 0x996   :  { %3289 = vmax.xlane.f32.xlu0 %v3288_v40 }
 0x997   :  { %v3291_v47 = vsel %vm2472_vm7, %v13249_v20, -inf }
 0x998   :  { %3292 = vmax.xlane.f32.xlu1 %v3291_v47 }
 0x99a   :  { %v3247_v50 = vpop.f32.mrb[196].mxu1 }
 0x99b   :  { %v10127_v4 = vpop.f32.mrb[197].mxu1  ;;  %v13254_v28 = vadd.f32 %v3247_v50, %v12860_v12 }
 0x99c   :  { %v3250_v44 = vpop.f32.mrb[198].mxu1 }
 0x99d   :  { %v10128_v3 = vpop.f32.mrb[199].mxu1  ;;  %v3294_v9 = vsel %vm2472_vm7, %v13254_v28, -inf  ;;  %v13259_v2 = vadd.f32 %v3250_v44, %v12865_v1 }
 0x99e   :  { %3295 = vmax.xlane.f32.xlu0 %v3294_v9 }
 0x99f   :  { %v3297_v35 = vsel %vm2472_vm7, %v13259_v2, -inf }
 0x9a0   :  { %3298 = vmax.xlane.f32.xlu1 %v3297_v35 }
 0x9a2   :  { %v3255_v5 = vpop.f32.mrb[200].mxu1 }
 0x9a3   :  { %v10131_v57 = vpop.f32.mrb[201].mxu1  ;;  %v13264_v60 = vadd.f32 %v3255_v5, %v12880_v13 }
 0x9a4   :  { %v3258_v12 = vpop.f32.mrb[202].mxu1 }
 0x9a5   :  { %v10132_v0 = vpop.f32.mrb[203].mxu1  ;;  %v3300_v55 = vsel %vm2472_vm7, %v13264_v60, -inf  ;;  %v13269_v52 = vadd.f32 %v3258_v12, %v12885_v33 }
 0x9a6   :  { %3301 = vmax.xlane.f32.xlu0 %v3300_v55 }
 0x9a7   :  { %v3303_v1 = vsel %vm2472_vm7, %v13269_v52, -inf }
 0x9a8   :  { %3304 = vmax.xlane.f32.xlu1 %v3303_v1 }
 0x9aa   :  { %v3263_v25 = vpop.f32.mrb[204].mxu1 }
 0x9ab   :  { %v10135_v10 = vpop.f32.mrb[205].mxu1  ;;  %v13274_v51 = vadd.f32 %v3263_v25, %v12900_v39 }
 0x9ac   :  { %v3266_v13 = vpop.f32.mrb[206].mxu1 }
 0x9ad   :  { %v10136_v43 = vpop.f32.mrb[207].mxu1  ;;  %v3306_v24 = vsel %vm2472_vm7, %v13274_v51, -inf  ;;  %v13279_v54 = vadd.f32 %v3266_v13, %v16347_v8 }
 0x9ae   :  { %3307 = vmax.xlane.f32.xlu0 %v3306_v24 }
 0x9af   :  { %v3309_v33 = vsel %vm2472_vm7, %v13279_v54, -inf }
 0x9b0   :  { %3310 = vmax.xlane.f32.xlu1 %v3309_v33 }
 0xa0b   :  { %v3272_v7 = vpop.xlane.xlu0 %3271 }
 0xa0c   :  { %v3312_v15 = vsub.f32 %v13214_v46, %v3272_v7 }
 0xa0d   :  { %v3275_v62 = vpop.xlane.xlu1 %3274 }
 0xa0e   :  { %v3326_v56 = vmul.f32 1.442695, %v3312_v15  ;;  %v3313_v39 = vsub.f32 %v13219_v14, %v3275_v62 }
 0xa10   :  { %11196 = vpow2.f32 %v3326_v56  ;;  %v3328_v59 = vmul.f32 1.442695, %v3313_v39 }
 0xa12   :  { %11198 = vpow2.f32 %v3328_v59 }
 0xa13   :  { %v3278_v63 = vpop.xlane.xlu0 %3277 }
 0xa14   :  { %v3314_v40 = vsub.f32 %v13224_v27, %v3278_v63 }
 0xa15   :  { %v3281_v47 = vpop.xlane.xlu1 %3280 }
 0xa16   :  { %v3330_v50 = vmul.f32 1.442695, %v3314_v40  ;;  %v3315_v4 = vsub.f32 %v13229_v18, %v3281_v47 }
 0xa18   :  { %11200 = vpow2.f32 %v3330_v50  ;;  %v3332_v44 = vmul.f32 1.442695, %v3315_v4 }
 0xa1a   :  { %v13287_v3 = vpop.eup %11196  ;;  %11202 = vpow2.f32 %v3332_v44 }
 0xa1b   :  { %v3284_v46 = vpop.xlane.xlu0 %3283  ;;  %v3354_v9 = vsel %vm2472_vm7, %v13287_v3, 0.0 }
 0xa1c   :  { %v13291_v14 = vpop.eup %11198  ;;  %v3316_v35 = vsub.f32 %v13234_v32, %v3284_v46  ;;  %3355 = vadd.xlane.f32.xlu0 %v3354_v9 }
 0xa1d   :  { %v3287_v5 = vpop.xlane.xlu1 %3286  ;;  %v3357_v27 = vsel %vm2472_vm7, %v13291_v14, 0.0 }
 0xa1e   :  { %v3334_v57 = vmul.f32 1.442695, %v3316_v35  ;;  %v3317_v18 = vsub.f32 %v13239_v41, %v3287_v5  ;;  %3358 = vadd.xlane.f32.xlu1 %v3357_v27 }
 0xa20   :  { %11204 = vpow2.f32 %v3334_v57  ;;  %v3336_v12 = vmul.f32 1.442695, %v3317_v18 }
 0xa22   :  { %v13297_v0 = vpop.eup %11200  ;;  %11206 = vpow2.f32 %v3336_v12 }
 0xa23   :  { %v3290_v55 = vpop.xlane.xlu0 %3289  ;;  %v3360_v1 = vsel %vm2472_vm7, %v13297_v0, 0.0 }
 0xa24   :  { %v13301_v25 = vpop.eup %11202  ;;  %v3318_v32 = vsub.f32 %v13244_v34, %v3290_v55  ;;  %3361 = vadd.xlane.f32.xlu0 %v3360_v1 }
 0xa25   :  { %v3293_v10 = vpop.xlane.xlu1 %3292  ;;  %v3363_v13 = vsel %vm2472_vm7, %v13301_v25, 0.0 }
 0xa26   :  { %v3338_v41 = vmul.f32 1.442695, %v3318_v32  ;;  %v3319_v43 = vsub.f32 %v13249_v20, %v3293_v10  ;;  %3364 = vadd.xlane.f32.xlu1 %v3363_v13 }
 0xa28   :  { %11208 = vpow2.f32 %v3338_v41  ;;  %v3340_v24 = vmul.f32 1.442695, %v3319_v43 }
 0xa2a   :  { %v13307_v8 = vpop.eup %11204  ;;  %11210 = vpow2.f32 %v3340_v24 }
 0xa2b   :  { %v3296_v33 = vpop.xlane.xlu0 %3295  ;;  %v3366_v7 = vsel %vm2472_vm7, %v13307_v8, 0.0 }
 0xa2c   :  { %v13311_v15 = vpop.eup %11206  ;;  %v3320_v34 = vsub.f32 %v13254_v28, %v3296_v33  ;;  %3367 = vadd.xlane.f32.xlu0 %v3366_v7  ;;  %v10994_v33 = vld [vmem:[%s16299_s7 + $0x68] sm:$0xff]   ;;  %v10995_v7 = vld [vmem:[%s16299_s7 + $0x70] sm:$0xff]  }
 0xa2d   :  { %v3299_v62 = vpop.xlane.xlu1 %3298  ;;  %v3369_v56 = vsel %vm2472_vm7, %v13311_v15, 0.0  ;;  %10180 = vmatpush3.bf16.msra.mxu1 %v10994_v33 }
 0xa2e   :  { %v3342_v20 = vmul.f32 1.442695, %v3320_v34  ;;  %v3321_v39 = vsub.f32 %v13259_v2, %v3299_v62  ;;  %3370 = vadd.xlane.f32.xlu1 %v3369_v56  ;;  %10181 = vmatprep.subr.bf16.mxu1 %v16316_v48 }
 0xa30   :  { %11212 = vpow2.f32 %v3342_v20  ;;  %v3344_v59 = vmul.f32 1.442695, %v3321_v39 }
 0xa31   :  { %10182 = vmatpush3.bf16.msra.mxu1 %v10995_v7 }
 0xa32   :  { %v13317_v63 = vpop.eup %11208  ;;  %11214 = vpow2.f32 %v3344_v59 }
 0xa33   :  { %v3302_v40 = vpop.xlane.xlu0 %3301  ;;  %v3372_v47 = vsel %vm2472_vm7, %v13317_v63, 0.0 }
 0xa34   :  { %v13321_v50 = vpop.eup %11210  ;;  %v3322_v28 = vsub.f32 %v13264_v60, %v3302_v40  ;;  %3373 = vadd.xlane.f32.xlu0 %v3372_v47 }
 0xa35   :  { %v3305_v4 = vpop.xlane.xlu1 %3304  ;;  %v3375_v44 = vsel %vm2472_vm7, %v13321_v50, 0.0 }
 0xa36   :  { %v3346_v2 = vmul.f32 1.442695, %v3322_v28  ;;  %v3323_v46 = vsub.f32 %v13269_v52, %v3305_v4  ;;  %3376 = vadd.xlane.f32.xlu1 %v3375_v44  ;;  %v10992_v28 = vld [vmem:[%s16299_s7 + $0x58] sm:$0xff]  }
 0xa38   :  { %11216 = vpow2.f32 %v3346_v2  ;;  %v3348_v9 = vmul.f32 1.442695, %v3323_v46 }
 0xa3a   :  { %v13327_v35 = vpop.eup %11212  ;;  %11218 = vpow2.f32 %v3348_v9 }
 0xa3b   :  { %v3308_v5 = vpop.xlane.xlu0 %3307  ;;  %v3378_v27 = vsel %vm2472_vm7, %v13327_v35, 0.0 }
 0xa3c   :  { %v13331_v57 = vpop.eup %11214  ;;  %v3324_v60 = vsub.f32 %v13274_v51, %v3308_v5  ;;  %3379 = vadd.xlane.f32.xlu0 %v3378_v27 }
 0xa3d   :  { %v3311_v18 = vpop.xlane.xlu1 %3310  ;;  %v3381_v12 = vsel %vm2472_vm7, %v13331_v57, 0.0 }
 0xa3e   :  { %v3350_v52 = vmul.f32 1.442695, %v3324_v60  ;;  %v3325_v55 = vsub.f32 %v13279_v54, %v3311_v18  ;;  %3382 = vadd.xlane.f32.xlu1 %v3381_v12 }
 0xa40   :  { %11220 = vpow2.f32 %v3350_v52  ;;  %v3352_v1 = vmul.f32 1.442695, %v3325_v55 }
 0xa42   :  { %v13337_v32 = vpop.eup %11216  ;;  %11222 = vpow2.f32 %v3352_v1 }
 0xa43   :  { %v3384_v10 = vsel %vm2472_vm7, %v13337_v32, 0.0 }
 0xa44   :  { %v13341_v13 = vpop.eup %11218  ;;  %3385 = vadd.xlane.f32.xlu0 %v3384_v10 }
 0xa45   :  { %v3387_v51 = vsel %vm2472_vm7, %v13341_v13, 0.0 }
 0xa46   :  { %3388 = vadd.xlane.f32.xlu1 %v3387_v51 }
 0xa4a   :  { %v13345_v41 = vpop.eup %11220 }
 0xa4b   :  { %v3390_v54 = vsel %vm2472_vm7, %v13345_v41, 0.0 }
 0xa4c   :  { %v13349_v43 = vpop.eup %11222  ;;  %3391 = vadd.xlane.f32.xlu0 %v3390_v54 }
 0xa4d   :  { %v3393_v24 = vsel %vm2472_vm7, %v13349_v43, 0.0 }
 0xa4e   :  { %3394 = vadd.xlane.f32.xlu1 %v3393_v24 }
 0xaa9   :  { %v3356_v34 = vpop.xlane.xlu0 %3355 }
 0xaaa   :  { %11224 = vrcp.f32 %v3356_v34 }
 0xaab   :  { %v3359_v62 = vpop.xlane.xlu1 %3358 }
 0xaac   :  { %11226 = vrcp.f32 %v3359_v62 }
 0xab1   :  { %v3362_v56 = vpop.xlane.xlu0 %3361 }
 0xab2   :  { %11228 = vrcp.f32 %v3362_v56 }
 0xab3   :  { %v3365_v20 = vpop.xlane.xlu1 %3364 }
 0xab4   :  { %v11225_v39 = vpop.eup %11224  ;;  %11230 = vrcp.f32 %v3365_v20 }
 0xab5   :  { %v3397_v40 = vmul.f32 %v11225_v39, %v13287_v3  ;;  %v10993_v3 = vld [vmem:[%s16299_s7 + $0x60] sm:$0xff]  }
 0xab6   :  { %v11227_v59 = vpop.eup %11226 }
 0xab7   :  { %v3399_v47 = vmul.f32 %v11227_v59, %v13291_v14 }
 0xab9   :  { %v3424_v4 = vpack.c.bf16 %v3399_v47, %v3397_v40  ;;  %v3368_v44 = vpop.xlane.xlu0 %3367 }
 0xaba   :  { %11232 = vrcp.f32 %v3368_v44 }
 0xabb   :  { %v3371_v2 = vpop.xlane.xlu1 %3370  ;;  %10152 = vmatmul.mubr.msk.bf16.vlgmr.msra.gmra.mrb[184].mxu0 %vm2472_vm7, %v3424_v4 }
 0xabc   :  { %v11229_v46 = vpop.eup %11228  ;;  %11234 = vrcp.f32 %v3371_v2  ;;  %10155 = vmatprep.mubr.msk.bf16.mxu0 %vm11613_vm4, %v16316_v48  ;;  %10212 = vmatpush3.bf16.msra.mxu0 %v10992_v28 }
 0xabd   :  { %10213 = vmatprep.subr.bf16.mxu0 %v16316_v48  ;;  %v3401_v9 = vmul.f32 %v11229_v46, %v13297_v0 }
 0xabe   :  { %v11231_v14 = vpop.eup %11230 }
 0xabf   :  { %v3403_v5 = vmul.f32 %v11231_v14, %v13301_v25 }
 0xac0   :  { %10214 = vmatpush3.bf16.msra.mxu0 %v10993_v3 }
 0xac1   :  { %v3374_v27 = vpop.xlane.xlu0 %3373  ;;  %v3425_v60 = vpack.c.bf16 %v3403_v5, %v3401_v9 }
 0xac2   :  { %11236 = vrcp.f32 %v3374_v27 }
 0xac3   :  { %v3377_v18 = vpop.xlane.xlu1 %3376  ;;  %10156 = vmatmul.mubr.msk.bf16.gmra.mrb[188].mxu0 %vm2472_vm7, %v3425_v60 }
 0xac4   :  { %v11233_v12 = vpop.eup %11232  ;;  %11238 = vrcp.f32 %v3377_v18  ;;  %10159 = vmatprep.mubr.msk.bf16.mxu0 %vm11613_vm4, %v16316_v48 }
 0xac5   :  { %v3405_v55 = vmul.f32 %v11233_v12, %v13307_v8 }
 0xac6   :  { %v11235_v52 = vpop.eup %11234 }
 0xac7   :  { %v3407_v1 = vmul.f32 %v11235_v52, %v13311_v15 }
 0xac9   :  { %v3380_v0 = vpop.xlane.xlu0 %3379  ;;  %v3426_v10 = vpack.c.bf16 %v3407_v1, %v3405_v55 }
 0xaca   :  { %11240 = vrcp.f32 %v3380_v0 }
 0xacb   :  { %v3383_v25 = vpop.xlane.xlu1 %3382  ;;  %10160 = vmatmul.mubr.msk.bf16.gmra.mrb[192].mxu0 %vm2472_vm7, %v3426_v10 }
 0xacc   :  { %v11237_v51 = vpop.eup %11236  ;;  %11242 = vrcp.f32 %v3383_v25  ;;  %10163 = vmatprep.mubr.msk.bf16.mxu0 %vm11613_vm4, %v16316_v48 }
 0xacd   :  { %v3409_v24 = vmul.f32 %v11237_v51, %v13317_v63 }
 0xace   :  { %v11239_v54 = vpop.eup %11238 }
 0xacf   :  { %v3411_v33 = vmul.f32 %v11239_v54, %v13321_v50 }
 0xad1   :  { %v3386_v7 = vpop.xlane.xlu0 %3385  ;;  %v3427_v8 = vpack.c.bf16 %v3411_v33, %v3409_v24 }
 0xad2   :  { %11244 = vrcp.f32 %v3386_v7 }
 0xad3   :  { %v3389_v15 = vpop.xlane.xlu1 %3388  ;;  %10164 = vmatmul.mubr.msk.bf16.gmra.mrb[196].mxu0 %vm2472_vm7, %v3427_v8 }
 0xad4   :  { %v11241_v34 = vpop.eup %11240  ;;  %11246 = vrcp.f32 %v3389_v15  ;;  %10167 = vmatprep.mubr.msk.bf16.mxu0 %vm11613_vm4, %v16316_v48 }
 0xad5   :  { %v3413_v56 = vmul.f32 %v11241_v34, %v13327_v35 }
 0xad6   :  { %v11243_v62 = vpop.eup %11242 }
 0xad7   :  { %v3415_v20 = vmul.f32 %v11243_v62, %v13331_v57 }
 0xad9   :  { %v3392_v39 = vpop.xlane.xlu0 %3391  ;;  %v3428_v63 = vpack.c.bf16 %v3415_v20, %v3413_v56 }
 0xada   :  { %11248 = vrcp.f32 %v3392_v39 }
 0xadb   :  { %v3395_v50 = vpop.xlane.xlu1 %3394  ;;  %10168 = vmatmul.mubr.msk.bf16.gmra.mrb[200].mxu0 %vm2472_vm7, %v3428_v63 }
 0xadc   :  { %v11245_v59 = vpop.eup %11244  ;;  %11250 = vrcp.f32 %v3395_v50  ;;  %10171 = vmatprep.mubr.msk.bf16.mxu0 %vm11613_vm4, %v16316_v48 }
 0xadd   :  { %v3417_v47 = vmul.f32 %v11245_v59, %v13337_v32 }
 0xade   :  { %v11247_v40 = vpop.eup %11246 }
 0xadf   :  { %v3419_v28 = vmul.f32 %v11247_v40, %v13341_v13 }
 0xae1   :  { %v3429_v4 = vpack.c.bf16 %v3419_v28, %v3417_v47 }
 0xae3   :  { %10172 = vmatmul.mubr.msk.bf16.gmra.mrb[204].mxu0 %vm2472_vm7, %v3429_v4 }
 0xae4   :  { %v11249_v35 = vpop.eup %11248  ;;  %10175 = vmatprep.mubr.msk.bf16.mxu0 %vm11613_vm4, %v16316_v48 }
 0xae5   :  { %v3421_v44 = vmul.f32 %v11249_v35, %v13345_v41 }
 0xae6   :  { %v11251_v57 = vpop.eup %11250 }
 0xae7   :  { %v3423_v2 = vmul.f32 %v11251_v57, %v13349_v43 }
 0xae9   :  { %v3430_v46 = vpack.c.bf16 %v3423_v2, %v3421_v44 }
 0xaeb   :  { %10176 = vmatmul.mubr.msk.bf16.gmra.mrb[208].mxu0 %vm2472_vm7, %v3430_v46 }
 0xaec   :  { %10215 = vmatprep.mubr.msk.bf16.mxu0 %vm11613_vm4, %v16316_v48 }
 0xaf3   :  { %10216 = vmatmul.mubr.msk.bf16.vlgmr.msra.gmra.mrb[212].mxu0 %vm1413_vm5, %v2755_v38 }
 0xaf4   :  { %10219 = vmatprep.mubr.msk.bf16.mxu0 %vm11613_vm4, %v16316_v48 }
 0xafb   :  { %10220 = vmatmul.mubr.msk.bf16.gmra.mrb[216].mxu0 %vm1413_vm5, %v2756_v21 }
 0xafc   :  { %10223 = vmatprep.mubr.msk.bf16.mxu0 %vm11613_vm4, %v16316_v48 }
 0xb03   :  { %10224 = vmatmul.mubr.msk.bf16.gmra.mrb[220].mxu0 %vm1413_vm5, %v2757_v26 }
 0xb04   :  { %10227 = vmatprep.mubr.msk.bf16.mxu0 %vm11613_vm4, %v16316_v48 }
 0xb0b   :  { %10228 = vmatmul.mubr.msk.bf16.gmra.mrb[224].mxu0 %vm1413_vm5, %v2758_v30 }
 0xb0c   :  { %10231 = vmatprep.mubr.msk.bf16.mxu0 %vm11613_vm4, %v16316_v48 }
 0xb13   :  { %10232 = vmatmul.mubr.msk.bf16.gmra.mrb[228].mxu0 %vm1413_vm5, %v2759_v31 }
 0xb14   :  { %10235 = vmatprep.mubr.msk.bf16.mxu0 %vm11613_vm4, %v16316_v48 }
 0xb1b   :  { %10236 = vmatmul.mubr.msk.bf16.gmra.mrb[232].mxu0 %vm1413_vm5, %v2760_v29 }
 0xb1c   :  { %10239 = vmatprep.mubr.msk.bf16.mxu0 %vm11613_vm4, %v16316_v48 }
 0xb23   :  { %10240 = vmatmul.mubr.msk.bf16.gmra.mrb[236].mxu0 %vm1413_vm5, %v2761_v23 }
 0xb8e   :  { %v3493_v36 = vpop.f32.mrb[184].mxu0 }
 0xb8f   :  { %v10153_v6 = vpop.f32.mrb[185].mxu0 }
 0xb90   :  { %v3496_v38 = vpop.f32.mrb[186].mxu0 }
 0xb91   :  { %v3552_v11 = vpack.c.bf16 %v3496_v38, %v3493_v36  ;;  %v10154_v37 = vpop.f32.mrb[187].mxu0 }
 0xb92   :  { %v13480_v37 = vld [vmem:[%s16303_s11 + $0x4] ss:$0 sm:$0xff] }
 0xb93   :  { %10184 = vmatmul.mubr.msk.bf16.vlgmr.msra.gmra.mrb[208].mxu1 %vm1413_vm5, %v3552_v11 }
 0xb94   :  { %10187 = vmatprep.mubr.msk.bf16.mxu1 %vm11613_vm4, %v16316_v48 }
 0xb96   :  { %v3501_v21 = vpop.f32.mrb[188].mxu0 }
 0xb97   :  { %v10157_v61 = vpop.f32.mrb[189].mxu0 }
 0xb98   :  { %v3504_v49 = vpop.f32.mrb[190].mxu0 }
 0xb99   :  { %v3553_v26 = vpack.c.bf16 %v3504_v49, %v3501_v21  ;;  %v10158_v19 = vpop.f32.mrb[191].mxu0  ;;  %v11560_v21 = vld [vmem:[#allocation2] sm:$0xff] }
 0xb9a   :  { %v11561_v19 = vld [vmem:[#allocation2 + $0x8] sm:$0xff] }
 0xb9b   :  { %10188 = vmatmul.mubr.msk.bf16.gmra.mrb[212].mxu1 %vm1413_vm5, %v3553_v26 }
 0xb9c   :  { %10191 = vmatprep.mubr.msk.bf16.mxu1 %vm11613_vm4, %v16316_v48 }
 0xb9e   :  { %v3509_v17 = vpop.f32.mrb[192].mxu0 }
 0xb9f   :  { %v10161_v30 = vpop.f32.mrb[193].mxu0 }
 0xba0   :  { %v3512_v16 = vpop.f32.mrb[194].mxu0 }
 0xba1   :  { %v3554_v45 = vpack.c.bf16 %v3512_v16, %v3509_v17  ;;  %v10162_v31 = vpop.f32.mrb[195].mxu0 }
 0xba3   :  { %10192 = vmatmul.mubr.msk.bf16.gmra.mrb[216].mxu1 %vm1413_vm5, %v3554_v45 }
 0xba4   :  { %10195 = vmatprep.mubr.msk.bf16.mxu1 %vm11613_vm4, %v16316_v48 }
 0xba6   :  { %v3517_v42 = vpop.f32.mrb[196].mxu0 }
 0xba7   :  { %v10165_v58 = vpop.f32.mrb[197].mxu0 }
 0xba8   :  { %v3520_v29 = vpop.f32.mrb[198].mxu0 }
 0xba9   :  { %v3555_v53 = vpack.c.bf16 %v3520_v29, %v3517_v42  ;;  %v10166_v22 = vpop.f32.mrb[199].mxu0 }
 0xbaa   :  { %v11562_v22 = vld [vmem:[#allocation2 + $0x10] sm:$0xff] }
 0xbab   :  { %10196 = vmatmul.mubr.msk.bf16.gmra.mrb[220].mxu1 %vm1413_vm5, %v3555_v53 }
 0xbac   :  { %10199 = vmatprep.mubr.msk.bf16.mxu1 %vm11613_vm4, %v16316_v48 }
 0xbae   :  { %v3525_v23 = vpop.f32.mrb[200].mxu0 }
 0xbaf   :  { %v10169_v32 = vpop.f32.mrb[201].mxu0 }
 0xbb0   :  { %v3528_v13 = vpop.f32.mrb[202].mxu0 }
 0xbb1   :  { %v3556_v41 = vpack.c.bf16 %v3528_v13, %v3525_v23  ;;  %v10170_v43 = vpop.f32.mrb[203].mxu0 }
 0xbb3   :  { %10200 = vmatmul.mubr.msk.bf16.gmra.mrb[224].mxu1 %vm1413_vm5, %v3556_v41  ;;  %v11563_v41 = vld [vmem:[#allocation2 + $0x18] sm:$0xff] }
 0xbb4   :  { %10203 = vmatprep.mubr.msk.bf16.mxu1 %vm11613_vm4, %v16316_v48 }
 0xbb6   :  { %v3533_v3 = vpop.f32.mrb[204].mxu0 }
 0xbb7   :  { %v10173_v14 = vpop.f32.mrb[205].mxu0 }
 0xbb8   :  { %v3536_v9 = vpop.f32.mrb[206].mxu0 }
 0xbb9   :  { %v3557_v5 = vpack.c.bf16 %v3536_v9, %v3533_v3  ;;  %v10174_v27 = vpop.f32.mrb[207].mxu0 }
 0xbbb   :  { %10204 = vmatmul.mubr.msk.bf16.gmra.mrb[228].mxu1 %vm1413_vm5, %v3557_v5 }
 0xbbc   :  { %10207 = vmatprep.mubr.msk.bf16.mxu1 %vm11613_vm4, %v16316_v48 }
 0xbbe   :  { %v3541_v60 = vpop.f32.mrb[208].mxu0 }
 0xbbf   :  { %v10177_v18 = vpop.f32.mrb[209].mxu0 }
 0xbc0   :  { %v3544_v12 = vpop.f32.mrb[210].mxu0 }
 0xbc1   :  { %v3558_v52 = vpack.c.bf16 %v3544_v12, %v3541_v60  ;;  %v10178_v55 = vpop.f32.mrb[211].mxu0 }
 0xbc3   :  { %10208 = vmatmul.mubr.msk.bf16.gmra.mrb[232].mxu1 %vm1413_vm5, %v3558_v52 }
 0xbc6   :  { %v3748_v1 = vpop.f32.mrb[212].mxu0 }
 0xbc7   :  { %v10217_v0 = vpop.f32.mrb[213].mxu0 }
 0xbc8   :  { %v3751_v10 = vpop.f32.mrb[214].mxu0 }
 0xbc9   :  { %v10218_v25 = vpop.f32.mrb[215].mxu0 }
 0xbca   :  { %v11565_v25 = vld [vmem:[#allocation2 + $0x28] sm:$0xff] }
 0xbce   :  { %v3756_v51 = vpop.f32.mrb[216].mxu0 }
 0xbcf   :  { %v10221_v54 = vpop.f32.mrb[217].mxu0 }
 0xbd0   :  { %v3759_v24 = vpop.f32.mrb[218].mxu0 }
 0xbd1   :  { %v10222_v33 = vpop.f32.mrb[219].mxu0 }
 0xbd6   :  { %v3764_v7 = vpop.f32.mrb[220].mxu0 }
 0xbd7   :  { %v10225_v8 = vpop.f32.mrb[221].mxu0 }
 0xbd8   :  { %v3767_v15 = vpop.f32.mrb[222].mxu0 }
 0xbd9   :  { %v10226_v34 = vpop.f32.mrb[223].mxu0 }
 0xbde   :  { %v13461_v62 = vpop.f32.mrb[224].mxu0 }
 0xbdf   :  { %v10229_v56 = vpop.f32.mrb[225].mxu0 }
 0xbe0   :  { %v13463_v20 = vpop.f32.mrb[226].mxu0 }
 0xbe1   :  { %v10230_v39 = vpop.f32.mrb[227].mxu0 }
 0xbe6   :  { %v13465_v63 = vpop.f32.mrb[228].mxu0 }
 0xbe7   :  { %v10233_v50 = vpop.f32.mrb[229].mxu0 }
 0xbe8   :  { %v13467_v59 = vpop.f32.mrb[230].mxu0  ;;  %v11566_v50 = vld [vmem:[#allocation2 + $0x30] sm:$0xff] }
 0xbe9   :  { %v10234_v40 = vpop.f32.mrb[231].mxu0 }
 0xbee   :  { %v13469_v47 = vpop.f32.mrb[232].mxu0 }
 0xbef   :  { %v10237_v28 = vpop.f32.mrb[233].mxu0 }
 0xbf0   :  { %v13471_v4 = vpop.f32.mrb[234].mxu0 }
 0xbf1   :  { %v10238_v35 = vpop.f32.mrb[235].mxu0 }
 0xbf2   :  { %v11567_v35 = vld [vmem:[#allocation2 + $0x38] sm:$0xff] }
 0xbf6   :  { %v13473_v57 = vpop.f32.mrb[236].mxu0 }
 0xbf7   :  { %v10241_v44 = vpop.f32.mrb[237].mxu0 }
 0xbf8   :  { %v13475_v2 = vpop.f32.mrb[238].mxu0 }
 0xbf9   :  { %v10242_v46 = vpop.f32.mrb[239].mxu0 }
 0xc66   :  { %v3626_v36 = vpop.f32.mrb[208].mxu1 }
 0xc67   :  { %v3749_v6 = vadd.f32 %v3748_v1, %v3626_v36  ;;  %v10185_v38 = vpop.f32.mrb[209].mxu1  ;;  %v11564_v1 = vld [vmem:[#allocation2 + $0x20] sm:$0xff] }
 0xc68   :  { %v3629_v11 = vpop.f32.mrb[210].mxu1 }
 0xc69   :  { %v3803_v61 = vadd.f32 %v11560_v21, %v3749_v6  ;;  %v3752_v49 = vadd.f32 %v3751_v10, %v3629_v11  ;;  %v10186_v26 = vpop.f32.mrb[211].mxu1  ;;  %v11568_v21 = vld [vmem:[#allocation2 + $0x40] sm:$0xff] }
 0xc6b   :  { %v3804_v17 = vadd.f32 %v11561_v19, %v3752_v49  ;;  %v13483_v30 = vadd.f32 %v13480_v37, %v3803_v61 }
 0xc6d   :  { %v3835_v16 = vsel %vm1357_vm6, %v13483_v30, 0.0  ;;  %v13488_v45 = vadd.f32 %v13480_v37, %v3804_v17  ;;  %v11569_v17 = vld [vmem:[#allocation2 + $0x48] sm:$0xff] }
 0xc6e   :  { %v3634_v31 = vpop.f32.mrb[212].mxu1  ;;  %3836 = vadd.xlane.f32.xlu0 %v3835_v16 }
 0xc6f   :  { %v3757_v42 = vadd.f32 %v3756_v51, %v3634_v31  ;;  %v10189_v58 = vpop.f32.mrb[213].mxu1  ;;  %v3838_v29 = vsel %vm1357_vm6, %v13488_v45, 0.0 }
 0xc70   :  { %v3637_v53 = vpop.f32.mrb[214].mxu1  ;;  %3839 = vadd.xlane.f32.xlu1 %v3838_v29 }
 0xc71   :  { %v3805_v23 = vadd.f32 %v11562_v22, %v3757_v42  ;;  %v3760_v32 = vadd.f32 %v3759_v24, %v3637_v53  ;;  %v10190_v13 = vpop.f32.mrb[215].mxu1  ;;  %v11570_v22 = vld [vmem:[#allocation2 + $0x50] sm:$0xff] }
 0xc73   :  { %v3806_v43 = vadd.f32 %v11563_v41, %v3760_v32  ;;  %v13493_v3 = vadd.f32 %v13480_v37, %v3805_v23 }
 0xc75   :  { %v3841_v14 = vsel %vm1357_vm6, %v13493_v3, 0.0  ;;  %v13498_v9 = vadd.f32 %v13480_v37, %v3806_v43  ;;  %v11571_v43 = vld [vmem:[#allocation2 + $0x58] sm:$0xff] }
 0xc76   :  { %v3642_v5 = vpop.f32.mrb[216].mxu1  ;;  %3842 = vadd.xlane.f32.xlu0 %v3841_v14 }
 0xc77   :  { %v3765_v27 = vadd.f32 %v3764_v7, %v3642_v5  ;;  %v10193_v60 = vpop.f32.mrb[217].mxu1  ;;  %v3844_v18 = vsel %vm1357_vm6, %v13498_v9, 0.0 }
 0xc78   :  { %v3645_v12 = vpop.f32.mrb[218].mxu1  ;;  %3845 = vadd.xlane.f32.xlu1 %v3844_v18 }
 0xc79   :  { %v3768_v52 = vadd.f32 %v3767_v15, %v3645_v12  ;;  %v10194_v55 = vpop.f32.mrb[219].mxu1  ;;  %v3807_v0 = vadd.f32 %v11564_v1, %v3765_v27 }
 0xc7b   :  { %v13503_v10 = vadd.f32 %v13480_v37, %v3807_v0  ;;  %v3808_v51 = vadd.f32 %v11565_v25, %v3768_v52  ;;  %v11572_v52 = vld [vmem:[#allocation2 + $0x60] sm:$0xff] }
 0xc7d   :  { %v3847_v54 = vsel %vm1357_vm6, %v13503_v10, 0.0  ;;  %v13508_v24 = vadd.f32 %v13480_v37, %v3808_v51  ;;  %v11573_v51 = vld [vmem:[#allocation2 + $0x68] sm:$0xff] }
 0xc7e   :  { %v3650_v33 = vpop.f32.mrb[220].mxu1  ;;  %3848 = vadd.xlane.f32.xlu0 %v3847_v54 }
 0xc7f   :  { %v3773_v7 = vadd.f32 %v13461_v62, %v3650_v33  ;;  %v10197_v8 = vpop.f32.mrb[221].mxu1  ;;  %v3850_v15 = vsel %vm1357_vm6, %v13508_v24, 0.0 }
 0xc80   :  { %v3653_v34 = vpop.f32.mrb[222].mxu1  ;;  %3851 = vadd.xlane.f32.xlu1 %v3850_v15  ;;  %v10998_v8 = vld [vmem:[%s16301_s9 + $0x4] ss:$8 sps:$4 sm:$0xff]   ;;  %v10999_v15 = vld [vmem:[%s16301_s9 + $0x10] ss:$8 sps:$4 sm:$0xff]  }
 0xc81   :  { %v3776_v56 = vadd.f32 %v13463_v20, %v3653_v34  ;;  %v10198_v39 = vpop.f32.mrb[223].mxu1  ;;  %v3809_v40 = vadd.f32 %v11566_v50, %v3773_v7  ;;  %4140 = vmatprep.subr.bf16.mxu1 %v10998_v8  ;;  %v11004_v34 = vld [vmem:[%s16301_s9 + $0x24] ss:$8 sps:$4 sm:$0xff]  }
 0xc83   :  { %v13515_v28 = vadd.f32 %v13480_v37, %v3809_v40  ;;  %v3810_v44 = vadd.f32 %v11567_v35, %v3776_v56  ;;  %v11002_v56 = vld [vmem:[%s16301_s9 + $0x20] ss:$8 sps:$4 sm:$0xff]  }
 0xc85   :  { %v3853_v46 = vsel %vm1357_vm6, %v13515_v28, 0.0  ;;  %v13520_v62 = vadd.f32 %v13480_v37, %v3810_v44 }
 0xc86   :  { %v3658_v36 = vpop.f32.mrb[224].mxu1  ;;  %3854 = vadd.xlane.f32.xlu0 %v3853_v46 }
 0xc87   :  { %v3781_v6 = vadd.f32 %v13465_v63, %v3658_v36  ;;  %v10201_v38 = vpop.f32.mrb[225].mxu1  ;;  %v3856_v20 = vsel %vm1357_vm6, %v13520_v62, 0.0 }
 0xc88   :  { %v3661_v11 = vpop.f32.mrb[226].mxu1  ;;  %3857 = vadd.xlane.f32.xlu1 %v3856_v20 }
 0xc89   :  { %v3811_v61 = vadd.f32 %v11568_v21, %v3781_v6  ;;  %v3784_v49 = vadd.f32 %v13467_v59, %v3661_v11  ;;  %v10202_v26 = vpop.f32.mrb[227].mxu1 }
 0xc8b   :  { %v13527_v19 = vadd.f32 %v13480_v37, %v3811_v61  ;;  %v3812_v16 = vadd.f32 %v11569_v17, %v3784_v49 }
 0xc8d   :  { %v13530_v31 = vadd.f32 %v13480_v37, %v3812_v16  ;;  %v3859_v63 = vsel %vm1357_vm6, %v13527_v19, 0.0 }
 0xc8e   :  { %v3666_v42 = vpop.f32.mrb[228].mxu1  ;;  %3860 = vadd.xlane.f32.xlu0 %v3859_v63 }
 0xc8f   :  { %v3789_v58 = vadd.f32 %v13469_v47, %v3666_v42  ;;  %v10205_v29 = vpop.f32.mrb[229].mxu1  ;;  %v3862_v59 = vsel %vm1357_vm6, %v13530_v31, 0.0 }
 0xc90   :  { %v3669_v53 = vpop.f32.mrb[230].mxu1  ;;  %3863 = vadd.xlane.f32.xlu1 %v3862_v59 }
 0xc91   :  { %v3813_v23 = vadd.f32 %v11570_v22, %v3789_v58  ;;  %v3792_v32 = vadd.f32 %v13471_v4, %v3669_v53  ;;  %v10206_v13 = vpop.f32.mrb[231].mxu1 }
 0xc93   :  { %v13539_v41 = vadd.f32 %v13480_v37, %v3813_v23  ;;  %v3814_v14 = vadd.f32 %v11571_v43, %v3792_v32 }
 0xc95   :  { %v13542_v5 = vadd.f32 %v13480_v37, %v3814_v14  ;;  %v3865_v47 = vsel %vm1357_vm6, %v13539_v41, 0.0 }
 0xc96   :  { %v3674_v27 = vpop.f32.mrb[232].mxu1  ;;  %3866 = vadd.xlane.f32.xlu0 %v3865_v47 }
 0xc97   :  { %v3797_v60 = vadd.f32 %v13473_v57, %v3674_v27  ;;  %v10209_v18 = vpop.f32.mrb[233].mxu1  ;;  %v3868_v4 = vsel %vm1357_vm6, %v13542_v5, 0.0 }
 0xc98   :  { %v3677_v12 = vpop.f32.mrb[234].mxu1  ;;  %3869 = vadd.xlane.f32.xlu1 %v3868_v4 }
 0xc99   :  { %v3815_v55 = vadd.f32 %v11572_v52, %v3797_v60  ;;  %v3800_v1 = vadd.f32 %v13475_v2, %v3677_v12  ;;  %v10210_v0 = vpop.f32.mrb[235].mxu1  ;;  %v10996_v2 = vld [vmem:[%s16301_s9] ss:$8 sps:$4 sm:$0xff]  }
 0xc9a   :  { %4141 = vmatpush1.bf16.msra.mxu1 %v10996_v2 }
 0xc9b   :  { %v13551_v25 = vadd.f32 %v13480_v37, %v3815_v55  ;;  %v3816_v54 = vadd.f32 %v11573_v51, %v3800_v1 }
 0xc9d   :  { %16348 = vst [vmem:[#allocation8_spill] sm:$0xff] %v13551_v25  ;;  %v13554_v33 = vadd.f32 %v13480_v37, %v3816_v54  ;;  %v3871_v57 = vsel %vm1357_vm6, %v13551_v25, 0.0  ;;  %v11001_v37 = vld [vmem:[%s16301_s9 + $0x14] ss:$8 sps:$4 sm:$0xff]  }
 0xc9e   :  { %3872 = vadd.xlane.f32.xlu0 %v3871_v57  ;;  %4142 = vmatprep.subr.bf16.mxu1 %v11001_v37 }
 0xc9f   :  { %16349 = vst [vmem:[#allocation9_spill] sm:$0xff] %v13554_v33  ;;  %v3874_v7 = vsel %vm1357_vm6, %v13554_v33, 0.0  ;;  %4143 = vmatpush1.bf16.msra.mxu1 %v10999_v15 }
 0xca0   :  { %3875 = vadd.xlane.f32.xlu1 %v3874_v7  ;;  %4144 = vmatprep.subr.bf16.mxu1 %v11004_v34 }
 0xca3   :  { %4145 = vmatpush1.bf16.msra.mxu1 %v11002_v56 }
 0xcfb   :  { %v3837_v39 = vpop.xlane.xlu0 %3836 }
 0xcfc   :  { %v3877_v50 = vmul.f32 0.015625, %v3837_v39 }
 0xcfd   :  { %v3840_v40 = vpop.xlane.xlu1 %3839 }
 0xcfe   :  { %v13579_v35 = vsub.f32 %v13483_v30, %v3877_v50  ;;  %v3878_v44 = vmul.f32 0.015625, %v3840_v40 }
 0xd00   :  { %v13582_v46 = vsub.f32 %v13488_v45, %v3878_v44  ;;  %v3905_v36 = vmul.f32 %v13579_v35, %v13579_v35 }
 0xd02   :  { %v3919_v6 = vsel %vm1357_vm6, %v3905_v36, 0.0  ;;  %v3906_v38 = vmul.f32 %v13582_v46, %v13582_v46 }
 0xd03   :  { %v3843_v20 = vpop.xlane.xlu0 %3842  ;;  %3920 = vadd.xlane.f32.xlu0 %v3919_v6 }
 0xd04   :  { %v3879_v11 = vmul.f32 0.015625, %v3843_v20  ;;  %v3922_v21 = vsel %vm1357_vm6, %v3906_v38, 0.0  ;;  %v11005_v38 = vld [vmem:[%s16301_s9 + $0x30] ss:$8 sps:$4 sm:$0xff]   ;;  %v11007_v20 = vld [vmem:[%s16301_s9 + $0x34] ss:$8 sps:$4 sm:$0xff]  }
 0xd05   :  { %v3846_v61 = vpop.xlane.xlu1 %3845  ;;  %3923 = vadd.xlane.f32.xlu1 %v3922_v21  ;;  %4146 = vmatprep.subr.bf16.mxu1 %v11007_v20 }
 0xd06   :  { %v13591_v49 = vsub.f32 %v13493_v3, %v3879_v11  ;;  %v3880_v26 = vmul.f32 0.015625, %v3846_v61  ;;  %4147 = vmatpush1.bf16.msra.mxu1 %v11005_v38 }
 0xd07   :  { %10243 = vmatprep.subr.bf16.mxu1 %v16316_v48 }
 0xd08   :  { %v13594_v17 = vsub.f32 %v13498_v9, %v3880_v26  ;;  %v3907_v16 = vmul.f32 %v13591_v49, %v13591_v49 }
 0xd0a   :  { %v3925_v63 = vsel %vm1357_vm6, %v3907_v16, 0.0  ;;  %v3908_v42 = vmul.f32 %v13594_v17, %v13594_v17 }
 0xd0b   :  { %v3849_v58 = vpop.xlane.xlu0 %3848  ;;  %3926 = vadd.xlane.f32.xlu0 %v3925_v63  ;;  %v16314_v63 = vmov 0  }
 0xd0c   :  { %v3881_v29 = vmul.f32 0.015625, %v3849_v58  ;;  %v3928_v59 = vsel %vm1357_vm6, %v3908_v42, 0.0  ;;  %4172 = vmatprep.mubr.bf16.mxu1 %v16314_v63 }
 0xd0d   :  { %v3852_v53 = vpop.xlane.xlu1 %3851  ;;  %3929 = vadd.xlane.f32.xlu1 %v3928_v59 }
 0xd0e   :  { %v13603_v22 = vsub.f32 %v13503_v10, %v3881_v29  ;;  %v3882_v23 = vmul.f32 0.015625, %v3852_v53 }
 0xd10   :  { %v13606_v32 = vsub.f32 %v13508_v24, %v3882_v23  ;;  %v3909_v13 = vmul.f32 %v13603_v22, %v13603_v22 }
 0xd12   :  { %v3931_v43 = vsel %vm1357_vm6, %v3909_v13, 0.0  ;;  %v3910_v14 = vmul.f32 %v13606_v32, %v13606_v32 }
 0xd13   :  { %v3855_v47 = vpop.xlane.xlu0 %3854  ;;  %3932 = vadd.xlane.f32.xlu0 %v3931_v43 }
 0xd14   :  { %v3883_v27 = vmul.f32 0.015625, %v3855_v47  ;;  %v3934_v60 = vsel %vm1357_vm6, %v3910_v14, 0.0 }
 0xd15   :  { %v3858_v18 = vpop.xlane.xlu1 %3857  ;;  %3935 = vadd.xlane.f32.xlu1 %v3934_v60  ;;  %v11009_v60 = vld [vmem:[%s16299_s7 + $0x98] sm:$0xff]  }
 0xd16   :  { %v13615_v4 = vsub.f32 %v13515_v28, %v3883_v27  ;;  %v3884_v12 = vmul.f32 0.015625, %v3858_v18  ;;  %v11008_v27 = vld [vmem:[%s16299_s7 + $0xd8] sm:$0xff]   ;;  %v11010_v18 = vld [vmem:[%s16299_s7 + $0xe0] sm:$0xff]  }
 0xd17   :  { %9405 = vmatprep.subr.bf16.mxu0 %v11008_v27 }
 0xd18   :  { %v13618_v52 = vsub.f32 %v13520_v62, %v3884_v12  ;;  %v3911_v55 = vmul.f32 %v13615_v4, %v13615_v4  ;;  %9406 = vmatpush3.bf16.msra.mxu0 %v11009_v60  ;;  %v11011_v12 = vld [vmem:[%s16299_s7 + $0xa0] sm:$0xff]  }
 0xd19   :  { %9407 = vmatprep.subr.bf16.mxu0 %v11010_v18 }
 0xd1a   :  { %v3937_v1 = vsel %vm1357_vm6, %v3911_v55, 0.0  ;;  %v3912_v0 = vmul.f32 %v13618_v52, %v13618_v52  ;;  %v11012_v55 = vld [vmem:[%s16299_s7 + $0xe8] sm:$0xff]  }
 0xd1b   :  { %v3861_v51 = vpop.xlane.xlu0 %3860  ;;  %3938 = vadd.xlane.f32.xlu0 %v3937_v1  ;;  %v11013_v1 = vld [vmem:[%s16299_s7 + $0xa8] sm:$0xff]  }
 0xd1c   :  { %v3885_v54 = vmul.f32 0.015625, %v3861_v51  ;;  %v3940_v57 = vsel %vm1357_vm6, %v3912_v0, 0.0  ;;  %9408 = vmatpush3.bf16.msra.mxu0 %v11011_v12 }
 0xd1d   :  { %v3864_v7 = vpop.xlane.xlu1 %3863  ;;  %3941 = vadd.xlane.f32.xlu1 %v3940_v57  ;;  %9409 = vmatprep.subr.bf16.mxu0 %v11012_v55 }
 0xd1e   :  { %v13627_v2 = vsub.f32 %v13527_v19, %v3885_v54  ;;  %v3886_v8 = vmul.f32 0.015625, %v3864_v7 }
 0xd20   :  { %v13630_v37 = vsub.f32 %v13530_v31, %v3886_v8  ;;  %v3913_v15 = vmul.f32 %v13627_v2, %v13627_v2  ;;  %9410 = vmatpush3.bf16.msra.mxu0 %v11013_v1 }
 0xd22   :  { %v3943_v34 = vsel %vm1357_vm6, %v3913_v15, 0.0  ;;  %v3914_v56 = vmul.f32 %v13630_v37, %v13630_v37 }
 0xd23   :  { %v3867_v39 = vpop.xlane.xlu0 %3866  ;;  %3944 = vadd.xlane.f32.xlu0 %v3943_v34 }
 0xd24   :  { %v3887_v50 = vmul.f32 0.015625, %v3867_v39  ;;  %v3946_v40 = vsel %vm1357_vm6, %v3914_v56, 0.0 }
 0xd25   :  { %v3870_v44 = vpop.xlane.xlu1 %3869  ;;  %3947 = vadd.xlane.f32.xlu1 %v3946_v40 }
 0xd26   :  { %v13639_v36 = vsub.f32 %v13539_v41, %v3887_v50  ;;  %v3888_v6 = vmul.f32 0.015625, %v3870_v44 }
 0xd28   :  { %v13648_v11 = vsub.f32 %v13542_v5, %v3888_v6  ;;  %v3915_v21 = vmul.f32 %v13639_v36, %v13639_v36  ;;  %v13691_v6 = vld [vmem:[%s16303_s11 + $0x5] ss:$0 sm:$0xff] }
 0xd2a   :  { %v3949_v61 = vsel %vm1357_vm6, %v3915_v21, 0.0  ;;  %v3916_v26 = vmul.f32 %v13648_v11, %v13648_v11 }
 0xd2b   :  { %3950 = vadd.xlane.f32.xlu0 %v3949_v61  ;;  %v3873_v16 = vpop.xlane.xlu0 %3872 }
 0xd2c   :  { %v3889_v42 = vmul.f32 0.015625, %v3873_v16  ;;  %v3952_v58 = vsel %vm1357_vm6, %v3916_v26, 0.0 }
 0xd2d   :  { %3953 = vadd.xlane.f32.xlu1 %v3952_v58  ;;  %v3876_v29 = vpop.xlane.xlu1 %3875  ;;  %v13699_v58 = vld [vmem:[%s16303_s11 + $0x6] ss:$0 sm:$0xff] }
 0xd2e   :  { %v13659_v59 = vsub.f32 %v13551_v25, %v3889_v42  ;;  %v3890_v53 = vmul.f32 0.015625, %v3876_v29 }
 0xd30   :  { %v13662_v23 = vsub.f32 %v13554_v33, %v3890_v53  ;;  %v3917_v13 = vmul.f32 %v13659_v59, %v13659_v59 }
 0xd32   :  { %v3955_v43 = vsel %vm1357_vm6, %v3917_v13, 0.0  ;;  %v3918_v14 = vmul.f32 %v13662_v23, %v13662_v23 }
 0xd33   :  { %3956 = vadd.xlane.f32.xlu0 %v3955_v43 }
 0xd34   :  { %v3958_v47 = vsel %vm1357_vm6, %v3918_v14, 0.0 }
 0xd35   :  { %3959 = vadd.xlane.f32.xlu1 %v3958_v47 }
 0xd90   :  { %v3921_v0 = vpop.xlane.xlu0 %3920 }
 0xd91   :  { %v3961_v51 = vmul.f32 0.015625, %v3921_v0 }
 0xd92   :  { %v3924_v54 = vpop.xlane.xlu1 %3923 }
 0xd93   :  { %v3975_v57 = vadd.f32 1e-05, %v3961_v51  ;;  %v3962_v7 = vmul.f32 0.015625, %v3924_v54 }
 0xd95   :  { %11252 = vrsqrt.f32 %v3975_v57  ;;  %v3976_v8 = vadd.f32 1e-05, %v3962_v7 }
 0xd97   :  { %11254 = vrsqrt.f32 %v3976_v8 }
 0xd98   :  { %v3927_v15 = vpop.xlane.xlu0 %3926 }
 0xd99   :  { %v3963_v34 = vmul.f32 0.015625, %v3927_v15 }
 0xd9a   :  { %v3930_v56 = vpop.xlane.xlu1 %3929 }
 0xd9b   :  { %v3977_v39 = vadd.f32 1e-05, %v3963_v34  ;;  %v3964_v50 = vmul.f32 0.015625, %v3930_v56 }
 0xd9d   :  { %11256 = vrsqrt.f32 %v3977_v39  ;;  %v3978_v40 = vadd.f32 1e-05, %v3964_v50 }
 0xd9f   :  { %v11253_v44 = vpop.eup %11252  ;;  %11258 = vrsqrt.f32 %v3978_v40 }
 0xda0   :  { %v4003_v38 = vmul.f32 %v11253_v44, %v13579_v35  ;;  %v3933_v20 = vpop.xlane.xlu0 %3932 }
 0xda1   :  { %v11255_v21 = vpop.eup %11254  ;;  %v3965_v61 = vmul.f32 0.015625, %v3933_v20 }
 0xda2   :  { %v4021_v26 = vmul.f32 %v13691_v6, %v4003_v38  ;;  %v4004_v16 = vmul.f32 %v11255_v21, %v13582_v46  ;;  %v3936_v42 = vpop.xlane.xlu1 %3935 }
 0xda3   :  { %v3979_v29 = vadd.f32 1e-05, %v3965_v61  ;;  %v3966_v53 = vmul.f32 0.015625, %v3936_v42 }
 0xda4   :  { %v4022_v13 = vmul.f32 %v13691_v6, %v4004_v16  ;;  %v4039_v35 = vadd.f32 %v13699_v58, %v4021_v26 }
 0xda5   :  { %11260 = vrsqrt.f32 %v3979_v29  ;;  %v3980_v43 = vadd.f32 1e-05, %v3966_v53 }
 0xda6   :  { %v4040_v14 = vadd.f32 %v13699_v58, %v4022_v13 }
 0xda7   :  { %v11257_v47 = vpop.eup %11256  ;;  %11262 = vrsqrt.f32 %v3980_v43 }
 0xda8   :  { %v3939_v27 = vpop.xlane.xlu0 %3938  ;;  %v4053_v46 = vpack.c.bf16 %v4040_v14, %v4039_v35  ;;  %v4005_v60 = vmul.f32 %v11257_v47, %v13591_v49 }
 0xda9   :  { %v11259_v18 = vpop.eup %11258  ;;  %v3967_v12 = vmul.f32 0.015625, %v3939_v27 }
 0xdaa   :  { %8908 = vmatmul.mubr.msk.bf16.vlgmr.msra.gmra.mrb[236].mxu1 %vm1357_vm6, %v4053_v46  ;;  %v3942_v55 = vpop.xlane.xlu1 %3941  ;;  %v4006_v1 = vmul.f32 %v11259_v18, %v13594_v17  ;;  %v4023_v0 = vmul.f32 %v13691_v6, %v4005_v60 }
 0xdab   :  { %v3981_v51 = vadd.f32 1e-05, %v3967_v12  ;;  %v3968_v54 = vmul.f32 0.015625, %v3942_v55  ;;  %4182 = vmatprep.mubr.bf16.mxu1 %v16314_v63 }
 0xdac   :  { %v4024_v57 = vmul.f32 %v13691_v6, %v4006_v1  ;;  %v4041_v8 = vadd.f32 %v13699_v58, %v4023_v0 }
 0xdad   :  { %11264 = vrsqrt.f32 %v3981_v51  ;;  %v3982_v7 = vadd.f32 1e-05, %v3968_v54 }
 0xdae   :  { %v4042_v49 = vadd.f32 %v13699_v58, %v4024_v57 }
 0xdaf   :  { %v11261_v15 = vpop.eup %11260  ;;  %11266 = vrsqrt.f32 %v3982_v7 }
 0xdb0   :  { %v3945_v34 = vpop.xlane.xlu0 %3944  ;;  %v4054_v56 = vpack.c.bf16 %v4042_v49, %v4041_v8  ;;  %v4007_v17 = vmul.f32 %v11261_v15, %v13603_v22 }
 0xdb1   :  { %v11263_v39 = vpop.eup %11262  ;;  %v3969_v50 = vmul.f32 0.015625, %v3945_v34 }
 0xdb2   :  { %8909 = vmatmul.mubr.msk.bf16.gmra.mrb[240].mxu1 %vm1357_vm6, %v4054_v56  ;;  %v3948_v40 = vpop.xlane.xlu1 %3947  ;;  %v4008_v44 = vmul.f32 %v11263_v39, %v13606_v32  ;;  %v4025_v38 = vmul.f32 %v13691_v6, %v4007_v17 }
 0xdb3   :  { %v3983_v20 = vadd.f32 1e-05, %v3969_v50  ;;  %v3970_v21 = vmul.f32 0.015625, %v3948_v40  ;;  %4192 = vmatprep.mubr.bf16.mxu1 %v16314_v63 }
 0xdb4   :  { %v4026_v61 = vmul.f32 %v13691_v6, %v4008_v44  ;;  %v4043_v16 = vadd.f32 %v13699_v58, %v4025_v38 }
 0xdb5   :  { %11268 = vrsqrt.f32 %v3983_v20  ;;  %v3984_v26 = vadd.f32 1e-05, %v3970_v21 }
 0xdb6   :  { %v4044_v22 = vadd.f32 %v13699_v58, %v4026_v61 }
 0xdb7   :  { %v11265_v42 = vpop.eup %11264  ;;  %11270 = vrsqrt.f32 %v3984_v26 }
 0xdb8   :  { %v3951_v29 = vpop.xlane.xlu0 %3950  ;;  %v4055_v53 = vpack.c.bf16 %v4044_v22, %v4043_v16  ;;  %v4009_v32 = vmul.f32 %v11265_v42, %v13615_v4 }
 0xdb9   :  { %v11267_v13 = vpop.eup %11266  ;;  %v3971_v43 = vmul.f32 0.015625, %v3951_v29 }
 0xdba   :  { %8910 = vmatmul.mubr.msk.bf16.gmra.mrb[244].mxu1 %vm1357_vm6, %v4055_v53  ;;  %v3954_v35 = vpop.xlane.xlu1 %3953  ;;  %v4010_v14 = vmul.f32 %v11267_v13, %v13618_v52  ;;  %v4027_v47 = vmul.f32 %v13691_v6, %v4009_v32 }
 0xdbb   :  { %v3985_v27 = vadd.f32 1e-05, %v3971_v43  ;;  %v3972_v46 = vmul.f32 0.015625, %v3954_v35  ;;  %4202 = vmatprep.mubr.bf16.mxu1 %v16314_v63  ;;  %v11018_v43 = vld [vmem:[%s16299_s7 + $0x100] sm:$0xff]  }
 0xdbc   :  { %v4028_v60 = vmul.f32 %v13691_v6, %v4010_v14  ;;  %v4045_v12 = vadd.f32 %v13699_v58, %v4027_v47  ;;  %v11019_v35 = vld [vmem:[%s16299_s7 + $0xc0] sm:$0xff]   ;;  %v11020_v14 = vld [vmem:[%s16299_s7 + $0x108] sm:$0xff]  }
 0xdbd   :  { %11272 = vrsqrt.f32 %v3985_v27  ;;  %v3986_v18 = vadd.f32 1e-05, %v3972_v46  ;;  %v11021_v47 = vld [vmem:[%s16299_s7 + $0xc8] sm:$0xff]   ;;  %v11022_v27 = vld [vmem:[%s16299_s7 + $0x110] sm:$0xff]  }
 0xdbe   :  { %v4046_v4 = vadd.f32 %v13699_v58, %v4028_v60  ;;  %v11023_v46 = vld [vmem:[%s16299_s7 + $0xd0] sm:$0xff]   ;;  %v1702_v60 = vld [vmem:[%s16305_s13] ss:$2 sm:$0x3] }
 0xdbf   :  { %v11269_v55 = vpop.eup %11268  ;;  %11274 = vrsqrt.f32 %v3986_v18  ;;  %v16350_v18 = vld [vmem:[#allocation6_spill] sm:$0xff] }
 0xdc0   :  { %v3957_v1 = vpop.xlane.xlu0 %3956  ;;  %v4056_v0 = vpack.c.bf16 %v4046_v4, %v4045_v12  ;;  %v4011_v52 = vmul.f32 %v11269_v55, %v13627_v2  ;;  %v16313_v12 = vsub.s32 1, %v16350_v18  ;;  %v16351_v4 = vld [vmem:[#allocation7_spill] sm:$0xff] }
 0xdc1   :  { %v11271_v51 = vpop.eup %11270  ;;  %v3973_v54 = vmul.f32 0.015625, %v3957_v1  ;;  %v13791_v55 = vrot.slane %v1702_v60, %v16351_v4 }
 0xdc2   :  { %8911 = vmatmul.mubr.msk.bf16.gmra.mrb[248].mxu1 %vm1357_vm6, %v4056_v0  ;;  %v3960_v57 = vpop.xlane.xlu1 %3959  ;;  %v4012_v7 = vmul.f32 %v11271_v51, %v13630_v37  ;;  %v4029_v8 = vmul.f32 %v13691_v6, %v4011_v52  ;;  %v13795_v1 = vrot.slane %v1702_v60, %v16313_v12 }
 0xdc3   :  { %v3987_v49 = vadd.f32 1e-05, %v3973_v54  ;;  %v3974_v15 = vmul.f32 0.015625, %v3960_v57  ;;  %4212 = vmatprep.mubr.bf16.mxu1 %v16314_v63 }
 0xdc4   :  { %v4030_v34 = vmul.f32 %v13691_v6, %v4012_v7  ;;  %v4047_v17 = vadd.f32 %v13699_v58, %v4029_v8 }
 0xdc5   :  { %11276 = vrsqrt.f32 %v3987_v49  ;;  %v3988_v56 = vadd.f32 1e-05, %v3974_v15 }
 0xdc6   :  { %v4048_v2 = vadd.f32 %v13699_v58, %v4030_v34 }
 0xdc7   :  { %v11273_v39 = vpop.eup %11272  ;;  %11278 = vrsqrt.f32 %v3988_v56 }
 0xdc8   :  { %v4013_v50 = vmul.f32 %v11273_v39, %v13639_v36  ;;  %v4057_v40 = vpack.c.bf16 %v4048_v2, %v4047_v17 }
 0xdc9   :  { %v11275_v37 = vpop.eup %11274 }
 0xdca   :  { %v4031_v44 = vmul.f32 %v13691_v6, %v4013_v50  ;;  %v4014_v38 = vmul.f32 %v11275_v37, %v13648_v11  ;;  %8912 = vmatmul.mubr.msk.bf16.gmra.mrb[252].mxu1 %vm1357_vm6, %v4057_v40 }
 0xdcb   :  { %4222 = vmatprep.mubr.bf16.mxu1 %v16314_v63 }
 0xdcc   :  { %v4032_v20 = vmul.f32 %v13691_v6, %v4014_v38  ;;  %v4049_v21 = vadd.f32 %v13699_v58, %v4031_v44 }
 0xdce   :  { %v4050_v61 = vadd.f32 %v13699_v58, %v4032_v20 }
 0xdcf   :  { %v11277_v26 = vpop.eup %11276 }
 0xdd0   :  { %v4058_v16 = vpack.c.bf16 %v4050_v61, %v4049_v21  ;;  %v4015_v36 = vmul.f32 %v11277_v26, %v13659_v59  ;;  %v11014_v59 = vld [vmem:[%s16299_s7 + $0xf0] sm:$0xff]  }
 0xdd1   :  { %v11279_v22 = vpop.eup %11278  ;;  %9411 = vmatprep.subr.bf16.mxu0 %v11014_v59 }
 0xdd2   :  { %v4033_v42 = vmul.f32 %v13691_v6, %v4015_v36  ;;  %v4016_v29 = vmul.f32 %v11279_v22, %v13662_v23  ;;  %8913 = vmatmul.mubr.msk.bf16.gmra.mrb[0].mxu1 %vm1357_vm6, %v4058_v16  ;;  %v11015_v23 = vld [vmem:[%s16299_s7 + $0xb0] sm:$0xff]  }
 0xdd3   :  { %4232 = vmatprep.mubr.bf16.mxu1 %v16314_v63  ;;  %9412 = vmatpush3.bf16.msra.mxu0 %v11015_v23 }
 0xdd4   :  { %v4034_v11 = vmul.f32 %v13691_v6, %v4016_v29  ;;  %v4051_v53 = vadd.f32 %v13699_v58, %v4033_v42  ;;  %v11016_v6 = vld [vmem:[%s16299_s7 + $0xf8] sm:$0xff]  }
 0xdd5   :  { %9413 = vmatprep.subr.bf16.mxu0 %v11016_v6 }
 0xdd6   :  { %v4052_v32 = vadd.f32 %v13699_v58, %v4034_v11  ;;  %v11017_v58 = vld [vmem:[%s16299_s7 + $0xb8] sm:$0xff]  }
 0xdd7   :  { %9414 = vmatpush3.bf16.msra.mxu0 %v11017_v58 }
 0xdd8   :  { %v4059_v13 = vpack.c.bf16 %v4052_v32, %v4051_v53  ;;  %9415 = vmatprep.subr.bf16.mxu0 %v11018_v43 }
 0xdda   :  { %8914 = vmatmul.mubr.msk.bf16.gmra.mrb[4].mxu1 %vm1357_vm6, %v4059_v13 }
 0xddb   :  { %10251 = vmatprep.mubr.msk.bf16.mxu1 %vm11613_vm4, %v16316_v48  ;;  %9416 = vmatpush3.bf16.msra.mxu0 %v11019_v35 }
 0xddc   :  { %9417 = vmatprep.subr.bf16.mxu0 %v11020_v14 }
 0xddf   :  { %9418 = vmatpush3.bf16.msra.mxu0 %v11021_v47 }
 0xde0   :  { %9419 = vmatprep.subr.bf16.mxu0 %v11022_v27 }
 0xde3   :  { %9420 = vmatpush3.bf16.msra.mxu0 %v11023_v46 }
 0xde4   :  { %10279 = vmatprep.subr.bf16.mxu0 %v16316_v48 }
 0xe7d   :  { %v4174_v0 = vpop.f32.mrb[236].mxu1 }
 0xe7e   :  { %v13798_v52 = vadd.f32 %v4174_v0, %v13791_v55  ;;  %v4176_v51 = vpop.f32.mrb[237].mxu1 }
 0xe7f   :  { %v13801_v54 = vadd.f32 %v4176_v51, %v13795_v1  ;;  %v4178_v57 = vpop.f32.mrb[238].mxu1 }
 0xe80   :  { %v4243_v7 = vmul.f32 %v13798_v52, %v13798_v52  ;;  %v13806_v8 = vadd.f32 %v4178_v57, %v13791_v55  ;;  %v4180_v49 = vpop.f32.mrb[239].mxu1 }
 0xe81   :  { %v4244_v15 = vmul.f32 %v13801_v54, %v13801_v54  ;;  %v13811_v34 = vadd.f32 %v4180_v49, %v13795_v1 }
 0xe82   :  { %v4271_v56 = vmul.f32 %v4243_v7, %v13798_v52  ;;  %v4245_v17 = vmul.f32 %v13806_v8, %v13806_v8 }
 0xe83   :  { %v4272_v2 = vmul.f32 %v4244_v15, %v13801_v54  ;;  %v4246_v39 = vmul.f32 %v13811_v34, %v13811_v34 }
 0xe84   :  { %v4299_v50 = vmul.f32 0.044715, %v4271_v56  ;;  %v4273_v40 = vmul.f32 %v4245_v17, %v13806_v8 }
 0xe85   :  { %v4300_v37 = vmul.f32 0.044715, %v4272_v2  ;;  %v4274_v44 = vmul.f32 %v4246_v39, %v13811_v34  ;;  %v4184_v38 = vpop.f32.mrb[240].mxu1 }
 0xe86   :  { %v4327_v20 = vadd.f32 %v4299_v50, %v13798_v52  ;;  %v4301_v21 = vmul.f32 0.044715, %v4273_v40  ;;  %v13823_v61 = vadd.f32 %v4184_v38, %v13791_v55  ;;  %v4186_v26 = vpop.f32.mrb[241].mxu1 }
 0xe87   :  { %v4328_v16 = vadd.f32 %v4300_v37, %v13801_v54  ;;  %v4302_v36 = vmul.f32 0.044715, %v4274_v44  ;;  %v13827_v22 = vadd.f32 %v4186_v26, %v13795_v1  ;;  %v4188_v42 = vpop.f32.mrb[242].mxu1 }
 0xe88   :  { %v4355_v29 = vmul.f32 0.7978846, %v4327_v20  ;;  %v4329_v11 = vadd.f32 %v4301_v21, %v13806_v8  ;;  %v4247_v53 = vmul.f32 %v13823_v61, %v13823_v61  ;;  %v13833_v32 = vadd.f32 %v4188_v42, %v13791_v55  ;;  %v4190_v13 = vpop.f32.mrb[243].mxu1 }
 0xe89   :  { %v4356_v59 = vmul.f32 0.7978846, %v4328_v16  ;;  %v4330_v23 = vadd.f32 %v4302_v36, %v13811_v34  ;;  %v4248_v6 = vmul.f32 %v13827_v22, %v13827_v22  ;;  %v13839_v58 = vadd.f32 %v4190_v13, %v13795_v1 }
 0xe8a   :  { %11280 = vtanh.f32 %v4355_v29  ;;  %v4357_v43 = vmul.f32 0.7978846, %v4329_v11  ;;  %v4275_v35 = vmul.f32 %v4247_v53, %v13823_v61  ;;  %v4249_v14 = vmul.f32 %v13833_v32, %v13833_v32 }
 0xe8b   :  { %11282 = vtanh.f32 %v4356_v59  ;;  %v4358_v47 = vmul.f32 0.7978846, %v4330_v23  ;;  %v4276_v27 = vmul.f32 %v4248_v6, %v13827_v22  ;;  %v4250_v46 = vmul.f32 %v13839_v58, %v13839_v58 }
 0xe8c   :  { %11284 = vtanh.f32 %v4357_v43  ;;  %v4303_v60 = vmul.f32 0.044715, %v4275_v35  ;;  %v4277_v0 = vmul.f32 %v4249_v14, %v13833_v32 }
 0xe8d   :  { %v4304_v51 = vmul.f32 0.044715, %v4276_v27  ;;  %v4278_v57 = vmul.f32 %v4250_v46, %v13839_v58  ;;  %v4194_v7 = vpop.f32.mrb[244].mxu1  ;;  %11286 = vtanh.f32 %v4358_v47 }
 0xe8e   :  { %v4331_v49 = vadd.f32 %v4303_v60, %v13823_v61  ;;  %v4305_v15 = vmul.f32 0.044715, %v4277_v0  ;;  %v13851_v56 = vadd.f32 %v4194_v7, %v13791_v55  ;;  %v4196_v17 = vpop.f32.mrb[245].mxu1 }
 0xe8f   :  { %v4332_v2 = vadd.f32 %v4304_v51, %v13827_v22  ;;  %v4306_v39 = vmul.f32 0.044715, %v4278_v57  ;;  %v13855_v50 = vadd.f32 %v4196_v17, %v13795_v1  ;;  %v4198_v40 = vpop.f32.mrb[246].mxu1 }
 0xe90   :  { %v4359_v37 = vmul.f32 0.7978846, %v4331_v49  ;;  %v4333_v44 = vadd.f32 %v4305_v15, %v13833_v32  ;;  %v4251_v38 = vmul.f32 %v13851_v56, %v13851_v56  ;;  %v13861_v20 = vadd.f32 %v4198_v40, %v13791_v55  ;;  %v4200_v21 = vpop.f32.mrb[247].mxu1 }
 0xe91   :  { %v4360_v26 = vmul.f32 0.7978846, %v4332_v2  ;;  %v4334_v16 = vadd.f32 %v4306_v39, %v13839_v58  ;;  %v4252_v36 = vmul.f32 %v13855_v50, %v13855_v50  ;;  %v13867_v42 = vadd.f32 %v4200_v21, %v13795_v1 }
 0xe92   :  { %11288 = vtanh.f32 %v4359_v37  ;;  %v4361_v29 = vmul.f32 0.7978846, %v4333_v44  ;;  %v4279_v11 = vmul.f32 %v4251_v38, %v13851_v56  ;;  %v4253_v53 = vmul.f32 %v13861_v20, %v13861_v20 }
 0xe93   :  { %11290 = vtanh.f32 %v4360_v26  ;;  %v4362_v13 = vmul.f32 0.7978846, %v4334_v16  ;;  %v4280_v59 = vmul.f32 %v4252_v36, %v13855_v50  ;;  %v4254_v23 = vmul.f32 %v13867_v42, %v13867_v42 }
 0xe94   :  { %v11281_v6 = vpop.eup %11280  ;;  %11292 = vtanh.f32 %v4361_v29  ;;  %v4307_v43 = vmul.f32 0.044715, %v4279_v11  ;;  %v4281_v35 = vmul.f32 %v4253_v53, %v13861_v20 }
 0xe95   :  { %v11283_v14 = vpop.eup %11282  ;;  %v4411_v47 = vadd.f32 1.0, %v11281_v6  ;;  %11294 = vtanh.f32 %v4362_v13  ;;  %v4308_v27 = vmul.f32 0.044715, %v4280_v59  ;;  %v4282_v46 = vmul.f32 %v4254_v23, %v13867_v42  ;;  %v4204_v60 = vpop.f32.mrb[248].mxu1 }
 0xe96   :  { %v11285_v0 = vpop.eup %11284  ;;  %v4335_v51 = vadd.f32 %v4307_v43, %v13851_v56  ;;  %v4309_v57 = vmul.f32 0.044715, %v4281_v35  ;;  %v13879_v7 = vadd.f32 %v4204_v60, %v13791_v55  ;;  %v4206_v49 = vpop.f32.mrb[249].mxu1  ;;  %v4412_v15 = vadd.f32 1.0, %v11283_v14 }
 0xe97   :  { %v4439_v17 = vmul.f32 0.5, %v4411_v47  ;;  %v4413_v2 = vadd.f32 1.0, %v11285_v0  ;;  %v4336_v39 = vadd.f32 %v4308_v27, %v13855_v50  ;;  %v4310_v40 = vmul.f32 0.044715, %v4282_v46  ;;  %v4208_v37 = vpop.f32.mrb[250].mxu1  ;;  %v11287_v36 = vpop.eup %11286 }
 0xe98   :  { %v4363_v44 = vmul.f32 0.7978846, %v4335_v51  ;;  %v4337_v38 = vadd.f32 %v4309_v57, %v13861_v20  ;;  %v4255_v21 = vmul.f32 %v13879_v7, %v13879_v7  ;;  %v13886_v26 = vadd.f32 %v4206_v49, %v13795_v1  ;;  %v4210_v16 = vpop.f32.mrb[251].mxu1 }
 0xe99   :  { %v13889_v29 = vmul.f32 %v4439_v17, %v13798_v52  ;;  %v4441_v11 = vmul.f32 0.5, %v4413_v2  ;;  %v4364_v53 = vmul.f32 0.7978846, %v4336_v39  ;;  %v4338_v13 = vadd.f32 %v4310_v40, %v13867_v42 }
 0xe9a   :  { %11296 = vtanh.f32 %v4363_v44  ;;  %v4365_v59 = vmul.f32 0.7978846, %v4337_v38  ;;  %v4283_v23 = vmul.f32 %v4255_v21, %v13879_v7  ;;  %v4256_v6 = vmul.f32 %v13886_v26, %v13886_v26 }
 0xe9b   :  { %v13896_v43 = vmul.f32 %v4441_v11, %v13806_v8  ;;  %11298 = vtanh.f32 %v4364_v53  ;;  %v4366_v35 = vmul.f32 0.7978846, %v4338_v13  ;;  %v13899_v14 = vadd.f32 %v4208_v37, %v13791_v55 }
 0xe9c   :  { %v13901_v52 = vpop.eup %11288  ;;  %11300 = vtanh.f32 %v4365_v59  ;;  %v4311_v47 = vmul.f32 0.044715, %v4283_v23  ;;  %v4284_v27 = vmul.f32 %v4256_v6, %v13886_v26  ;;  %v13905_v46 = vadd.f32 %v4210_v16, %v13795_v1 }
 0xe9d   :  { %v13907_v60 = vpop.eup %11290  ;;  %11302 = vtanh.f32 %v4366_v35  ;;  %v4257_v0 = vmul.f32 %v13899_v14, %v13899_v14  ;;  %v4214_v51 = vpop.f32.mrb[252].mxu1  ;;  %v4414_v57 = vadd.f32 1.0, %v11287_v36  ;;  %v4440_v36 = vmul.f32 0.5, %v4412_v15 }
 0xe9e   :  { %v13913_v49 = vpop.eup %11292  ;;  %v4339_v17 = vadd.f32 %v4311_v47, %v13879_v7  ;;  %v4312_v2 = vmul.f32 0.044715, %v4284_v27  ;;  %v4258_v39 = vmul.f32 %v13905_v46, %v13905_v46  ;;  %v13919_v40 = vadd.f32 %v4214_v51, %v13791_v55  ;;  %v4216_v37 = vpop.f32.mrb[253].mxu1 }
 0xe9f   :  { %v13921_v44 = vpop.eup %11294  ;;  %v4285_v38 = vmul.f32 %v4257_v0, %v13899_v14  ;;  %v13925_v21 = vadd.f32 %v4216_v37, %v13795_v1  ;;  %v4218_v16 = vpop.f32.mrb[254].mxu1  ;;  %v4442_v11 = vmul.f32 0.5, %v4414_v57 }
 0xea0   :  { %v4367_v53 = vmul.f32 0.7978846, %v4339_v17  ;;  %v4340_v13 = vadd.f32 %v4312_v2, %v13886_v26  ;;  %v4286_v59 = vmul.f32 %v4258_v39, %v13905_v46  ;;  %v4259_v23 = vmul.f32 %v13919_v40, %v13919_v40  ;;  %v4220_v6 = vpop.f32.mrb[255].mxu1 }
 0xea1   :  { %v4313_v35 = vmul.f32 0.044715, %v4285_v38  ;;  %v4260_v47 = vmul.f32 %v13925_v21, %v13925_v21  ;;  %v13934_v27 = vadd.f32 %v4218_v16, %v13791_v55  ;;  %v13937_v0 = vadd.f32 %v4220_v6, %v13795_v1 }
 0xea2   :  { %11304 = vtanh.f32 %v4367_v53  ;;  %v4368_v15 = vmul.f32 0.7978846, %v4340_v13  ;;  %v4314_v51 = vmul.f32 0.044715, %v4286_v59  ;;  %v4287_v57 = vmul.f32 %v4259_v23, %v13919_v40 }
 0xea3   :  { %v4341_v17 = vadd.f32 %v4313_v35, %v13899_v14  ;;  %v4288_v2 = vmul.f32 %v4260_v47, %v13925_v21  ;;  %v4261_v39 = vmul.f32 %v13934_v27, %v13934_v27  ;;  %v4262_v37 = vmul.f32 %v13937_v0, %v13937_v0 }
 0xea4   :  { %v13946_v38 = vpop.eup %11296  ;;  %11306 = vtanh.f32 %v4368_v15  ;;  %v4342_v16 = vadd.f32 %v4314_v51, %v13905_v46  ;;  %v4315_v53 = vmul.f32 0.044715, %v4287_v57  ;;  %v4468_v13 = vmul.f32 %v4440_v36, %v13801_v54 }
 0xea5   :  { %v13950_v59 = vpop.eup %11298  ;;  %v4369_v23 = vmul.f32 0.7978846, %v4341_v17  ;;  %v4316_v6 = vmul.f32 0.044715, %v4288_v2  ;;  %v4289_v35 = vmul.f32 %v4261_v39, %v13934_v27  ;;  %v4290_v47 = vmul.f32 %v4262_v37, %v13937_v0  ;;  %v4224_v12 = vpop.f32.mrb[0].mxu1 }
 0xea6   :  { %v13954_v63 = vpop.eup %11300  ;;  %v4370_v48 = vmul.f32 0.7978846, %v4342_v16  ;;  %v4343_v8 = vadd.f32 %v4315_v53, %v13919_v40  ;;  %v4470_v15 = vmul.f32 %v4442_v11, %v13811_v34  ;;  %v13959_v51 = vadd.f32 %v4224_v12, %v13791_v55  ;;  %v4226_v54 = vpop.f32.mrb[1].mxu1 }
 0xea7   :  { %v13961_v36 = vpop.eup %11302  ;;  %11308 = vtanh.f32 %v4369_v23  ;;  %v4344_v57 = vadd.f32 %v4316_v6, %v13925_v21  ;;  %v4317_v17 = vmul.f32 0.044715, %v4289_v35  ;;  %v4318_v2 = vmul.f32 0.044715, %v4290_v47  ;;  %v4228_v39 = vpop.f32.mrb[2].mxu1 }
 0xea8   :  { %11310 = vtanh.f32 %v4370_v48  ;;  %v4371_v37 = vmul.f32 0.7978846, %v4343_v8  ;;  %v4496_v18 = vpack.c.bf16 %v4470_v15, %v4468_v13  ;;  %v4263_v16 = vmul.f32 %v13959_v51, %v13959_v51  ;;  %v4230_v53 = vpop.f32.mrb[3].mxu1 }
 0xea9   :  { %v4372_v34 = vmul.f32 0.7978846, %v4344_v57  ;;  %v4345_v12 = vadd.f32 %v4317_v17, %v13934_v27  ;;  %v4346_v11 = vadd.f32 %v4318_v2, %v13937_v0  ;;  %v13969_v4 = vadd.f32 %v4226_v54, %v13795_v1 }
 0xeaa   :  { %11312 = vtanh.f32 %v4371_v37  ;;  %4669 = vmatprep.mubr.bf16.mxu0 %v4496_v18  ;;  %v4291_v23 = vmul.f32 %v4263_v16, %v13959_v51  ;;  %v13973_v48 = vadd.f32 %v4228_v39, %v13791_v55  ;;  %v13976_v8 = vadd.f32 %v4230_v53, %v13795_v1 }
 0xeab   :  { %11314 = vtanh.f32 %v4372_v34  ;;  %v4373_v13 = vmul.f32 0.7978846, %v4345_v12  ;;  %v4374_v6 = vmul.f32 0.7978846, %v4346_v11  ;;  %v16352_v35 = vpack.c.bf16 %v13896_v43, %v13889_v29 }
 0xeac   :  { %v4264_v47 = vmul.f32 %v13969_v4, %v13969_v4  ;;  %v13983_v15 = vpop.eup %11304  ;;  %v4319_v18 = vmul.f32 0.044715, %v4291_v23  ;;  %v4265_v54 = vmul.f32 %v13973_v48, %v13973_v48  ;;  %v4266_v57 = vmul.f32 %v13976_v8, %v13976_v8 }
 0xead   :  { %4670 = vmatmul.mubr.bf16.vlgmr.msra.gmra.mrb[240].mxu0 %v16352_v35  ;;  %v4416_v17 = vadd.f32 1.0, %v13907_v60  ;;  %11316 = vtanh.f32 %v4373_v13  ;;  %v4418_v29 = vadd.f32 1.0, %v13921_v44  ;;  %v4415_v43 = vadd.f32 1.0, %v13901_v52  ;;  %v4234_v39 = vpop.f32.mrb[4].mxu1 }
 0xeae   :  { %v4292_v2 = vmul.f32 %v4264_v47, %v13969_v4  ;;  %v13993_v37 = vpop.eup %11306  ;;  %11318 = vtanh.f32 %v4374_v6  ;;  %v4347_v16 = vadd.f32 %v4319_v18, %v13959_v51  ;;  %v4293_v53 = vmul.f32 %v4265_v54, %v13973_v48  ;;  %v4236_v12 = vpop.f32.mrb[5].mxu1 }
 0xeaf   :  { %v4294_v34 = vmul.f32 %v4266_v57, %v13976_v8  ;;  %v4444_v60 = vmul.f32 0.5, %v4416_v17  ;;  %v4446_v23 = vmul.f32 0.5, %v4418_v29  ;;  %v4417_v13 = vadd.f32 1.0, %v13913_v49  ;;  %v4238_v35 = vpop.f32.mrb[6].mxu1 }
 0xeb0   :  { %v4320_v11 = vmul.f32 0.044715, %v4292_v2  ;;  %v4375_v44 = vmul.f32 0.7978846, %v4347_v16  ;;  %v4321_v47 = vmul.f32 0.044715, %v4293_v53  ;;  %v14000_v33 = vadd.f32 %v4234_v39, %v13791_v55 }
 0xeb1   :  { %v4322_v52 = vmul.f32 0.044715, %v4294_v34  ;;  %v14002_v6 = vpop.eup %11308  ;;  %v4472_v54 = vmul.f32 %v4444_v60, %v13827_v22  ;;  %v4474_v57 = vmul.f32 %v4446_v23, %v13839_v58  ;;  %v4443_v2 = vmul.f32 0.5, %v4415_v43  ;;  %v4240_v17 = vpop.f32.mrb[7].mxu1 }
 0xeb2   :  { %v4348_v18 = vadd.f32 %v4320_v11, %v13969_v4  ;;  %v14007_v29 = vpop.eup %11310  ;;  %11320 = vtanh.f32 %v4375_v44  ;;  %v4349_v49 = vadd.f32 %v4321_v47, %v13973_v48  ;;  %v4445_v53 = vmul.f32 0.5, %v4417_v13 }
 0xeb3   :  { %v4350_v16 = vadd.f32 %v4322_v52, %v13976_v8  ;;  %v4498_v34 = vpack.c.bf16 %v4474_v57, %v4472_v54  ;;  %v4471_v25 = vmul.f32 %v4443_v2, %v13823_v61  ;;  %v4267_v11 = vmul.f32 %v14000_v33, %v14000_v33 }
 0xeb4   :  { %v4376_v39 = vmul.f32 0.7978846, %v4348_v18  ;;  %v11313_v22 = vpop.eup %11312  ;;  %v4377_v60 = vmul.f32 0.7978846, %v4349_v49  ;;  %v4473_v43 = vmul.f32 %v4445_v53, %v13833_v32  ;;  %v14016_v23 = vadd.f32 %v4236_v12, %v13795_v1 }
 0xeb5   :  { %v4378_v58 = vmul.f32 0.7978846, %v4350_v16  ;;  %v14018_v44 = vpop.eup %11314  ;;  %v4427_v47 = vadd.f32 1.0, %v11313_v22  ;;  %4677 = vmatprep.mubr.bf16.mxu0 %v4498_v34  ;;  %v4295_v13 = vmul.f32 %v4267_v11, %v14000_v33  ;;  %v14022_v61 = vadd.f32 %v4238_v35, %v13791_v55 }
 0xeb6   :  { %11322 = vtanh.f32 %v4376_v39  ;;  %v4497_v52 = vpack.c.bf16 %v4473_v43, %v4471_v25  ;;  %v4268_v18 = vmul.f32 %v14016_v23, %v14016_v23  ;;  %v14027_v32 = vadd.f32 %v4240_v17, %v13795_v1 }
 0xeb7   :  { %11324 = vtanh.f32 %v4377_v60  ;;  %v11317_v12 = vpop.eup %11316  ;;  %v4455_v54 = vmul.f32 0.5, %v4427_v47  ;;  %v4323_v57 = vmul.f32 0.044715, %v4295_v13  ;;  %v4269_v2 = vmul.f32 %v14022_v61, %v14022_v61 }
 0xeb8   :  { %11326 = vtanh.f32 %v4378_v58  ;;  %v11319_v49 = vpop.eup %11318  ;;  %v4429_v16 = vadd.f32 1.0, %v11317_v12  ;;  %4678 = vmatmul.mubr.bf16.gmra.mrb[244].mxu0 %v4497_v52  ;;  %v4296_v55 = vmul.f32 %v4268_v18, %v14016_v23  ;;  %v4270_v25 = vmul.f32 %v14027_v32, %v14027_v32 }
 0xeb9   :  { %v4420_v35 = vadd.f32 1.0, %v13950_v59  ;;  %v14036_v1 = vmul.f32 %v4455_v54, %v13919_v40  ;;  %v4351_v17 = vadd.f32 %v4323_v57, %v14000_v33  ;;  %v4297_v53 = vmul.f32 %v4269_v2, %v14022_v61 }
 0xeba   :  { %v4422_v39 = vadd.f32 1.0, %v13961_v36  ;;  %v4457_v34 = vmul.f32 0.5, %v4429_v16  ;;  %v4324_v11 = vmul.f32 0.044715, %v4296_v55  ;;  %v4298_v22 = vmul.f32 %v4270_v25, %v14027_v32 }
 0xebb   :  { %v4448_v60 = vmul.f32 0.5, %v4420_v35  ;;  %v4379_v58 = vmul.f32 0.7978846, %v4351_v17  ;;  %v4325_v43 = vmul.f32 0.044715, %v4297_v53  ;;  %v4419_v13 = vadd.f32 1.0, %v13946_v38 }
 0xebc   :  { %v4450_v47 = vmul.f32 0.5, %v4422_v39  ;;  %v11321_v59 = vpop.eup %11320  ;;  %v14044_v40 = vmul.f32 %v4457_v34, %v13934_v27  ;;  %v4352_v52 = vadd.f32 %v4324_v11, %v14016_v23  ;;  %v4326_v18 = vmul.f32 0.044715, %v4298_v22 }
 0xebd   :  { %v4476_v12 = vmul.f32 %v4448_v60, %v13855_v50  ;;  %v4431_v36 = vadd.f32 1.0, %v11321_v59  ;;  %11328 = vtanh.f32 %v4379_v58  ;;  %v4353_v54 = vadd.f32 %v4325_v43, %v14022_v61 }
 0xebe   :  { %v4478_v57 = vmul.f32 %v4450_v47, %v13867_v42  ;;  %v4503_v2 = vpack.c.bf16 %v14044_v40, %v14036_v1  ;;  %v4380_v16 = vmul.f32 0.7978846, %v4352_v52  ;;  %v4354_v38 = vadd.f32 %v4326_v18, %v14027_v32 }
 0xebf   :  { %v4421_v27 = vadd.f32 1.0, %v13954_v63  ;;  %v4459_v25 = vmul.f32 0.5, %v4431_v36  ;;  %v4381_v35 = vmul.f32 0.7978846, %v4353_v54  ;;  %v4447_v53 = vmul.f32 0.5, %v4419_v13 }
 0xec0   :  { %v11323_v55 = vpop.eup %11322  ;;  %v4500_v17 = vpack.c.bf16 %v4478_v57, %v4476_v12  ;;  %11330 = vtanh.f32 %v4380_v16  ;;  %v4382_v39 = vmul.f32 0.7978846, %v4354_v38  ;;  %v4424_v11 = vadd.f32 1.0, %v13993_v37 }
 0xec1   :  { %v11325_v50 = vpop.eup %11324  ;;  %v4449_v34 = vmul.f32 0.5, %v4421_v27  ;;  %v4487_v22 = vmul.f32 %v4459_v25, %v13959_v51  ;;  %11332 = vtanh.f32 %v4381_v35  ;;  %v4475_v58 = vmul.f32 %v4447_v53, %v13851_v56 }
 0xec2   :  { %v11327_v42 = vpop.eup %11326  ;;  %v4433_v60 = vadd.f32 1.0, %v11325_v50  ;;  %4685 = vmatprep.mubr.bf16.mxu0 %v4500_v17  ;;  %11334 = vtanh.f32 %v4382_v39  ;;  %v4426_v43 = vadd.f32 1.0, %v14007_v29  ;;  %v4452_v47 = vmul.f32 0.5, %v4424_v11 }
 0xec3   :  { %v4477_v63 = vmul.f32 %v4449_v34, %v13861_v20  ;;  %v4423_v59 = vadd.f32 1.0, %v13983_v15  ;;  %v4425_v52 = vadd.f32 1.0, %v14002_v6  ;;  %v4428_v37 = vadd.f32 1.0, %v14018_v44 }
 0xec4   :  { %v4461_v13 = vmul.f32 0.5, %v4433_v60  ;;  %v4454_v51 = vmul.f32 0.5, %v4426_v43  ;;  %v4480_v12 = vmul.f32 %v4452_v47, %v13886_v26  ;;  %v4430_v36 = vadd.f32 1.0, %v11319_v49 }
 0xec5   :  { %v4499_v18 = vpack.c.bf16 %v4477_v63, %v4475_v58  ;;  %v4451_v54 = vmul.f32 0.5, %v4423_v59  ;;  %v4453_v57 = vmul.f32 0.5, %v4425_v52  ;;  %v4456_v20 = vmul.f32 0.5, %v4428_v37 }
 0xec6   :  { %v4489_v56 = vmul.f32 %v4461_v13, %v13973_v48  ;;  %v4482_v29 = vmul.f32 %v4454_v51, %v13905_v46  ;;  %v4458_v16 = vmul.f32 0.5, %v4430_v36  ;;  %v4432_v38 = vadd.f32 1.0, %v11323_v55 }
 0xec7   :  { %4686 = vmatmul.mubr.bf16.gmra.mrb[248].mxu0 %v4499_v18  ;;  %v4434_v15 = vadd.f32 1.0, %v11327_v42  ;;  %v11329_v27 = vpop.eup %11328  ;;  %v4479_v44 = vmul.f32 %v4451_v54, %v13879_v7  ;;  %v4481_v25 = vmul.f32 %v4453_v57, %v13899_v14  ;;  %v4484_v26 = vmul.f32 %v4456_v20, %v13925_v21 }
 0xec8   :  { %v4505_v6 = vpack.c.bf16 %v4489_v56, %v4487_v22  ;;  %v4435_v49 = vadd.f32 1.0, %v11329_v27  ;;  %v4502_v35 = vpack.c.bf16 %v4482_v29, %v4480_v12  ;;  %v4486_v48 = vmul.f32 %v4458_v16, %v13937_v0 }
 0xec9   :  { %v4460_v17 = vmul.f32 0.5, %v4432_v38  ;;  %v4501_v53 = vpack.c.bf16 %v4481_v25, %v4479_v44  ;;  %v4462_v50 = vmul.f32 0.5, %v4434_v15  ;;  %v16353_v52 = vmov 0.0  }
 0xeca   :  { %v11331_v39 = vpop.eup %11330  ;;  %4693 = vmatprep.mubr.bf16.mxu0 %v4502_v35  ;;  %v4504_v46 = vpack.c.bf16 %v4486_v48, %v4484_v26  ;;  %v4463_v14 = vmul.f32 0.5, %v4435_v49 }
 0xecb   :  { %v11333_v55 = vpop.eup %11332  ;;  %v4488_v34 = vmul.f32 %v4460_v17, %v13969_v4  ;;  %v4490_v11 = vmul.f32 %v4462_v50, %v13976_v8  ;;  %v4436_v7 = vadd.f32 1.0, %v11331_v39 }
 0xecc   :  { %v11335_v42 = vpop.eup %11334  ;;  %v4437_v22 = vadd.f32 1.0, %v11333_v55  ;;  %v4491_v43 = vmul.f32 %v4463_v14, %v14000_v33 }
 0xecd   :  { %v4506_v21 = vpack.c.bf16 %v4490_v11, %v4488_v34  ;;  %v4438_v60 = vadd.f32 1.0, %v11335_v42  ;;  %v4464_v58 = vmul.f32 0.5, %v4436_v7 }
 0xece   :  { %v4465_v63 = vmul.f32 0.5, %v4437_v22 }
 0xecf   :  { %4694 = vmatmul.mubr.bf16.gmra.mrb[252].mxu0 %v4501_v53  ;;  %v4466_v0 = vmul.f32 0.5, %v4438_v60  ;;  %v4492_v13 = vmul.f32 %v4464_v58, %v14016_v23 }
 0xed0   :  { %4701 = vmatprep.mubr.bf16.mxu0 %v4504_v46  ;;  %v4493_v47 = vmul.f32 %v4465_v63, %v14022_v61 }
 0xed1   :  { %v4494_v4 = vmul.f32 %v4466_v0, %v14027_v32  ;;  %v14083_v32 = vld [vmem:[%s16303_s11 + $0x7] ss:$0 sm:$0xff] }
 0xed2   :  { %v4507_v8 = vpack.c.bf16 %v4493_v47, %v4491_v43 }
 0xed3   :  { %v4508_v59 = vpack.c.bf16 %v4494_v4, %v4492_v13 }
 0xed7   :  { %4702 = vmatmul.mubr.bf16.gmra.mrb[0].mxu0 %v4503_v2 }
 0xed8   :  { %4709 = vmatprep.mubr.bf16.mxu0 %v4506_v21 }
 0xedf   :  { %4710 = vmatmul.mubr.bf16.gmra.mrb[4].mxu0 %v4505_v6 }
 0xee0   :  { %4717 = vmatprep.mubr.bf16.mxu0 %v4508_v59 }
 0xee7   :  { %4718 = vmatmul.mubr.bf16.gmra.mrb[8].mxu0 %v4507_v8 }
 0xee8   :  { %10287 = vmatprep.mubr.msk.bf16.mxu0 %vm11613_vm4, %v16353_v52 }
 0xf80   :  { %v9421_v33 = vpop.f32.mrb[240].mxu0 }
 0xf81   :  { %v9422_v37 = vpop.f32.mrb[241].mxu0 }
 0xf82   :  { %v9423_v61 = vadd.f32 %v9422_v37, %v9421_v33  ;;  %v9424_v18 = vpop.f32.mrb[242].mxu0 }
 0xf83   :  { %v9425_v23 = vpop.f32.mrb[243].mxu0 }
 0xf84   :  { %v4726_v1 = vadd.f32 %v9423_v61, %v13483_v30  ;;  %v9426_v40 = vadd.f32 %v9425_v23, %v9424_v18 }
 0xf86   :  { %v4727_v2 = vadd.f32 %v9426_v40, %v13488_v45  ;;  %v14088_v51 = vadd.f32 %v14083_v32, %v4726_v1 }
 0xf88   :  { %16354 = vst [vmem:[#allocation10_spill] sm:$0xff] %v14088_v51  ;;  %v4766_v12 = vsel %vm1357_vm6, %v14088_v51, 0.0  ;;  %v14093_v36 = vadd.f32 %v14083_v32, %v4727_v2 }
 0xf89   :  { %4767 = vadd.xlane.f32.xlu0 %v4766_v12 }
 0xf8a   :  { %16355 = vst [vmem:[#allocation11_spill] sm:$0xff] %v14093_v36  ;;  %v4769_v56 = vsel %vm1357_vm6, %v14093_v36, 0.0 }
 0xf8b   :  { %4770 = vadd.xlane.f32.xlu1 %v4769_v56  ;;  %v9427_v54 = vpop.f32.mrb[244].mxu0 }
 0xf8c   :  { %v9428_v57 = vpop.f32.mrb[245].mxu0 }
 0xf8d   :  { %v9429_v30 = vadd.f32 %v9428_v57, %v9427_v54  ;;  %v9430_v20 = vpop.f32.mrb[246].mxu0 }
 0xf8e   :  { %v9431_v29 = vpop.f32.mrb[247].mxu0 }
 0xf8f   :  { %v4728_v45 = vadd.f32 %v9429_v30, %v13493_v3  ;;  %v9432_v16 = vadd.f32 %v9431_v29, %v9430_v20 }
 0xf91   :  { %v4729_v38 = vadd.f32 %v9432_v16, %v13498_v9  ;;  %v14100_v15 = vadd.f32 %v14083_v32, %v4728_v45  ;;  %v16366_v16 = vld [vmem:[#allocation8_spill] sm:$0xff] }
 0xf93   :  { %16356 = vst [vmem:[#allocation12_spill] sm:$0xff] %v14100_v15  ;;  %v4772_v27 = vsel %vm1357_vm6, %v14100_v15, 0.0  ;;  %v14105_v6 = vadd.f32 %v14083_v32, %v4729_v38 }
 0xf94   :  { %4773 = vadd.xlane.f32.xlu0 %v4772_v27 }
 0xf95   :  { %16357 = vst [vmem:[#allocation13_spill] sm:$0xff] %v14105_v6  ;;  %v4775_v44 = vsel %vm1357_vm6, %v14105_v6, 0.0 }
 0xf96   :  { %4776 = vadd.xlane.f32.xlu1 %v4775_v44  ;;  %v16368_v44 = vld [vmem:[#allocation9_spill] sm:$0xff] }
 0xf9a   :  { %v9433_v25 = vpop.f32.mrb[248].mxu0 }
 0xf9b   :  { %v9434_v26 = vpop.f32.mrb[249].mxu0 }
 0xf9c   :  { %v9435_v3 = vadd.f32 %v9434_v26, %v9433_v25  ;;  %v9436_v49 = vpop.f32.mrb[250].mxu0 }
 0xf9d   :  { %v9437_v35 = vpop.f32.mrb[251].mxu0 }
 0xf9e   :  { %v4730_v9 = vadd.f32 %v9435_v3, %v13503_v10  ;;  %v9438_v48 = vadd.f32 %v9437_v35, %v9436_v49  ;;  %v11024_v35 = vld [vmem:[%s16298_s6 + $0x1e8] sm:$0xff]  }
 0xf9f   :  { %10280 = vmatpush3.bf16.msra.mxu0 %v11024_v35 }
 0xfa0   :  { %v14111_v17 = vadd.f32 %v14083_v32, %v4730_v9  ;;  %v4731_v53 = vadd.f32 %v9438_v48, %v13508_v24  ;;  %v11025_v9 = vld [vmem:[%s16298_s6 + $0x1f0] sm:$0xff]   ;;  %10281 = vmatprep.subr.bf16.mxu0 %v16353_v52 }
 0xfa2   :  { %16358 = vst [vmem:[#allocation14_spill] sm:$0xff] %v14111_v17  ;;  %v14115_v50 = vadd.f32 %v14083_v32, %v4731_v53  ;;  %v9439_v39 = vpop.f32.mrb[252].mxu0  ;;  %v4778_v46 = vsel %vm1357_vm6, %v14111_v17, 0.0 }
 0xfa3   :  { %v9440_v55 = vpop.f32.mrb[253].mxu0  ;;  %4779 = vadd.xlane.f32.xlu0 %v4778_v46  ;;  %10282 = vmatpush3.bf16.msra.mxu0 %v11025_v9 }
 0xfa4   :  { %16359 = vst [vmem:[#allocation15_spill] sm:$0xff] %v14115_v50  ;;  %v9441_v34 = vadd.f32 %v9440_v55, %v9439_v39  ;;  %v9442_v11 = vpop.f32.mrb[254].mxu0  ;;  %v4781_v10 = vsel %vm1357_vm6, %v14115_v50, 0.0  ;;  %10283 = vmatprep.subr.bf16.mxu0 %v16353_v52 }
 0xfa5   :  { %v9443_v7 = vpop.f32.mrb[255].mxu0  ;;  %4782 = vadd.xlane.f32.xlu1 %v4781_v10 }
 0xfa6   :  { %v4732_v42 = vadd.f32 %v9441_v34, %v13515_v28  ;;  %v9444_v14 = vadd.f32 %v9443_v7, %v9442_v11 }
 0xfa8   :  { %v14123_v24 = vadd.f32 %v14083_v32, %v4732_v42  ;;  %v4733_v22 = vadd.f32 %v9444_v14, %v13520_v62 }
 0xfaa   :  { %16360 = vst [vmem:[#allocation16_spill] sm:$0xff] %v14123_v24  ;;  %v14127_v21 = vadd.f32 %v14083_v32, %v4733_v22  ;;  %v9445_v60 = vpop.f32.mrb[0].mxu0  ;;  %v4784_v58 = vsel %vm1357_vm6, %v14123_v24, 0.0 }
 0xfab   :  { %v9446_v63 = vpop.f32.mrb[1].mxu0  ;;  %4785 = vadd.xlane.f32.xlu0 %v4784_v58 }
 0xfac   :  { %16361 = vst [vmem:[#allocation17_spill] sm:$0xff] %v14127_v21  ;;  %v9447_v0 = vadd.f32 %v9446_v63, %v9445_v60  ;;  %v9448_v43 = vpop.f32.mrb[2].mxu0  ;;  %v4787_v28 = vsel %vm1357_vm6, %v14127_v21, 0.0 }
 0xfad   :  { %v9449_v47 = vpop.f32.mrb[3].mxu0  ;;  %4788 = vadd.xlane.f32.xlu1 %v4787_v28 }
 0xfae   :  { %v4734_v13 = vadd.f32 %v9447_v0, %v13527_v19  ;;  %v9450_v4 = vadd.f32 %v9449_v47, %v9448_v43 }
 0xfb0   :  { %v14135_v62 = vadd.f32 %v14083_v32, %v4734_v13  ;;  %v4735_v8 = vadd.f32 %v9450_v4, %v13530_v31 }
 0xfb2   :  { %16362 = vst [vmem:[#allocation18_spill] sm:$0xff] %v14135_v62  ;;  %v14139_v59 = vadd.f32 %v14083_v32, %v4735_v8  ;;  %v9451_v33 = vpop.f32.mrb[4].mxu0  ;;  %v4790_v37 = vsel %vm1357_vm6, %v14135_v62, 0.0 }
 0xfb3   :  { %v9452_v61 = vpop.f32.mrb[5].mxu0  ;;  %4791 = vadd.xlane.f32.xlu0 %v4790_v37 }
 0xfb4   :  { %16363 = vst [vmem:[#allocation19_spill] sm:$0xff] %v14139_v59  ;;  %v9453_v18 = vadd.f32 %v9452_v61, %v9451_v33  ;;  %v9454_v23 = vpop.f32.mrb[6].mxu0  ;;  %v4793_v19 = vsel %vm1357_vm6, %v14139_v59, 0.0 }
 0xfb5   :  { %v9455_v1 = vpop.f32.mrb[7].mxu0  ;;  %4794 = vadd.xlane.f32.xlu1 %v4793_v19 }
 0xfb6   :  { %v4736_v40 = vadd.f32 %v9453_v18, %v13539_v41  ;;  %v9456_v2 = vadd.f32 %v9455_v1, %v9454_v23 }
 0xfb8   :  { %v14147_v31 = vadd.f32 %v14083_v32, %v4736_v40  ;;  %v4737_v12 = vadd.f32 %v9456_v2, %v13542_v5 }
 0xfba   :  { %16364 = vst [vmem:[#allocation20_spill] sm:$0xff] %v14147_v31  ;;  %v14151_v56 = vadd.f32 %v14083_v32, %v4737_v12  ;;  %v9457_v54 = vpop.f32.mrb[8].mxu0  ;;  %v4796_v57 = vsel %vm1357_vm6, %v14147_v31, 0.0 }
 0xfbb   :  { %v9458_v30 = vpop.f32.mrb[9].mxu0  ;;  %4797 = vadd.xlane.f32.xlu0 %v4796_v57 }
 0xfbc   :  { %16365 = vst [vmem:[#allocation21_spill] sm:$0xff] %v14151_v56  ;;  %v9459_v20 = vadd.f32 %v9458_v30, %v9457_v54  ;;  %v9460_v29 = vpop.f32.mrb[10].mxu0  ;;  %v4799_v41 = vsel %vm1357_vm6, %v14151_v56, 0.0 }
 0xfbd   :  { %v9461_v45 = vpop.f32.mrb[11].mxu0  ;;  %4800 = vadd.xlane.f32.xlu1 %v4799_v41 }
 0xfbe   :  { %v4738_v38 = vadd.f32 %v9459_v20, %v16366_v16  ;;  %v9462_v27 = vadd.f32 %v9461_v45, %v9460_v29 }
 0xfc0   :  { %v14159_v5 = vadd.f32 %v14083_v32, %v4738_v38  ;;  %v4739_v25 = vadd.f32 %v9462_v27, %v16368_v44  ;;  %v11027_v44 = vld [vmem:[%s16298_s6 + $0x1c8] sm:$0xff]  }
 0xfc1   :  { %10244 = vmatpush3.bf16.msra.mxu1 %v11027_v44 }
 0xfc2   :  { %16367 = vst [vmem:[#allocation8_spill] sm:$0xff] %v14159_v5  ;;  %v14163_v26 = vadd.f32 %v14083_v32, %v4739_v25  ;;  %v4802_v3 = vsel %vm1357_vm6, %v14159_v5, 0.0  ;;  %v11026_v32 = vld [vmem:[%s16298_s6 + $0x1f8] sm:$0xff]   ;;  %10245 = vmatprep.subr.bf16.mxu1 %v16353_v52 }
 0xfc3   :  { %4803 = vadd.xlane.f32.xlu0 %v4802_v3  ;;  %10284 = vmatpush3.bf16.msra.mxu0 %v11026_v32  ;;  %v11029_v32 = vld [vmem:[%s16298_s6 + $0x1d0] sm:$0xff]  }
 0xfc4   :  { %16369 = vst [vmem:[#allocation9_spill] sm:$0xff] %v14163_v26  ;;  %v4805_v49 = vsel %vm1357_vm6, %v14163_v26, 0.0  ;;  %10285 = vmatprep.subr.bf16.mxu0 %v16353_v52 }
 0xfc5   :  { %4806 = vadd.xlane.f32.xlu1 %v4805_v49  ;;  %10246 = vmatpush3.bf16.msra.mxu1 %v11029_v32 }
 0xfc6   :  { %10247 = vmatprep.subr.bf16.mxu1 %v16353_v52 }
0x1016   :  { %v4768_v48 = vpop.xlane.xlu0 %4767 }
0x1017   :  { %v4808_v53 = vmul.f32 0.015625, %v4768_v48 }
0x1018   :  { %v4771_v39 = vpop.xlane.xlu1 %4770 }
0x1019   :  { %v14182_v46 = vsub.f32 %v14088_v51, %v4808_v53  ;;  %v4809_v55 = vmul.f32 0.015625, %v4771_v39 }
0x101b   :  { %v14185_v34 = vsub.f32 %v14093_v36, %v4809_v55  ;;  %v4836_v11 = vmul.f32 %v14182_v46, %v14182_v46 }
0x101d   :  { %v4850_v10 = vsel %vm1357_vm6, %v4836_v11, 0.0  ;;  %v4837_v7 = vmul.f32 %v14185_v34, %v14185_v34 }
0x101e   :  { %4851 = vadd.xlane.f32.xlu0 %v4850_v10  ;;  %v11030_v10 = vld [vmem:[%s16298_s6 + $0x1d8] sm:$0xff]  }
0x101f   :  { %v4853_v42 = vsel %vm1357_vm6, %v4837_v7, 0.0  ;;  %10248 = vmatpush3.bf16.msra.mxu1 %v11030_v10  ;;  %v14296_v10 = vld [vmem:[%s16303_s11 + $0x9] ss:$0 sm:$0xff] }
0x1020   :  { %4854 = vadd.xlane.f32.xlu1 %v4853_v42  ;;  %10249 = vmatprep.subr.bf16.mxu1 %v16353_v52 }
0x1021   :  { %v4774_v14 = vpop.xlane.xlu0 %4773 }
0x1022   :  { %v4810_v22 = vmul.f32 0.015625, %v4774_v14 }
0x1023   :  { %v4777_v60 = vpop.xlane.xlu1 %4776 }
0x1024   :  { %v14194_v58 = vsub.f32 %v14100_v15, %v4810_v22  ;;  %v4811_v63 = vmul.f32 0.015625, %v4777_v60 }
0x1026   :  { %v14197_v0 = vsub.f32 %v14105_v6, %v4811_v63  ;;  %v4838_v43 = vmul.f32 %v14194_v58, %v14194_v58  ;;  %v11028_v63 = vld [vmem:[%s16298_s6 + $0x200] sm:$0xff]  }
0x1027   :  { %10286 = vmatpush3.bf16.msra.mxu0 %v11028_v63 }
0x1028   :  { %v4856_v28 = vsel %vm1357_vm6, %v4838_v43, 0.0  ;;  %v4839_v47 = vmul.f32 %v14197_v0, %v14197_v0  ;;  %v11031_v43 = vld [vmem:[%s16298_s6 + $0x1e0] sm:$0xff]   ;;  %10351 = vmatprep.subr.bf16.mxu0 %v16353_v52 }
0x1029   :  { %4857 = vadd.xlane.f32.xlu0 %v4856_v28  ;;  %10250 = vmatpush3.bf16.msra.mxu1 %v11031_v43 }
0x102a   :  { %v4859_v13 = vsel %vm1357_vm6, %v4839_v47, 0.0  ;;  %10315 = vmatprep.subr.bf16.mxu1 %v16353_v52 }
0x102b   :  { %4860 = vadd.xlane.f32.xlu1 %v4859_v13 }
0x1030   :  { %v4780_v4 = vpop.xlane.xlu0 %4779 }
0x1031   :  { %v4812_v8 = vmul.f32 0.015625, %v4780_v4 }
0x1032   :  { %v4783_v33 = vpop.xlane.xlu1 %4782 }
0x1033   :  { %v14206_v37 = vsub.f32 %v14111_v17, %v4812_v8  ;;  %v4813_v61 = vmul.f32 0.015625, %v4783_v33 }
0x1035   :  { %v14209_v18 = vsub.f32 %v14115_v50, %v4813_v61  ;;  %v4840_v23 = vmul.f32 %v14206_v37, %v14206_v37 }
0x1037   :  { %v4862_v19 = vsel %vm1357_vm6, %v4840_v23, 0.0  ;;  %v4841_v1 = vmul.f32 %v14209_v18, %v14209_v18 }
0x1038   :  { %4863 = vadd.xlane.f32.xlu0 %v4862_v19  ;;  %v4786_v40 = vpop.xlane.xlu0 %4785 }
0x1039   :  { %v4814_v2 = vmul.f32 0.015625, %v4786_v40  ;;  %v4865_v12 = vsel %vm1357_vm6, %v4841_v1, 0.0 }
0x103a   :  { %4866 = vadd.xlane.f32.xlu1 %v4865_v12  ;;  %v4789_v54 = vpop.xlane.xlu1 %4788 }
0x103b   :  { %v14218_v57 = vsub.f32 %v14123_v24, %v4814_v2  ;;  %v4815_v30 = vmul.f32 0.015625, %v4789_v54 }
0x103d   :  { %v14221_v20 = vsub.f32 %v14127_v21, %v4815_v30  ;;  %v4842_v29 = vmul.f32 %v14218_v57, %v14218_v57 }
0x103f   :  { %v4868_v41 = vsel %vm1357_vm6, %v4842_v29, 0.0  ;;  %v4843_v45 = vmul.f32 %v14221_v20, %v14221_v20 }
0x1040   :  { %4869 = vadd.xlane.f32.xlu0 %v4868_v41  ;;  %v4792_v16 = vpop.xlane.xlu0 %4791 }
0x1041   :  { %v4816_v38 = vmul.f32 0.015625, %v4792_v16  ;;  %v4871_v27 = vsel %vm1357_vm6, %v4843_v45, 0.0 }
0x1042   :  { %4872 = vadd.xlane.f32.xlu1 %v4871_v27  ;;  %v4795_v25 = vpop.xlane.xlu1 %4794 }
0x1043   :  { %v14233_v3 = vsub.f32 %v14135_v62, %v4816_v38  ;;  %v4817_v49 = vmul.f32 0.015625, %v4795_v25  ;;  %v14288_v25 = vld [vmem:[%s16303_s11 + $0x8] ss:$0 sm:$0xff] }
0x1045   :  { %v14237_v35 = vsub.f32 %v14139_v59, %v4817_v49  ;;  %v4844_v9 = vmul.f32 %v14233_v3, %v14233_v3 }
0x1047   :  { %v4874_v48 = vsel %vm1357_vm6, %v4844_v9, 0.0  ;;  %v4845_v53 = vmul.f32 %v14237_v35, %v14237_v35 }
0x1048   :  { %4875 = vadd.xlane.f32.xlu0 %v4874_v48  ;;  %v4798_v39 = vpop.xlane.xlu0 %4797 }
0x1049   :  { %v4818_v55 = vmul.f32 0.015625, %v4798_v39  ;;  %v4877_v11 = vsel %vm1357_vm6, %v4845_v53, 0.0 }
0x104a   :  { %4878 = vadd.xlane.f32.xlu1 %v4877_v11  ;;  %v4801_v7 = vpop.xlane.xlu1 %4800 }
0x104b   :  { %v14253_v42 = vsub.f32 %v14147_v31, %v4818_v55  ;;  %v4819_v14 = vmul.f32 0.015625, %v4801_v7 }
0x104d   :  { %v14257_v22 = vsub.f32 %v14151_v56, %v4819_v14  ;;  %v4846_v60 = vmul.f32 %v14253_v42, %v14253_v42 }
0x104f   :  { %v4880_v28 = vsel %vm1357_vm6, %v4846_v60, 0.0  ;;  %v4847_v47 = vmul.f32 %v14257_v22, %v14257_v22 }
0x1050   :  { %4881 = vadd.xlane.f32.xlu0 %v4880_v28  ;;  %v4804_v13 = vpop.xlane.xlu0 %4803 }
0x1051   :  { %v4820_v4 = vmul.f32 0.015625, %v4804_v13  ;;  %v4883_v8 = vsel %vm1357_vm6, %v4847_v47, 0.0  ;;  %v11033_v47 = vld [vmem:[%s16298_s6 + $0x210] sm:$0xff]  }
0x1052   :  { %4884 = vadd.xlane.f32.xlu1 %v4883_v8  ;;  %v4807_v33 = vpop.xlane.xlu1 %4806 }
0x1053   :  { %v14274_v61 = vsub.f32 %v14159_v5, %v4820_v4  ;;  %v4821_v23 = vmul.f32 0.015625, %v4807_v33 }
0x1055   :  { %v14277_v19 = vsub.f32 %v14163_v26, %v4821_v23  ;;  %v4848_v1 = vmul.f32 %v14274_v61, %v14274_v61 }
0x1057   :  { %v4886_v40 = vsel %vm1357_vm6, %v4848_v1, 0.0  ;;  %v4849_v2 = vmul.f32 %v14277_v19, %v14277_v19 }
0x1058   :  { %4887 = vadd.xlane.f32.xlu0 %v4886_v40 }
0x1059   :  { %v4889_v12 = vsel %vm1357_vm6, %v4849_v2, 0.0 }
0x105a   :  { %4890 = vadd.xlane.f32.xlu1 %v4889_v12  ;;  %v11034_v12 = vld [vmem:[%s16298_s6 + $0x218] sm:$0xff]  }
0x10ab   :  { %v4852_v54 = vpop.xlane.xlu0 %4851 }
0x10ac   :  { %v4892_v30 = vmul.f32 0.015625, %v4852_v54 }
0x10ad   :  { %v4855_v29 = vpop.xlane.xlu1 %4854 }
0x10ae   :  { %v4906_v41 = vadd.f32 1e-05, %v4892_v30  ;;  %v4893_v45 = vmul.f32 0.015625, %v4855_v29 }
0x10b0   :  { %11336 = vrsqrt.f32 %v4906_v41  ;;  %v4907_v16 = vadd.f32 1e-05, %v4893_v45 }
0x10b2   :  { %11338 = vrsqrt.f32 %v4907_v16  ;;  %v11035_v16 = vld [vmem:[%s16298_s6 + $0x220] sm:$0xff]  }
0x10b6   :  { %v4858_v38 = vpop.xlane.xlu0 %4857 }
0x10b7   :  { %v4894_v27 = vmul.f32 0.015625, %v4858_v38 }
0x10b8   :  { %v4861_v49 = vpop.xlane.xlu1 %4860 }
0x10b9   :  { %v4908_v32 = vadd.f32 1e-05, %v4894_v27  ;;  %v4895_v48 = vmul.f32 0.015625, %v4861_v49 }
0x10ba   :  { %v11337_v44 = vpop.eup %11336 }
0x10bb   :  { %v4934_v9 = vmul.f32 %v11337_v44, %v14182_v46  ;;  %11340 = vrsqrt.f32 %v4908_v32  ;;  %v4909_v11 = vadd.f32 1e-05, %v4895_v48 }
0x10bc   :  { %v11339_v53 = vpop.eup %11338 }
0x10bd   :  { %v4952_v39 = vmul.f32 %v14288_v25, %v4934_v9  ;;  %v4935_v55 = vmul.f32 %v11339_v53, %v14185_v34  ;;  %11342 = vrsqrt.f32 %v4909_v11  ;;  %v11032_v34 = vld [vmem:[%s16298_s6 + $0x208] sm:$0xff]  }
0x10bf   :  { %v4953_v7 = vmul.f32 %v14288_v25, %v4935_v55  ;;  %v4970_v14 = vadd.f32 %v14296_v10, %v4952_v39 }
0x10c1   :  { %v4971_v46 = vadd.f32 %v14296_v10, %v4953_v7 }
0x10c3   :  { %v14301_v60 = vpack.c.bf16 %v4971_v46, %v4970_v14 }
0x10c5   :  { %10252 = vmatmul.mubr.msk.bf16.vlgmr.msra.gmra.mrb[8].mxu1 %vm1357_vm6, %v14301_v60  ;;  %10288 = vmatmul.mubr.msk.bf16.vlgmr.msra.gmra.mrb[12].mxu0 %vm1357_vm6, %v14301_v60  ;;  %v4864_v63 = vpop.xlane.xlu0 %4863  ;;  %v11341_v43 = vpop.eup %11340 }
0x10c6   :  { %10255 = vmatprep.mubr.msk.bf16.mxu1 %vm11613_vm4, %v16353_v52  ;;  %10291 = vmatprep.mubr.msk.bf16.mxu0 %vm11613_vm4, %v16353_v52  ;;  %v4896_v28 = vmul.f32 0.015625, %v4864_v63  ;;  %v4936_v13 = vmul.f32 %v11341_v43, %v14194_v58 }
0x10c7   :  { %10316 = vmatpush3.bf16.msra.mxu1 %v11032_v34  ;;  %v4867_v4 = vpop.xlane.xlu1 %4866  ;;  %v11343_v8 = vpop.eup %11342 }
0x10c8   :  { %10317 = vmatprep.subr.bf16.mxu1 %v16353_v52  ;;  %v4910_v33 = vadd.f32 1e-05, %v4896_v28  ;;  %v4897_v23 = vmul.f32 0.015625, %v4867_v4  ;;  %v4954_v1 = vmul.f32 %v14288_v25, %v4936_v13  ;;  %v4937_v40 = vmul.f32 %v11343_v8, %v14197_v0 }
0x10ca   :  { %11344 = vrsqrt.f32 %v4910_v33  ;;  %v4911_v2 = vadd.f32 1e-05, %v4897_v23  ;;  %v4955_v54 = vmul.f32 %v14288_v25, %v4937_v40  ;;  %v4972_v58 = vadd.f32 %v14296_v10, %v4954_v1 }
0x10cb   :  { %10318 = vmatpush3.bf16.msra.mxu1 %v11033_v47 }
0x10cc   :  { %10319 = vmatprep.subr.bf16.mxu1 %v16353_v52  ;;  %11346 = vrsqrt.f32 %v4911_v2  ;;  %v4973_v30 = vadd.f32 %v14296_v10, %v4955_v54 }
0x10cd   :  { %v4870_v29 = vpop.xlane.xlu0 %4869 }
0x10ce   :  { %v4898_v41 = vmul.f32 0.015625, %v4870_v29  ;;  %v14328_v0 = vpack.c.bf16 %v4973_v30, %v4972_v58 }
0x10cf   :  { %10320 = vmatpush3.bf16.msra.mxu1 %v11034_v12  ;;  %v4873_v45 = vpop.xlane.xlu1 %4872 }
0x10d0   :  { %10321 = vmatprep.subr.bf16.mxu1 %v16353_v52  ;;  %v4912_v38 = vadd.f32 1e-05, %v4898_v41  ;;  %v4899_v27 = vmul.f32 0.015625, %v4873_v45  ;;  %10256 = vmatmul.mubr.msk.bf16.gmra.mrb[12].mxu1 %vm1357_vm6, %v14328_v0 }
0x10d1   :  { %10292 = vmatmul.mubr.msk.bf16.gmra.mrb[16].mxu0 %vm1357_vm6, %v14328_v0  ;;  %10259 = vmatprep.mubr.msk.bf16.mxu1 %vm11613_vm4, %v16353_v52 }
0x10d2   :  { %11348 = vrsqrt.f32 %v4912_v38  ;;  %v4913_v44 = vadd.f32 1e-05, %v4899_v27  ;;  %10295 = vmatprep.mubr.msk.bf16.mxu0 %vm11613_vm4, %v16353_v52 }
0x10d3   :  { %10322 = vmatpush3.bf16.msra.mxu1 %v11035_v16 }
0x10d4   :  { %v11345_v49 = vpop.eup %11344  ;;  %11350 = vrsqrt.f32 %v4913_v44  ;;  %10393 = vmatprep.subr.bf16.mxu1 %v16353_v52 }
0x10d5   :  { %v4938_v9 = vmul.f32 %v11345_v49, %v14206_v37  ;;  %v4876_v32 = vpop.xlane.xlu0 %4875 }
0x10d6   :  { %v11347_v48 = vpop.eup %11346  ;;  %v4900_v53 = vmul.f32 0.015625, %v4876_v32 }
0x10d7   :  { %v4956_v39 = vmul.f32 %v14288_v25, %v4938_v9  ;;  %v4939_v55 = vmul.f32 %v11347_v48, %v14209_v18  ;;  %v4879_v11 = vpop.xlane.xlu1 %4878 }
0x10d8   :  { %v4914_v7 = vadd.f32 1e-05, %v4900_v53  ;;  %v4901_v14 = vmul.f32 0.015625, %v4879_v11 }
0x10d9   :  { %v4957_v46 = vmul.f32 %v14288_v25, %v4939_v55  ;;  %v4974_v63 = vadd.f32 %v14296_v10, %v4956_v39 }
0x10da   :  { %11352 = vrsqrt.f32 %v4914_v7  ;;  %v4915_v34 = vadd.f32 1e-05, %v4901_v14 }
0x10db   :  { %v4975_v43 = vadd.f32 %v14296_v10, %v4957_v46 }
0x10dc   :  { %v11349_v28 = vpop.eup %11348  ;;  %11354 = vrsqrt.f32 %v4915_v34 }
0x10dd   :  { %v14349_v37 = vpack.c.bf16 %v4975_v43, %v4974_v63  ;;  %v4940_v47 = vmul.f32 %v11349_v28, %v14218_v57  ;;  %v4882_v13 = vpop.xlane.xlu0 %4881 }
0x10de   :  { %v11351_v4 = vpop.eup %11350  ;;  %v4902_v18 = vmul.f32 0.015625, %v4882_v13 }
0x10df   :  { %v4958_v8 = vmul.f32 %v14288_v25, %v4940_v47  ;;  %v4941_v33 = vmul.f32 %v11351_v4, %v14221_v20  ;;  %v4885_v23 = vpop.xlane.xlu1 %4884  ;;  %10260 = vmatmul.mubr.msk.bf16.gmra.mrb[16].mxu1 %vm1357_vm6, %v14349_v37  ;;  %10296 = vmatmul.mubr.msk.bf16.gmra.mrb[20].mxu0 %vm1357_vm6, %v14349_v37 }
0x10e0   :  { %v4916_v1 = vadd.f32 1e-05, %v4902_v18  ;;  %v4903_v40 = vmul.f32 0.015625, %v4885_v23  ;;  %10263 = vmatprep.mubr.msk.bf16.mxu1 %vm11613_vm4, %v16353_v52  ;;  %10299 = vmatprep.mubr.msk.bf16.mxu0 %vm11613_vm4, %v16353_v52 }
0x10e1   :  { %v4959_v57 = vmul.f32 %v14288_v25, %v4941_v33  ;;  %v4976_v20 = vadd.f32 %v14296_v10, %v4958_v8 }
0x10e2   :  { %11356 = vrsqrt.f32 %v4916_v1  ;;  %v4917_v2 = vadd.f32 1e-05, %v4903_v40 }
0x10e3   :  { %v4977_v12 = vadd.f32 %v14296_v10, %v4959_v57 }
0x10e4   :  { %v11353_v54 = vpop.eup %11352  ;;  %11358 = vrsqrt.f32 %v4917_v2 }
0x10e5   :  { %v14365_v58 = vpack.c.bf16 %v4977_v12, %v4976_v20  ;;  %v4942_v30 = vmul.f32 %v11353_v54, %v14233_v3  ;;  %v4888_v29 = vpop.xlane.xlu0 %4887 }
0x10e6   :  { %v11355_v41 = vpop.eup %11354  ;;  %v4904_v45 = vmul.f32 0.015625, %v4888_v29 }
0x10e7   :  { %v4960_v16 = vmul.f32 %v14288_v25, %v4942_v30  ;;  %v4943_v38 = vmul.f32 %v11355_v41, %v14237_v35  ;;  %v4891_v27 = vpop.xlane.xlu1 %4890  ;;  %10264 = vmatmul.mubr.msk.bf16.gmra.mrb[20].mxu1 %vm1357_vm6, %v14365_v58  ;;  %10300 = vmatmul.mubr.msk.bf16.gmra.mrb[24].mxu0 %vm1357_vm6, %v14365_v58 }
0x10e8   :  { %v4918_v44 = vadd.f32 1e-05, %v4904_v45  ;;  %v4905_v49 = vmul.f32 0.015625, %v4891_v27  ;;  %10267 = vmatprep.mubr.msk.bf16.mxu1 %vm11613_vm4, %v16353_v52  ;;  %10303 = vmatprep.mubr.msk.bf16.mxu0 %vm11613_vm4, %v16353_v52 }
0x10e9   :  { %v4961_v3 = vmul.f32 %v14288_v25, %v4943_v38  ;;  %v4978_v35 = vadd.f32 %v14296_v10, %v4960_v16 }
0x10ea   :  { %11360 = vrsqrt.f32 %v4918_v44  ;;  %v4919_v9 = vadd.f32 1e-05, %v4905_v49 }
0x10eb   :  { %v4979_v32 = vadd.f32 %v14296_v10, %v4961_v3 }
0x10ec   :  { %v11357_v48 = vpop.eup %11356  ;;  %11362 = vrsqrt.f32 %v4919_v9 }
0x10ed   :  { %v14381_v53 = vpack.c.bf16 %v4979_v32, %v4978_v35  ;;  %v4944_v39 = vmul.f32 %v11357_v48, %v14253_v42 }
0x10ee   :  { %v11359_v55 = vpop.eup %11358 }
0x10ef   :  { %v4962_v11 = vmul.f32 %v14288_v25, %v4944_v39  ;;  %v4945_v7 = vmul.f32 %v11359_v55, %v14257_v22  ;;  %10268 = vmatmul.mubr.msk.bf16.gmra.mrb[24].mxu1 %vm1357_vm6, %v14381_v53  ;;  %10304 = vmatmul.mubr.msk.bf16.gmra.mrb[28].mxu0 %vm1357_vm6, %v14381_v53 }
0x10f0   :  { %10271 = vmatprep.mubr.msk.bf16.mxu1 %vm11613_vm4, %v16353_v52  ;;  %10307 = vmatprep.mubr.msk.bf16.mxu0 %vm11613_vm4, %v16353_v52 }
0x10f1   :  { %v4963_v14 = vmul.f32 %v14288_v25, %v4945_v7  ;;  %v4980_v42 = vadd.f32 %v14296_v10, %v4962_v11 }
0x10f3   :  { %v4981_v46 = vadd.f32 %v14296_v10, %v4963_v14 }
0x10f4   :  { %v11361_v34 = vpop.eup %11360 }
0x10f5   :  { %v14397_v22 = vpack.c.bf16 %v4981_v46, %v4980_v42  ;;  %v4946_v63 = vmul.f32 %v11361_v34, %v14274_v61 }
0x10f6   :  { %v11363_v43 = vpop.eup %11362 }
0x10f7   :  { %v4964_v28 = vmul.f32 %v14288_v25, %v4946_v63  ;;  %v4947_v47 = vmul.f32 %v11363_v43, %v14277_v19  ;;  %10272 = vmatmul.mubr.msk.bf16.gmra.mrb[28].mxu1 %vm1357_vm6, %v14397_v22  ;;  %10308 = vmatmul.mubr.msk.bf16.gmra.mrb[32].mxu0 %vm1357_vm6, %v14397_v22 }
0x10f8   :  { %10275 = vmatprep.mubr.msk.bf16.mxu1 %vm11613_vm4, %v16353_v52  ;;  %10311 = vmatprep.mubr.msk.bf16.mxu0 %vm11613_vm4, %v16353_v52 }
0x10f9   :  { %v4965_v13 = vmul.f32 %v14288_v25, %v4947_v47  ;;  %v4982_v61 = vadd.f32 %v14296_v10, %v4964_v28 }
0x10fb   :  { %v4983_v4 = vadd.f32 %v14296_v10, %v4965_v13 }
0x10fd   :  { %v14413_v18 = vpack.c.bf16 %v4983_v4, %v4982_v61 }
0x10ff   :  { %10276 = vmatmul.mubr.msk.bf16.gmra.mrb[32].mxu1 %vm1357_vm6, %v14413_v18  ;;  %10312 = vmatmul.mubr.msk.bf16.gmra.mrb[36].mxu0 %vm1357_vm6, %v14413_v18 }
0x1100   :  { %10323 = vmatprep.mubr.msk.bf16.mxu1 %vm11613_vm4, %v16353_v52  ;;  %10365 = vmatprep.mubr.msk.bf16.mxu0 %vm11613_vm4, %v16353_v52 }
0x1107   :  { %10324 = vmatmul.mubr.msk.bf16.vlgmr.msra.gmra.mrb[36].mxu1 %vm1357_vm6, %v14301_v60 }
0x1108   :  { %10327 = vmatprep.mubr.msk.bf16.mxu1 %vm11613_vm4, %v16353_v52 }
0x110f   :  { %10328 = vmatmul.mubr.msk.bf16.gmra.mrb[40].mxu1 %vm1357_vm6, %v14328_v0 }
0x1110   :  { %10331 = vmatprep.mubr.msk.bf16.mxu1 %vm11613_vm4, %v16353_v52 }
0x1117   :  { %10332 = vmatmul.mubr.msk.bf16.gmra.mrb[44].mxu1 %vm1357_vm6, %v14349_v37 }
0x1118   :  { %10335 = vmatprep.mubr.msk.bf16.mxu1 %vm11613_vm4, %v16353_v52 }
0x111f   :  { %10336 = vmatmul.mubr.msk.bf16.gmra.mrb[48].mxu1 %vm1357_vm6, %v14365_v58 }
0x1120   :  { %10339 = vmatprep.mubr.msk.bf16.mxu1 %vm11613_vm4, %v16353_v52 }
0x1127   :  { %10340 = vmatmul.mubr.msk.bf16.gmra.mrb[52].mxu1 %vm1357_vm6, %v14381_v53 }
0x1128   :  { %10343 = vmatprep.mubr.msk.bf16.mxu1 %vm11613_vm4, %v16353_v52 }
0x112f   :  { %10344 = vmatmul.mubr.msk.bf16.gmra.mrb[56].mxu1 %vm1357_vm6, %v14397_v22 }
0x1130   :  { %10347 = vmatprep.mubr.msk.bf16.mxu1 %vm11613_vm4, %v16353_v52 }
0x1137   :  { %10348 = vmatmul.mubr.msk.bf16.gmra.mrb[60].mxu1 %vm1357_vm6, %v14413_v18 }
0x1138   :  { %10407 = vmatprep.mubr.msk.bf16.mxu1 %vm11613_vm4, %v16353_v52 }
0x1198   :  { %v14451_v19 = vpop.f32.mrb[8].mxu1  ;;  %v5199_v25 = vpop.f32.mrb[12].mxu0 }
0x1199   :  { %v10253_v10 = vpop.f32.mrb[9].mxu1  ;;  %v10289_v8 = vpop.f32.mrb[13].mxu0 }
0x119a   :  { %v14453_v33 = vpop.f32.mrb[10].mxu1  ;;  %v5202_v23 = vpop.f32.mrb[14].mxu0 }
0x119b   :  { %v5375_v1 = vpack.c.bf16 %v14453_v33, %v14451_v19  ;;  %v5382_v40 = vpack.c.bf16 %v5202_v23, %v5199_v25  ;;  %v10254_v57 = vpop.f32.mrb[11].mxu1  ;;  %v10290_v2 = vpop.f32.mrb[15].mxu0  ;;  %v11038_v33 = vld [vmem:[%s16298_s6 + $0x238] sm:$0xff]  }
0x119d   :  { %v5411_v20 = vsel %vm1413_vm5, %v5382_v40, 0 }
0x119e   :  { %10352 = vmatpush3.bf16.xpose.msra.mxu0 %v5411_v20 }
0x119f   :  { %10353 = vmatprep.subr.bf16.mxu0 %v16353_v52 }
0x11a3   :  { %v14459_v12 = vpop.f32.mrb[12].mxu1 }
0x11a4   :  { %v5207_v54 = vpop.f32.mrb[16].mxu0  ;;  %v10257_v30 = vpop.f32.mrb[13].mxu1 }
0x11a5   :  { %v10293_v29 = vpop.f32.mrb[17].mxu0  ;;  %v14461_v41 = vpop.f32.mrb[14].mxu1 }
0x11a6   :  { %v5210_v45 = vpop.f32.mrb[18].mxu0  ;;  %v5376_v16 = vpack.c.bf16 %v14461_v41, %v14459_v12  ;;  %v10258_v27 = vpop.f32.mrb[15].mxu1 }
0x11a7   :  { %v5383_v38 = vpack.c.bf16 %v5210_v45, %v5207_v54  ;;  %v10294_v44 = vpop.f32.mrb[19].mxu0 }
0x11a9   :  { %v5414_v49 = vsel %vm1413_vm5, %v5383_v38, 0 }
0x11aa   :  { %10354 = vmatpush3.bf16.xpose.msra.mxu0 %v5414_v49 }
0x11ab   :  { %10355 = vmatprep.subr.bf16.mxu0 %v16353_v52 }
0x11b2   :  { %v14467_v3 = vpop.f32.mrb[16].mxu1  ;;  %v5215_v9 = vpop.f32.mrb[20].mxu0 }
0x11b3   :  { %v10261_v35 = vpop.f32.mrb[17].mxu1  ;;  %v10297_v32 = vpop.f32.mrb[21].mxu0 }
0x11b4   :  { %v14469_v48 = vpop.f32.mrb[18].mxu1  ;;  %v5218_v39 = vpop.f32.mrb[22].mxu0 }
0x11b5   :  { %v5377_v55 = vpack.c.bf16 %v14469_v48, %v14467_v3  ;;  %v5384_v11 = vpack.c.bf16 %v5218_v39, %v5215_v9  ;;  %v10262_v7 = vpop.f32.mrb[19].mxu1  ;;  %v10298_v14 = vpop.f32.mrb[23].mxu0 }
0x11b7   :  { %v5417_v42 = vsel %vm1413_vm5, %v5384_v11, 0 }
0x11b8   :  { %10356 = vmatpush3.bf16.xpose.msra.mxu0 %v5417_v42 }
0x11b9   :  { %10357 = vmatprep.subr.bf16.mxu0 %v16353_v52 }
0x11ba   :  { %v14475_v46 = vpop.f32.mrb[20].mxu1  ;;  %v5223_v34 = vpop.f32.mrb[24].mxu0 }
0x11bb   :  { %v10265_v63 = vpop.f32.mrb[21].mxu1  ;;  %v10301_v43 = vpop.f32.mrb[25].mxu0 }
0x11bc   :  { %v14477_v28 = vpop.f32.mrb[22].mxu1  ;;  %v5226_v47 = vpop.f32.mrb[26].mxu0 }
0x11bd   :  { %v5378_v13 = vpack.c.bf16 %v14477_v28, %v14475_v46  ;;  %v5385_v61 = vpack.c.bf16 %v5226_v47, %v5223_v34  ;;  %v10266_v4 = vpop.f32.mrb[23].mxu1  ;;  %v10302_v25 = vpop.f32.mrb[27].mxu0 }
0x11bf   :  { %v5420_v10 = vsel %vm1413_vm5, %v5385_v61, 0 }
0x11c0   :  { %10358 = vmatpush3.bf16.xpose.msra.mxu0 %v5420_v10 }
0x11c1   :  { %10359 = vmatprep.subr.bf16.mxu0 %v16353_v52 }
0x11c2   :  { %v14483_v8 = vpop.f32.mrb[24].mxu1  ;;  %v5231_v23 = vpop.f32.mrb[28].mxu0 }
0x11c3   :  { %v10269_v40 = vpop.f32.mrb[25].mxu1  ;;  %v10305_v57 = vpop.f32.mrb[29].mxu0 }
0x11c4   :  { %v14485_v2 = vpop.f32.mrb[26].mxu1  ;;  %v5234_v20 = vpop.f32.mrb[30].mxu0 }
0x11c5   :  { %v5379_v54 = vpack.c.bf16 %v14485_v2, %v14483_v8  ;;  %v5386_v30 = vpack.c.bf16 %v5234_v20, %v5231_v23  ;;  %v10270_v29 = vpop.f32.mrb[27].mxu1  ;;  %v10306_v45 = vpop.f32.mrb[31].mxu0 }
0x11c7   :  { %v5423_v38 = vsel %vm1413_vm5, %v5386_v30, 0 }
0x11c8   :  { %10360 = vmatpush3.bf16.xpose.msra.mxu0 %v5423_v38 }
0x11c9   :  { %10361 = vmatprep.subr.bf16.mxu0 %v16353_v52 }
0x11ca   :  { %v14491_v27 = vpop.f32.mrb[28].mxu1  ;;  %v5239_v44 = vpop.f32.mrb[32].mxu0 }
0x11cb   :  { %v10273_v49 = vpop.f32.mrb[29].mxu1  ;;  %v10309_v9 = vpop.f32.mrb[33].mxu0 }
0x11cc   :  { %v14493_v35 = vpop.f32.mrb[30].mxu1  ;;  %v5242_v32 = vpop.f32.mrb[34].mxu0  ;;  %v11037_v49 = vld [vmem:[%s16298_s6 + $0x230] sm:$0xff]  }
0x11cd   :  { %v5380_v39 = vpack.c.bf16 %v14493_v35, %v14491_v27  ;;  %v5387_v11 = vpack.c.bf16 %v5242_v32, %v5239_v44  ;;  %v10274_v7 = vpop.f32.mrb[31].mxu1  ;;  %v10310_v14 = vpop.f32.mrb[35].mxu0  ;;  %v11036_v44 = vld [vmem:[%s16298_s6 + $0x228] sm:$0xff]   ;;  %v11041_v35 = vld [vmem:[%s16298_s6 + $0x270] sm:$0xff]  }
0x11ce   :  { %v11040_v27 = vld [vmem:[%s16298_s6 + $0x268] sm:$0xff]  }
0x11cf   :  { %v5426_v42 = vsel %vm1413_vm5, %v5387_v11, 0 }
0x11d0   :  { %10362 = vmatpush3.bf16.xpose.msra.mxu0 %v5426_v42 }
0x11d1   :  { %10363 = vmatprep.subr.bf16.mxu0 %v16353_v52 }
0x11d2   :  { %v14499_v34 = vpop.f32.mrb[32].mxu1  ;;  %v5247_v63 = vpop.f32.mrb[36].mxu0 }
0x11d3   :  { %v10277_v43 = vpop.f32.mrb[33].mxu1  ;;  %v10313_v47 = vpop.f32.mrb[37].mxu0 }
0x11d4   :  { %v14501_v61 = vpop.f32.mrb[34].mxu1  ;;  %v5250_v4 = vpop.f32.mrb[38].mxu0 }
0x11d5   :  { %v5381_v25 = vpack.c.bf16 %v14501_v61, %v14499_v34  ;;  %v5388_v10 = vpack.c.bf16 %v5250_v4, %v5247_v63  ;;  %v10278_v23 = vpop.f32.mrb[35].mxu1  ;;  %v10314_v40 = vpop.f32.mrb[39].mxu0  ;;  %v11043_v34 = vld [vmem:[%s16298_s6 + $0x280] sm:$0xff]  }
0x11d7   :  { %v5429_v57 = vsel %vm1413_vm5, %v5388_v10, 0 }
0x11d8   :  { %10364 = vmatpush3.bf16.xpose.msra.mxu0 %v5429_v57 }
0x11d9   :  { %10435 = vmatprep.subr.bf16.mxu0 %v16353_v52 }
0x11da   :  { %v5320_v20 = vpop.f32.mrb[36].mxu1 }
0x11db   :  { %v10325_v30 = vpop.f32.mrb[37].mxu1 }
0x11dc   :  { %v5323_v29 = vpop.f32.mrb[38].mxu1 }
0x11dd   :  { %v5681_v45 = vpack.c.bf16 %v5323_v29, %v5320_v20  ;;  %v10326_v38 = vpop.f32.mrb[39].mxu1 }
0x11df   :  { %10366 = vmatmul.mubr.msk.bf16.vlgmr.msra.gmra.mrb[40].mxu0 %vm1413_vm5, %v5375_v1  ;;  %10394 = vmatpush3.bf16.msra.mxu1 %v5681_v45  ;;  %v11039_v1 = vld [vmem:[%s16298_s6 + $0x240] sm:$0xff]  }
0x11e0   :  { %10369 = vmatprep.mubr.msk.bf16.mxu0 %vm11613_vm4, %v16353_v52  ;;  %10395 = vmatprep.subr.bf16.mxu1 %v16353_v52 }
0x11e1   :  { %10436 = vmatpush3.bf16.msra.mxu0 %v11036_v44 }
0x11e2   :  { %v5328_v9 = vpop.f32.mrb[40].mxu1  ;;  %10437 = vmatprep.subr.bf16.mxu0 %v16353_v52 }
0x11e3   :  { %v10329_v32 = vpop.f32.mrb[41].mxu1 }
0x11e4   :  { %v5331_v11 = vpop.f32.mrb[42].mxu1 }
0x11e5   :  { %v5682_v7 = vpack.c.bf16 %v5331_v11, %v5328_v9  ;;  %v10330_v19 = vpop.f32.mrb[43].mxu1  ;;  %10438 = vmatpush3.bf16.msra.mxu0 %v11037_v49  ;;  %v14655_v49 = vld [vmem:[%s16296_s4 + $0x8] sm:$0xff] }
0x11e6   :  { %10439 = vmatprep.subr.bf16.mxu0 %v16353_v52 }
0x11e7   :  { %10370 = vmatmul.mubr.msk.bf16.gmra.mrb[44].mxu0 %vm1413_vm5, %v5376_v16  ;;  %10396 = vmatpush3.bf16.msra.mxu1 %v5682_v7 }
0x11e8   :  { %10373 = vmatprep.mubr.msk.bf16.mxu0 %vm11613_vm4, %v16353_v52  ;;  %10397 = vmatprep.subr.bf16.mxu1 %v16353_v52 }
0x11e9   :  { %10440 = vmatpush3.bf16.msra.mxu0 %v11038_v33  ;;  %v14667_v33 = vld [vmem:[%s16296_s4 + $0x10] sm:$0xff] }
0x11ea   :  { %v5336_v14 = vpop.f32.mrb[44].mxu1  ;;  %10441 = vmatprep.subr.bf16.mxu0 %v16353_v52 }
0x11eb   :  { %v10333_v42 = vpop.f32.mrb[45].mxu1 }
0x11ec   :  { %v5339_v63 = vpop.f32.mrb[46].mxu1 }
0x11ed   :  { %v5683_v43 = vpack.c.bf16 %v5339_v63, %v5336_v14  ;;  %v10334_v12 = vpop.f32.mrb[47].mxu1  ;;  %10442 = vmatpush3.bf16.msra.mxu0 %v11039_v1  ;;  %v14675_v63 = vld [vmem:[%s16296_s4 + $0x18] sm:$0xff] }
0x11ee   :  { %10507 = vmatprep.subr.bf16.mxu0 %v16353_v52 }
0x11ef   :  { %10374 = vmatmul.mubr.msk.bf16.gmra.mrb[48].mxu0 %vm1413_vm5, %v5377_v55  ;;  %10398 = vmatpush3.bf16.msra.mxu1 %v5683_v43 }
0x11f0   :  { %10377 = vmatprep.mubr.msk.bf16.mxu0 %vm11613_vm4, %v16353_v52  ;;  %10399 = vmatprep.subr.bf16.mxu1 %v16353_v52 }
0x11f2   :  { %v5344_v41 = vpop.f32.mrb[48].mxu1 }
0x11f3   :  { %v10337_v16 = vpop.f32.mrb[49].mxu1 }
0x11f4   :  { %v5347_v47 = vpop.f32.mrb[50].mxu1 }
0x11f5   :  { %v5684_v4 = vpack.c.bf16 %v5347_v47, %v5344_v41  ;;  %v10338_v10 = vpop.f32.mrb[51].mxu1 }
0x11f7   :  { %10378 = vmatmul.mubr.msk.bf16.gmra.mrb[52].mxu0 %vm1413_vm5, %v5378_v13  ;;  %10400 = vmatpush3.bf16.msra.mxu1 %v5684_v4  ;;  %v14687_v4 = vld [vmem:[%s16296_s4 + $0x20] sm:$0xff] }
0x11f8   :  { %10381 = vmatprep.mubr.msk.bf16.mxu0 %vm11613_vm4, %v16353_v52  ;;  %10401 = vmatprep.subr.bf16.mxu1 %v16353_v52 }
0x11fa   :  { %v5352_v3 = vpop.f32.mrb[52].mxu1 }
0x11fb   :  { %v10341_v48 = vpop.f32.mrb[53].mxu1 }
0x11fc   :  { %v5355_v55 = vpop.f32.mrb[54].mxu1 }
0x11fd   :  { %v5685_v23 = vpack.c.bf16 %v5355_v55, %v5352_v3  ;;  %v10342_v40 = vpop.f32.mrb[55].mxu1  ;;  %v14695_v55 = vld [vmem:[%s16296_s4 + $0x28] sm:$0xff] }
0x11ff   :  { %10382 = vmatmul.mubr.msk.bf16.gmra.mrb[56].mxu0 %vm1413_vm5, %v5379_v54  ;;  %10402 = vmatpush3.bf16.msra.mxu1 %v5685_v23 }
0x1200   :  { %10385 = vmatprep.mubr.msk.bf16.mxu0 %vm11613_vm4, %v16353_v52  ;;  %10403 = vmatprep.subr.bf16.mxu1 %v16353_v52 }
0x1202   :  { %v5360_v46 = vpop.f32.mrb[56].mxu1 }
0x1203   :  { %v10345_v28 = vpop.f32.mrb[57].mxu1 }
0x1204   :  { %v5363_v13 = vpop.f32.mrb[58].mxu1 }
0x1205   :  { %v5686_v57 = vpack.c.bf16 %v5363_v13, %v5360_v46  ;;  %v10346_v20 = vpop.f32.mrb[59].mxu1 }
0x1207   :  { %10386 = vmatmul.mubr.msk.bf16.gmra.mrb[60].mxu0 %vm1413_vm5, %v5380_v39  ;;  %10404 = vmatpush3.bf16.msra.mxu1 %v5686_v57  ;;  %v11042_v39 = vld [vmem:[%s16298_s6 + $0x278] sm:$0xff]   ;;  %v14707_v57 = vld [vmem:[%s16296_s4 + $0x30] sm:$0xff] }
0x1208   :  { %10389 = vmatprep.mubr.msk.bf16.mxu0 %vm11613_vm4, %v16353_v52  ;;  %10405 = vmatprep.subr.bf16.mxu1 %v16353_v52 }
0x120a   :  { %v5368_v8 = vpop.f32.mrb[60].mxu1 }
0x120b   :  { %v10349_v2 = vpop.f32.mrb[61].mxu1 }
0x120c   :  { %v5371_v54 = vpop.f32.mrb[62].mxu1 }
0x120d   :  { %v5687_v30 = vpack.c.bf16 %v5371_v54, %v5368_v8  ;;  %v10350_v29 = vpop.f32.mrb[63].mxu1  ;;  %v14715_v54 = vld [vmem:[%s16296_s4 + $0x38] sm:$0xff] }
0x120f   :  { %10390 = vmatmul.mubr.msk.bf16.gmra.mrb[64].mxu0 %vm1413_vm5, %v5381_v25  ;;  %10406 = vmatpush3.bf16.msra.mxu1 %v5687_v30  ;;  %v14647_v25 = vld [vmem:[%s16296_s4] sm:$0xff] }
0x1210   :  { %10443 = vmatprep.mubr.msk.bf16.mxu0 %vm11613_vm4, %v16353_v52  ;;  %10471 = vmatprep.subr.bf16.mxu1 %v16353_v52 }
0x1217   :  { %10444 = vmatmul.mubr.msk.bf16.vlgmr.msra.gmra.mrb[68].mxu0 %vm1357_vm6, %v14301_v60 }
0x1218   :  { %10447 = vmatprep.mubr.msk.bf16.mxu0 %vm11613_vm4, %v16353_v52  ;;  %10508 = vmatpush3.bf16.msra.mxu0 %v11040_v27 }
0x1219   :  { %10509 = vmatprep.subr.bf16.mxu0 %v16353_v52 }
0x121c   :  { %10510 = vmatpush3.bf16.msra.mxu0 %v11041_v35 }
0x121d   :  { %10511 = vmatprep.subr.bf16.mxu0 %v16353_v52 }
0x121f   :  { %10448 = vmatmul.mubr.msk.bf16.gmra.mrb[72].mxu0 %vm1357_vm6, %v14328_v0 }
0x1220   :  { %10451 = vmatprep.mubr.msk.bf16.mxu0 %vm11613_vm4, %v16353_v52  ;;  %10512 = vmatpush3.bf16.msra.mxu0 %v11042_v39 }
0x1221   :  { %10513 = vmatprep.subr.bf16.mxu0 %v16353_v52 }
0x1224   :  { %10514 = vmatpush3.bf16.msra.mxu0 %v11043_v34  ;;  %v14727_v34 = vld [vmem:[%s16296_s4 + $0x40] sm:$0xff] }
0x1225   :  { %10585 = vmatprep.subr.bf16.mxu0 %v16353_v52 }
0x1227   :  { %10452 = vmatmul.mubr.msk.bf16.gmra.mrb[76].mxu0 %vm1357_vm6, %v14349_v37 }
0x1228   :  { %10455 = vmatprep.mubr.msk.bf16.mxu0 %vm11613_vm4, %v16353_v52 }
0x122f   :  { %10456 = vmatmul.mubr.msk.bf16.gmra.mrb[80].mxu0 %vm1357_vm6, %v14365_v58 }
0x1230   :  { %10459 = vmatprep.mubr.msk.bf16.mxu0 %vm11613_vm4, %v16353_v52 }
0x1237   :  { %10460 = vmatmul.mubr.msk.bf16.gmra.mrb[84].mxu0 %vm1357_vm6, %v14381_v53 }
0x1238   :  { %10463 = vmatprep.mubr.msk.bf16.mxu0 %vm11613_vm4, %v16353_v52 }
0x123f   :  { %10464 = vmatmul.mubr.msk.bf16.gmra.mrb[88].mxu0 %vm1357_vm6, %v14397_v22 }
0x1240   :  { %10467 = vmatprep.mubr.msk.bf16.mxu0 %vm11613_vm4, %v16353_v52 }
0x1247   :  { %10468 = vmatmul.mubr.msk.bf16.gmra.mrb[92].mxu0 %vm1357_vm6, %v14413_v18 }
0x1248   :  { %10515 = vmatprep.mubr.msk.bf16.mxu0 %vm11613_vm4, %v16353_v52 }
0x124f   :  { %10516 = vmatmul.mubr.msk.bf16.vlgmr.msra.gmra.mrb[96].mxu0 %vm1357_vm6, %v14301_v60 }
0x1250   :  { %10519 = vmatprep.mubr.msk.bf16.mxu0 %vm11613_vm4, %v16353_v52 }
0x1257   :  { %10520 = vmatmul.mubr.msk.bf16.gmra.mrb[100].mxu0 %vm1357_vm6, %v14328_v0 }
0x1258   :  { %10523 = vmatprep.mubr.msk.bf16.mxu0 %vm11613_vm4, %v16353_v52 }
0x125f   :  { %10524 = vmatmul.mubr.msk.bf16.gmra.mrb[104].mxu0 %vm1357_vm6, %v14349_v37 }
0x1260   :  { %10527 = vmatprep.mubr.msk.bf16.mxu0 %vm11613_vm4, %v16353_v52 }
0x1267   :  { %10528 = vmatmul.mubr.msk.bf16.gmra.mrb[108].mxu0 %vm1357_vm6, %v14365_v58 }
0x1268   :  { %10531 = vmatprep.mubr.msk.bf16.mxu0 %vm11613_vm4, %v16353_v52 }
0x126f   :  { %10532 = vmatmul.mubr.msk.bf16.gmra.mrb[112].mxu0 %vm1357_vm6, %v14381_v53 }
0x1270   :  { %10535 = vmatprep.mubr.msk.bf16.mxu0 %vm11613_vm4, %v16353_v52 }
0x1277   :  { %10536 = vmatmul.mubr.msk.bf16.gmra.mrb[116].mxu0 %vm1357_vm6, %v14397_v22 }
0x1278   :  { %10539 = vmatprep.mubr.msk.bf16.mxu0 %vm11613_vm4, %v16353_v52 }
0x127f   :  { %10540 = vmatmul.mubr.msk.bf16.gmra.mrb[120].mxu0 %vm1357_vm6, %v14413_v18 }
0x1280   :  { %10599 = vmatprep.mubr.msk.bf16.mxu0 %vm11613_vm4, %v16353_v52 }
0x12b2   :  { %v5465_v61 = vpop.f32.mrb[40].mxu0 }
0x12b3   :  { %v14650_v45 = vadd.f32 %v14647_v25, %v5465_v61  ;;  %v10367_v38 = vpop.f32.mrb[41].mxu0 }
0x12b4   :  { %v5468_v44 = vpop.f32.mrb[42].mxu0 }
0x12b5   :  { %v14658_v9 = vadd.f32 %v14655_v49, %v5468_v44  ;;  %v10368_v32 = vpop.f32.mrb[43].mxu0  ;;  %v5520_v11 = vsel %vm2472_vm7, %v14650_v45, -inf }
0x12b6   :  { %5521 = vmax.xlane.f32.xlu0 %v5520_v11  ;;  %v14735_v32 = vld [vmem:[%s16296_s4 + $0x48] sm:$0xff] }
0x12b7   :  { %v5523_v7 = vsel %vm2472_vm7, %v14658_v9, -inf }
0x12b8   :  { %5524 = vmax.xlane.f32.xlu1 %v5523_v7 }
0x12ba   :  { %v5473_v19 = vpop.f32.mrb[44].mxu0 }
0x12bb   :  { %v14670_v1 = vadd.f32 %v14667_v33, %v5473_v19  ;;  %v10371_v14 = vpop.f32.mrb[45].mxu0 }
0x12bc   :  { %v5476_v42 = vpop.f32.mrb[46].mxu0 }
0x12bd   :  { %v14678_v43 = vadd.f32 %v14675_v63, %v5476_v42  ;;  %v10372_v12 = vpop.f32.mrb[47].mxu0  ;;  %v5526_v41 = vsel %vm2472_vm7, %v14670_v1, -inf }
0x12be   :  { %5527 = vmax.xlane.f32.xlu0 %v5526_v41  ;;  %v14747_v12 = vld [vmem:[%s16296_s4 + $0x50] sm:$0xff] }
0x12bf   :  { %v5529_v16 = vsel %vm2472_vm7, %v14678_v43, -inf }
0x12c0   :  { %5530 = vmax.xlane.f32.xlu1 %v5529_v16 }
0x12c2   :  { %v5481_v47 = vpop.f32.mrb[48].mxu0 }
0x12c3   :  { %v14690_v10 = vadd.f32 %v14687_v4, %v5481_v47  ;;  %v10375_v3 = vpop.f32.mrb[49].mxu0 }
0x12c4   :  { %v5484_v48 = vpop.f32.mrb[50].mxu0  ;;  %v14755_v3 = vld [vmem:[%s16296_s4 + $0x58] sm:$0xff] }
0x12c5   :  { %v14698_v23 = vadd.f32 %v14695_v55, %v5484_v48  ;;  %v10376_v40 = vpop.f32.mrb[51].mxu0  ;;  %v5532_v46 = vsel %vm2472_vm7, %v14690_v10, -inf }
0x12c6   :  { %5533 = vmax.xlane.f32.xlu0 %v5532_v46 }
0x12c7   :  { %v5535_v28 = vsel %vm2472_vm7, %v14698_v23, -inf }
0x12c8   :  { %5536 = vmax.xlane.f32.xlu1 %v5535_v28 }
0x12ca   :  { %v5489_v13 = vpop.f32.mrb[52].mxu0 }
0x12cb   :  { %v14710_v20 = vadd.f32 %v14707_v57, %v5489_v13  ;;  %v10379_v8 = vpop.f32.mrb[53].mxu0 }
0x12cc   :  { %v5492_v2 = vpop.f32.mrb[54].mxu0  ;;  %v14767_v8 = vld [vmem:[%s16296_s4 + $0x60] sm:$0xff] }
0x12cd   :  { %v14718_v30 = vadd.f32 %v14715_v54, %v5492_v2  ;;  %v10380_v29 = vpop.f32.mrb[55].mxu0  ;;  %v5538_v27 = vsel %vm2472_vm7, %v14710_v20, -inf }
0x12ce   :  { %5539 = vmax.xlane.f32.xlu0 %v5538_v27 }
0x12cf   :  { %v5541_v35 = vsel %vm2472_vm7, %v14718_v30, -inf }
0x12d0   :  { %5542 = vmax.xlane.f32.xlu1 %v5541_v35  ;;  %v14775_v35 = vld [vmem:[%s16296_s4 + $0x68] sm:$0xff] }
0x12d1   :  { %16370 = vst [vmem:[#allocation22_spill] sm:$0xff] %v14775_v35 }
0x12d2   :  { %v5497_v39 = vpop.f32.mrb[56].mxu0 }
0x12d3   :  { %v14730_v61 = vadd.f32 %v14727_v34, %v5497_v39  ;;  %v10383_v38 = vpop.f32.mrb[57].mxu0 }
0x12d4   :  { %v5500_v44 = vpop.f32.mrb[58].mxu0 }
0x12d5   :  { %v14738_v11 = vadd.f32 %v14735_v32, %v5500_v44  ;;  %v10384_v7 = vpop.f32.mrb[59].mxu0  ;;  %v5544_v19 = vsel %vm2472_vm7, %v14730_v61, -inf }
0x12d6   :  { %5545 = vmax.xlane.f32.xlu0 %v5544_v19 }
0x12d7   :  { %v5547_v14 = vsel %vm2472_vm7, %v14738_v11, -inf }
0x12d8   :  { %5548 = vmax.xlane.f32.xlu1 %v5547_v14 }
0x12da   :  { %v5505_v42 = vpop.f32.mrb[60].mxu0 }
0x12db   :  { %v14750_v41 = vadd.f32 %v14747_v12, %v5505_v42  ;;  %v10387_v16 = vpop.f32.mrb[61].mxu0 }
0x12dc   :  { %v5508_v47 = vpop.f32.mrb[62].mxu0 }
0x12dd   :  { %v14758_v48 = vadd.f32 %v14755_v3, %v5508_v47  ;;  %v10388_v40 = vpop.f32.mrb[63].mxu0  ;;  %v5550_v46 = vsel %vm2472_vm7, %v14750_v41, -inf }
0x12de   :  { %5551 = vmax.xlane.f32.xlu0 %v5550_v46 }
0x12df   :  { %v5553_v28 = vsel %vm2472_vm7, %v14758_v48, -inf }
0x12e0   :  { %5554 = vmax.xlane.f32.xlu1 %v5553_v28 }
0x12e2   :  { %v5513_v13 = vpop.f32.mrb[64].mxu0 }
0x12e3   :  { %v14770_v2 = vadd.f32 %v14767_v8, %v5513_v13  ;;  %v10391_v29 = vpop.f32.mrb[65].mxu0 }
0x12e4   :  { %v5516_v27 = vpop.f32.mrb[66].mxu0 }
0x12e5   :  { %v14778_v39 = vadd.f32 %v14775_v35, %v5516_v27  ;;  %v10392_v38 = vpop.f32.mrb[67].mxu0  ;;  %v5556_v44 = vsel %vm2472_vm7, %v14770_v2, -inf }
0x12e6   :  { %5557 = vmax.xlane.f32.xlu0 %v5556_v44 }
0x12e7   :  { %v5559_v7 = vsel %vm2472_vm7, %v14778_v39, -inf }
0x12e8   :  { %5560 = vmax.xlane.f32.xlu1 %v5559_v7 }
0x12ea   :  { %v14784_v19 = vpop.f32.mrb[68].mxu0 }
0x12eb   :  { %v10445_v14 = vpop.f32.mrb[69].mxu0 }
0x12ec   :  { %v14786_v42 = vpop.f32.mrb[70].mxu0 }
0x12ed   :  { %v10446_v47 = vpop.f32.mrb[71].mxu0 }
0x12f2   :  { %v14790_v40 = vpop.f32.mrb[72].mxu0 }
0x12f3   :  { %v10449_v46 = vpop.f32.mrb[73].mxu0 }
0x12f4   :  { %v14792_v28 = vpop.f32.mrb[74].mxu0 }
0x12f5   :  { %v10450_v29 = vpop.f32.mrb[75].mxu0 }
0x12fa   :  { %v14796_v27 = vpop.f32.mrb[76].mxu0 }
0x12fb   :  { %v10453_v38 = vpop.f32.mrb[77].mxu0 }
0x12fc   :  { %v14798_v44 = vpop.f32.mrb[78].mxu0 }
0x12fd   :  { %v10454_v14 = vpop.f32.mrb[79].mxu0 }
0x1302   :  { %v14802_v16 = vpop.f32.mrb[80].mxu0 }
0x1303   :  { %v10457_v47 = vpop.f32.mrb[81].mxu0 }
0x1304   :  { %v14804_v26 = vpop.f32.mrb[82].mxu0 }
0x1305   :  { %v10458_v5 = vpop.f32.mrb[83].mxu0 }
0x130a   :  { %v14808_v13 = vpop.f32.mrb[84].mxu0 }
0x130b   :  { %v10461_v29 = vpop.f32.mrb[85].mxu0 }
0x130c   :  { %v14810_v56 = vpop.f32.mrb[86].mxu0 }
0x130d   :  { %v10462_v31 = vpop.f32.mrb[87].mxu0 }
0x1312   :  { %v14814_v7 = vpop.f32.mrb[88].mxu0 }
0x1313   :  { %v10465_v14 = vpop.f32.mrb[89].mxu0 }
0x1314   :  { %v14816_v59 = vpop.f32.mrb[90].mxu0 }
0x1315   :  { %v10466_v62 = vpop.f32.mrb[91].mxu0 }
0x131a   :  { %v14820_v46 = vpop.f32.mrb[92].mxu0 }
0x131b   :  { %v10469_v5 = vpop.f32.mrb[93].mxu0 }
0x131c   :  { %v14822_v21 = vpop.f32.mrb[94].mxu0 }
0x131d   :  { %v10470_v24 = vpop.f32.mrb[95].mxu0 }
0x1322   :  { %v6117_v38 = vpop.f32.mrb[96].mxu0 }
0x1323   :  { %v10517_v31 = vpop.f32.mrb[97].mxu0 }
0x1324   :  { %v6120_v50 = vpop.f32.mrb[98].mxu0 }
0x1325   :  { %v6478_v17 = vpack.c.bf16 %v6120_v50, %v6117_v38  ;;  %v10518_v14 = vpop.f32.mrb[99].mxu0 }
0x1327   :  { %10586 = vmatpush3.bf16.msra.mxu0 %v6478_v17 }
0x1328   :  { %10587 = vmatprep.subr.bf16.mxu0 %v16353_v52 }
0x132a   :  { %v6125_v6 = vpop.f32.mrb[100].mxu0 }
0x132b   :  { %v10521_v47 = vpop.f32.mrb[101].mxu0 }
0x132c   :  { %v6128_v62 = vpop.f32.mrb[102].mxu0 }
0x132d   :  { %v6479_v15 = vpack.c.bf16 %v6128_v62, %v6125_v6  ;;  %v10522_v36 = vpop.f32.mrb[103].mxu0 }
0x132f   :  { %10588 = vmatpush3.bf16.msra.mxu0 %v6479_v15 }
0x1330   :  { %10589 = vmatprep.subr.bf16.mxu0 %v16353_v52 }
0x1332   :  { %v6133_v5 = vpop.f32.mrb[104].mxu0 }
0x1333   :  { %v10525_v51 = vpop.f32.mrb[105].mxu0 }
0x1334   :  { %v6136_v29 = vpop.f32.mrb[106].mxu0 }
0x1335   :  { %v6480_v24 = vpack.c.bf16 %v6136_v29, %v6133_v5  ;;  %v10526_v35 = vpop.f32.mrb[107].mxu0 }
0x1337   :  { %10590 = vmatpush3.bf16.msra.mxu0 %v6480_v24 }
0x1338   :  { %10591 = vmatprep.subr.bf16.mxu0 %v16353_v52 }
0x133a   :  { %v6141_v50 = vpop.f32.mrb[108].mxu0 }
0x133b   :  { %v10529_v17 = vpop.f32.mrb[109].mxu0 }
0x133c   :  { %v6144_v38 = vpop.f32.mrb[110].mxu0 }
0x133d   :  { %v6481_v31 = vpack.c.bf16 %v6144_v38, %v6141_v50  ;;  %v10530_v14 = vpop.f32.mrb[111].mxu0 }
0x133f   :  { %10592 = vmatpush3.bf16.msra.mxu0 %v6481_v31 }
0x1340   :  { %10593 = vmatprep.subr.bf16.mxu0 %v16353_v52 }
0x1342   :  { %v6149_v36 = vpop.f32.mrb[112].mxu0 }
0x1343   :  { %v5522_v15 = vpop.xlane.xlu0 %5521  ;;  %v10533_v6 = vpop.f32.mrb[113].mxu0 }
0x1344   :  { %v5562_v47 = vsub.f32 %v14650_v45, %v5522_v15  ;;  %v6152_v51 = vpop.f32.mrb[114].mxu0 }
0x1345   :  { %v6482_v62 = vpack.c.bf16 %v6152_v51, %v6149_v36  ;;  %v5525_v29 = vpop.xlane.xlu1 %5524  ;;  %v10534_v35 = vpop.f32.mrb[115].mxu0 }
0x1346   :  { %v5576_v5 = vmul.f32 1.442695, %v5562_v47  ;;  %v5563_v24 = vsub.f32 %v14658_v9, %v5525_v29 }
0x1347   :  { %10594 = vmatpush3.bf16.msra.mxu0 %v6482_v62 }
0x1348   :  { %11364 = vpow2.f32 %v5576_v5  ;;  %v5578_v17 = vmul.f32 1.442695, %v5563_v24  ;;  %10595 = vmatprep.subr.bf16.mxu0 %v16353_v52 }
0x134a   :  { %11366 = vpow2.f32 %v5578_v17  ;;  %v6157_v50 = vpop.f32.mrb[116].mxu0 }
0x134b   :  { %v5528_v38 = vpop.xlane.xlu0 %5527  ;;  %v10537_v31 = vpop.f32.mrb[117].mxu0 }
0x134c   :  { %v5564_v14 = vsub.f32 %v14670_v1, %v5528_v38  ;;  %v6160_v6 = vpop.f32.mrb[118].mxu0 }
0x134d   :  { %v6483_v45 = vpack.c.bf16 %v6160_v6, %v6157_v50  ;;  %v5531_v15 = vpop.xlane.xlu1 %5530  ;;  %v10538_v36 = vpop.f32.mrb[119].mxu0 }
0x134e   :  { %v5580_v51 = vmul.f32 1.442695, %v5564_v14  ;;  %v5565_v47 = vsub.f32 %v14678_v43, %v5531_v15 }
0x134f   :  { %10596 = vmatpush3.bf16.msra.mxu0 %v6483_v45 }
0x1350   :  { %11368 = vpow2.f32 %v5580_v51  ;;  %v5582_v9 = vmul.f32 1.442695, %v5565_v47  ;;  %10597 = vmatprep.subr.bf16.mxu0 %v16353_v52 }
0x1352   :  { %v14836_v62 = vpop.eup %11364  ;;  %11370 = vpow2.f32 %v5582_v9  ;;  %v6165_v29 = vpop.f32.mrb[120].mxu0 }
0x1353   :  { %v5534_v35 = vpop.xlane.xlu0 %5533  ;;  %v10541_v5 = vpop.f32.mrb[121].mxu0  ;;  %v5604_v1 = vsel %vm2472_vm7, %v14836_v62, 0.0 }
0x1354   :  { %v14840_v24 = vpop.eup %11366  ;;  %v5566_v17 = vsub.f32 %v14690_v10, %v5534_v35  ;;  %5605 = vadd.xlane.f32.xlu0 %v5604_v1  ;;  %v6168_v43 = vpop.f32.mrb[122].mxu0 }
0x1355   :  { %v6484_v50 = vpack.c.bf16 %v6168_v43, %v6165_v29  ;;  %v5537_v38 = vpop.xlane.xlu1 %5536  ;;  %v10542_v31 = vpop.f32.mrb[123].mxu0  ;;  %v5607_v14 = vsel %vm2472_vm7, %v14840_v24, 0.0 }
0x1356   :  { %v5584_v6 = vmul.f32 1.442695, %v5566_v17  ;;  %v5567_v45 = vsub.f32 %v14698_v23, %v5537_v38  ;;  %5608 = vadd.xlane.f32.xlu1 %v5607_v14 }
0x1357   :  { %10598 = vmatpush3.bf16.msra.mxu0 %v6484_v50 }
0x1358   :  { %11372 = vpow2.f32 %v5584_v6  ;;  %v5586_v15 = vmul.f32 1.442695, %v5567_v45  ;;  %10659 = vmatprep.subr.bf16.mxu0 %v16353_v52 }
0x135a   :  { %v14847_v36 = vpop.eup %11368  ;;  %11374 = vpow2.f32 %v5586_v15 }
0x135b   :  { %v5540_v10 = vpop.xlane.xlu0 %5539  ;;  %v5610_v51 = vsel %vm2472_vm7, %v14847_v36, 0.0 }
0x135c   :  { %v14851_v47 = vpop.eup %11370  ;;  %v5568_v9 = vsub.f32 %v14710_v20, %v5540_v10  ;;  %5611 = vadd.xlane.f32.xlu0 %v5610_v51 }
0x135d   :  { %v5543_v29 = vpop.xlane.xlu1 %5542  ;;  %v5613_v23 = vsel %vm2472_vm7, %v14851_v47, 0.0 }
0x135e   :  { %v5588_v35 = vmul.f32 1.442695, %v5568_v9  ;;  %v5569_v5 = vsub.f32 %v14718_v30, %v5543_v29  ;;  %5614 = vadd.xlane.f32.xlu1 %v5613_v23 }
0x1360   :  { %11376 = vpow2.f32 %v5588_v35  ;;  %v5590_v1 = vmul.f32 1.442695, %v5569_v5 }
0x1362   :  { %v14857_v17 = vpop.eup %11372  ;;  %11378 = vpow2.f32 %v5590_v1 }
0x1363   :  { %v5546_v43 = vpop.xlane.xlu0 %5545  ;;  %v5616_v50 = vsel %vm2472_vm7, %v14857_v17, 0.0 }
0x1364   :  { %v14861_v38 = vpop.eup %11374  ;;  %v5570_v20 = vsub.f32 %v14730_v61, %v5546_v43  ;;  %5617 = vadd.xlane.f32.xlu0 %v5616_v50 }
0x1365   :  { %v5549_v31 = vpop.xlane.xlu1 %5548  ;;  %v5619_v14 = vsel %vm2472_vm7, %v14861_v38, 0.0 }
0x1366   :  { %v5592_v30 = vmul.f32 1.442695, %v5570_v20  ;;  %v5571_v6 = vsub.f32 %v14738_v11, %v5549_v31  ;;  %5620 = vadd.xlane.f32.xlu1 %v5619_v14 }
0x1368   :  { %11380 = vpow2.f32 %v5592_v30  ;;  %v5594_v45 = vmul.f32 1.442695, %v5571_v6 }
0x136a   :  { %v14867_v15 = vpop.eup %11376  ;;  %11382 = vpow2.f32 %v5594_v45 }
0x136b   :  { %v5552_v10 = vpop.xlane.xlu0 %5551  ;;  %v5622_v51 = vsel %vm2472_vm7, %v14867_v15, 0.0 }
0x136c   :  { %v14871_v9 = vpop.eup %11378  ;;  %v5572_v61 = vsub.f32 %v14750_v41, %v5552_v10  ;;  %5623 = vadd.xlane.f32.xlu0 %v5622_v51 }
0x136d   :  { %v5555_v29 = vpop.xlane.xlu1 %5554  ;;  %v5625_v23 = vsel %vm2472_vm7, %v14871_v9, 0.0 }
0x136e   :  { %v5596_v11 = vmul.f32 1.442695, %v5572_v61  ;;  %v5573_v35 = vsub.f32 %v14758_v48, %v5555_v29  ;;  %5626 = vadd.xlane.f32.xlu1 %v5625_v23 }
0x1370   :  { %11384 = vpow2.f32 %v5596_v11  ;;  %v5598_v5 = vmul.f32 1.442695, %v5573_v35 }
0x1372   :  { %v14877_v1 = vpop.eup %11380  ;;  %11386 = vpow2.f32 %v5598_v5 }
0x1373   :  { %v5558_v43 = vpop.xlane.xlu0 %5557  ;;  %v5628_v50 = vsel %vm2472_vm7, %v14877_v1, 0.0 }
0x1374   :  { %v14881_v20 = vpop.eup %11382  ;;  %v5574_v41 = vsub.f32 %v14770_v2, %v5558_v43  ;;  %5629 = vadd.xlane.f32.xlu0 %v5628_v50 }
0x1375   :  { %v5561_v31 = vpop.xlane.xlu1 %5560  ;;  %v5631_v14 = vsel %vm2472_vm7, %v14881_v20, 0.0 }
0x1376   :  { %v5600_v48 = vmul.f32 1.442695, %v5574_v41  ;;  %v5575_v30 = vsub.f32 %v14778_v39, %v5561_v31  ;;  %5632 = vadd.xlane.f32.xlu1 %v5631_v14 }
0x1378   :  { %11388 = vpow2.f32 %v5600_v48  ;;  %v5602_v6 = vmul.f32 1.442695, %v5575_v30  ;;  %v11044_v48 = vld [vmem:[%s16298_s6 + $0x248] sm:$0xff]  }
0x137a   :  { %v14887_v45 = vpop.eup %11384  ;;  %11390 = vpow2.f32 %v5602_v6 }
0x137b   :  { %v5634_v10 = vsel %vm2472_vm7, %v14887_v45, 0.0 }
0x137c   :  { %v14891_v51 = vpop.eup %11386  ;;  %5635 = vadd.xlane.f32.xlu0 %v5634_v10 }
0x137d   :  { %v5637_v2 = vsel %vm2472_vm7, %v14891_v51, 0.0 }
0x137e   :  { %5638 = vadd.xlane.f32.xlu1 %v5637_v2 }
0x1382   :  { %v14895_v61 = vpop.eup %11388 }
0x1383   :  { %v5640_v39 = vsel %vm2472_vm7, %v14895_v61, 0.0 }
0x1384   :  { %v14899_v29 = vpop.eup %11390  ;;  %5641 = vadd.xlane.f32.xlu0 %v5640_v39 }
0x1385   :  { %v5643_v23 = vsel %vm2472_vm7, %v14899_v29, 0.0 }
0x1386   :  { %5644 = vadd.xlane.f32.xlu1 %v5643_v23 }
0x13e1   :  { %v5606_v11 = vpop.xlane.xlu0 %5605 }
0x13e2   :  { %11392 = vrcp.f32 %v5606_v11  ;;  %v11046_v11 = vld [vmem:[%s16298_s6 + $0x258] sm:$0xff]  }
0x13e3   :  { %v5609_v35 = vpop.xlane.xlu1 %5608 }
0x13e4   :  { %11394 = vrcp.f32 %v5609_v35 }
0x13e9   :  { %v5612_v5 = vpop.xlane.xlu0 %5611 }
0x13ea   :  { %11396 = vrcp.f32 %v5612_v5 }
0x13eb   :  { %v5615_v43 = vpop.xlane.xlu1 %5614 }
0x13ec   :  { %v11393_v50 = vpop.eup %11392  ;;  %11398 = vrcp.f32 %v5615_v43 }
0x13ed   :  { %v5647_v31 = vmul.f32 %v11393_v50, %v14836_v62  ;;  %v11045_v62 = vld [vmem:[%s16298_s6 + $0x250] sm:$0xff]  }
0x13ee   :  { %v11395_v41 = vpop.eup %11394 }
0x13ef   :  { %v5649_v14 = vmul.f32 %v11395_v41, %v14840_v24 }
0x13f1   :  { %v5674_v30 = vpack.c.bf16 %v5649_v14, %v5647_v31  ;;  %v5618_v6 = vpop.xlane.xlu0 %5617 }
0x13f2   :  { %11400 = vrcp.f32 %v5618_v6 }
0x13f3   :  { %v5621_v10 = vpop.xlane.xlu1 %5620  ;;  %10408 = vmatmul.mubr.msk.bf16.vlgmr.msra.gmra.mrb[64].mxu1 %vm2472_vm7, %v5674_v30 }
0x13f4   :  { %v11397_v2 = vpop.eup %11396  ;;  %11402 = vrcp.f32 %v5621_v10  ;;  %10472 = vmatpush3.bf16.msra.mxu1 %v11044_v48  ;;  %10411 = vmatprep.mubr.msk.bf16.mxu1 %vm11613_vm4, %v16353_v52 }
0x13f5   :  { %10473 = vmatprep.subr.bf16.mxu1 %v16353_v52  ;;  %v5651_v39 = vmul.f32 %v11397_v2, %v14847_v36  ;;  %v11047_v36 = vld [vmem:[%s16298_s6 + $0x260] sm:$0xff]  }
0x13f6   :  { %v11399_v24 = vpop.eup %11398 }
0x13f7   :  { %v5653_v23 = vmul.f32 %v11399_v24, %v14851_v47 }
0x13f8   :  { %10474 = vmatpush3.bf16.msra.mxu1 %v11045_v62 }
0x13f9   :  { %v5675_v35 = vpack.c.bf16 %v5653_v23, %v5651_v39  ;;  %v5624_v5 = vpop.xlane.xlu0 %5623  ;;  %10475 = vmatprep.subr.bf16.mxu1 %v16353_v52 }
0x13fa   :  { %11404 = vrcp.f32 %v5624_v5 }
0x13fb   :  { %v5627_v43 = vpop.xlane.xlu1 %5626  ;;  %10412 = vmatmul.mubr.msk.bf16.gmra.mrb[68].mxu1 %vm2472_vm7, %v5675_v35 }
0x13fc   :  { %v11401_v50 = vpop.eup %11400  ;;  %11406 = vrcp.f32 %v5627_v43  ;;  %10415 = vmatprep.mubr.msk.bf16.mxu1 %vm11613_vm4, %v16353_v52  ;;  %10476 = vmatpush3.bf16.msra.mxu1 %v11046_v11 }
0x13fd   :  { %10477 = vmatprep.subr.bf16.mxu1 %v16353_v52  ;;  %v5655_v41 = vmul.f32 %v11401_v50, %v14857_v17 }
0x13fe   :  { %v11403_v47 = vpop.eup %11402 }
0x13ff   :  { %v5657_v31 = vmul.f32 %v11403_v47, %v14861_v38 }
0x1400   :  { %10478 = vmatpush3.bf16.msra.mxu1 %v11047_v36 }
0x1401   :  { %v5676_v14 = vpack.c.bf16 %v5657_v31, %v5655_v41  ;;  %v5630_v48 = vpop.xlane.xlu0 %5629  ;;  %10543 = vmatprep.subr.bf16.mxu1 %v16353_v52 }
0x1402   :  { %11408 = vrcp.f32 %v5630_v48 }
0x1403   :  { %v5633_v30 = vpop.xlane.xlu1 %5632  ;;  %10416 = vmatmul.mubr.msk.bf16.gmra.mrb[72].mxu1 %vm2472_vm7, %v5676_v14 }
0x1404   :  { %v11405_v6 = vpop.eup %11404  ;;  %11410 = vrcp.f32 %v5633_v30  ;;  %10419 = vmatprep.mubr.msk.bf16.mxu1 %vm11613_vm4, %v16353_v52 }
0x1405   :  { %v5659_v2 = vmul.f32 %v11405_v6, %v14867_v15 }
0x1406   :  { %v11407_v10 = vpop.eup %11406 }
0x1407   :  { %v5661_v17 = vmul.f32 %v11407_v10, %v14871_v9 }
0x1409   :  { %v5677_v38 = vpack.c.bf16 %v5661_v17, %v5659_v2  ;;  %v5636_v62 = vpop.xlane.xlu0 %5635 }
0x140a   :  { %11412 = vrcp.f32 %v5636_v62 }
0x140b   :  { %v5639_v24 = vpop.xlane.xlu1 %5638  ;;  %10420 = vmatmul.mubr.msk.bf16.gmra.mrb[76].mxu1 %vm2472_vm7, %v5677_v38 }
0x140c   :  { %v11409_v39 = vpop.eup %11408  ;;  %11414 = vrcp.f32 %v5639_v24  ;;  %10423 = vmatprep.mubr.msk.bf16.mxu1 %vm11613_vm4, %v16353_v52 }
0x140d   :  { %v5663_v11 = vmul.f32 %v11409_v39, %v14877_v1 }
0x140e   :  { %v11411_v23 = vpop.eup %11410 }
0x140f   :  { %v5665_v35 = vmul.f32 %v11411_v23, %v14881_v20 }
0x1411   :  { %v5678_v5 = vpack.c.bf16 %v5665_v35, %v5663_v11  ;;  %v5642_v15 = vpop.xlane.xlu0 %5641 }
0x1412   :  { %11416 = vrcp.f32 %v5642_v15 }
0x1413   :  { %v5645_v9 = vpop.xlane.xlu1 %5644  ;;  %10424 = vmatmul.mubr.msk.bf16.gmra.mrb[80].mxu1 %vm2472_vm7, %v5678_v5 }
0x1414   :  { %v11413_v43 = vpop.eup %11412  ;;  %11418 = vrcp.f32 %v5645_v9  ;;  %10427 = vmatprep.mubr.msk.bf16.mxu1 %vm11613_vm4, %v16353_v52 }
0x1415   :  { %v5667_v36 = vmul.f32 %v11413_v43, %v14887_v45 }
0x1416   :  { %v11415_v50 = vpop.eup %11414 }
0x1417   :  { %v5669_v47 = vmul.f32 %v11415_v50, %v14891_v51 }
0x1419   :  { %v5679_v41 = vpack.c.bf16 %v5669_v47, %v5667_v36 }
0x141b   :  { %10428 = vmatmul.mubr.msk.bf16.gmra.mrb[84].mxu1 %vm2472_vm7, %v5679_v41 }
0x141c   :  { %v11417_v1 = vpop.eup %11416  ;;  %10431 = vmatprep.mubr.msk.bf16.mxu1 %vm11613_vm4, %v16353_v52 }
0x141d   :  { %v5671_v31 = vmul.f32 %v11417_v1, %v14895_v61 }
0x141e   :  { %v11419_v20 = vpop.eup %11418 }
0x141f   :  { %v5673_v14 = vmul.f32 %v11419_v20, %v14899_v29 }
0x1421   :  { %v5680_v48 = vpack.c.bf16 %v5673_v14, %v5671_v31 }
0x1423   :  { %10432 = vmatmul.mubr.msk.bf16.gmra.mrb[88].mxu1 %vm2472_vm7, %v5680_v48 }
0x1424   :  { %10479 = vmatprep.mubr.msk.bf16.mxu1 %vm11613_vm4, %v16353_v52 }
0x142b   :  { %10480 = vmatmul.mubr.msk.bf16.vlgmr.msra.gmra.mrb[92].mxu1 %vm1357_vm6, %v14301_v60 }
0x142c   :  { %10483 = vmatprep.mubr.msk.bf16.mxu1 %vm11613_vm4, %v16353_v52 }
0x1433   :  { %10484 = vmatmul.mubr.msk.bf16.gmra.mrb[96].mxu1 %vm1357_vm6, %v14328_v0 }
0x1434   :  { %10487 = vmatprep.mubr.msk.bf16.mxu1 %vm11613_vm4, %v16353_v52 }
0x143b   :  { %10488 = vmatmul.mubr.msk.bf16.gmra.mrb[100].mxu1 %vm1357_vm6, %v14349_v37 }
0x143c   :  { %10491 = vmatprep.mubr.msk.bf16.mxu1 %vm11613_vm4, %v16353_v52 }
0x1443   :  { %10492 = vmatmul.mubr.msk.bf16.gmra.mrb[104].mxu1 %vm1357_vm6, %v14365_v58 }
0x1444   :  { %10495 = vmatprep.mubr.msk.bf16.mxu1 %vm11613_vm4, %v16353_v52 }
0x144b   :  { %10496 = vmatmul.mubr.msk.bf16.gmra.mrb[108].mxu1 %vm1357_vm6, %v14381_v53 }
0x144c   :  { %10499 = vmatprep.mubr.msk.bf16.mxu1 %vm11613_vm4, %v16353_v52 }
0x1453   :  { %10500 = vmatmul.mubr.msk.bf16.gmra.mrb[112].mxu1 %vm1357_vm6, %v14397_v22 }
0x1454   :  { %10503 = vmatprep.mubr.msk.bf16.mxu1 %vm11613_vm4, %v16353_v52 }
0x145b   :  { %10504 = vmatmul.mubr.msk.bf16.gmra.mrb[116].mxu1 %vm1357_vm6, %v14413_v18 }
0x145c   :  { %10557 = vmatprep.mubr.msk.bf16.mxu1 %vm11613_vm4, %v16353_v52 }
0x14c6   :  { %v14982_v60 = vpop.f32.mrb[64].mxu1 }
0x14c7   :  { %v10409_v0 = vpop.f32.mrb[65].mxu1 }
0x14c8   :  { %v14984_v37 = vpop.f32.mrb[66].mxu1 }
0x14c9   :  { %v5802_v58 = vpack.c.bf16 %v14984_v37, %v14982_v60  ;;  %v10410_v53 = vpop.f32.mrb[67].mxu1 }
0x14ce   :  { %v14988_v45 = vpop.f32.mrb[68].mxu1 }
0x14cf   :  { %v10413_v22 = vpop.f32.mrb[69].mxu1 }
0x14d0   :  { %v14990_v51 = vpop.f32.mrb[70].mxu1 }
0x14d1   :  { %v5803_v18 = vpack.c.bf16 %v14990_v51, %v14988_v45  ;;  %v10414_v61 = vpop.f32.mrb[71].mxu1 }
0x14d6   :  { %v14994_v29 = vpop.f32.mrb[72].mxu1 }
0x14d7   :  { %v10417_v30 = vpop.f32.mrb[73].mxu1 }
0x14d8   :  { %v14996_v6 = vpop.f32.mrb[74].mxu1 }
0x14d9   :  { %v5804_v10 = vpack.c.bf16 %v14996_v6, %v14994_v29  ;;  %v10418_v2 = vpop.f32.mrb[75].mxu1 }
0x14de   :  { %v15000_v17 = vpop.f32.mrb[76].mxu1 }
0x14df   :  { %v10421_v38 = vpop.f32.mrb[77].mxu1 }
0x14e0   :  { %v15002_v62 = vpop.f32.mrb[78].mxu1 }
0x14e1   :  { %v5805_v24 = vpack.c.bf16 %v15002_v62, %v15000_v17  ;;  %v10422_v39 = vpop.f32.mrb[79].mxu1 }
0x14e6   :  { %v15006_v23 = vpop.f32.mrb[80].mxu1 }
0x14e7   :  { %v10425_v11 = vpop.f32.mrb[81].mxu1 }
0x14e8   :  { %v15008_v35 = vpop.f32.mrb[82].mxu1 }
0x14e9   :  { %v5806_v5 = vpack.c.bf16 %v15008_v35, %v15006_v23  ;;  %v10426_v15 = vpop.f32.mrb[83].mxu1 }
0x14ee   :  { %v15012_v9 = vpop.f32.mrb[84].mxu1 }
0x14ef   :  { %v10429_v43 = vpop.f32.mrb[85].mxu1 }
0x14f0   :  { %v15014_v50 = vpop.f32.mrb[86].mxu1 }
0x14f1   :  { %v5807_v36 = vpack.c.bf16 %v15014_v50, %v15012_v9  ;;  %v10430_v47 = vpop.f32.mrb[87].mxu1 }
0x14f6   :  { %v15018_v41 = vpop.f32.mrb[88].mxu1 }
0x14f7   :  { %v10433_v1 = vpop.f32.mrb[89].mxu1 }
0x14f8   :  { %v15020_v20 = vpop.f32.mrb[90].mxu1 }
0x14f9   :  { %v5808_v31 = vpack.c.bf16 %v15020_v20, %v15018_v41  ;;  %v10434_v14 = vpop.f32.mrb[91].mxu1 }
0x14fe   :  { %v5996_v48 = vpop.f32.mrb[92].mxu1 }
0x14ff   :  { %v10481_v0 = vpop.f32.mrb[93].mxu1 }
0x1500   :  { %v5999_v53 = vpop.f32.mrb[94].mxu1 }
0x1501   :  { %v6179_v22 = vpack.c.bf16 %v5999_v53, %v5996_v48  ;;  %v10482_v61 = vpop.f32.mrb[95].mxu1 }
0x1503   :  { %v6208_v30 = vsel %vm1413_vm5, %v6179_v22, 0 }
0x1504   :  { %10544 = vmatpush3.bf16.xpose.msra.mxu1 %v6208_v30 }
0x1505   :  { %10545 = vmatprep.subr.bf16.mxu1 %v16353_v52 }
0x1506   :  { %v6004_v2 = vpop.f32.mrb[96].mxu1 }
0x1507   :  { %v10485_v38 = vpop.f32.mrb[97].mxu1 }
0x1508   :  { %v6007_v39 = vpop.f32.mrb[98].mxu1 }
0x1509   :  { %v6180_v11 = vpack.c.bf16 %v6007_v39, %v6004_v2  ;;  %v10486_v15 = vpop.f32.mrb[99].mxu1 }
0x150b   :  { %v6211_v43 = vsel %vm1413_vm5, %v6180_v11, 0 }
0x150c   :  { %10546 = vmatpush3.bf16.xpose.msra.mxu1 %v6211_v43 }
0x150d   :  { %10547 = vmatprep.subr.bf16.mxu1 %v16353_v52 }
0x150e   :  { %v6012_v47 = vpop.f32.mrb[100].mxu1 }
0x150f   :  { %v10489_v1 = vpop.f32.mrb[101].mxu1 }
0x1510   :  { %v6015_v14 = vpop.f32.mrb[102].mxu1 }
0x1511   :  { %v6181_v48 = vpack.c.bf16 %v6015_v14, %v6012_v47  ;;  %v10490_v0 = vpop.f32.mrb[103].mxu1 }
0x1513   :  { %v6214_v53 = vsel %vm1413_vm5, %v6181_v48, 0 }
0x1514   :  { %10548 = vmatpush3.bf16.xpose.msra.mxu1 %v6214_v53 }
0x1515   :  { %10549 = vmatprep.subr.bf16.mxu1 %v16353_v52 }
0x1516   :  { %v6020_v22 = vpop.f32.mrb[104].mxu1 }
0x1517   :  { %v10493_v61 = vpop.f32.mrb[105].mxu1 }
0x1518   :  { %v6023_v30 = vpop.f32.mrb[106].mxu1 }
0x1519   :  { %v6182_v2 = vpack.c.bf16 %v6023_v30, %v6020_v22  ;;  %v10494_v38 = vpop.f32.mrb[107].mxu1 }
0x151b   :  { %v6217_v39 = vsel %vm1413_vm5, %v6182_v2, 0 }
0x151c   :  { %10550 = vmatpush3.bf16.xpose.msra.mxu1 %v6217_v39 }
0x151d   :  { %10551 = vmatprep.subr.bf16.mxu1 %v16353_v52 }
0x151e   :  { %v6028_v11 = vpop.f32.mrb[108].mxu1 }
0x151f   :  { %v10497_v15 = vpop.f32.mrb[109].mxu1 }
0x1520   :  { %v6031_v43 = vpop.f32.mrb[110].mxu1 }
0x1521   :  { %v6183_v47 = vpack.c.bf16 %v6031_v43, %v6028_v11  ;;  %v10498_v1 = vpop.f32.mrb[111].mxu1 }
0x1522   :  { %v16372_v1 = vpack.c.bf16 %v14792_v28, %v14790_v40  ;;  %v16376_v40 = vpack.c.bf16 %v14816_v59, %v14814_v7 }
0x1523   :  { %v6220_v14 = vsel %vm1413_vm5, %v6183_v47, 0  ;;  %v16371_v47 = vpack.c.bf16 %v14786_v42, %v14784_v19  ;;  %v16374_v19 = vpack.c.bf16 %v14804_v26, %v14802_v16  ;;  %v16375_v42 = vpack.c.bf16 %v14810_v56, %v14808_v13 }
0x1524   :  { %10552 = vmatpush3.bf16.xpose.msra.mxu1 %v6220_v14  ;;  %v16373_v14 = vpack.c.bf16 %v14798_v44, %v14796_v27  ;;  %v16377_v26 = vpack.c.bf16 %v14822_v21, %v14820_v46 }
0x1525   :  { %10553 = vmatprep.subr.bf16.mxu1 %v16353_v52 }
0x1526   :  { %v6036_v48 = vpop.f32.mrb[112].mxu1 }
0x1527   :  { %v10501_v0 = vpop.f32.mrb[113].mxu1 }
0x1528   :  { %v6039_v53 = vpop.f32.mrb[114].mxu1 }
0x1529   :  { %v6184_v22 = vpack.c.bf16 %v6039_v53, %v6036_v48  ;;  %v10502_v61 = vpop.f32.mrb[115].mxu1 }
0x152b   :  { %v6223_v30 = vsel %vm1413_vm5, %v6184_v22, 0 }
0x152c   :  { %10554 = vmatpush3.bf16.xpose.msra.mxu1 %v6223_v30 }
0x152d   :  { %10555 = vmatprep.subr.bf16.mxu1 %v16353_v52 }
0x152e   :  { %v6044_v2 = vpop.f32.mrb[116].mxu1 }
0x152f   :  { %v10505_v38 = vpop.f32.mrb[117].mxu1 }
0x1530   :  { %v6047_v39 = vpop.f32.mrb[118].mxu1 }
0x1531   :  { %v6185_v11 = vpack.c.bf16 %v6047_v39, %v6044_v2  ;;  %v10506_v15 = vpop.f32.mrb[119].mxu1 }
0x1533   :  { %v6226_v43 = vsel %vm1413_vm5, %v6185_v11, 0 }
0x1534   :  { %10556 = vmatpush3.bf16.xpose.msra.mxu1 %v6226_v43 }
0x1535   :  { %10627 = vmatprep.subr.bf16.mxu1 %v16353_v52 }
0x153b   :  { %10558 = vmatmul.mubr.msk.bf16.vlgmr.msra.gmra.mrb[120].mxu1 %vm1413_vm5, %v16371_v47 }
0x153c   :  { %10561 = vmatprep.mubr.msk.bf16.mxu1 %vm11613_vm4, %v16353_v52 }
0x1543   :  { %10562 = vmatmul.mubr.msk.bf16.gmra.mrb[124].mxu1 %vm1413_vm5, %v16372_v1 }
0x1544   :  { %10565 = vmatprep.mubr.msk.bf16.mxu1 %vm11613_vm4, %v16353_v52 }
0x154b   :  { %10566 = vmatmul.mubr.msk.bf16.gmra.mrb[128].mxu1 %vm1413_vm5, %v16373_v14 }
0x154c   :  { %10569 = vmatprep.mubr.msk.bf16.mxu1 %vm11613_vm4, %v16353_v52 }
0x1553   :  { %10570 = vmatmul.mubr.msk.bf16.gmra.mrb[132].mxu1 %vm1413_vm5, %v16374_v19 }
0x1554   :  { %10573 = vmatprep.mubr.msk.bf16.mxu1 %vm11613_vm4, %v16353_v52 }
0x155b   :  { %10574 = vmatmul.mubr.msk.bf16.gmra.mrb[136].mxu1 %vm1413_vm5, %v16375_v42 }
0x155c   :  { %10577 = vmatprep.mubr.msk.bf16.mxu1 %vm11613_vm4, %v16353_v52 }
0x1563   :  { %10578 = vmatmul.mubr.msk.bf16.gmra.mrb[140].mxu1 %vm1413_vm5, %v16376_v40 }
0x1564   :  { %10581 = vmatprep.mubr.msk.bf16.mxu1 %vm11613_vm4, %v16353_v52 }
0x156b   :  { %10582 = vmatmul.mubr.msk.bf16.gmra.mrb[144].mxu1 %vm1413_vm5, %v16377_v26 }
0x156c   :  { %10631 = vmatprep.mubr.msk.bf16.mxu1 %vm11613_vm4, %v16353_v52 }
0x160e   :  { %v6262_v56 = vpop.f32.mrb[120].mxu1 }
0x160f   :  { %v15081_v16 = vadd.f32 %v14647_v25, %v6262_v56  ;;  %v10559_v28 = vpop.f32.mrb[121].mxu1 }
0x1610   :  { %v6265_v13 = vpop.f32.mrb[122].mxu1 }
0x1611   :  { %v15084_v59 = vadd.f32 %v14655_v49, %v6265_v13  ;;  %v10560_v27 = vpop.f32.mrb[123].mxu1  ;;  %v6317_v44 = vsel %vm2472_vm7, %v15081_v16, -inf }
0x1612   :  { %6318 = vmax.xlane.f32.xlu0 %v6317_v44 }
0x1613   :  { %v6320_v21 = vsel %vm2472_vm7, %v15084_v59, -inf }
0x1614   :  { %6321 = vmax.xlane.f32.xlu1 %v6320_v21 }
0x1616   :  { %v6270_v7 = vpop.f32.mrb[124].mxu1 }
0x1617   :  { %v15091_v46 = vadd.f32 %v14667_v33, %v6270_v7  ;;  %v10563_v25 = vpop.f32.mrb[125].mxu1 }
0x1618   :  { %v6273_v48 = vpop.f32.mrb[126].mxu1 }
0x1619   :  { %v15094_v0 = vadd.f32 %v14675_v63, %v6273_v48  ;;  %v10564_v49 = vpop.f32.mrb[127].mxu1  ;;  %v6323_v53 = vsel %vm2472_vm7, %v15091_v46, -inf }
0x161a   :  { %6324 = vmax.xlane.f32.xlu0 %v6323_v53 }
0x161b   :  { %v6326_v22 = vsel %vm2472_vm7, %v15094_v0, -inf }
0x161c   :  { %6327 = vmax.xlane.f32.xlu1 %v6326_v22 }
0x161e   :  { %v6278_v61 = vpop.f32.mrb[128].mxu1 }
0x161f   :  { %v15101_v30 = vadd.f32 %v14687_v4, %v6278_v61  ;;  %v10567_v33 = vpop.f32.mrb[129].mxu1  ;;  %v16378_v61 = vld [vmem:[#allocation22_spill] sm:$0xff] }
0x1620   :  { %v6281_v2 = vpop.f32.mrb[130].mxu1 }
0x1621   :  { %v15104_v38 = vadd.f32 %v14695_v55, %v6281_v2  ;;  %v10568_v63 = vpop.f32.mrb[131].mxu1  ;;  %v6329_v39 = vsel %vm2472_vm7, %v15101_v30, -inf }
0x1622   :  { %6330 = vmax.xlane.f32.xlu0 %v6329_v39 }
0x1623   :  { %v6332_v11 = vsel %vm2472_vm7, %v15104_v38, -inf }
0x1624   :  { %6333 = vmax.xlane.f32.xlu1 %v6332_v11 }
0x1626   :  { %v6286_v15 = vpop.f32.mrb[132].mxu1 }
0x1627   :  { %v15111_v43 = vadd.f32 %v14707_v57, %v6286_v15  ;;  %v10571_v4 = vpop.f32.mrb[133].mxu1 }
0x1628   :  { %v6289_v47 = vpop.f32.mrb[134].mxu1 }
0x1629   :  { %v15114_v1 = vadd.f32 %v14715_v54, %v6289_v47  ;;  %v10572_v55 = vpop.f32.mrb[135].mxu1  ;;  %v6335_v14 = vsel %vm2472_vm7, %v15111_v43, -inf }
0x162a   :  { %6336 = vmax.xlane.f32.xlu0 %v6335_v14 }
0x162b   :  { %v6338_v19 = vsel %vm2472_vm7, %v15114_v1, -inf }
0x162c   :  { %6339 = vmax.xlane.f32.xlu1 %v6338_v19 }
0x162e   :  { %v6294_v42 = vpop.f32.mrb[136].mxu1 }
0x162f   :  { %v15121_v40 = vadd.f32 %v14727_v34, %v6294_v42  ;;  %v10575_v57 = vpop.f32.mrb[137].mxu1 }
0x1630   :  { %v6297_v26 = vpop.f32.mrb[138].mxu1 }
0x1631   :  { %v15124_v56 = vadd.f32 %v14735_v32, %v6297_v26  ;;  %v10576_v54 = vpop.f32.mrb[139].mxu1  ;;  %v6341_v28 = vsel %vm2472_vm7, %v15121_v40, -inf }
0x1632   :  { %6342 = vmax.xlane.f32.xlu0 %v6341_v28 }
0x1633   :  { %v6344_v13 = vsel %vm2472_vm7, %v15124_v56, -inf }
0x1634   :  { %6345 = vmax.xlane.f32.xlu1 %v6344_v13 }
0x1636   :  { %v6302_v27 = vpop.f32.mrb[140].mxu1 }
0x1637   :  { %v15131_v44 = vadd.f32 %v14747_v12, %v6302_v27  ;;  %v10579_v34 = vpop.f32.mrb[141].mxu1 }
0x1638   :  { %v6305_v21 = vpop.f32.mrb[142].mxu1 }
0x1639   :  { %v15134_v7 = vadd.f32 %v14755_v3, %v6305_v21  ;;  %v10580_v32 = vpop.f32.mrb[143].mxu1  ;;  %v6347_v25 = vsel %vm2472_vm7, %v15131_v44, -inf }
0x163a   :  { %6348 = vmax.xlane.f32.xlu0 %v6347_v25 }
0x163b   :  { %v6350_v48 = vsel %vm2472_vm7, %v15134_v7, -inf }
0x163c   :  { %6351 = vmax.xlane.f32.xlu1 %v6350_v48 }
0x163e   :  { %v6310_v49 = vpop.f32.mrb[144].mxu1 }
0x163f   :  { %v15141_v53 = vadd.f32 %v14767_v8, %v6310_v49  ;;  %v10583_v12 = vpop.f32.mrb[145].mxu1 }
0x1640   :  { %v6313_v22 = vpop.f32.mrb[146].mxu1 }
0x1641   :  { %v15144_v33 = vadd.f32 %v16378_v61, %v6313_v22  ;;  %v10584_v3 = vpop.f32.mrb[147].mxu1  ;;  %v6353_v2 = vsel %vm2472_vm7, %v15141_v53, -inf }
0x1642   :  { %6354 = vmax.xlane.f32.xlu0 %v6353_v2 }
0x1643   :  { %v6356_v63 = vsel %vm2472_vm7, %v15144_v33, -inf }
0x1644   :  { %6357 = vmax.xlane.f32.xlu1 %v6356_v63 }
0x169f   :  { %v6319_v39 = vpop.xlane.xlu0 %6318 }
0x16a0   :  { %v6359_v11 = vsub.f32 %v15081_v16, %v6319_v39 }
0x16a1   :  { %v6322_v15 = vpop.xlane.xlu1 %6321 }
0x16a2   :  { %v6373_v8 = vmul.f32 1.442695, %v6359_v11  ;;  %v6360_v4 = vsub.f32 %v15084_v59, %v6322_v15 }
0x16a4   :  { %11420 = vpow2.f32 %v6373_v8  ;;  %v6375_v47 = vmul.f32 1.442695, %v6360_v4 }
0x16a6   :  { %11422 = vpow2.f32 %v6375_v47 }
0x16a7   :  { %v6325_v55 = vpop.xlane.xlu0 %6324 }
0x16a8   :  { %v6361_v14 = vsub.f32 %v15091_v46, %v6325_v55 }
0x16a9   :  { %v6328_v19 = vpop.xlane.xlu1 %6327 }
0x16aa   :  { %v6377_v42 = vmul.f32 1.442695, %v6361_v14  ;;  %v6362_v57 = vsub.f32 %v15094_v0, %v6328_v19 }
0x16ac   :  { %11424 = vpow2.f32 %v6377_v42  ;;  %v6379_v26 = vmul.f32 1.442695, %v6362_v57 }
0x16ae   :  { %v15154_v54 = vpop.eup %11420  ;;  %11426 = vpow2.f32 %v6379_v26 }
0x16af   :  { %v6331_v16 = vpop.xlane.xlu0 %6330  ;;  %v6401_v28 = vsel %vm2472_vm7, %v15154_v54, 0.0 }
0x16b0   :  { %v15158_v59 = vpop.eup %11422  ;;  %v6363_v13 = vsub.f32 %v15101_v30, %v6331_v16  ;;  %6402 = vadd.xlane.f32.xlu0 %v6401_v28 }
0x16b1   :  { %v6334_v27 = vpop.xlane.xlu1 %6333  ;;  %v6404_v46 = vsel %vm2472_vm7, %v15158_v59, 0.0 }
0x16b2   :  { %v6381_v34 = vmul.f32 1.442695, %v6363_v13  ;;  %v6364_v0 = vsub.f32 %v15104_v38, %v6334_v27  ;;  %6405 = vadd.xlane.f32.xlu1 %v6404_v46 }
0x16b4   :  { %11428 = vpow2.f32 %v6381_v34  ;;  %v6383_v21 = vmul.f32 1.442695, %v6364_v0 }
0x16b6   :  { %v15164_v32 = vpop.eup %11424  ;;  %11430 = vpow2.f32 %v6383_v21 }
0x16b7   :  { %v6337_v25 = vpop.xlane.xlu0 %6336  ;;  %v6407_v48 = vsel %vm2472_vm7, %v15164_v32, 0.0 }
0x16b8   :  { %v15168_v49 = vpop.eup %11426  ;;  %v6365_v30 = vsub.f32 %v15111_v43, %v6337_v25  ;;  %6408 = vadd.xlane.f32.xlu0 %v6407_v48 }
0x16b9   :  { %v6340_v12 = vpop.xlane.xlu1 %6339  ;;  %v6410_v22 = vsel %vm2472_vm7, %v15168_v49, 0.0 }
0x16ba   :  { %v6385_v38 = vmul.f32 1.442695, %v6365_v30  ;;  %v6366_v61 = vsub.f32 %v15114_v1, %v6340_v12  ;;  %6411 = vadd.xlane.f32.xlu1 %v6410_v22 }
0x16bc   :  { %11432 = vpow2.f32 %v6385_v38  ;;  %v6387_v3 = vmul.f32 1.442695, %v6366_v61 }
0x16be   :  { %v15174_v2 = vpop.eup %11428  ;;  %11434 = vpow2.f32 %v6387_v3 }
0x16bf   :  { %v6343_v63 = vpop.xlane.xlu0 %6342  ;;  %v6413_v39 = vsel %vm2472_vm7, %v15174_v2, 0.0 }
0x16c0   :  { %v15178_v11 = vpop.eup %11430  ;;  %v6367_v43 = vsub.f32 %v15121_v40, %v6343_v63  ;;  %6414 = vadd.xlane.f32.xlu0 %v6413_v39  ;;  %v11050_v63 = vld [vmem:[%s16299_s7 + $0x88] sm:$0xff]   ;;  %v11051_v39 = vld [vmem:[%s16299_s7 + $0x90] sm:$0xff]  }
0x16c1   :  { %v6346_v15 = vpop.xlane.xlu1 %6345  ;;  %v6416_v8 = vsel %vm2472_vm7, %v15178_v11, 0.0  ;;  %10628 = vmatpush3.bf16.msra.mxu1 %v11050_v63 }
0x16c2   :  { %v6389_v1 = vmul.f32 1.442695, %v6367_v43  ;;  %v6368_v4 = vsub.f32 %v15124_v56, %v6346_v15  ;;  %6417 = vadd.xlane.f32.xlu1 %v6416_v8  ;;  %10629 = vmatprep.subr.bf16.mxu1 %v16353_v52 }
0x16c4   :  { %11436 = vpow2.f32 %v6389_v1  ;;  %v6391_v47 = vmul.f32 1.442695, %v6368_v4 }
0x16c5   :  { %10630 = vmatpush3.bf16.msra.mxu1 %v11051_v39 }
0x16c6   :  { %v15184_v55 = vpop.eup %11432  ;;  %11438 = vpow2.f32 %v6391_v47 }
0x16c7   :  { %v6349_v14 = vpop.xlane.xlu0 %6348  ;;  %v6419_v19 = vsel %vm2472_vm7, %v15184_v55, 0.0 }
0x16c8   :  { %v15188_v42 = vpop.eup %11434  ;;  %v6369_v40 = vsub.f32 %v15131_v44, %v6349_v14  ;;  %6420 = vadd.xlane.f32.xlu0 %v6419_v19 }
0x16c9   :  { %v6352_v57 = vpop.xlane.xlu1 %6351  ;;  %v6422_v26 = vsel %vm2472_vm7, %v15188_v42, 0.0 }
0x16ca   :  { %v6393_v56 = vmul.f32 1.442695, %v6369_v40  ;;  %v6370_v16 = vsub.f32 %v15134_v7, %v6352_v57  ;;  %6423 = vadd.xlane.f32.xlu1 %v6422_v26  ;;  %v11048_v40 = vld [vmem:[%s16299_s7 + $0x78] sm:$0xff]  }
0x16cc   :  { %11440 = vpow2.f32 %v6393_v56  ;;  %v6395_v28 = vmul.f32 1.442695, %v6370_v16 }
0x16ce   :  { %v15194_v13 = vpop.eup %11436  ;;  %11442 = vpow2.f32 %v6395_v28 }
0x16cf   :  { %v6355_v27 = vpop.xlane.xlu0 %6354  ;;  %v6425_v46 = vsel %vm2472_vm7, %v15194_v13, 0.0 }
0x16d0   :  { %v15198_v34 = vpop.eup %11438  ;;  %v6371_v44 = vsub.f32 %v15141_v53, %v6355_v27  ;;  %6426 = vadd.xlane.f32.xlu0 %v6425_v46 }
0x16d1   :  { %v6358_v0 = vpop.xlane.xlu1 %6357  ;;  %v6428_v21 = vsel %vm2472_vm7, %v15198_v34, 0.0 }
0x16d2   :  { %v6397_v7 = vmul.f32 1.442695, %v6371_v44  ;;  %v6372_v25 = vsub.f32 %v15144_v33, %v6358_v0  ;;  %6429 = vadd.xlane.f32.xlu1 %v6428_v21 }
0x16d4   :  { %11444 = vpow2.f32 %v6397_v7  ;;  %v6399_v48 = vmul.f32 1.442695, %v6372_v25 }
0x16d6   :  { %v15204_v30 = vpop.eup %11440  ;;  %11446 = vpow2.f32 %v6399_v48 }
0x16d7   :  { %v6431_v12 = vsel %vm2472_vm7, %v15204_v30, 0.0 }
0x16d8   :  { %v15208_v22 = vpop.eup %11442  ;;  %6432 = vadd.xlane.f32.xlu0 %v6431_v12 }
0x16d9   :  { %v6434_v53 = vsel %vm2472_vm7, %v15208_v22, 0.0 }
0x16da   :  { %6435 = vadd.xlane.f32.xlu1 %v6434_v53 }
0x16de   :  { %v15212_v38 = vpop.eup %11444 }
0x16df   :  { %v6437_v33 = vsel %vm2472_vm7, %v15212_v38, 0.0 }
0x16e0   :  { %v15216_v61 = vpop.eup %11446  ;;  %6438 = vadd.xlane.f32.xlu0 %v6437_v33 }
0x16e1   :  { %v6440_v3 = vsel %vm2472_vm7, %v15216_v61, 0.0 }
0x16e2   :  { %6441 = vadd.xlane.f32.xlu1 %v6440_v3 }
0x173d   :  { %v6403_v43 = vpop.xlane.xlu0 %6402 }
0x173e   :  { %11448 = vrcp.f32 %v6403_v43 }
0x173f   :  { %v6406_v15 = vpop.xlane.xlu1 %6405 }
0x1740   :  { %11450 = vrcp.f32 %v6406_v15 }
0x1745   :  { %v6409_v8 = vpop.xlane.xlu0 %6408 }
0x1746   :  { %11452 = vrcp.f32 %v6409_v8 }
0x1747   :  { %v6412_v1 = vpop.xlane.xlu1 %6411 }
0x1748   :  { %v11449_v4 = vpop.eup %11448  ;;  %11454 = vrcp.f32 %v6412_v1 }
0x1749   :  { %v6444_v14 = vmul.f32 %v11449_v4, %v15154_v54  ;;  %v11049_v54 = vld [vmem:[%s16299_s7 + $0x80] sm:$0xff]  }
0x174a   :  { %v11451_v47 = vpop.eup %11450 }
0x174b   :  { %v6446_v19 = vmul.f32 %v11451_v47, %v15158_v59 }
0x174d   :  { %v6471_v57 = vpack.c.bf16 %v6446_v19, %v6444_v14  ;;  %v6415_v26 = vpop.xlane.xlu0 %6414 }
0x174e   :  { %11456 = vrcp.f32 %v6415_v26 }
0x174f   :  { %10600 = vmatmul.mubr.msk.bf16.vlgmr.msra.gmra.mrb[124].mxu0 %vm2472_vm7, %v6471_v57  ;;  %v6418_v56 = vpop.xlane.xlu1 %6417 }
0x1750   :  { %v11453_v16 = vpop.eup %11452  ;;  %11458 = vrcp.f32 %v6418_v56  ;;  %10603 = vmatprep.mubr.msk.bf16.mxu0 %vm11613_vm4, %v16353_v52  ;;  %10660 = vmatpush3.bf16.msra.mxu0 %v11048_v40 }
0x1751   :  { %10661 = vmatprep.subr.bf16.mxu0 %v16353_v52  ;;  %v6448_v28 = vmul.f32 %v11453_v16, %v15164_v32 }
0x1752   :  { %v11455_v59 = vpop.eup %11454 }
0x1753   :  { %v6450_v27 = vmul.f32 %v11455_v59, %v15168_v49 }
0x1754   :  { %10662 = vmatpush3.bf16.msra.mxu0 %v11049_v54 }
0x1755   :  { %v6472_v46 = vpack.c.bf16 %v6450_v27, %v6448_v28  ;;  %v6421_v44 = vpop.xlane.xlu0 %6420 }
0x1756   :  { %11460 = vrcp.f32 %v6421_v44 }
0x1757   :  { %10604 = vmatmul.mubr.msk.bf16.gmra.mrb[128].mxu0 %vm2472_vm7, %v6472_v46  ;;  %v6424_v0 = vpop.xlane.xlu1 %6423 }
0x1758   :  { %v11457_v21 = vpop.eup %11456  ;;  %11462 = vrcp.f32 %v6424_v0  ;;  %10607 = vmatprep.mubr.msk.bf16.mxu0 %vm11613_vm4, %v16353_v52 }
0x1759   :  { %v6452_v25 = vmul.f32 %v11457_v21, %v15174_v2 }
0x175a   :  { %v11459_v7 = vpop.eup %11458 }
0x175b   :  { %v6454_v48 = vmul.f32 %v11459_v7, %v15178_v11 }
0x175d   :  { %v6473_v32 = vpack.c.bf16 %v6454_v48, %v6452_v25  ;;  %v6427_v12 = vpop.xlane.xlu0 %6426  ;;  %v16379_v48 = vmov 0  }
0x175e   :  { %11464 = vrcp.f32 %v6427_v12 }
0x175f   :  { %10608 = vmatmul.mubr.msk.bf16.gmra.mrb[132].mxu0 %vm2472_vm7, %v6473_v32  ;;  %v6430_v49 = vpop.xlane.xlu1 %6429 }
0x1760   :  { %v11461_v53 = vpop.eup %11460  ;;  %11466 = vrcp.f32 %v6430_v49  ;;  %10611 = vmatprep.mubr.msk.bf16.mxu0 %vm11613_vm4, %v16353_v52 }
0x1761   :  { %v6456_v3 = vmul.f32 %v11461_v53, %v15184_v55 }
0x1762   :  { %v11463_v33 = vpop.eup %11462 }
0x1763   :  { %v6458_v63 = vmul.f32 %v11463_v33, %v15188_v42 }
0x1765   :  { %v6474_v39 = vpack.c.bf16 %v6458_v63, %v6456_v3  ;;  %v6433_v2 = vpop.xlane.xlu0 %6432 }
0x1766   :  { %11468 = vrcp.f32 %v6433_v2 }
0x1767   :  { %10612 = vmatmul.mubr.msk.bf16.gmra.mrb[136].mxu0 %vm2472_vm7, %v6474_v39  ;;  %v6436_v11 = vpop.xlane.xlu1 %6435 }
0x1768   :  { %v11465_v43 = vpop.eup %11464  ;;  %11470 = vrcp.f32 %v6436_v11  ;;  %10615 = vmatprep.mubr.msk.bf16.mxu0 %vm11613_vm4, %v16353_v52 }
0x1769   :  { %v6460_v8 = vmul.f32 %v11465_v43, %v15194_v13 }
0x176a   :  { %v11467_v15 = vpop.eup %11466 }
0x176b   :  { %v6462_v1 = vmul.f32 %v11467_v15, %v15198_v34 }
0x176d   :  { %v6475_v4 = vpack.c.bf16 %v6462_v1, %v6460_v8  ;;  %v6439_v55 = vpop.xlane.xlu0 %6438 }
0x176e   :  { %11472 = vrcp.f32 %v6439_v55 }
0x176f   :  { %10616 = vmatmul.mubr.msk.bf16.gmra.mrb[140].mxu0 %vm2472_vm7, %v6475_v4  ;;  %v6442_v42 = vpop.xlane.xlu1 %6441 }
0x1770   :  { %v11469_v47 = vpop.eup %11468  ;;  %11474 = vrcp.f32 %v6442_v42  ;;  %10619 = vmatprep.mubr.msk.bf16.mxu0 %vm11613_vm4, %v16353_v52 }
0x1771   :  { %v6464_v19 = vmul.f32 %v11469_v47, %v15204_v30 }
0x1772   :  { %v11471_v14 = vpop.eup %11470 }
0x1773   :  { %v6466_v40 = vmul.f32 %v11471_v14, %v15208_v22 }
0x1775   :  { %v6476_v57 = vpack.c.bf16 %v6466_v40, %v6464_v19 }
0x1777   :  { %10620 = vmatmul.mubr.msk.bf16.gmra.mrb[144].mxu0 %vm2472_vm7, %v6476_v57 }
0x1778   :  { %v11473_v13 = vpop.eup %11472  ;;  %10623 = vmatprep.mubr.msk.bf16.mxu0 %vm11613_vm4, %v16353_v52 }
0x1779   :  { %v6468_v26 = vmul.f32 %v11473_v13, %v15212_v38 }
0x177a   :  { %v11475_v34 = vpop.eup %11474 }
0x177b   :  { %v6470_v56 = vmul.f32 %v11475_v34, %v15216_v61 }
0x177d   :  { %v6477_v16 = vpack.c.bf16 %v6470_v56, %v6468_v26 }
0x177f   :  { %10624 = vmatmul.mubr.msk.bf16.gmra.mrb[148].mxu0 %vm2472_vm7, %v6477_v16 }
0x1780   :  { %10663 = vmatprep.mubr.msk.bf16.mxu0 %vm11613_vm4, %v16353_v52 }
0x1787   :  { %10664 = vmatmul.mubr.msk.bf16.vlgmr.msra.gmra.mrb[152].mxu0 %vm1413_vm5, %v5802_v58 }
0x1788   :  { %10667 = vmatprep.mubr.msk.bf16.mxu0 %vm11613_vm4, %v16353_v52 }
0x178f   :  { %10668 = vmatmul.mubr.msk.bf16.gmra.mrb[156].mxu0 %vm1413_vm5, %v5803_v18 }
0x1790   :  { %10671 = vmatprep.mubr.msk.bf16.mxu0 %vm11613_vm4, %v16353_v52 }
0x1797   :  { %10672 = vmatmul.mubr.msk.bf16.gmra.mrb[160].mxu0 %vm1413_vm5, %v5804_v10 }
0x1798   :  { %10675 = vmatprep.mubr.msk.bf16.mxu0 %vm11613_vm4, %v16353_v52 }
0x179f   :  { %10676 = vmatmul.mubr.msk.bf16.gmra.mrb[164].mxu0 %vm1413_vm5, %v5805_v24 }
0x17a0   :  { %10679 = vmatprep.mubr.msk.bf16.mxu0 %vm11613_vm4, %v16353_v52 }
0x17a7   :  { %10680 = vmatmul.mubr.msk.bf16.gmra.mrb[168].mxu0 %vm1413_vm5, %v5806_v5 }
0x17a8   :  { %10683 = vmatprep.mubr.msk.bf16.mxu0 %vm11613_vm4, %v16353_v52 }
0x17af   :  { %10684 = vmatmul.mubr.msk.bf16.gmra.mrb[172].mxu0 %vm1413_vm5, %v5807_v36 }
0x17b0   :  { %10687 = vmatprep.mubr.msk.bf16.mxu0 %vm11613_vm4, %v16353_v52 }
0x17b7   :  { %10688 = vmatmul.mubr.msk.bf16.gmra.mrb[176].mxu0 %vm1413_vm5, %v5808_v31 }
0x1822   :  { %v6540_v60 = vpop.f32.mrb[124].mxu0 }
0x1823   :  { %v10601_v37 = vpop.f32.mrb[125].mxu0 }
0x1824   :  { %v6543_v58 = vpop.f32.mrb[126].mxu0 }
0x1825   :  { %v6599_v45 = vpack.c.bf16 %v6543_v58, %v6540_v60  ;;  %v10602_v51 = vpop.f32.mrb[127].mxu0 }
0x1826   :  { %v15344_v51 = vld [vmem:[%s16303_s11 + $0xa] ss:$0 sm:$0xff] }
0x1827   :  { %10632 = vmatmul.mubr.msk.bf16.vlgmr.msra.gmra.mrb[148].mxu1 %vm1413_vm5, %v6599_v45 }
0x1828   :  { %10635 = vmatprep.mubr.msk.bf16.mxu1 %vm11613_vm4, %v16353_v52 }
0x182a   :  { %v6548_v18 = vpop.f32.mrb[128].mxu0 }
0x182b   :  { %v10605_v29 = vpop.f32.mrb[129].mxu0 }
0x182c   :  { %v6551_v6 = vpop.f32.mrb[130].mxu0  ;;  %v16380_v29 = vld [vmem:[#allocation10_spill] sm:$0xff] }
0x182d   :  { %v6600_v10 = vpack.c.bf16 %v6551_v6, %v6548_v18  ;;  %v10606_v17 = vpop.f32.mrb[131].mxu0 }
0x182f   :  { %10636 = vmatmul.mubr.msk.bf16.gmra.mrb[152].mxu1 %vm1413_vm5, %v6600_v10 }
0x1830   :  { %10639 = vmatprep.mubr.msk.bf16.mxu1 %vm11613_vm4, %v16353_v52 }
0x1832   :  { %v6556_v62 = vpop.f32.mrb[132].mxu0 }
0x1833   :  { %v10609_v24 = vpop.f32.mrb[133].mxu0 }
0x1834   :  { %v6559_v23 = vpop.f32.mrb[134].mxu0 }
0x1835   :  { %v6601_v35 = vpack.c.bf16 %v6559_v23, %v6556_v62  ;;  %v10610_v5 = vpop.f32.mrb[135].mxu0  ;;  %v16381_v62 = vld [vmem:[#allocation11_spill] sm:$0xff] }
0x1837   :  { %10640 = vmatmul.mubr.msk.bf16.gmra.mrb[156].mxu1 %vm1413_vm5, %v6601_v35 }
0x1838   :  { %10643 = vmatprep.mubr.msk.bf16.mxu1 %vm11613_vm4, %v16353_v52 }
0x183a   :  { %v6564_v9 = vpop.f32.mrb[136].mxu0 }
0x183b   :  { %v10613_v50 = vpop.f32.mrb[137].mxu0 }
0x183c   :  { %v6567_v36 = vpop.f32.mrb[138].mxu0 }
0x183d   :  { %v6602_v41 = vpack.c.bf16 %v6567_v36, %v6564_v9  ;;  %v10614_v20 = vpop.f32.mrb[139].mxu0 }
0x183f   :  { %10644 = vmatmul.mubr.msk.bf16.gmra.mrb[160].mxu1 %vm1413_vm5, %v6602_v41 }
0x1840   :  { %10647 = vmatprep.mubr.msk.bf16.mxu1 %vm11613_vm4, %v16353_v52 }
0x1842   :  { %v6572_v31 = vpop.f32.mrb[140].mxu0 }
0x1843   :  { %v10617_v30 = vpop.f32.mrb[141].mxu0 }
0x1844   :  { %v6575_v22 = vpop.f32.mrb[142].mxu0 }
0x1845   :  { %v6603_v38 = vpack.c.bf16 %v6575_v22, %v6572_v31  ;;  %v10618_v61 = vpop.f32.mrb[143].mxu0  ;;  %v16382_v31 = vld [vmem:[#allocation12_spill] sm:$0xff] }
0x1847   :  { %10648 = vmatmul.mubr.msk.bf16.gmra.mrb[164].mxu1 %vm1413_vm5, %v6603_v38 }
0x1848   :  { %10651 = vmatprep.mubr.msk.bf16.mxu1 %vm11613_vm4, %v16353_v52 }
0x184a   :  { %v6580_v54 = vpop.f32.mrb[144].mxu0 }
0x184b   :  { %v10621_v59 = vpop.f32.mrb[145].mxu0 }
0x184c   :  { %v6583_v28 = vpop.f32.mrb[146].mxu0 }
0x184d   :  { %v6604_v27 = vpack.c.bf16 %v6583_v28, %v6580_v54  ;;  %v10622_v46 = vpop.f32.mrb[147].mxu0  ;;  %v16383_v54 = vld [vmem:[#allocation13_spill] sm:$0xff] }
0x184f   :  { %10652 = vmatmul.mubr.msk.bf16.gmra.mrb[168].mxu1 %vm1413_vm5, %v6604_v27 }
0x1850   :  { %10655 = vmatprep.mubr.msk.bf16.mxu1 %vm11613_vm4, %v16353_v52 }
0x1852   :  { %v6588_v44 = vpop.f32.mrb[148].mxu0 }
0x1853   :  { %v10625_v0 = vpop.f32.mrb[149].mxu0 }
0x1854   :  { %v6591_v21 = vpop.f32.mrb[150].mxu0 }
0x1855   :  { %v6605_v7 = vpack.c.bf16 %v6591_v21, %v6588_v44  ;;  %v10626_v25 = vpop.f32.mrb[151].mxu0 }
0x1856   :  { %v16384_v25 = vld [vmem:[#allocation14_spill] sm:$0xff] }
0x1857   :  { %10656 = vmatmul.mubr.msk.bf16.gmra.mrb[172].mxu1 %vm1413_vm5, %v6605_v7 }
0x1858   :  { %7219 = vmatprep.mubr.bf16.mxu1 %v16379_v48 }
0x185a   :  { %v6795_v32 = vpop.f32.mrb[152].mxu0 }
0x185b   :  { %v10665_v12 = vpop.f32.mrb[153].mxu0 }
0x185c   :  { %v6798_v49 = vpop.f32.mrb[154].mxu0 }
0x185d   :  { %v10666_v53 = vpop.f32.mrb[155].mxu0 }
0x1862   :  { %v6803_v33 = vpop.f32.mrb[156].mxu0 }
0x1863   :  { %v10669_v3 = vpop.f32.mrb[157].mxu0 }
0x1864   :  { %v6806_v63 = vpop.f32.mrb[158].mxu0 }
0x1865   :  { %v10670_v39 = vpop.f32.mrb[159].mxu0 }
0x186a   :  { %v6811_v2 = vpop.f32.mrb[160].mxu0 }
0x186b   :  { %v10673_v11 = vpop.f32.mrb[161].mxu0 }
0x186c   :  { %v6814_v43 = vpop.f32.mrb[162].mxu0 }
0x186d   :  { %v10674_v15 = vpop.f32.mrb[163].mxu0 }
0x1872   :  { %v6819_v8 = vpop.f32.mrb[164].mxu0 }
0x1873   :  { %v10677_v1 = vpop.f32.mrb[165].mxu0 }
0x1874   :  { %v6822_v4 = vpop.f32.mrb[166].mxu0 }
0x1875   :  { %v10678_v55 = vpop.f32.mrb[167].mxu0 }
0x1876   :  { %v16386_v55 = vld [vmem:[#allocation16_spill] sm:$0xff] }
0x187a   :  { %v15329_v42 = vpop.f32.mrb[168].mxu0 }
0x187b   :  { %v10681_v47 = vpop.f32.mrb[169].mxu0 }
0x187c   :  { %v15331_v14 = vpop.f32.mrb[170].mxu0 }
0x187d   :  { %v10682_v19 = vpop.f32.mrb[171].mxu0 }
0x1882   :  { %v15333_v40 = vpop.f32.mrb[172].mxu0 }
0x1883   :  { %v10685_v57 = vpop.f32.mrb[173].mxu0 }
0x1884   :  { %v15335_v13 = vpop.f32.mrb[174].mxu0 }
0x1885   :  { %v10686_v34 = vpop.f32.mrb[175].mxu0 }
0x188a   :  { %v15337_v26 = vpop.f32.mrb[176].mxu0 }
0x188b   :  { %v10689_v56 = vpop.f32.mrb[177].mxu0 }
0x188c   :  { %v15339_v16 = vpop.f32.mrb[178].mxu0  ;;  %v16387_v56 = vld [vmem:[#allocation17_spill] sm:$0xff] }
0x188d   :  { %v10690_v60 = vpop.f32.mrb[179].mxu0 }
0x18fa   :  { %v6673_v37 = vpop.f32.mrb[148].mxu1 }
0x18fb   :  { %v6796_v58 = vadd.f32 %v6795_v32, %v6673_v37  ;;  %v10633_v45 = vpop.f32.mrb[149].mxu1 }
0x18fc   :  { %v6676_v18 = vpop.f32.mrb[150].mxu1 }
0x18fd   :  { %v6850_v6 = vadd.f32 %v6796_v58, %v16380_v29  ;;  %v6799_v10 = vadd.f32 %v6798_v49, %v6676_v18  ;;  %v10634_v17 = vpop.f32.mrb[151].mxu1 }
0x18ff   :  { %v6851_v24 = vadd.f32 %v6799_v10, %v16381_v62  ;;  %v15349_v23 = vadd.f32 %v15344_v51, %v6850_v6  ;;  %v16388_v6 = vld [vmem:[#allocation18_spill] sm:$0xff] }
0x1901   :  { %v15352_v35 = vadd.f32 %v15344_v51, %v6851_v24  ;;  %v6882_v5 = vsel %vm1357_vm6, %v15349_v23, 0.0 }
0x1902   :  { %6883 = vadd.xlane.f32.xlu0 %v6882_v5  ;;  %v6681_v9 = vpop.f32.mrb[152].mxu1  ;;  %v16389_v5 = vld [vmem:[#allocation19_spill] sm:$0xff] }
0x1903   :  { %v6804_v50 = vadd.f32 %v6803_v33, %v6681_v9  ;;  %v10637_v36 = vpop.f32.mrb[153].mxu1  ;;  %v6885_v41 = vsel %vm1357_vm6, %v15352_v35, 0.0  ;;  %v16385_v33 = vld [vmem:[#allocation15_spill] sm:$0xff] }
0x1904   :  { %6886 = vadd.xlane.f32.xlu1 %v6885_v41  ;;  %v6684_v20 = vpop.f32.mrb[154].mxu1 }
0x1905   :  { %v6852_v30 = vadd.f32 %v6804_v50, %v16382_v31  ;;  %v6807_v22 = vadd.f32 %v6806_v63, %v6684_v20  ;;  %v10638_v38 = vpop.f32.mrb[155].mxu1 }
0x1907   :  { %v15360_v61 = vadd.f32 %v15344_v51, %v6852_v30  ;;  %v6853_v59 = vadd.f32 %v6807_v22, %v16383_v54  ;;  %v16390_v30 = vld [vmem:[#allocation20_spill] sm:$0xff] }
0x1909   :  { %v15364_v28 = vadd.f32 %v15344_v51, %v6853_v59  ;;  %v6888_v27 = vsel %vm1357_vm6, %v15360_v61, 0.0 }
0x190a   :  { %6889 = vadd.xlane.f32.xlu0 %v6888_v27  ;;  %v6689_v46 = vpop.f32.mrb[156].mxu1  ;;  %v16391_v27 = vld [vmem:[#allocation21_spill] sm:$0xff] }
0x190b   :  { %v6812_v44 = vadd.f32 %v6811_v2, %v6689_v46  ;;  %v10641_v0 = vpop.f32.mrb[157].mxu1  ;;  %v6891_v21 = vsel %vm1357_vm6, %v15364_v28, 0.0 }
0x190c   :  { %6892 = vadd.xlane.f32.xlu1 %v6891_v21  ;;  %v6692_v7 = vpop.f32.mrb[158].mxu1 }
0x190d   :  { %v6854_v32 = vadd.f32 %v6812_v44, %v16384_v25  ;;  %v6815_v12 = vadd.f32 %v6814_v43, %v6692_v7  ;;  %v10642_v49 = vpop.f32.mrb[159].mxu1 }
0x190f   :  { %v15372_v53 = vadd.f32 %v15344_v51, %v6854_v32  ;;  %v6855_v3 = vadd.f32 %v6815_v12, %v16385_v33  ;;  %v16392_v32 = vld [vmem:[#allocation8_spill] sm:$0xff] }
0x1911   :  { %v15376_v63 = vadd.f32 %v15344_v51, %v6855_v3  ;;  %v6894_v39 = vsel %vm1357_vm6, %v15372_v53, 0.0 }
0x1912   :  { %6895 = vadd.xlane.f32.xlu0 %v6894_v39  ;;  %v6697_v2 = vpop.f32.mrb[160].mxu1  ;;  %v16393_v39 = vld [vmem:[#allocation9_spill] sm:$0xff] }
0x1913   :  { %v6820_v11 = vadd.f32 %v6819_v8, %v6697_v2  ;;  %v10645_v15 = vpop.f32.mrb[161].mxu1  ;;  %v6897_v1 = vsel %vm1357_vm6, %v15376_v63, 0.0 }
0x1914   :  { %6898 = vadd.xlane.f32.xlu1 %v6897_v1  ;;  %v6700_v43 = vpop.f32.mrb[162].mxu1  ;;  %v11054_v1 = vld [vmem:[%s16301_s9 + $0x44] ss:$8 sps:$4 sm:$0xff]  }
0x1915   :  { %v6856_v47 = vadd.f32 %v6820_v11, %v16386_v55  ;;  %v6823_v19 = vadd.f32 %v6822_v4, %v6700_v43  ;;  %v10646_v57 = vpop.f32.mrb[163].mxu1  ;;  %7187 = vmatprep.subr.bf16.mxu1 %v11054_v1  ;;  %v11055_v43 = vld [vmem:[%s16301_s9 + $0x50] ss:$8 sps:$4 sm:$0xff]   ;;  %v11060_v55 = vld [vmem:[%s16301_s9 + $0x64] ss:$8 sps:$4 sm:$0xff]  }
0x1917   :  { %v15384_v34 = vadd.f32 %v15344_v51, %v6856_v47  ;;  %v6857_v60 = vadd.f32 %v6823_v19, %v16387_v56  ;;  %v11058_v47 = vld [vmem:[%s16301_s9 + $0x60] ss:$8 sps:$4 sm:$0xff]  }
0x1919   :  { %v6900_v37 = vsel %vm1357_vm6, %v15384_v34, 0.0  ;;  %v15390_v8 = vadd.f32 %v15344_v51, %v6857_v60 }
0x191a   :  { %6901 = vadd.xlane.f32.xlu0 %v6900_v37  ;;  %v6705_v58 = vpop.f32.mrb[164].mxu1 }
0x191b   :  { %v6828_v45 = vadd.f32 %v15329_v42, %v6705_v58  ;;  %v10649_v18 = vpop.f32.mrb[165].mxu1  ;;  %v6903_v4 = vsel %vm1357_vm6, %v15390_v8, 0.0 }
0x191c   :  { %6904 = vadd.xlane.f32.xlu1 %v6903_v4  ;;  %v6708_v29 = vpop.f32.mrb[166].mxu1 }
0x191d   :  { %v6858_v10 = vadd.f32 %v6828_v45, %v16388_v6  ;;  %v6831_v17 = vadd.f32 %v15331_v14, %v6708_v29  ;;  %v10650_v62 = vpop.f32.mrb[167].mxu1 }
0x191f   :  { %v15398_v24 = vadd.f32 %v15344_v51, %v6858_v10  ;;  %v6859_v9 = vadd.f32 %v6831_v17, %v16389_v5 }
0x1921   :  { %v15402_v50 = vadd.f32 %v15344_v51, %v6859_v9  ;;  %v6906_v42 = vsel %vm1357_vm6, %v15398_v24, 0.0 }
0x1922   :  { %6907 = vadd.xlane.f32.xlu0 %v6906_v42  ;;  %v6713_v36 = vpop.f32.mrb[168].mxu1 }
0x1923   :  { %v6836_v41 = vadd.f32 %v15333_v40, %v6713_v36  ;;  %v10653_v20 = vpop.f32.mrb[169].mxu1  ;;  %v6909_v14 = vsel %vm1357_vm6, %v15402_v50, 0.0 }
0x1924   :  { %6910 = vadd.xlane.f32.xlu1 %v6909_v14  ;;  %v6716_v31 = vpop.f32.mrb[170].mxu1 }
0x1925   :  { %v6860_v22 = vadd.f32 %v6836_v41, %v16390_v30  ;;  %v6839_v38 = vadd.f32 %v15335_v13, %v6716_v31  ;;  %v10654_v54 = vpop.f32.mrb[171].mxu1 }
0x1927   :  { %v15412_v59 = vadd.f32 %v15344_v51, %v6860_v22  ;;  %v6861_v46 = vadd.f32 %v6839_v38, %v16391_v27 }
0x1929   :  { %v15416_v44 = vadd.f32 %v15344_v51, %v6861_v46  ;;  %v6912_v40 = vsel %vm1357_vm6, %v15412_v59, 0.0 }
0x192a   :  { %6913 = vadd.xlane.f32.xlu0 %v6912_v40  ;;  %v6721_v0 = vpop.f32.mrb[172].mxu1 }
0x192b   :  { %v6844_v21 = vadd.f32 %v15337_v26, %v6721_v0  ;;  %v10657_v7 = vpop.f32.mrb[173].mxu1  ;;  %v6915_v13 = vsel %vm1357_vm6, %v15416_v44, 0.0 }
0x192c   :  { %6916 = vadd.xlane.f32.xlu1 %v6915_v13  ;;  %v6724_v25 = vpop.f32.mrb[174].mxu1 }
0x192d   :  { %v6862_v12 = vadd.f32 %v6844_v21, %v16392_v32  ;;  %v6847_v49 = vadd.f32 %v15339_v16, %v6724_v25  ;;  %v10658_v33 = vpop.f32.mrb[175].mxu1  ;;  %v11052_v16 = vld [vmem:[%s16301_s9 + $0x40] ss:$8 sps:$4 sm:$0xff]  }
0x192e   :  { %7188 = vmatpush1.bf16.msra.mxu1 %v11052_v16 }
0x192f   :  { %v15426_v3 = vadd.f32 %v15344_v51, %v6862_v12  ;;  %v6863_v2 = vadd.f32 %v6847_v49, %v16393_v39 }
0x1931   :  { %v15430_v11 = vadd.f32 %v15344_v51, %v6863_v2  ;;  %v6918_v26 = vsel %vm1357_vm6, %v15426_v3, 0.0  ;;  %v11057_v51 = vld [vmem:[%s16301_s9 + $0x54] ss:$8 sps:$4 sm:$0xff]  }
0x1932   :  { %6919 = vadd.xlane.f32.xlu0 %v6918_v26  ;;  %7189 = vmatprep.subr.bf16.mxu1 %v11057_v51 }
0x1933   :  { %16394 = vst [vmem:[#allocation22_spill] sm:$0xff] %v15430_v11  ;;  %v6921_v15 = vsel %vm1357_vm6, %v15430_v11, 0.0  ;;  %7190 = vmatpush1.bf16.msra.mxu1 %v11055_v43 }
0x1934   :  { %6922 = vadd.xlane.f32.xlu1 %v6921_v15  ;;  %7191 = vmatprep.subr.bf16.mxu1 %v11060_v55 }
0x1937   :  { %7192 = vmatpush1.bf16.msra.mxu1 %v11058_v47 }
0x198f   :  { %v6884_v19 = vpop.xlane.xlu0 %6883 }
0x1990   :  { %v6924_v57 = vmul.f32 0.015625, %v6884_v19 }
0x1991   :  { %v6887_v56 = vpop.xlane.xlu1 %6886 }
0x1992   :  { %v15455_v60 = vsub.f32 %v15349_v23, %v6924_v57  ;;  %v6925_v37 = vmul.f32 0.015625, %v6887_v56 }
0x1994   :  { %v15458_v58 = vsub.f32 %v15352_v35, %v6925_v37  ;;  %v6952_v45 = vmul.f32 %v15455_v60, %v15455_v60 }
0x1996   :  { %v6966_v18 = vsel %vm1357_vm6, %v6952_v45, 0.0  ;;  %v6953_v4 = vmul.f32 %v15458_v58, %v15458_v58 }
0x1997   :  { %v6890_v29 = vpop.xlane.xlu0 %6889  ;;  %6967 = vadd.xlane.f32.xlu0 %v6966_v18  ;;  %v11063_v18 = vld [vmem:[%s16301_s9 + $0x74] ss:$8 sps:$4 sm:$0xff]  }
0x1998   :  { %v6926_v6 = vmul.f32 0.015625, %v6890_v29  ;;  %v6969_v10 = vsel %vm1357_vm6, %v6953_v4, 0.0  ;;  %7193 = vmatprep.subr.bf16.mxu1 %v11063_v18 }
0x1999   :  { %v6893_v17 = vpop.xlane.xlu1 %6892  ;;  %6970 = vadd.xlane.f32.xlu1 %v6969_v10 }
0x199a   :  { %v15467_v23 = vsub.f32 %v15360_v61, %v6926_v6  ;;  %v6927_v62 = vmul.f32 0.015625, %v6893_v17  ;;  %v11061_v6 = vld [vmem:[%s16301_s9 + $0x70] ss:$8 sps:$4 sm:$0xff]  }
0x199b   :  { %7194 = vmatpush1.bf16.msra.mxu1 %v11061_v6 }
0x199c   :  { %v15470_v5 = vsub.f32 %v15364_v28, %v6927_v62  ;;  %v6954_v9 = vmul.f32 %v15467_v23, %v15467_v23  ;;  %10691 = vmatprep.subr.bf16.mxu1 %v16353_v52 }
0x199e   :  { %v6972_v42 = vsel %vm1357_vm6, %v6954_v9, 0.0  ;;  %v6955_v36 = vmul.f32 %v15470_v5, %v15470_v5 }
0x199f   :  { %v6896_v41 = vpop.xlane.xlu0 %6895  ;;  %6973 = vadd.xlane.f32.xlu0 %v6972_v42 }
0x19a0   :  { %v6928_v20 = vmul.f32 0.015625, %v6896_v41  ;;  %v6975_v14 = vsel %vm1357_vm6, %v6955_v36, 0.0 }
0x19a1   :  { %v6899_v31 = vpop.xlane.xlu1 %6898  ;;  %6976 = vadd.xlane.f32.xlu1 %v6975_v14 }
0x19a2   :  { %v15479_v30 = vsub.f32 %v15372_v53, %v6928_v20  ;;  %v6929_v22 = vmul.f32 0.015625, %v6899_v31 }
0x19a4   :  { %v15482_v38 = vsub.f32 %v15376_v63, %v6929_v22  ;;  %v6956_v54 = vmul.f32 %v15479_v30, %v15479_v30 }
0x19a6   :  { %v6978_v27 = vsel %vm1357_vm6, %v6956_v54, 0.0  ;;  %v6957_v46 = vmul.f32 %v15482_v38, %v15482_v38 }
0x19a7   :  { %v6902_v40 = vpop.xlane.xlu0 %6901  ;;  %6979 = vadd.xlane.f32.xlu0 %v6978_v27 }
0x19a8   :  { %v6930_v0 = vmul.f32 0.015625, %v6902_v40  ;;  %v6981_v21 = vsel %vm1357_vm6, %v6957_v46, 0.0  ;;  %v11064_v46 = vld [vmem:[%s16299_s7 + $0x158] sm:$0xff]  }
0x19a9   :  { %v6905_v7 = vpop.xlane.xlu1 %6904  ;;  %6982 = vadd.xlane.f32.xlu1 %v6981_v21  ;;  %v11065_v40 = vld [vmem:[%s16299_s7 + $0x118] sm:$0xff]   ;;  %9603 = vmatprep.subr.bf16.mxu0 %v11064_v46  ;;  %v11067_v21 = vld [vmem:[%s16299_s7 + $0x120] sm:$0xff]  }
0x19aa   :  { %v15491_v13 = vsub.f32 %v15384_v34, %v6930_v0  ;;  %v6931_v25 = vmul.f32 0.015625, %v6905_v7  ;;  %v11066_v0 = vld [vmem:[%s16299_s7 + $0x160] sm:$0xff]   ;;  %9604 = vmatpush3.bf16.msra.mxu0 %v11065_v40  ;;  %v11068_v7 = vld [vmem:[%s16299_s7 + $0x168] sm:$0xff]  }
0x19ab   :  { %9605 = vmatprep.subr.bf16.mxu0 %v11066_v0 }
0x19ac   :  { %v15494_v32 = vsub.f32 %v15390_v8, %v6931_v25  ;;  %v6958_v12 = vmul.f32 %v15491_v13, %v15491_v13  ;;  %v11069_v25 = vld [vmem:[%s16299_s7 + $0x128] sm:$0xff]  }
0x19ae   :  { %v6984_v49 = vsel %vm1357_vm6, %v6958_v12, 0.0  ;;  %v6959_v33 = vmul.f32 %v15494_v32, %v15494_v32  ;;  %9606 = vmatpush3.bf16.msra.mxu0 %v11067_v21 }
0x19af   :  { %v6908_v39 = vpop.xlane.xlu0 %6907  ;;  %6985 = vadd.xlane.f32.xlu0 %v6984_v49  ;;  %9607 = vmatprep.subr.bf16.mxu0 %v11068_v7 }
0x19b0   :  { %v6932_v2 = vmul.f32 0.015625, %v6908_v39  ;;  %v6987_v26 = vsel %vm1357_vm6, %v6959_v33, 0.0 }
0x19b1   :  { %v6911_v15 = vpop.xlane.xlu1 %6910  ;;  %6988 = vadd.xlane.f32.xlu1 %v6987_v26 }
0x19b2   :  { %v15503_v16 = vsub.f32 %v15398_v24, %v6932_v2  ;;  %v6933_v8 = vmul.f32 0.015625, %v6911_v15  ;;  %9608 = vmatpush3.bf16.msra.mxu0 %v11069_v25 }
0x19b4   :  { %v15506_v1 = vsub.f32 %v15402_v50, %v6933_v8  ;;  %v6960_v51 = vmul.f32 %v15503_v16, %v15503_v16 }
0x19b6   :  { %v6990_v43 = vsel %vm1357_vm6, %v6960_v51, 0.0  ;;  %v6961_v55 = vmul.f32 %v15506_v1, %v15506_v1 }
0x19b7   :  { %v6914_v47 = vpop.xlane.xlu0 %6913  ;;  %6991 = vadd.xlane.f32.xlu0 %v6990_v43 }
0x19b8   :  { %v6934_v19 = vmul.f32 0.015625, %v6914_v47  ;;  %v6993_v57 = vsel %vm1357_vm6, %v6961_v55, 0.0 }
0x19b9   :  { %v6917_v56 = vpop.xlane.xlu1 %6916  ;;  %6994 = vadd.xlane.f32.xlu1 %v6993_v57  ;;  %v15566_v57 = vld [vmem:[%s16303_s11 + $0xb] ss:$0 sm:$0xff] }
0x19ba   :  { %v15515_v37 = vsub.f32 %v15412_v59, %v6934_v19  ;;  %v6935_v45 = vmul.f32 0.015625, %v6917_v56 }
0x19bc   :  { %v15521_v4 = vsub.f32 %v15416_v44, %v6935_v45  ;;  %v6962_v29 = vmul.f32 %v15515_v37, %v15515_v37 }
0x19be   :  { %v6996_v10 = vsel %vm1357_vm6, %v6962_v29, 0.0  ;;  %v6963_v17 = vmul.f32 %v15521_v4, %v15521_v4 }
0x19bf   :  { %6997 = vadd.xlane.f32.xlu0 %v6996_v10  ;;  %v6920_v62 = vpop.xlane.xlu0 %6919 }
0x19c0   :  { %v6936_v9 = vmul.f32 0.015625, %v6920_v62  ;;  %v6999_v42 = vsel %vm1357_vm6, %v6963_v17, 0.0  ;;  %v15574_v62 = vld [vmem:[%s16303_s11 + $0xc] ss:$0 sm:$0xff] }
0x19c1   :  { %7000 = vadd.xlane.f32.xlu1 %v6999_v42  ;;  %v6923_v36 = vpop.xlane.xlu1 %6922 }
0x19c2   :  { %v15534_v41 = vsub.f32 %v15426_v3, %v6936_v9  ;;  %v6937_v20 = vmul.f32 0.015625, %v6923_v36 }
0x19c4   :  { %v15537_v14 = vsub.f32 %v15430_v11, %v6937_v20  ;;  %v6964_v31 = vmul.f32 %v15534_v41, %v15534_v41 }
0x19c6   :  { %v7002_v22 = vsel %vm1357_vm6, %v6964_v31, 0.0  ;;  %v6965_v54 = vmul.f32 %v15537_v14, %v15537_v14 }
0x19c7   :  { %7003 = vadd.xlane.f32.xlu0 %v7002_v22 }
0x19c8   :  { %v7005_v27 = vsel %vm1357_vm6, %v6965_v54, 0.0 }
0x19c9   :  { %7006 = vadd.xlane.f32.xlu1 %v7005_v27 }
0x1a24   :  { %v6968_v12 = vpop.xlane.xlu0 %6967 }
0x1a25   :  { %v7008_v49 = vmul.f32 0.015625, %v6968_v12 }
0x1a26   :  { %v6971_v33 = vpop.xlane.xlu1 %6970 }
0x1a27   :  { %v7022_v39 = vadd.f32 1e-05, %v7008_v49  ;;  %v7009_v2 = vmul.f32 0.015625, %v6971_v33 }
0x1a29   :  { %11476 = vrsqrt.f32 %v7022_v39  ;;  %v7023_v26 = vadd.f32 1e-05, %v7009_v2 }
0x1a2b   :  { %11478 = vrsqrt.f32 %v7023_v26 }
0x1a2c   :  { %v6974_v15 = vpop.xlane.xlu0 %6973 }
0x1a2d   :  { %v7010_v8 = vmul.f32 0.015625, %v6974_v15 }
0x1a2e   :  { %v6977_v51 = vpop.xlane.xlu1 %6976 }
0x1a2f   :  { %v7024_v43 = vadd.f32 1e-05, %v7010_v8  ;;  %v7011_v55 = vmul.f32 0.015625, %v6977_v51 }
0x1a31   :  { %11480 = vrsqrt.f32 %v7024_v43  ;;  %v7025_v47 = vadd.f32 1e-05, %v7011_v55 }
0x1a33   :  { %v11477_v19 = vpop.eup %11476  ;;  %11482 = vrsqrt.f32 %v7025_v47 }
0x1a34   :  { %v7050_v56 = vmul.f32 %v11477_v19, %v15455_v60  ;;  %v6980_v45 = vpop.xlane.xlu0 %6979 }
0x1a35   :  { %v11479_v18 = vpop.eup %11478  ;;  %v7012_v29 = vmul.f32 0.015625, %v6980_v45 }
0x1a36   :  { %v7068_v6 = vmul.f32 %v15566_v57, %v7050_v56  ;;  %v7051_v10 = vmul.f32 %v11479_v18, %v15458_v58  ;;  %v6983_v17 = vpop.xlane.xlu1 %6982 }
0x1a37   :  { %v7026_v9 = vadd.f32 1e-05, %v7012_v29  ;;  %v7013_v42 = vmul.f32 0.015625, %v6983_v17 }
0x1a38   :  { %v7069_v36 = vmul.f32 %v15566_v57, %v7051_v10  ;;  %v7086_v60 = vadd.f32 %v15574_v62, %v7068_v6 }
0x1a39   :  { %11484 = vrsqrt.f32 %v7026_v9  ;;  %v7027_v20 = vadd.f32 1e-05, %v7013_v42 }
0x1a3a   :  { %v7087_v31 = vadd.f32 %v15574_v62, %v7069_v36 }
0x1a3b   :  { %v11481_v22 = vpop.eup %11480  ;;  %11486 = vrsqrt.f32 %v7027_v20 }
0x1a3c   :  { %v7100_v54 = vpack.c.bf16 %v7087_v31, %v7086_v60  ;;  %v7052_v58 = vmul.f32 %v11481_v22, %v15467_v23  ;;  %v6986_v27 = vpop.xlane.xlu0 %6985 }
0x1a3d   :  { %v11483_v46 = vpop.eup %11482  ;;  %v7014_v40 = vmul.f32 0.015625, %v6986_v27 }
0x1a3e   :  { %v7070_v0 = vmul.f32 %v15566_v57, %v7052_v58  ;;  %v7053_v21 = vmul.f32 %v11483_v46, %v15470_v5  ;;  %9058 = vmatmul.mubr.msk.bf16.vlgmr.msra.gmra.mrb[176].mxu1 %vm1357_vm6, %v7100_v54  ;;  %v6989_v7 = vpop.xlane.xlu1 %6988 }
0x1a3f   :  { %v7028_v25 = vadd.f32 1e-05, %v7014_v40  ;;  %v7015_v12 = vmul.f32 0.015625, %v6989_v7  ;;  %7229 = vmatprep.mubr.bf16.mxu1 %v16379_v48 }
0x1a40   :  { %v7071_v49 = vmul.f32 %v15566_v57, %v7053_v21  ;;  %v7088_v23 = vadd.f32 %v15574_v62, %v7070_v0 }
0x1a41   :  { %11488 = vrsqrt.f32 %v7028_v25  ;;  %v7029_v33 = vadd.f32 1e-05, %v7015_v12 }
0x1a42   :  { %v7089_v39 = vadd.f32 %v15574_v62, %v7071_v49 }
0x1a43   :  { %v11485_v2 = vpop.eup %11484  ;;  %11490 = vrsqrt.f32 %v7029_v33 }
0x1a44   :  { %v7101_v26 = vpack.c.bf16 %v7089_v39, %v7088_v23  ;;  %v7054_v5 = vmul.f32 %v11485_v2, %v15479_v30  ;;  %v6992_v15 = vpop.xlane.xlu0 %6991 }
0x1a45   :  { %v11487_v8 = vpop.eup %11486  ;;  %v7016_v51 = vmul.f32 0.015625, %v6992_v15 }
0x1a46   :  { %v7072_v43 = vmul.f32 %v15566_v57, %v7054_v5  ;;  %v7055_v55 = vmul.f32 %v11487_v8, %v15482_v38  ;;  %9059 = vmatmul.mubr.msk.bf16.gmra.mrb[180].mxu1 %vm1357_vm6, %v7101_v26  ;;  %v6995_v47 = vpop.xlane.xlu1 %6994 }
0x1a47   :  { %v7030_v19 = vadd.f32 1e-05, %v7016_v51  ;;  %v7017_v56 = vmul.f32 0.015625, %v6995_v47  ;;  %7239 = vmatprep.mubr.bf16.mxu1 %v16379_v48 }
0x1a48   :  { %v7073_v45 = vmul.f32 %v15566_v57, %v7055_v55  ;;  %v7090_v30 = vadd.f32 %v15574_v62, %v7072_v43 }
0x1a49   :  { %11492 = vrsqrt.f32 %v7030_v19  ;;  %v7031_v18 = vadd.f32 1e-05, %v7017_v56 }
0x1a4a   :  { %v7091_v29 = vadd.f32 %v15574_v62, %v7073_v45 }
0x1a4b   :  { %v11489_v6 = vpop.eup %11488  ;;  %11494 = vrsqrt.f32 %v7031_v18 }
0x1a4c   :  { %v7102_v10 = vpack.c.bf16 %v7091_v29, %v7090_v30  ;;  %v7056_v38 = vmul.f32 %v11489_v6, %v15491_v13  ;;  %v6998_v17 = vpop.xlane.xlu0 %6997 }
0x1a4d   :  { %v11491_v9 = vpop.eup %11490  ;;  %v7018_v42 = vmul.f32 0.015625, %v6998_v17  ;;  %v11075_v17 = vld [vmem:[%s16299_s7 + $0x140] sm:$0xff]  }
0x1a4e   :  { %v7074_v36 = vmul.f32 %v15566_v57, %v7056_v38  ;;  %v7057_v20 = vmul.f32 %v11491_v9, %v15494_v32  ;;  %9060 = vmatmul.mubr.msk.bf16.gmra.mrb[184].mxu1 %vm1357_vm6, %v7102_v10  ;;  %v7001_v60 = vpop.xlane.xlu1 %7000  ;;  %v11076_v9 = vld [vmem:[%s16299_s7 + $0x188] sm:$0xff]  }
0x1a4f   :  { %v7032_v31 = vadd.f32 1e-05, %v7018_v42  ;;  %v7019_v22 = vmul.f32 0.015625, %v7001_v60  ;;  %7249 = vmatprep.mubr.bf16.mxu1 %v16379_v48  ;;  %v11077_v42 = vld [vmem:[%s16299_s7 + $0x148] sm:$0xff]  }
0x1a50   :  { %v7075_v54 = vmul.f32 %v15566_v57, %v7057_v20  ;;  %v7092_v13 = vadd.f32 %v15574_v62, %v7074_v36  ;;  %v11078_v36 = vld [vmem:[%s16299_s7 + $0x190] sm:$0xff]   ;;  %v8932_v60 = vld [vmem:[%s16305_s13 + $0x1] ss:$2 sm:$0x3] }
0x1a51   :  { %11496 = vrsqrt.f32 %v7032_v31  ;;  %v7033_v58 = vadd.f32 1e-05, %v7019_v22  ;;  %v11079_v20 = vld [vmem:[%s16299_s7 + $0x150] sm:$0xff]   ;;  %v16395_v31 = vld [vmem:[#allocation7_spill] sm:$0xff] }
0x1a52   :  { %v7093_v27 = vadd.f32 %v15574_v62, %v7075_v54  ;;  %v15665_v22 = vrot.slane %v8932_v60, %v16395_v31  ;;  %v16396_v54 = vld [vmem:[#allocation6_spill] sm:$0xff] }
0x1a53   :  { %v11493_v46 = vpop.eup %11492  ;;  %11498 = vrsqrt.f32 %v7033_v58  ;;  %v16397_v58 = vsub.s32 1, %v16396_v54 }
0x1a54   :  { %v7103_v40 = vpack.c.bf16 %v7093_v27, %v7092_v13  ;;  %v7058_v32 = vmul.f32 %v11493_v46, %v15503_v16  ;;  %v7004_v0 = vpop.xlane.xlu0 %7003 }
0x1a55   :  { %v11495_v21 = vpop.eup %11494  ;;  %v7020_v7 = vmul.f32 0.015625, %v7004_v0  ;;  %v15669_v13 = vrot.slane %v8932_v60, %v16397_v58 }
0x1a56   :  { %v7076_v25 = vmul.f32 %v15566_v57, %v7058_v32  ;;  %v7059_v12 = vmul.f32 %v11495_v21, %v15506_v1  ;;  %9061 = vmatmul.mubr.msk.bf16.gmra.mrb[188].mxu1 %vm1357_vm6, %v7103_v40  ;;  %v7007_v49 = vpop.xlane.xlu1 %7006 }
0x1a57   :  { %v7034_v33 = vadd.f32 1e-05, %v7020_v7  ;;  %v7021_v23 = vmul.f32 0.015625, %v7007_v49  ;;  %7259 = vmatprep.mubr.bf16.mxu1 %v16379_v48 }
0x1a58   :  { %v7077_v39 = vmul.f32 %v15566_v57, %v7059_v12  ;;  %v7094_v16 = vadd.f32 %v15574_v62, %v7076_v25 }
0x1a59   :  { %11500 = vrsqrt.f32 %v7034_v33  ;;  %v7035_v2 = vadd.f32 1e-05, %v7021_v23 }
0x1a5a   :  { %v7095_v26 = vadd.f32 %v15574_v62, %v7077_v39 }
0x1a5b   :  { %v11497_v5 = vpop.eup %11496  ;;  %11502 = vrsqrt.f32 %v7035_v2 }
0x1a5c   :  { %v7104_v15 = vpack.c.bf16 %v7095_v26, %v7094_v16  ;;  %v7060_v1 = vmul.f32 %v11497_v5, %v15515_v37 }
0x1a5d   :  { %v11499_v8 = vpop.eup %11498 }
0x1a5e   :  { %v7078_v51 = vmul.f32 %v15566_v57, %v7060_v1  ;;  %v7061_v43 = vmul.f32 %v11499_v8, %v15521_v4  ;;  %9062 = vmatmul.mubr.msk.bf16.gmra.mrb[192].mxu1 %vm1357_vm6, %v7104_v15 }
0x1a5f   :  { %7269 = vmatprep.mubr.bf16.mxu1 %v16379_v48 }
0x1a60   :  { %v7079_v55 = vmul.f32 %v15566_v57, %v7061_v43  ;;  %v7096_v47 = vadd.f32 %v15574_v62, %v7078_v51 }
0x1a62   :  { %v7097_v19 = vadd.f32 %v15574_v62, %v7079_v55 }
0x1a63   :  { %v11501_v56 = vpop.eup %11500 }
0x1a64   :  { %v7105_v45 = vpack.c.bf16 %v7097_v19, %v7096_v47  ;;  %v7062_v18 = vmul.f32 %v11501_v56, %v15534_v41  ;;  %v11070_v41 = vld [vmem:[%s16299_s7 + $0x170] sm:$0xff]  }
0x1a65   :  { %v11503_v37 = vpop.eup %11502  ;;  %9609 = vmatprep.subr.bf16.mxu0 %v11070_v41 }
0x1a66   :  { %v7080_v30 = vmul.f32 %v15566_v57, %v7062_v18  ;;  %v7063_v29 = vmul.f32 %v11503_v37, %v15537_v14  ;;  %9063 = vmatmul.mubr.msk.bf16.gmra.mrb[196].mxu1 %vm1357_vm6, %v7105_v45  ;;  %v11072_v14 = vld [vmem:[%s16299_s7 + $0x178] sm:$0xff]  }
0x1a67   :  { %7279 = vmatprep.mubr.bf16.mxu1 %v16379_v48  ;;  %v11071_v48 = vld [vmem:[%s16299_s7 + $0x130] sm:$0xff]  }
0x1a68   :  { %v7081_v4 = vmul.f32 %v15566_v57, %v7063_v29  ;;  %v7098_v6 = vadd.f32 %v15574_v62, %v7080_v30  ;;  %9610 = vmatpush3.bf16.msra.mxu0 %v11071_v48  ;;  %v11073_v57 = vld [vmem:[%s16299_s7 + $0x138] sm:$0xff]  }
0x1a69   :  { %9611 = vmatprep.subr.bf16.mxu0 %v11072_v14 }
0x1a6a   :  { %v7099_v10 = vadd.f32 %v15574_v62, %v7081_v4  ;;  %v11074_v62 = vld [vmem:[%s16299_s7 + $0x180] sm:$0xff]  }
0x1a6c   :  { %v7106_v38 = vpack.c.bf16 %v7099_v10, %v7098_v6  ;;  %9612 = vmatpush3.bf16.msra.mxu0 %v11073_v57 }
0x1a6d   :  { %9613 = vmatprep.subr.bf16.mxu0 %v11074_v62 }
0x1a6e   :  { %9064 = vmatmul.mubr.msk.bf16.gmra.mrb[200].mxu1 %vm1357_vm6, %v7106_v38 }
0x1a6f   :  { %10699 = vmatprep.mubr.msk.bf16.mxu1 %vm11613_vm4, %v16353_v52 }
0x1a70   :  { %9614 = vmatpush3.bf16.msra.mxu0 %v11075_v17 }
0x1a71   :  { %9615 = vmatprep.subr.bf16.mxu0 %v11076_v9 }
0x1a74   :  { %9616 = vmatpush3.bf16.msra.mxu0 %v11077_v42 }
0x1a75   :  { %9617 = vmatprep.subr.bf16.mxu0 %v11078_v36 }
0x1a78   :  { %9618 = vmatpush3.bf16.msra.mxu0 %v11079_v20 }
0x1a79   :  { %10711 = vmatprep.subr.bf16.mxu0 %v16353_v52 }
0x1b11   :  { %v7221_v27 = vpop.f32.mrb[176].mxu1 }
0x1b12   :  { %v15672_v46 = vadd.f32 %v7221_v27, %v15665_v22  ;;  %v7223_v40 = vpop.f32.mrb[177].mxu1 }
0x1b13   :  { %v15675_v32 = vadd.f32 %v7223_v40, %v15669_v13  ;;  %v7225_v0 = vpop.f32.mrb[178].mxu1 }
0x1b14   :  { %v7290_v21 = vmul.f32 %v15672_v46, %v15672_v46  ;;  %v15680_v7 = vadd.f32 %v7225_v0, %v15665_v22  ;;  %v7227_v25 = vpop.f32.mrb[179].mxu1 }
0x1b15   :  { %v7291_v12 = vmul.f32 %v15675_v32, %v15675_v32  ;;  %v15685_v49 = vadd.f32 %v7227_v25, %v15669_v13 }
0x1b16   :  { %v7318_v33 = vmul.f32 %v7290_v21, %v15672_v46  ;;  %v7292_v23 = vmul.f32 %v15680_v7, %v15680_v7 }
0x1b17   :  { %v7319_v39 = vmul.f32 %v7291_v12, %v15675_v32  ;;  %v7293_v2 = vmul.f32 %v15685_v49, %v15685_v49 }
0x1b18   :  { %v7346_v16 = vmul.f32 0.044715, %v7318_v33  ;;  %v7320_v26 = vmul.f32 %v7292_v23, %v15680_v7 }
0x1b19   :  { %v7347_v5 = vmul.f32 0.044715, %v7319_v39  ;;  %v7321_v15 = vmul.f32 %v7293_v2, %v15685_v49  ;;  %v7231_v1 = vpop.f32.mrb[180].mxu1 }
0x1b1a   :  { %v7374_v8 = vadd.f32 %v7346_v16, %v15672_v46  ;;  %v7348_v51 = vmul.f32 0.044715, %v7320_v26  ;;  %v15697_v43 = vadd.f32 %v7231_v1, %v15665_v22  ;;  %v7233_v55 = vpop.f32.mrb[181].mxu1 }
0x1b1b   :  { %v7375_v47 = vadd.f32 %v7347_v5, %v15675_v32  ;;  %v7349_v19 = vmul.f32 0.044715, %v7321_v15  ;;  %v15701_v56 = vadd.f32 %v7233_v55, %v15669_v13  ;;  %v7235_v45 = vpop.f32.mrb[182].mxu1 }
0x1b1c   :  { %v7402_v18 = vmul.f32 0.7978846, %v7374_v8  ;;  %v7376_v37 = vadd.f32 %v7348_v51, %v15680_v7  ;;  %v7294_v30 = vmul.f32 %v15697_v43, %v15697_v43  ;;  %v15707_v29 = vadd.f32 %v7235_v45, %v15665_v22  ;;  %v7237_v4 = vpop.f32.mrb[183].mxu1 }
0x1b1d   :  { %v7403_v6 = vmul.f32 0.7978846, %v7375_v47  ;;  %v7377_v10 = vadd.f32 %v7349_v19, %v15685_v49  ;;  %v7295_v38 = vmul.f32 %v15701_v56, %v15701_v56  ;;  %v15713_v41 = vadd.f32 %v7237_v4, %v15669_v13 }
0x1b1e   :  { %11504 = vtanh.f32 %v7402_v18  ;;  %v7404_v48 = vmul.f32 0.7978846, %v7376_v37  ;;  %v7322_v14 = vmul.f32 %v7294_v30, %v15697_v43  ;;  %v7296_v57 = vmul.f32 %v15707_v29, %v15707_v29 }
0x1b1f   :  { %11506 = vtanh.f32 %v7403_v6  ;;  %v7405_v62 = vmul.f32 0.7978846, %v7377_v10  ;;  %v7323_v17 = vmul.f32 %v7295_v38, %v15701_v56  ;;  %v7297_v9 = vmul.f32 %v15713_v41, %v15713_v41 }
0x1b20   :  { %11508 = vtanh.f32 %v7404_v48  ;;  %v7350_v42 = vmul.f32 0.044715, %v7322_v14  ;;  %v7324_v36 = vmul.f32 %v7296_v57, %v15707_v29 }
0x1b21   :  { %v7351_v20 = vmul.f32 0.044715, %v7323_v17  ;;  %v7325_v60 = vmul.f32 %v7297_v9, %v15713_v41  ;;  %v7241_v31 = vpop.f32.mrb[184].mxu1  ;;  %11510 = vtanh.f32 %v7405_v62 }
0x1b22   :  { %v7378_v54 = vadd.f32 %v7350_v42, %v15697_v43  ;;  %v7352_v58 = vmul.f32 0.044715, %v7324_v36  ;;  %v15725_v27 = vadd.f32 %v7241_v31, %v15665_v22  ;;  %v7243_v40 = vpop.f32.mrb[185].mxu1 }
0x1b23   :  { %v7379_v0 = vadd.f32 %v7351_v20, %v15701_v56  ;;  %v7353_v21 = vmul.f32 0.044715, %v7325_v60  ;;  %v15729_v25 = vadd.f32 %v7243_v40, %v15669_v13  ;;  %v7245_v12 = vpop.f32.mrb[186].mxu1 }
0x1b24   :  { %v7406_v33 = vmul.f32 0.7978846, %v7378_v54  ;;  %v7380_v23 = vadd.f32 %v7352_v58, %v15707_v29  ;;  %v7298_v39 = vmul.f32 %v15725_v27, %v15725_v27  ;;  %v15735_v2 = vadd.f32 %v7245_v12, %v15665_v22  ;;  %v7247_v16 = vpop.f32.mrb[187].mxu1 }
0x1b25   :  { %v7407_v26 = vmul.f32 0.7978846, %v7379_v0  ;;  %v7381_v5 = vadd.f32 %v7353_v21, %v15713_v41  ;;  %v7299_v15 = vmul.f32 %v15729_v25, %v15729_v25  ;;  %v15741_v1 = vadd.f32 %v7247_v16, %v15669_v13 }
0x1b26   :  { %11512 = vtanh.f32 %v7406_v33  ;;  %v7408_v8 = vmul.f32 0.7978846, %v7380_v23  ;;  %v7326_v51 = vmul.f32 %v7298_v39, %v15725_v27  ;;  %v7300_v55 = vmul.f32 %v15735_v2, %v15735_v2 }
0x1b27   :  { %11514 = vtanh.f32 %v7407_v26  ;;  %v7409_v47 = vmul.f32 0.7978846, %v7381_v5  ;;  %v7327_v19 = vmul.f32 %v7299_v15, %v15729_v25  ;;  %v7301_v45 = vmul.f32 %v15741_v1, %v15741_v1 }
0x1b28   :  { %v11505_v18 = vpop.eup %11504  ;;  %11516 = vtanh.f32 %v7408_v8  ;;  %v7354_v37 = vmul.f32 0.044715, %v7326_v51  ;;  %v7328_v30 = vmul.f32 %v7300_v55, %v15735_v2 }
0x1b29   :  { %v11507_v4 = vpop.eup %11506  ;;  %v7458_v6 = vadd.f32 1.0, %v11505_v18  ;;  %11518 = vtanh.f32 %v7409_v47  ;;  %v7355_v10 = vmul.f32 0.044715, %v7327_v19  ;;  %v7329_v38 = vmul.f32 %v7301_v45, %v15741_v1  ;;  %v7251_v48 = vpop.f32.mrb[188].mxu1 }
0x1b2a   :  { %v11509_v14 = vpop.eup %11508  ;;  %v7382_v57 = vadd.f32 %v7354_v37, %v15725_v27  ;;  %v7356_v62 = vmul.f32 0.044715, %v7328_v30  ;;  %v15753_v17 = vadd.f32 %v7251_v48, %v15665_v22  ;;  %v7253_v9 = vpop.f32.mrb[189].mxu1  ;;  %v15755_v42 = vadd.f32 1.0, %v11507_v4 }
0x1b2b   :  { %v7486_v36 = vmul.f32 0.5, %v7458_v6  ;;  %v7460_v20 = vadd.f32 1.0, %v11509_v14  ;;  %v7383_v60 = vadd.f32 %v7355_v10, %v15729_v25  ;;  %v7357_v31 = vmul.f32 0.044715, %v7329_v38  ;;  %v7255_v54 = vpop.f32.mrb[190].mxu1  ;;  %v15764_v33 = vpop.eup %11510 }
0x1b2c   :  { %v7410_v58 = vmul.f32 0.7978846, %v7382_v57  ;;  %v7384_v40 = vadd.f32 %v7356_v62, %v15735_v2  ;;  %v7302_v0 = vmul.f32 %v15753_v17, %v15753_v17  ;;  %v15762_v21 = vadd.f32 %v7253_v9, %v15669_v13  ;;  %v7257_v12 = vpop.f32.mrb[191].mxu1 }
0x1b2d   :  { %v15767_v23 = vmul.f32 %v7486_v36, %v15672_v46  ;;  %v7488_v39 = vmul.f32 0.5, %v7460_v20  ;;  %v7411_v16 = vmul.f32 0.7978846, %v7383_v60  ;;  %v7385_v26 = vadd.f32 %v7357_v31, %v15741_v1 }
0x1b2e   :  { %11520 = vtanh.f32 %v7410_v58  ;;  %v7412_v5 = vmul.f32 0.7978846, %v7384_v40  ;;  %v7330_v15 = vmul.f32 %v7302_v0, %v15753_v17  ;;  %v7303_v8 = vmul.f32 %v15762_v21, %v15762_v21 }
0x1b2f   :  { %v15774_v51 = vmul.f32 %v7488_v39, %v15680_v7  ;;  %11522 = vtanh.f32 %v7411_v16  ;;  %v7413_v55 = vmul.f32 0.7978846, %v7385_v26  ;;  %v15777_v47 = vadd.f32 %v7255_v54, %v15665_v22 }
0x1b30   :  { %v11513_v46 = vpop.eup %11512  ;;  %11524 = vtanh.f32 %v7412_v5  ;;  %v7358_v19 = vmul.f32 0.044715, %v7330_v15  ;;  %v7331_v45 = vmul.f32 %v7303_v8, %v15762_v21  ;;  %v15781_v18 = vadd.f32 %v7257_v12, %v15669_v13 }
0x1b31   :  { %v15783_v37 = vpop.eup %11514  ;;  %v7542_v30 = vpack.c.bf16 %v15774_v51, %v15767_v23  ;;  %v7462_v7 = vadd.f32 1.0, %v11513_v46  ;;  %11526 = vtanh.f32 %v7413_v55  ;;  %v7304_v4 = vmul.f32 %v15777_v47, %v15777_v47  ;;  %v7261_v6 = vpop.f32.mrb[192].mxu1  ;;  %v15900_v23 = vld [vmem:[%s16299_s7 + $0x40] sm:$0xff]  }
0x1b32   :  { %v11517_v10 = vpop.eup %11516  ;;  %v7386_v38 = vadd.f32 %v7358_v19, %v15753_v17  ;;  %v7359_v48 = vmul.f32 0.044715, %v7331_v45  ;;  %v7305_v14 = vmul.f32 %v15781_v18, %v15781_v18  ;;  %v15793_v57 = vadd.f32 %v7261_v6, %v15665_v22  ;;  %v7263_v62 = vpop.f32.mrb[193].mxu1 }
0x1b33   :  { %v15795_v9 = vpop.eup %11518  ;;  %v7490_v36 = vmul.f32 0.5, %v7462_v7  ;;  %v7464_v20 = vadd.f32 1.0, %v11517_v10  ;;  %v7332_v60 = vmul.f32 %v7304_v4, %v15777_v47  ;;  %v15799_v31 = vadd.f32 %v7263_v62, %v15669_v13  ;;  %v7265_v54 = vpop.f32.mrb[194].mxu1 }
0x1b34   :  { %v7414_v58 = vmul.f32 0.7978846, %v7386_v38  ;;  %v7387_v40 = vadd.f32 %v7359_v48, %v15762_v21  ;;  %v7333_v0 = vmul.f32 %v7305_v14, %v15781_v18  ;;  %v7306_v12 = vmul.f32 %v15793_v57, %v15793_v57  ;;  %v7267_v39 = vpop.f32.mrb[195].mxu1 }
0x1b35   :  { %v15806_v16 = vmul.f32 %v7490_v36, %v15697_v43  ;;  %v7492_v26 = vmul.f32 0.5, %v7464_v20  ;;  %v7360_v5 = vmul.f32 0.044715, %v7332_v60  ;;  %v7307_v15 = vmul.f32 %v15799_v31, %v15799_v31 }
0x1b36   :  { %11528 = vtanh.f32 %v7414_v58  ;;  %v7415_v8 = vmul.f32 0.7978846, %v7387_v40  ;;  %v7361_v55 = vmul.f32 0.044715, %v7333_v0  ;;  %v7334_v46 = vmul.f32 %v7306_v12, %v15793_v57 }
0x1b37   :  { %v15812_v19 = vmul.f32 %v7492_v26, %v15707_v29  ;;  %v7388_v45 = vadd.f32 %v7360_v5, %v15777_v47  ;;  %v7335_v7 = vmul.f32 %v7307_v15, %v15799_v31  ;;  %v15817_v43 = vadd.f32 %v7265_v54, %v15665_v22 }
0x1b38   :  { %v11521_v4 = vpop.eup %11520  ;;  %11530 = vtanh.f32 %v7415_v8  ;;  %v7389_v6 = vadd.f32 %v7361_v55, %v15781_v18  ;;  %v7362_v10 = vmul.f32 0.044715, %v7334_v46  ;;  %v15821_v38 = vadd.f32 %v7267_v39, %v15669_v13 }
0x1b39   :  { %v15823_v48 = vpop.eup %11522  ;;  %v7466_v14 = vadd.f32 1.0, %v11521_v4  ;;  %v7416_v62 = vmul.f32 0.7978846, %v7388_v45  ;;  %v7363_v36 = vmul.f32 0.044715, %v7335_v7  ;;  %v7271_v20 = vpop.f32.mrb[196].mxu1  ;;  %v7308_v40 = vmul.f32 %v15817_v43, %v15817_v43 }
0x1b3a   :  { %v11525_v60 = vpop.eup %11524  ;;  %v7417_v54 = vmul.f32 0.7978846, %v7389_v6  ;;  %v7390_v58 = vadd.f32 %v7362_v10, %v15793_v57  ;;  %v7309_v0 = vmul.f32 %v15821_v38, %v15821_v38  ;;  %v7273_v12 = vpop.f32.mrb[197].mxu1  ;;  %v7461_v29 = vadd.f32 1.0, %v15764_v33 }
0x1b3b   :  { %v15832_v39 = vpop.eup %11526  ;;  %v7494_v26 = vmul.f32 0.5, %v7466_v14  ;;  %v7468_v5 = vadd.f32 1.0, %v11525_v60  ;;  %11532 = vtanh.f32 %v7416_v62  ;;  %v7391_v15 = vadd.f32 %v7363_v36, %v15799_v31  ;;  %v7275_v8 = vpop.f32.mrb[198].mxu1 }
0x1b3c   :  { %11534 = vtanh.f32 %v7417_v54  ;;  %v7418_v55 = vmul.f32 0.7978846, %v7390_v58  ;;  %v7336_v46 = vmul.f32 %v7308_v40, %v15817_v43  ;;  %v7337_v45 = vmul.f32 %v7309_v0, %v15821_v38  ;;  %v7277_v7 = vpop.f32.mrb[199].mxu1 }
0x1b3d   :  { %v15838_v4 = vmul.f32 %v7494_v26, %v15725_v27  ;;  %v7496_v6 = vmul.f32 0.5, %v7468_v5  ;;  %v7419_v10 = vmul.f32 0.7978846, %v7391_v15  ;;  %v7487_v36 = vmul.f32 0.5, %v15755_v42 }
0x1b3e   :  { %11536 = vtanh.f32 %v7418_v55  ;;  %v7364_v14 = vmul.f32 0.044715, %v7336_v46  ;;  %v7365_v62 = vmul.f32 0.044715, %v7337_v45  ;;  %v7489_v54 = vmul.f32 0.5, %v7461_v29 }
0x1b3f   :  { %v15843_v60 = vmul.f32 %v7496_v6, %v15735_v2  ;;  %11538 = vtanh.f32 %v7419_v10  ;;  %v15846_v58 = vadd.f32 %v7271_v20, %v15665_v22  ;;  %v7515_v33 = vmul.f32 %v7487_v36, %v15675_v32  ;;  %v15873_v36 = vld [vmem:[%s16299_s7 + $0x38] sm:$0xff]  }
0x1b40   :  { %v11529_v40 = vpop.eup %11528  ;;  %v7392_v27 = vadd.f32 %v7364_v14, %v15817_v43  ;;  %v7393_v0 = vadd.f32 %v7365_v62, %v15821_v38  ;;  %v15852_v26 = vadd.f32 %v7273_v12, %v15669_v13  ;;  %v7517_v5 = vmul.f32 %v7489_v54, %v15685_v49 }
0x1b41   :  { %v7470_v2 = vadd.f32 1.0, %v11529_v40  ;;  %v7310_v29 = vmul.f32 %v15846_v58, %v15846_v58  ;;  %v7281_v20 = vpop.f32.mrb[200].mxu1  ;;  %v15864_v12 = vadd.f32 %v7275_v8, %v15665_v22  ;;  %v15868_v49 = vadd.f32 %v7277_v7, %v15669_v13 }
0x1b42   :  { %v15859_v15 = vpop.eup %11530  ;;  %v7420_v55 = vmul.f32 0.7978846, %v7392_v27  ;;  %v7421_v46 = vmul.f32 0.7978846, %v7393_v0  ;;  %v7311_v32 = vmul.f32 %v15852_v26, %v15852_v26  ;;  %v7283_v45 = vpop.f32.mrb[201].mxu1  ;;  %v7543_v10 = vpack.c.bf16 %v7517_v5, %v7515_v33 }
0x1b43   :  { %v7498_v6 = vmul.f32 0.5, %v7470_v2  ;;  %v7338_v14 = vmul.f32 %v7310_v29, %v15846_v58  ;;  %v7285_v62 = vpop.f32.mrb[202].mxu1  ;;  %v7312_v8 = vmul.f32 %v15864_v12, %v15864_v12  ;;  %v7463_v40 = vadd.f32 1.0, %v15783_v37 }
0x1b44   :  { %11540 = vtanh.f32 %v7420_v55  ;;  %v7339_v54 = vmul.f32 %v7311_v32, %v15852_v26  ;;  %v7287_v27 = vpop.f32.mrb[203].mxu1  ;;  %7716 = vmatprep.mubr.bf16.mxu0 %v7543_v10  ;;  %v7313_v2 = vmul.f32 %v15868_v49, %v15868_v49  ;;  %v7465_v32 = vadd.f32 1.0, %v15795_v9 }
0x1b45   :  { %v11533_v0 = vpop.eup %11532  ;;  %v15880_v33 = vmul.f32 %v7498_v6, %v15753_v17  ;;  %11542 = vtanh.f32 %v7421_v46  ;;  %v7366_v7 = vmul.f32 0.044715, %v7338_v14  ;;  %7717 = vmatmul.mubr.bf16.vlgmr.msra.gmra.mrb[180].mxu0 %v7542_v30  ;;  %v7340_v37 = vmul.f32 %v7312_v8, %v15864_v12 }
0x1b46   :  { %v15884_v5 = vpop.eup %11534  ;;  %v7472_v29 = vadd.f32 1.0, %v11533_v0  ;;  %v7367_v55 = vmul.f32 0.044715, %v7339_v54  ;;  %v7341_v46 = vmul.f32 %v7313_v2, %v15868_v49  ;;  %v7491_v6 = vmul.f32 0.5, %v7463_v40  ;;  %10712 = vmatpush3.bf16.msra.mxu0 %v15873_v36 }
0x1b47   :  { %v7394_v17 = vadd.f32 %v7366_v7, %v15846_v58  ;;  %v15894_v10 = vadd.f32 %v7281_v20, %v15665_v22  ;;  %v7368_v9 = vmul.f32 0.044715, %v7340_v37  ;;  %v7493_v54 = vmul.f32 0.5, %v7465_v32  ;;  %10713 = vmatprep.subr.bf16.mxu0 %v16353_v52 }
0x1b48   :  { %v11537_v51 = vpop.eup %11536  ;;  %v7500_v30 = vmul.f32 0.5, %v7472_v29  ;;  %v7395_v14 = vadd.f32 %v7367_v55, %v15852_v26  ;;  %v7369_v0 = vmul.f32 0.044715, %v7341_v46  ;;  %v7519_v7 = vmul.f32 %v7491_v6, %v15701_v56 }
0x1b49   :  { %v15904_v8 = vpop.eup %11538  ;;  %v7474_v40 = vadd.f32 1.0, %v11537_v51  ;;  %v7422_v20 = vmul.f32 0.7978846, %v7394_v17  ;;  %v7396_v11 = vadd.f32 %v7368_v9, %v15864_v12  ;;  %v7521_v29 = vmul.f32 %v7493_v54, %v15713_v41  ;;  %v15922_v41 = vld [vmem:[%s16299_s7 + $0x48] sm:$0xff]  }
0x1b4a   :  { %v15908_v2 = vmul.f32 %v7500_v30, %v15777_v47  ;;  %v7423_v42 = vmul.f32 0.7978846, %v7395_v14  ;;  %v7397_v37 = vadd.f32 %v7369_v0, %v15868_v49  ;;  %v7314_v32 = vmul.f32 %v15894_v10, %v15894_v10  ;;  %10714 = vmatpush3.bf16.msra.mxu0 %v15900_v23 }
0x1b4b   :  { %v7502_v55 = vmul.f32 0.5, %v7474_v40  ;;  %11544 = vtanh.f32 %v7422_v20  ;;  %v7424_v47 = vmul.f32 0.7978846, %v7396_v11  ;;  %v7545_v17 = vpack.c.bf16 %v7521_v29, %v7519_v7  ;;  %10715 = vmatprep.subr.bf16.mxu0 %v16353_v52 }
0x1b4c   :  { %v7548_v56 = vpack.c.bf16 %v15908_v2, %v15880_v33  ;;  %11546 = vtanh.f32 %v7423_v42  ;;  %v7425_v6 = vmul.f32 0.7978846, %v7397_v37  ;;  %v7342_v51 = vmul.f32 %v7314_v32, %v15894_v10 }
0x1b4d   :  { %v15925_v46 = vmul.f32 %v7502_v55, %v15793_v57  ;;  %v15929_v30 = vadd.f32 %v7283_v45, %v15669_v13  ;;  %11548 = vtanh.f32 %v7424_v47  ;;  %7723 = vmatprep.mubr.bf16.mxu0 %v7545_v17  ;;  %v15932_v11 = vadd.f32 %v7285_v62, %v15665_v22 }
0x1b4e   :  { %v11541_v14 = vpop.eup %11540  ;;  %v15935_v42 = vadd.f32 %v7287_v27, %v15669_v13  ;;  %v7467_v9 = vadd.f32 1.0, %v15823_v48  ;;  %11550 = vtanh.f32 %v7425_v6  ;;  %v16398_v40 = vpack.c.bf16 %v15812_v19, %v15806_v16  ;;  %10716 = vmatpush3.bf16.msra.mxu0 %v15922_v41 }
0x1b4f   :  { %v11543_v54 = vpop.eup %11542  ;;  %v7476_v57 = vadd.f32 1.0, %v11541_v14  ;;  %v7370_v45 = vmul.f32 0.044715, %v7342_v51  ;;  %v7315_v20 = vmul.f32 %v15929_v30, %v15929_v30  ;;  %v7316_v22 = vmul.f32 %v15932_v11, %v15932_v11  ;;  %10717 = vmatprep.subr.bf16.mxu0 %v16353_v52 }
0x1b50   :  { %7724 = vmatmul.mubr.bf16.gmra.mrb[184].mxu0 %v16398_v40  ;;  %v7317_v13 = vmul.f32 %v15935_v42, %v15935_v42  ;;  %v7469_v62 = vadd.f32 1.0, %v15832_v39  ;;  %v7495_v48 = vmul.f32 0.5, %v7467_v9  ;;  %v7471_v19 = vadd.f32 1.0, %v15859_v15 }
0x1b51   :  { %v7504_v27 = vmul.f32 0.5, %v7476_v57  ;;  %v7398_v0 = vadd.f32 %v7370_v45, %v15894_v10  ;;  %v7343_v16 = vmul.f32 %v7315_v20, %v15929_v30  ;;  %v7344_v7 = vmul.f32 %v7316_v22, %v15932_v11 }
0x1b52   :  { %v7345_v29 = vmul.f32 %v7317_v13, %v15935_v42  ;;  %v7497_v55 = vmul.f32 0.5, %v7469_v62  ;;  %v7523_v37 = vmul.f32 %v7495_v48, %v15729_v25  ;;  %v7473_v17 = vadd.f32 1.0, %v15884_v5 }
0x1b53   :  { %v15957_v39 = vmul.f32 %v7504_v27, %v15817_v43  ;;  %v7426_v32 = vmul.f32 0.7978846, %v7398_v0  ;;  %v7371_v47 = vmul.f32 0.044715, %v7343_v16  ;;  %v7372_v6 = vmul.f32 0.044715, %v7344_v7 }
0x1b54   :  { %v7373_v51 = vmul.f32 0.044715, %v7345_v29  ;;  %v7525_v15 = vmul.f32 %v7497_v55, %v15741_v1  ;;  %v7499_v14 = vmul.f32 0.5, %v7471_v19  ;;  %v7501_v25 = vmul.f32 0.5, %v7473_v17 }
0x1b55   :  { %v11545_v9 = vpop.eup %11544  ;;  %v7550_v57 = vpack.c.bf16 %v15957_v39, %v15925_v46  ;;  %11552 = vtanh.f32 %v7426_v32  ;;  %v7399_v40 = vadd.f32 %v7371_v47, %v15929_v30  ;;  %v7400_v20 = vadd.f32 %v7372_v6, %v15932_v11 }
0x1b56   :  { %v11547_v45 = vpop.eup %11546  ;;  %v7478_v43 = vadd.f32 1.0, %v11545_v9  ;;  %v7401_v22 = vadd.f32 %v7373_v51, %v15935_v42  ;;  %v7547_v5 = vpack.c.bf16 %v7525_v15, %v7523_v37  ;;  %v7527_v62 = vmul.f32 %v7499_v14, %v15762_v21 }
0x1b57   :  { %v7427_v13 = vmul.f32 0.7978846, %v7399_v40  ;;  %v7529_v1 = vmul.f32 %v7501_v25, %v15781_v18  ;;  %v7475_v48 = vadd.f32 1.0, %v15904_v8  ;;  %v11549_v27 = vpop.eup %11548  ;;  %v7428_v0 = vmul.f32 0.7978846, %v7400_v20 }
0x1b58   :  { %v7506_v46 = vmul.f32 0.5, %v7478_v43  ;;  %v7429_v16 = vmul.f32 0.7978846, %v7401_v22  ;;  %7731 = vmatprep.mubr.bf16.mxu0 %v7547_v5  ;;  %v7477_v19 = vadd.f32 1.0, %v11543_v54  ;;  %v11551_v7 = vpop.eup %11550  ;;  %v7480_v29 = vadd.f32 1.0, %v11549_v27 }
0x1b59   :  { %11554 = vtanh.f32 %v7427_v13  ;;  %v16399_v55 = vpack.c.bf16 %v15843_v60, %v15838_v4  ;;  %v7549_v37 = vpack.c.bf16 %v7529_v1, %v7527_v62  ;;  %v7503_v39 = vmul.f32 0.5, %v7475_v48 }
0x1b5a   :  { %11556 = vtanh.f32 %v7428_v0  ;;  %v7505_v21 = vmul.f32 0.5, %v7477_v19  ;;  %v7479_v18 = vadd.f32 1.0, %v11547_v45  ;;  %v7508_v32 = vmul.f32 0.5, %v7480_v29 }
0x1b5b   :  { %7732 = vmatmul.mubr.bf16.gmra.mrb[188].mxu0 %v16399_v55  ;;  %11558 = vtanh.f32 %v7429_v16  ;;  %v7481_v8 = vadd.f32 1.0, %v11551_v7  ;;  %v7531_v47 = vmul.f32 %v7503_v39, %v15799_v31  ;;  %v7534_v6 = vmul.f32 %v7506_v46, %v15846_v58  ;;  %v16014_v39 = vld [vmem:[%s16303_s11 + $0xd] ss:$0 sm:$0xff] }
0x1b5c   :  { %7739 = vmatprep.mubr.bf16.mxu0 %v7549_v37  ;;  %v7533_v54 = vmul.f32 %v7505_v21, %v15821_v38  ;;  %v7507_v17 = vmul.f32 0.5, %v7479_v18  ;;  %v7536_v51 = vmul.f32 %v7508_v32, %v15864_v12 }
0x1b5d   :  { %v7509_v4 = vmul.f32 0.5, %v7481_v8 }
0x1b5e   :  { %v7551_v60 = vpack.c.bf16 %v7533_v54, %v7531_v47  ;;  %v7552_v14 = vpack.c.bf16 %v7536_v51, %v7534_v6  ;;  %v7535_v9 = vmul.f32 %v7507_v17, %v15852_v26 }
0x1b5f   :  { %v11553_v15 = vpop.eup %11552  ;;  %v7537_v40 = vmul.f32 %v7509_v4, %v15868_v49 }
0x1b60   :  { %v7482_v25 = vadd.f32 1.0, %v11553_v15 }
0x1b61   :  { %v7553_v31 = vpack.c.bf16 %v7537_v40, %v7535_v9 }
0x1b62   :  { %v7510_v12 = vmul.f32 0.5, %v7482_v25 }
0x1b63   :  { %7740 = vmatmul.mubr.bf16.gmra.mrb[192].mxu0 %v7548_v56  ;;  %v11555_v38 = vpop.eup %11554 }
0x1b64   :  { %7746 = vmatprep.mubr.bf16.mxu0 %v7551_v60  ;;  %v11557_v45 = vpop.eup %11556  ;;  %v7483_v58 = vadd.f32 1.0, %v11555_v38  ;;  %v7538_v26 = vmul.f32 %v7510_v12, %v15894_v10  ;;  %v11083_v10 = vld [vmem:[%s16300_s8] sm:$0xff]  }
0x1b65   :  { %v11559_v43 = vpop.eup %11558  ;;  %v7484_v20 = vadd.f32 1.0, %v11557_v45  ;;  %10692 = vmatpush3.bf16.msra.mxu1 %v11083_v10 }
0x1b66   :  { %v7485_v22 = vadd.f32 1.0, %v11559_v43  ;;  %v7511_v5 = vmul.f32 0.5, %v7483_v58  ;;  %10693 = vmatprep.subr.bf16.mxu1 %v16353_v52 }
0x1b67   :  { %v7512_v13 = vmul.f32 0.5, %v7484_v20 }
0x1b68   :  { %v7513_v62 = vmul.f32 0.5, %v7485_v22  ;;  %v7539_v33 = vmul.f32 %v7511_v5, %v15929_v30  ;;  %v11084_v30 = vld [vmem:[%s16300_s8 + $0x8] sm:$0xff]  }
0x1b69   :  { %v7540_v49 = vmul.f32 %v7512_v13, %v15932_v11  ;;  %v15997_v11 = vld [vmem:[%s16299_s7 + $0x50] sm:$0xff]   ;;  %10694 = vmatpush3.bf16.msra.mxu1 %v11084_v30 }
0x1b6a   :  { %v7541_v2 = vmul.f32 %v7513_v62, %v15935_v42  ;;  %10718 = vmatpush3.bf16.msra.mxu0 %v15997_v11  ;;  %10695 = vmatprep.subr.bf16.mxu1 %v16353_v52  ;;  %v11086_v42 = vld [vmem:[%s16300_s8 + $0x10] sm:$0xff]  }
0x1b6b   :  { %7747 = vmatmul.mubr.bf16.gmra.mrb[196].mxu0 %v7550_v57  ;;  %v7554_v56 = vpack.c.bf16 %v7540_v49, %v7538_v26  ;;  %10767 = vmatprep.subr.bf16.mxu0 %v16353_v52  ;;  %v11087_v57 = vld [vmem:[%s16300_s8 + $0x18] sm:$0xff]  }
0x1b6c   :  { %7754 = vmatprep.mubr.bf16.mxu0 %v7553_v31  ;;  %v7555_v1 = vpack.c.bf16 %v7541_v2, %v7539_v33 }
0x1b6d   :  { %10696 = vmatpush3.bf16.msra.mxu1 %v11086_v42 }
0x1b6e   :  { %10697 = vmatprep.subr.bf16.mxu1 %v16353_v52 }
0x1b71   :  { %10698 = vmatpush3.bf16.msra.mxu1 %v11087_v57 }
0x1b72   :  { %10731 = vmatprep.subr.bf16.mxu1 %v16353_v52 }
0x1b73   :  { %7755 = vmatmul.mubr.bf16.gmra.mrb[200].mxu0 %v7552_v14 }
0x1b74   :  { %7762 = vmatprep.mubr.bf16.mxu0 %v7555_v1 }
0x1b7b   :  { %7763 = vmatmul.mubr.bf16.gmra.mrb[204].mxu0 %v7554_v56 }
0x1b7c   :  { %10719 = vmatprep.mubr.msk.bf16.mxu0 %vm11613_vm4, %v16353_v52 }
0x1c18   :  { %v9619_v48 = vpop.f32.mrb[180].mxu0 }
0x1c19   :  { %v9620_v27 = vpop.f32.mrb[181].mxu0 }
0x1c1a   :  { %v9622_v46 = vpop.f32.mrb[182].mxu0 }
0x1c1b   :  { %v9623_v0 = vpop.f32.mrb[183].mxu0 }
0x1c1c   :  { %v9624_v16 = vadd.f32 %v9623_v0, %v9622_v46 }
0x1c1e   :  { %v7771_v29 = vadd.f32 %v9624_v16, %v15352_v35 }
0x1c20   :  { %v7787_v8 = vadd.f32 %v16014_v39, %v7771_v29 }
0x1c23   :  { %v9625_v19 = vpop.f32.mrb[184].mxu0 }
0x1c24   :  { %v9626_v7 = vpop.f32.mrb[185].mxu0 }
0x1c25   :  { %v9627_v55 = vadd.f32 %v9626_v7, %v9625_v19  ;;  %v9628_v37 = vpop.f32.mrb[186].mxu0 }
0x1c26   :  { %v9629_v21 = vpop.f32.mrb[187].mxu0 }
0x1c27   :  { %v7772_v18 = vadd.f32 %v9627_v55, %v15360_v61  ;;  %v9630_v32 = vadd.f32 %v9629_v21, %v9628_v37 }
0x1c29   :  { %v7788_v47 = vadd.f32 %v16014_v39, %v7772_v18  ;;  %v7773_v6 = vadd.f32 %v9630_v32, %v15364_v28  ;;  %v11100_v32 = vld [vmem:[%s16300_s8 + $0x20] sm:$0xff]  }
0x1c2b   :  { %v7818_v54 = vpack.c.bf16 %v7788_v47, %v7787_v8  ;;  %v7789_v14 = vadd.f32 %v16014_v39, %v7773_v6  ;;  %v11101_v8 = vld [vmem:[%s16300_s8 + $0x28] sm:$0xff]   ;;  %v11103_v47 = vld [vmem:[%s16300_s8 + $0x30] sm:$0xff]  }
0x1c2d   :  { %10700 = vmatmul.mubr.msk.bf16.vlgmr.msra.gmra.mrb[204].mxu1 %vm1357_vm6, %v7818_v54  ;;  %10720 = vmatmul.mubr.msk.bf16.vlgmr.msra.gmra.mrb[208].mxu0 %vm1357_vm6, %v7818_v54  ;;  %v11105_v54 = vld [vmem:[%s16300_s8 + $0x38] sm:$0xff]  }
0x1c2e   :  { %v9631_v17 = vpop.f32.mrb[188].mxu0  ;;  %10768 = vmatpush3.bf16.msra.mxu0 %v11083_v10  ;;  %10703 = vmatprep.mubr.msk.bf16.mxu1 %vm11613_vm4, %v16353_v52 }
0x1c2f   :  { %v9632_v35 = vpop.f32.mrb[189].mxu0  ;;  %10723 = vmatprep.mubr.msk.bf16.mxu0 %vm11613_vm4, %v16353_v52  ;;  %10769 = vmatprep.subr.bf16.mxu0 %v16353_v52 }
0x1c30   :  { %v9633_v51 = vadd.f32 %v9632_v35, %v9631_v17  ;;  %v9634_v61 = vpop.f32.mrb[190].mxu0  ;;  %v16121_v17 = vld [vmem:[%s16304_s12] ss:$0 sm:$0xff]  ;;  %v16126_v35 = vld [vmem:[%s16303_s11 + $0x1] ss:$0 sm:$0xff] }
0x1c31   :  { %v9635_v4 = vpop.f32.mrb[191].mxu0 }
0x1c32   :  { %v7774_v60 = vadd.f32 %v9633_v51, %v15372_v53  ;;  %v9636_v15 = vadd.f32 %v9635_v4, %v9634_v61  ;;  %10770 = vmatpush3.bf16.msra.mxu0 %v11084_v30 }
0x1c33   :  { %10771 = vmatprep.subr.bf16.mxu0 %v16353_v52 }
0x1c34   :  { %v7790_v9 = vadd.f32 %v16014_v39, %v7774_v60  ;;  %v7775_v31 = vadd.f32 %v9636_v15, %v15376_v63 }
0x1c36   :  { %v7819_v40 = vpack.c.bf16 %v7790_v9, %v7789_v14  ;;  %v9637_v28 = vpop.f32.mrb[192].mxu0  ;;  %10772 = vmatpush3.bf16.msra.mxu0 %v11086_v42  ;;  %v7791_v63 = vadd.f32 %v16014_v39, %v7775_v31 }
0x1c37   :  { %v9638_v25 = vpop.f32.mrb[193].mxu0  ;;  %10773 = vmatprep.subr.bf16.mxu0 %v16353_v52 }
0x1c38   :  { %v9639_v38 = vadd.f32 %v9638_v25, %v9637_v28  ;;  %v9640_v45 = vpop.f32.mrb[194].mxu0  ;;  %10704 = vmatmul.mubr.msk.bf16.gmra.mrb[208].mxu1 %vm1357_vm6, %v7819_v40  ;;  %10724 = vmatmul.mubr.msk.bf16.gmra.mrb[212].mxu0 %vm1357_vm6, %v7819_v40 }
0x1c39   :  { %v9641_v53 = vpop.f32.mrb[195].mxu0  ;;  %10707 = vmatprep.mubr.msk.bf16.mxu1 %vm11613_vm4, %v16353_v52  ;;  %10727 = vmatprep.mubr.msk.bf16.mxu0 %vm11613_vm4, %v16353_v52 }
0x1c3a   :  { %v7776_v58 = vadd.f32 %v9639_v38, %v15384_v34  ;;  %10774 = vmatpush3.bf16.msra.mxu0 %v11087_v57 }
0x1c3b   :  { %10787 = vmatprep.subr.bf16.mxu0 %v16353_v52 }
0x1c3c   :  { %v7792_v43 = vadd.f32 %v16014_v39, %v7776_v58 }
0x1c3e   :  { %v7820_v12 = vpack.c.bf16 %v7792_v43, %v7791_v63  ;;  %v9643_v20 = vpop.f32.mrb[196].mxu0 }
0x1c3f   :  { %v9644_v22 = vpop.f32.mrb[197].mxu0 }
0x1c40   :  { %v9645_v5 = vadd.f32 %v9644_v22, %v9643_v20  ;;  %v9646_v13 = vpop.f32.mrb[198].mxu0  ;;  %10708 = vmatmul.mubr.msk.bf16.gmra.mrb[212].mxu1 %vm1357_vm6, %v7820_v12  ;;  %10728 = vmatmul.mubr.msk.bf16.gmra.mrb[216].mxu0 %vm1357_vm6, %v7820_v12 }
0x1c41   :  { %v9647_v62 = vpop.f32.mrb[199].mxu0  ;;  %10775 = vmatprep.mubr.msk.bf16.mxu0 %vm11613_vm4, %v16353_v52  ;;  %10739 = vmatprep.mubr.msk.bf16.mxu1 %vm11613_vm4, %v16353_v52 }
0x1c42   :  { %v7777_v34 = vadd.f32 %v9645_v5, %v15398_v24  ;;  %v9648_v26 = vadd.f32 %v9647_v62, %v9646_v13 }
0x1c44   :  { %v7778_v49 = vadd.f32 %v9648_v26, %v15402_v50  ;;  %v7793_v33 = vadd.f32 %v16014_v39, %v7777_v34 }
0x1c46   :  { %v7794_v2 = vadd.f32 %v16014_v39, %v7778_v49  ;;  %v9649_v56 = vpop.f32.mrb[200].mxu0 }
0x1c47   :  { %v9650_v1 = vpop.f32.mrb[201].mxu0 }
0x1c48   :  { %v8265_v10 = vpack.c.bf16 %v7794_v2, %v7793_v33  ;;  %v9651_v30 = vadd.f32 %v9650_v1, %v9649_v56  ;;  %v9652_v42 = vpop.f32.mrb[202].mxu0 }
0x1c49   :  { %v9653_v57 = vpop.f32.mrb[203].mxu0 }
0x1c4a   :  { %v7779_v48 = vadd.f32 %v9651_v30, %v15412_v59  ;;  %v9654_v27 = vadd.f32 %v9653_v57, %v9652_v42  ;;  %10776 = vmatmul.mubr.msk.bf16.vlgmr.msra.gmra.mrb[220].mxu0 %vm1357_vm6, %v8265_v10 }
0x1c4b   :  { %10788 = vmatpush3.bf16.msra.mxu0 %v15873_v36  ;;  %10779 = vmatprep.mubr.msk.bf16.mxu0 %vm11613_vm4, %v16353_v52 }
0x1c4c   :  { %v7780_v24 = vadd.f32 %v9654_v27, %v15416_v44  ;;  %10789 = vmatprep.subr.bf16.mxu0 %v16353_v52  ;;  %v7795_v50 = vadd.f32 %v16014_v39, %v7779_v48  ;;  %v16400_v44 = vld [vmem:[#allocation22_spill] sm:$0xff] }
0x1c4e   :  { %v7796_v46 = vadd.f32 %v16014_v39, %v7780_v24  ;;  %v9655_v0 = vpop.f32.mrb[204].mxu0 }
0x1c4f   :  { %v9656_v16 = vpop.f32.mrb[205].mxu0  ;;  %10790 = vmatpush3.bf16.msra.mxu0 %v15900_v23 }
0x1c50   :  { %v8266_v59 = vpack.c.bf16 %v7796_v46, %v7795_v50  ;;  %v9657_v19 = vadd.f32 %v9656_v16, %v9655_v0  ;;  %v9658_v7 = vpop.f32.mrb[206].mxu0  ;;  %10791 = vmatprep.subr.bf16.mxu0 %v16353_v52 }
0x1c51   :  { %v9659_v36 = vpop.f32.mrb[207].mxu0 }
0x1c52   :  { %v7781_v29 = vadd.f32 %v9657_v19, %v15426_v3  ;;  %v9660_v55 = vadd.f32 %v9659_v36, %v9658_v7  ;;  %10780 = vmatmul.mubr.msk.bf16.gmra.mrb[224].mxu0 %vm1357_vm6, %v8266_v59  ;;  %v11088_v3 = vld [vmem:[%s16300_s8 + $0x20] sm:$0xff]  }
0x1c53   :  { %10792 = vmatpush3.bf16.msra.mxu0 %v15922_v41  ;;  %10783 = vmatprep.mubr.msk.bf16.mxu0 %vm11613_vm4, %v16353_v52  ;;  %v11089_v41 = vld [vmem:[%s16300_s8 + $0x28] sm:$0xff]   ;;  %v11092_v19 = vld [vmem:[%s16300_s8 + $0x40] sm:$0xff]  }
0x1c54   :  { %v7782_v37 = vadd.f32 %v9660_v55, %v16400_v44  ;;  %10793 = vmatprep.subr.bf16.mxu0 %v16353_v52  ;;  %v7797_v23 = vadd.f32 %v16014_v39, %v7781_v29  ;;  %10732 = vmatpush3.bf16.msra.mxu1 %v11088_v3 }
0x1c55   :  { %10733 = vmatprep.subr.bf16.mxu1 %v16353_v52 }
0x1c56   :  { %v7798_v21 = vadd.f32 %v16014_v39, %v7782_v37  ;;  %v11091_v39 = vld [vmem:[%s16300_s8 + $0x38] sm:$0xff]  }
0x1c57   :  { %10794 = vmatpush3.bf16.msra.mxu0 %v15997_v11  ;;  %v11090_v11 = vld [vmem:[%s16300_s8 + $0x30] sm:$0xff]  }
0x1c58   :  { %v8267_v18 = vpack.c.bf16 %v7798_v21, %v7797_v23  ;;  %10807 = vmatprep.subr.bf16.mxu0 %v16353_v52  ;;  %10734 = vmatpush3.bf16.msra.mxu1 %v11089_v41 }
0x1c59   :  { %10735 = vmatprep.subr.bf16.mxu1 %v16353_v52 }
0x1c5a   :  { %10784 = vmatmul.mubr.msk.bf16.gmra.mrb[228].mxu0 %vm1357_vm6, %v8267_v18 }
0x1c5b   :  { %10795 = vmatprep.mubr.msk.bf16.mxu0 %vm11613_vm4, %v16353_v52 }
0x1c5c   :  { %10736 = vmatpush3.bf16.msra.mxu1 %v11090_v11  ;;  %v11093_v11 = vld [vmem:[%s16300_s8 + $0x48] sm:$0xff]  }
0x1c5d   :  { %10737 = vmatprep.subr.bf16.mxu1 %v16353_v52 }
0x1c60   :  { %10738 = vmatpush3.bf16.msra.mxu1 %v11091_v39 }
0x1c61   :  { %10743 = vmatprep.subr.bf16.mxu1 %v16353_v52 }
0x1c62   :  { %10796 = vmatmul.mubr.msk.bf16.vlgmr.msra.gmra.mrb[232].mxu0 %vm1357_vm6, %v8265_v10 }
0x1c63   :  { %10799 = vmatprep.mubr.msk.bf16.mxu0 %vm11613_vm4, %v16353_v52  ;;  %10808 = vmatpush3.bf16.msra.mxu0 %v11100_v32 }
0x1c64   :  { %10809 = vmatprep.subr.bf16.mxu0 %v16353_v52 }
0x1c67   :  { %10810 = vmatpush3.bf16.msra.mxu0 %v11101_v8  ;;  %v11094_v8 = vld [vmem:[%s16300_s8 + $0x50] sm:$0xff]  }
0x1c68   :  { %10811 = vmatprep.subr.bf16.mxu0 %v16353_v52 }
0x1c6a   :  { %10800 = vmatmul.mubr.msk.bf16.gmra.mrb[236].mxu0 %vm1357_vm6, %v8266_v59 }
0x1c6b   :  { %10803 = vmatprep.mubr.msk.bf16.mxu0 %vm11613_vm4, %v16353_v52  ;;  %10812 = vmatpush3.bf16.msra.mxu0 %v11103_v47 }
0x1c6c   :  { %10813 = vmatprep.subr.bf16.mxu0 %v16353_v52 }
0x1c6f   :  { %10814 = vmatpush3.bf16.msra.mxu0 %v11105_v54 }
0x1c72   :  { %10804 = vmatmul.mubr.msk.bf16.gmra.mrb[240].mxu0 %vm1357_vm6, %v8267_v18 }
0x1c73   :  { %10815 = vmatprep.mubr.msk.bf16.mxu0 %vm11613_vm4, %v16353_v52 }
0x1d00   :  { %v7892_v6 = vpop.f32.mrb[204].mxu1  ;;  %v7983_v51 = vpop.f32.mrb[208].mxu0 }
0x1d01   :  { %v7893_v61 = vadd.f32 %v16121_v17, %v7892_v6  ;;  %v7984_v4 = vadd.f32 %v16126_v35, %v7983_v51  ;;  %v10701_v60 = vpop.f32.mrb[205].mxu1  ;;  %v10721_v15 = vpop.f32.mrb[209].mxu0 }
0x1d02   :  { %v7895_v14 = vpop.f32.mrb[206].mxu1  ;;  %v7986_v9 = vpop.f32.mrb[210].mxu0 }
0x1d03   :  { %7915 = vst [vmem:[%s16306_s14] sm:$0xff] %v7893_v61  ;;  %v7896_v40 = vadd.f32 %v16121_v17, %v7895_v14  ;;  %v7987_v28 = vadd.f32 %v16126_v35, %v7986_v9  ;;  %v10702_v25 = vpop.f32.mrb[207].mxu1  ;;  %v10722_v31 = vpop.f32.mrb[211].mxu0  ;;  %v8006_v38 = vsel %vm1357_vm6, %v7984_v4, -inf  ;;  %v11095_v14 = vld [vmem:[%s16300_s8 + $0x58] sm:$0xff]  }
0x1d05   :  { %7916 = vst [vmem:[%s16306_s14 + $0x8] sm:$0xff] %v7896_v40  ;;  %v8007_v45 = vsel %vm1357_vm6, %v7987_v28, -inf  ;;  %v11096_v28 = vld [vmem:[%s16300_s8 + $0x60] sm:$0xff]  }
0x1d06   :  { %v8008_v53 = vmax.f32 %v8006_v38, %v8007_v45 }
0x1d08   :  { %v8009_v58 = vrot.slane %v8008_v53, 4 }
0x1d0a   :  { %v8010_v63 = vmax.f32 %v8008_v53, %v8009_v58 }
0x1d0b   :  { %v7900_v43 = vpop.f32.mrb[208].mxu1  ;;  %v7991_v12 = vpop.f32.mrb[212].mxu0 }
0x1d0c   :  { %v7901_v20 = vadd.f32 %v16121_v17, %v7900_v43  ;;  %v7992_v22 = vadd.f32 %v16126_v35, %v7991_v12  ;;  %v10705_v5 = vpop.f32.mrb[209].mxu1  ;;  %v10725_v13 = vpop.f32.mrb[213].mxu0  ;;  %v8011_v62 = vrot.slane %v8010_v63, 2  ;;  %v11097_v12 = vld [vmem:[%s16300_s8 + $0x68] sm:$0xff]  }
0x1d0d   :  { %v7903_v34 = vpop.f32.mrb[210].mxu1  ;;  %v7994_v26 = vpop.f32.mrb[214].mxu0 }
0x1d0e   :  { %7917 = vst [vmem:[%s16306_s14 + $0x10] sm:$0xff] %v7901_v20  ;;  %v7904_v49 = vadd.f32 %v16121_v17, %v7903_v34  ;;  %v7995_v33 = vadd.f32 %v16126_v35, %v7994_v26  ;;  %v10706_v2 = vpop.f32.mrb[211].mxu1  ;;  %v10726_v56 = vpop.f32.mrb[215].mxu0  ;;  %v8012_v1 = vmax.f32 %v8010_v63, %v8011_v62  ;;  %v8092_v10 = vsel %vm1357_vm6, %v7992_v22, -inf  ;;  %v11098_v22 = vld [vmem:[%s16300_s8 + $0x70] sm:$0xff]  }
0x1d0f   :  { %v11099_v2 = vld [vmem:[%s16300_s8 + $0x78] sm:$0xff]  }
0x1d10   :  { %7918 = vst [vmem:[%s16306_s14 + $0x18] sm:$0xff] %v7904_v49  ;;  %v8093_v30 = vsel %vm1357_vm6, %v7995_v33, -inf  ;;  %v8013_v42 = vrot.slane %v8012_v1, 1 }
0x1d11   :  { %v8094_v57 = vmax.f32 %v8092_v10, %v8093_v30 }
0x1d12   :  { %v8014_v48 = vmax.f32 %v8012_v1, %v8013_v42  ;;  %v11102_v1 = vld [vmem:[%s16300_s8 + $0x40] sm:$0xff]  }
0x1d13   :  { %v8095_v27 = vrot.slane %v8094_v57, 4  ;;  %v7908_v24 = vpop.f32.mrb[212].mxu1  ;;  %v7999_v50 = vpop.f32.mrb[216].mxu0 }
0x1d14   :  { %v7909_v46 = vadd.f32 %v16121_v17, %v7908_v24  ;;  %v8000_v0 = vadd.f32 %v16126_v35, %v7999_v50  ;;  %v10709_v16 = vpop.f32.mrb[213].mxu1  ;;  %v10729_v59 = vpop.f32.mrb[217].mxu0  ;;  %v8023_v7 = vpack.c.bf16 %v8014_v48, %v8014_v48  ;;  %v11104_v24 = vld [vmem:[%s16300_s8 + $0x48] sm:$0xff]  }
0x1d15   :  { %v8096_v36 = vmax.f32 %v8094_v57, %v8095_v27  ;;  %v7911_v29 = vpop.f32.mrb[214].mxu1  ;;  %v8002_v55 = vpop.f32.mrb[218].mxu0  ;;  %v11106_v16 = vld [vmem:[%s16300_s8 + $0x50] sm:$0xff]  }
0x1d16   :  { %7919 = vst [vmem:[%s16306_s14 + $0x20] sm:$0xff] %v7909_v46  ;;  %v7912_v44 = vadd.f32 %v16121_v17, %v7911_v29  ;;  %v8003_v37 = vadd.f32 %v16126_v35, %v8002_v55  ;;  %v10710_v23 = vpop.f32.mrb[215].mxu1  ;;  %v10730_v21 = vpop.f32.mrb[219].mxu0  ;;  %10740 = vmatmul.mubr.msk.bf16.vlgmr.msra.gmra.mrb[216].mxu1 %vm1357_vm6, %v8023_v7  ;;  %v8178_v3 = vsel %vm1357_vm6, %v8000_v0, -inf }
0x1d17   :  { %v8097_v18 = vrot.slane %v8096_v36, 2  ;;  %10744 = vmatpush3.bf16.msra.mxu1 %v11092_v19  ;;  %10751 = vmatprep.mubr.msk.bf16.mxu1 %vm11613_vm4, %v16353_v52  ;;  %v11107_v23 = vld [vmem:[%s16300_s8 + $0x58] sm:$0xff]  }
0x1d18   :  { %7920 = vst [vmem:[%s16306_s14 + $0x28] sm:$0xff] %v7912_v44  ;;  %v8179_v41 = vsel %vm1357_vm6, %v8003_v37, -inf  ;;  %10745 = vmatprep.subr.bf16.mxu1 %v16353_v52 }
0x1d19   :  { %v8098_v39 = vmax.f32 %v8096_v36, %v8097_v18  ;;  %v8180_v32 = vmax.f32 %v8178_v3, %v8179_v41 }
0x1d1b   :  { %10746 = vmatpush3.bf16.msra.mxu1 %v11093_v11  ;;  %v8099_v47 = vrot.slane %v8098_v39, 1  ;;  %v8181_v54 = vrot.slane %v8180_v32, 4 }
0x1d1c   :  { %10747 = vmatprep.subr.bf16.mxu1 %v16353_v52 }
0x1d1d   :  { %v8311_v6 = vpop.f32.mrb[220].mxu0  ;;  %v8100_v9 = vmax.f32 %v8098_v39, %v8099_v47  ;;  %v8182_v40 = vmax.f32 %v8180_v32, %v8181_v54 }
0x1d1e   :  { %v8312_v51 = vadd.f32 %v16121_v17, %v8311_v6  ;;  %v10777_v61 = vpop.f32.mrb[221].mxu0 }
0x1d1f   :  { %v8314_v4 = vpop.f32.mrb[222].mxu0  ;;  %10748 = vmatpush3.bf16.msra.mxu1 %v11094_v8  ;;  %v8109_v25 = vpack.c.bf16 %v8100_v9, %v8100_v9  ;;  %v8183_v31 = vrot.slane %v8182_v40, 2 }
0x1d20   :  { %8334 = vst [vmem:[%s16306_s14 + $0x30] sm:$0xff] %v8312_v51  ;;  %v8315_v60 = vadd.f32 %v16121_v17, %v8314_v4  ;;  %v10778_v15 = vpop.f32.mrb[223].mxu0  ;;  %10749 = vmatprep.subr.bf16.mxu1 %v16353_v52 }
0x1d21   :  { %v8184_v20 = vmax.f32 %v8182_v40, %v8183_v31 }
0x1d22   :  { %8335 = vst [vmem:[%s16306_s14 + $0x38] sm:$0xff] %v8315_v60 }
0x1d23   :  { %10750 = vmatpush3.bf16.msra.mxu1 %v11095_v14  ;;  %v8185_v5 = vrot.slane %v8184_v20, 1 }
0x1d24   :  { %10755 = vmatprep.subr.bf16.mxu1 %v16353_v52 }
0x1d25   :  { %v8319_v38 = vpop.f32.mrb[224].mxu0  ;;  %v8186_v56 = vmax.f32 %v8184_v20, %v8185_v5  ;;  %v11110_v20 = vld [vmem:[%s16300_s8 + $0x70] sm:$0xff]   ;;  %v11111_v5 = vld [vmem:[%s16300_s8 + $0x78] sm:$0xff]  }
0x1d26   :  { %v8320_v45 = vadd.f32 %v16121_v17, %v8319_v38  ;;  %v10781_v53 = vpop.f32.mrb[225].mxu0  ;;  %10752 = vmatmul.mubr.msk.bf16.vlgmr.msra.gmra.mrb[216].mxu1 %vm1357_vm6, %v8109_v25 }
0x1d27   :  { %v8322_v58 = vpop.f32.mrb[226].mxu0  ;;  %10756 = vmatpush3.bf16.msra.mxu1 %v11096_v28  ;;  %10763 = vmatprep.mubr.msk.bf16.mxu1 %vm11613_vm4, %v16353_v52  ;;  %v8195_v10 = vpack.c.bf16 %v8186_v56, %v8186_v56 }
0x1d28   :  { %8336 = vst [vmem:[%s16306_s14 + $0x40] sm:$0xff] %v8320_v45  ;;  %v8323_v63 = vadd.f32 %v16121_v17, %v8322_v58  ;;  %v10782_v43 = vpop.f32.mrb[227].mxu0  ;;  %10757 = vmatprep.subr.bf16.mxu1 %v16353_v52  ;;  %v11108_v58 = vld [vmem:[%s16300_s8 + $0x60] sm:$0xff]  }
0x1d29   :  { %v11109_v43 = vld [vmem:[%s16300_s8 + $0x68] sm:$0xff]   ;;  %s11615_s8 = smov [#allocation3]  }
0x1d2a   :  { %8337 = vst [vmem:[%s16306_s14 + $0x48] sm:$0xff] %v8323_v63  ;;  %s8664_s2 = sshll.u32 %s11615_s8, 4  ;;  %s8665_s2 = int_to_ptr.vmem [resolvable:$true] %s8664_s2 }
0x1d2b   :  { %10758 = vmatpush3.bf16.msra.mxu1 %v11097_v12  ;;  %p11593_p1 = scmp.lt.s32.totalorder %s8665_s2, %s8665_s2 }
0x1d2c   :  { %10759 = vmatprep.subr.bf16.mxu1 %v16353_v52 }
0x1d2d   :  { %v8327_v13 = vpop.f32.mrb[228].mxu0 }
0x1d2e   :  { %v8328_v62 = vadd.f32 %v16121_v17, %v8327_v13  ;;  %v10785_v34 = vpop.f32.mrb[229].mxu0 }
0x1d2f   :  { %v8330_v26 = vpop.f32.mrb[230].mxu0  ;;  %10760 = vmatpush3.bf16.msra.mxu1 %v11098_v22  ;;  %v7816_v34 = vld [vmem:[%s16304_s12 + $0x1] sm:$0x1]  ;;  %s11588_s12 = scalar_lea.vmem %s8665_s2, 32 }
0x1d30   :  { %8338 = vst [vmem:[%s16306_s14 + $0x50] sm:$0xff] %v8328_v62  ;;  %v8331_v49 = vadd.f32 %v16121_v17, %v8330_v26  ;;  %v10786_v33 = vpop.f32.mrb[231].mxu0  ;;  %10761 = vmatprep.subr.bf16.mxu1 %v16353_v52  ;;  %p11589_p0 = scmp.ne.s32.totalorder %s8665_s2, %s11588_s12  ;;  %p11594_p2 = scmp.lt.s32.totalorder %s11588_s12, %s11588_s12 }
0x1d32   :  { %8339 = vst [vmem:[%s16306_s14 + $0x58] sm:$0xff] %v8331_v49  ;;  %p11595_p3 = por %p11594_p2, %p11593_p1 }
0x1d33   :  { %10762 = vmatpush3.bf16.msra.mxu1 %v11099_v2 }
0x1d34   :  { %10819 = vmatprep.subr.bf16.mxu1 %v16353_v52  ;;  %p11596_p4 = pnand %p11595_p3, %p11589_p0 }
0x1d35   :  { %v8374_v17 = vpop.f32.mrb[232].mxu0 }
0x1d36   :  { %v8375_v30 = vadd.f32 %v16126_v35, %v8374_v17  ;;  %v10797_v42 = vpop.f32.mrb[233].mxu0  ;;  %10764 = vmatmul.mubr.msk.bf16.vlgmr.msra.gmra.mrb[216].mxu1 %vm1357_vm6, %v8195_v10 }
0x1d37   :  { %v8377_v57 = vpop.f32.mrb[234].mxu0  ;;  %10820 = vmatpush3.bf16.msra.mxu1 %v11102_v1  ;;  %10827 = vmatprep.mubr.msk.bf16.mxu1 %vm11613_vm4, %v16353_v52 }
0x1d38   :  { %v8378_v48 = vadd.f32 %v16126_v35, %v8377_v57  ;;  %v10798_v27 = vpop.f32.mrb[235].mxu0  ;;  %10821 = vmatprep.subr.bf16.mxu1 %v16353_v52  ;;  %v8397_v50 = vsel %vm1357_vm6, %v8375_v30, -inf }
0x1d3a   :  { %v8398_v46 = vsel %vm1357_vm6, %v8378_v48, -inf }
0x1d3b   :  { %v8399_v0 = vmax.f32 %v8397_v50, %v8398_v46  ;;  %10822 = vmatpush3.bf16.msra.mxu1 %v11104_v24 }
0x1d3c   :  { %10823 = vmatprep.subr.bf16.mxu1 %v16353_v52 }
0x1d3d   :  { %v8400_v59 = vrot.slane %v8399_v0, 4  ;;  %v8382_v19 = vpop.f32.mrb[236].mxu0 }
0x1d3e   :  { %v8383_v7 = vadd.f32 %v16126_v35, %v8382_v19  ;;  %v10801_v36 = vpop.f32.mrb[237].mxu0 }
0x1d3f   :  { %v8401_v29 = vmax.f32 %v8399_v0, %v8400_v59  ;;  %v8385_v55 = vpop.f32.mrb[238].mxu0  ;;  %10824 = vmatpush3.bf16.msra.mxu1 %v11106_v16 }
0x1d40   :  { %v8386_v44 = vadd.f32 %v16126_v35, %v8385_v55  ;;  %v10802_v37 = vpop.f32.mrb[239].mxu0  ;;  %10825 = vmatprep.subr.bf16.mxu1 %v16353_v52  ;;  %v8483_v18 = vsel %vm1357_vm6, %v8383_v7, -inf }
0x1d41   :  { %v8402_v21 = vrot.slane %v8401_v29, 2 }
0x1d42   :  { %v8484_v3 = vsel %vm1357_vm6, %v8386_v44, -inf }
0x1d43   :  { %v8403_v41 = vmax.f32 %v8401_v29, %v8402_v21  ;;  %v8485_v11 = vmax.f32 %v8483_v18, %v8484_v3  ;;  %10826 = vmatpush3.bf16.msra.mxu1 %v11107_v23 }
0x1d44   :  { %10831 = vmatprep.subr.bf16.mxu1 %v16353_v52 }
0x1d45   :  { %v8404_v39 = vrot.slane %v8403_v41, 1  ;;  %v8486_v32 = vrot.slane %v8485_v11, 4  ;;  %v8390_v8 = vpop.f32.mrb[240].mxu0 }
0x1d46   :  { %v8391_v47 = vadd.f32 %v16126_v35, %v8390_v8  ;;  %v10805_v54 = vpop.f32.mrb[241].mxu0 }
0x1d47   :  { %v8405_v6 = vmax.f32 %v8403_v41, %v8404_v39  ;;  %v8487_v51 = vmax.f32 %v8485_v11, %v8486_v32  ;;  %v8393_v61 = vpop.f32.mrb[242].mxu0 }
0x1d48   :  { %v8394_v4 = vadd.f32 %v16126_v35, %v8393_v61  ;;  %v10806_v60 = vpop.f32.mrb[243].mxu0  ;;  %v8569_v9 = vsel %vm1357_vm6, %v8391_v47, -inf }
0x1d49   :  { %v8414_v15 = vpack.c.bf16 %v8405_v6, %v8405_v6  ;;  %v8488_v14 = vrot.slane %v8487_v51, 2 }
0x1d4a   :  { %v8570_v40 = vsel %vm1357_vm6, %v8394_v4, -inf }
0x1d4b   :  { %v8489_v28 = vmax.f32 %v8487_v51, %v8488_v14  ;;  %v8571_v25 = vmax.f32 %v8569_v9, %v8570_v40  ;;  %10816 = vmatmul.mubr.msk.bf16.vlgmr.msra.gmra.mrb[244].mxu0 %vm1357_vm6, %v8414_v15 }
0x1d4d   :  { %v8490_v31 = vrot.slane %v8489_v28, 1  ;;  %v8572_v38 = vrot.slane %v8571_v25, 4 }
0x1d4f   :  { %v8491_v45 = vmax.f32 %v8489_v28, %v8490_v31  ;;  %v8573_v53 = vmax.f32 %v8571_v25, %v8572_v38 }
0x1d51   :  { %v8500_v35 = vpack.c.bf16 %v8491_v45, %v8491_v45  ;;  %v8574_v63 = vrot.slane %v8573_v53, 2 }
0x1d53   :  { %10828 = vmatmul.mubr.msk.bf16.vlgmr.msra.gmra.mrb[220].mxu1 %vm1357_vm6, %v8500_v35  ;;  %v8575_v12 = vmax.f32 %v8573_v53, %v8574_v63 }
0x1d54   :  { %10832 = vmatpush3.bf16.msra.mxu1 %v11108_v58  ;;  %10839 = vmatprep.mubr.msk.bf16.mxu1 %vm11613_vm4, %v16353_v52 }
0x1d55   :  { %10833 = vmatprep.subr.bf16.mxu1 %v16353_v52  ;;  %v8576_v22 = vrot.slane %v8575_v12, 1 }
0x1d57   :  { %v8577_v13 = vmax.f32 %v8575_v12, %v8576_v22 }
0x1d58   :  { %10834 = vmatpush3.bf16.msra.mxu1 %v11109_v43 }
0x1d59   :  { %10835 = vmatprep.subr.bf16.mxu1 %v16353_v52  ;;  %v8586_v62 = vpack.c.bf16 %v8577_v13, %v8577_v13 }
0x1d5c   :  { %10836 = vmatpush3.bf16.msra.mxu1 %v11110_v20 }
0x1d5d   :  { %10837 = vmatprep.subr.bf16.mxu1 %v16353_v52 }
0x1d60   :  { %10838 = vmatpush3.bf16.msra.mxu1 %v11111_v5 }
0x1d63   :  { %10840 = vmatmul.mubr.msk.bf16.vlgmr.msra.gmra.mrb[220].mxu1 %vm1357_vm6, %v8586_v62 }
0x1e09   :  { %v8257_v26 = vpop.f32.mrb[216].mxu1 }
0x1e0a   :  { %v10843_v49 = vadd.f32 %v8257_v26, %v7816_v34  ;;  %v10765_v33 = vpop.f32.mrb[217].mxu1 }
0x1e0b   :  { %v8260_v2 = vpop.f32.mrb[218].mxu1 }
0x1e0c   :  { %8264 = vst [vmem:[#allocation3] sm:$0x1] %v10843_v49  ;;  %v10766_v56 = vpop.f32.mrb[219].mxu1 }
0x1e1e   :  { %v8476_v1 = vpop.f32.mrb[244].mxu0 }
0x1e1f   :  { %v10817_v10 = vpop.f32.mrb[245].mxu0  ;;  %v8482_v52 = vadd.f32 %v8476_v1, %v7816_v34 }
0x1e20   :  { %v8479_v17 = vpop.f32.mrb[246].mxu0 }
0x1e21   :  { %v10818_v30 = vpop.f32.mrb[247].mxu0 }
0x1e36   :  { %v8648_v42 = vpop.f32.mrb[220].mxu1 }
0x1e37   :  { %v10845_v57 = vadd.f32 %v8648_v42, %v8482_v52  ;;  %v10841_v48 = vpop.f32.mrb[221].mxu1 }
0x1e38   :  { %v8651_v27 = vpop.f32.mrb[222].mxu1 }
0x1e39   :  { %8655 = vst [vmem:[#allocation3 + $0x1] sm:$0x1] %v10845_v57  ;;  %v10842_v24 = vpop.f32.mrb[223].mxu1 }
0x1e3a   :  { %11599 = shalt.err (!%p11596_p4)
}
0x1e3b   :  { %s11600_s3 = scalar_lea.hbm %s16307_s15, 32 }
0x1e3c   :  { %p11601_p5 = scmp.ne.s32.totalorder %s16307_s15, %s11600_s3  ;;  %p11604_p6 = scmp.lt.u32.totalorder %s11600_s3, %s16307_s15 }
0x1e3e   :  { %p11606_p7 = pnand %p11604_p6, %p11601_p5 }
0x1e40   :  { %11609 = shalt.err (!%p11606_p7)
}
0x1e41   :  { %8667 = dma.vmem_to_hbm [thread:$0]  %s8665_s2, 32, %s16307_s15, [#allocation4]  }
0x1e42   :  { %11610 = dma.done.wait [#allocation4], 32  }
0x1e43   :  { %11611 = vsyncadd [#allocation4], 4294967264 }
0x1e44   :  { %8673 = vsyncpa [#allocation4], 1 }

</bundles_post_ra>
